<compile_context>
chip_gen: v6e
topology: v6e:2x2x1
jax: 0.10.0
libtpu: 0.0.40
codegen_flags: <defaults>
</compile_context>

<pallas_src>
import functools

import jax
import jax.numpy as jnp
from jax.experimental import pallas as pl
from jax.experimental.pallas import tpu as pltpu

# --- tiny BERT config (same structure as bert-base-uncased, scaled down) ---
VOCAB, TYPE_VOCAB, MAX_POS = 256, 2, 128
H, N_HEADS, HEAD_DIM, FFN = 128, 4, 32, 512
N_LAYERS, N_CLASSES = 2, 29            # len(target_list) == 29
LN_EPS = 1e-12
CLS_PAD = 128                          # lane-dense padded classifier width


def _row_grid(M):
    tm = 128 if M % 128 == 0 else M
    return tm, M // tm


def _ln(x, g, b):
    mean = jnp.mean(x, axis=-1, keepdims=True)
    xc = x - mean
    var = jnp.mean(xc * xc, axis=-1, keepdims=True)
    return (xc * jax.lax.rsqrt(var + LN_EPS)) * g + b


# --------------------------- Pallas kernels ---------------------------------

def _emb_ln_kernel(x_ref, g_ref, b_ref, o_ref):
    # Residual-free LayerNorm for the summed embeddings.
    o_ref[...] = _ln(x_ref[...], g_ref[...], b_ref[...])


def embed_layernorm(x, gamma, beta):
    M, Hd = x.shape
    tm, nsteps = _row_grid(M)
    return pl.pallas_call(
        _emb_ln_kernel,
        out_shape=jax.ShapeDtypeStruct((M, Hd), jnp.float32),
        grid_spec=pltpu.PrefetchScalarGridSpec(
            num_scalar_prefetch=0,
            grid=(nsteps,),
            in_specs=[
                pl.BlockSpec((tm, Hd), lambda i: (i, 0)),
                pl.BlockSpec((1, Hd), lambda i: (0, 0)),
                pl.BlockSpec((1, Hd), lambda i: (0, 0)),
            ],
            out_specs=pl.BlockSpec((tm, Hd), lambda i: (i, 0)),
        ),
        compiler_params=pltpu.CompilerParams(dimension_semantics=("parallel",)),
    )(x, gamma.reshape(1, Hd), beta.reshape(1, Hd))


def _qkv_kernel(x_ref, w_ref, b_ref, o_ref):
    acc = jnp.dot(x_ref[...].astype(jnp.bfloat16), w_ref[...],
                  preferred_element_type=jnp.float32)
    o_ref[...] = acc + b_ref[...]


def qkv_proj(x, w, b):
    """Fused Q/K/V projection: (M,H) @ (H,3H) + (3H,) -> (M,3H)."""
    M, K = x.shape
    N = w.shape[1]
    tm, nsteps = _row_grid(M)
    return pl.pallas_call(
        _qkv_kernel,
        out_shape=jax.ShapeDtypeStruct((M, N), jnp.float32),
        grid_spec=pltpu.PrefetchScalarGridSpec(
            num_scalar_prefetch=0,
            grid=(nsteps,),
            in_specs=[
                pl.BlockSpec((tm, K), lambda i: (i, 0)),
                pl.BlockSpec((K, N), lambda i: (0, 0)),
                pl.BlockSpec((1, N), lambda i: (0, 0)),
            ],
            out_specs=pl.BlockSpec((tm, N), lambda i: (i, 0)),
        ),
        compiler_params=pltpu.CompilerParams(dimension_semantics=("parallel",)),
    )(x, w, b.reshape(1, N))


def _attn_kernel(qkv_ref, m_ref, o_ref, *, scale):
    qkv = qkv_ref[...].astype(jnp.bfloat16)            # (S, 3H)
    mask = m_ref[...]                                   # (1, S), f32 additive
    ctx = []
    for h in range(N_HEADS):
        q = qkv[:, h * HEAD_DIM:(h + 1) * HEAD_DIM]                    # (S, Dh)
        k = qkv[:, H + h * HEAD_DIM:H + (h + 1) * HEAD_DIM]            # (S, Dh)
        v = qkv[:, 2 * H + h * HEAD_DIM:2 * H + (h + 1) * HEAD_DIM]    # (S, Dh)
        # q @ k^T without materializing a transpose.
        s = jax.lax.dot_general(q, k, (((1,), (1,)), ((), ())),
                                preferred_element_type=jnp.float32)
        s = s * scale + mask                                            # f32
        mx = jnp.max(s, axis=-1, keepdims=True)
        p = jnp.exp(s - mx)
        denom = jnp.sum(p, axis=-1, keepdims=True)
        p = p * pl.reciprocal(denom, approx=True)
        ctx.append(jnp.dot(p.astype(jnp.bfloat16), v,
                           preferred_element_type=jnp.float32))
    # single lane-dense (S, NH*Dh) = (128, 128) store
    o_ref[...] = jnp.concatenate(ctx, axis=-1)


def attention(qkv, ext_mask, B, S):
    """qkv: (B*S, 3H); ext_mask: (B, 1, S) additive mask. Returns (B*S, H)."""
    qkv3 = qkv.reshape(B, S, 3 * H)
    scale = 1.0 / (HEAD_DIM ** 0.5)
    out = pl.pallas_call(
        functools.partial(_attn_kernel, scale=scale),
        out_shape=jax.ShapeDtypeStruct((B, S, H), jnp.float32),
        grid_spec=pltpu.PrefetchScalarGridSpec(
            num_scalar_prefetch=0,
            grid=(B,),
            in_specs=[
                pl.BlockSpec((None, S, 3 * H), lambda b: (b, 0, 0)),
                pl.BlockSpec((None, 1, S), lambda b: (b, 0, 0)),
            ],
            out_specs=pl.BlockSpec((None, S, H), lambda b: (b, 0, 0)),
        ),
        compiler_params=pltpu.CompilerParams(dimension_semantics=("parallel",)),
    )(qkv3, ext_mask)
    return out.reshape(B * S, H)


def _attnout_ln_kernel(ctx_ref, x_ref, w_ref, b_ref, g_ref, bb_ref, o_ref):
    y = (jnp.dot(ctx_ref[...].astype(jnp.bfloat16), w_ref[...],
                 preferred_element_type=jnp.float32)
         + b_ref[...] + x_ref[...])
    o_ref[...] = _ln(y, g_ref[...], bb_ref[...])


def attn_out_layernorm(ctx, x, w, b, gamma, beta):
    """LayerNorm(ctx @ Wo + bo + x) fused into one kernel."""
    M, Hd = x.shape
    tm, nsteps = _row_grid(M)
    return pl.pallas_call(
        _attnout_ln_kernel,
        out_shape=jax.ShapeDtypeStruct((M, Hd), jnp.float32),
        grid_spec=pltpu.PrefetchScalarGridSpec(
            num_scalar_prefetch=0,
            grid=(nsteps,),
            in_specs=[
                pl.BlockSpec((tm, Hd), lambda i: (i, 0)),
                pl.BlockSpec((tm, Hd), lambda i: (i, 0)),
                pl.BlockSpec((Hd, Hd), lambda i: (0, 0)),
                pl.BlockSpec((1, Hd), lambda i: (0, 0)),
                pl.BlockSpec((1, Hd), lambda i: (0, 0)),
                pl.BlockSpec((1, Hd), lambda i: (0, 0)),
            ],
            out_specs=pl.BlockSpec((tm, Hd), lambda i: (i, 0)),
        ),
        compiler_params=pltpu.CompilerParams(dimension_semantics=("parallel",)),
    )(ctx, x, w, b.reshape(1, Hd), gamma.reshape(1, Hd), beta.reshape(1, Hd))


def _ffn_ln_kernel(x_ref, w1_ref, b1_ref, w2_ref, b2_ref, g_ref, bb_ref, o_ref):
    x = x_ref[...]
    h = (jnp.dot(x.astype(jnp.bfloat16), w1_ref[...],
                 preferred_element_type=jnp.float32) + b1_ref[...])
    # TODO(synk): HF BERT uses exact erf-GELU; tanh approximation used here for
    # robust Mosaic lowering (EUP tanh).
    h = jax.nn.gelu(h, approximate=True)
    y = (jnp.dot(h.astype(jnp.bfloat16), w2_ref[...],
                 preferred_element_type=jnp.float32) + b2_ref[...] + x)
    o_ref[...] = _ln(y, g_ref[...], bb_ref[...])


def ffn_layernorm(x, w1, b1, w2, b2, gamma, beta):
    """LayerNorm(gelu(x @ W1 + b1) @ W2 + b2 + x) fused into one kernel."""
    M, Hd = x.shape
    F = w1.shape[1]
    tm, nsteps = _row_grid(M)
    return pl.pallas_call(
        _ffn_ln_kernel,
        out_shape=jax.ShapeDtypeStruct((M, Hd), jnp.float32),
        grid_spec=pltpu.PrefetchScalarGridSpec(
            num_scalar_prefetch=0,
            grid=(nsteps,),
            in_specs=[
                pl.BlockSpec((tm, Hd), lambda i: (i, 0)),
                pl.BlockSpec((Hd, F), lambda i: (0, 0)),
                pl.BlockSpec((1, F), lambda i: (0, 0)),
                pl.BlockSpec((F, Hd), lambda i: (0, 0)),
                pl.BlockSpec((1, Hd), lambda i: (0, 0)),
                pl.BlockSpec((1, Hd), lambda i: (0, 0)),
                pl.BlockSpec((1, Hd), lambda i: (0, 0)),
            ],
            out_specs=pl.BlockSpec((tm, Hd), lambda i: (i, 0)),
        ),
        compiler_params=pltpu.CompilerParams(dimension_semantics=("parallel",)),
    )(x, w1, b1.reshape(1, F), w2, b2.reshape(1, Hd),
      gamma.reshape(1, Hd), beta.reshape(1, Hd))


def _pool_cls_kernel(cls_ref, pw_ref, pb_ref, cw_ref, cb_ref, o_ref):
    pooled = jnp.tanh(
        jnp.dot(cls_ref[...].astype(jnp.bfloat16), pw_ref[...],
                preferred_element_type=jnp.float32) + pb_ref[...])
    # Dropout(p=0.3) in eval/inference mode is the identity.
    o_ref[...] = (jnp.dot(pooled.astype(jnp.bfloat16), cw_ref[...],
                          preferred_element_type=jnp.float32) + cb_ref[...])


def pool_and_classify(cls_tok, pw, pb, cw_pad, cb_pad):
    """Fused pooler(tanh) + classifier; output padded to 128 lanes."""
    B, Hd = cls_tok.shape
    return pl.pallas_call(
        _pool_cls_kernel,
        out_shape=jax.ShapeDtypeStruct((B, CLS_PAD), jnp.float32),
        grid_spec=pltpu.PrefetchScalarGridSpec(
            num_scalar_prefetch=0,
            grid=(1,),
            in_specs=[
                pl.BlockSpec((B, Hd), lambda i: (0, 0)),
                pl.BlockSpec((Hd, Hd), lambda i: (0, 0)),
                pl.BlockSpec((1, Hd), lambda i: (0, 0)),
                pl.BlockSpec((Hd, CLS_PAD), lambda i: (0, 0)),
                pl.BlockSpec((1, CLS_PAD), lambda i: (0, 0)),
            ],
            out_specs=pl.BlockSpec((B, CLS_PAD), lambda i: (0, 0)),
        ),
        compiler_params=pltpu.CompilerParams(dimension_semantics=("arbitrary",)),
    )(cls_tok, pw, pb.reshape(1, Hd), cw_pad, cb_pad.reshape(1, CLS_PAD))


# ------------------------------ model glue -----------------------------------

def init_params(key):
    def nrm(k, shape, dtype=jnp.bfloat16):
        # matmul weights stored bf16 (MXU operands); everything else f32.
        return (0.02 * jax.random.normal(k, shape, jnp.float32)).astype(dtype)

    keys = jax.random.split(key, 4 + N_LAYERS)
    params = {
        "word_emb": nrm(keys[0], (VOCAB, H), jnp.float32),
        "pos_emb": nrm(keys[1], (MAX_POS, H), jnp.float32),
        "type_emb": nrm(keys[2], (TYPE_VOCAB, H), jnp.float32),
        "emb_ln_g": jnp.ones((H,), jnp.float32),
        "emb_ln_b": jnp.zeros((H,), jnp.float32),
        "layers": [],
    }
    for l in range(N_LAYERS):
        lk = jax.random.split(keys[4 + l], 6)
        qkv_w = jnp.concatenate(
            [nrm(lk[0], (H, H)), nrm(lk[1], (H, H)), nrm(lk[2], (H, H))], axis=1)
        params["layers"].append({
            "qkv_w": qkv_w, "qkv_b": jnp.zeros((3 * H,), jnp.float32),
            "o_w": nrm(lk[3], (H, H)), "o_b": jnp.zeros((H,), jnp.float32),
            "ln1_g": jnp.ones((H,), jnp.float32), "ln1_b": jnp.zeros((H,), jnp.float32),
            "ff1_w": nrm(lk[4], (H, FFN)), "ff1_b": jnp.zeros((FFN,), jnp.float32),
            "ff2_w": nrm(lk[5], (FFN, H)), "ff2_b": jnp.zeros((H,), jnp.float32),
            "ln2_g": jnp.ones((H,), jnp.float32), "ln2_b": jnp.zeros((H,), jnp.float32),
        })
    kp, kc = jax.random.split(keys[3])
    params["pool_w"] = nrm(kp, (H, H))
    params["pool_b"] = jnp.zeros((H,), jnp.float32)
    cls_w = nrm(kc, (H, N_CLASSES))
    params["cls_w_pad"] = jnp.zeros((H, CLS_PAD), jnp.bfloat16).at[:, :N_CLASSES].set(cls_w)
    params["cls_b_pad"] = jnp.zeros((CLS_PAD,), jnp.float32)
    return params


def bert_class_forward(params, input_ids, attn_mask, token_type_ids):
    B, S = input_ids.shape

    # --- embeddings: word + position + token_type, then residual-free LN ---
    emb = (params["word_emb"][input_ids]
           + params["pos_emb"][jnp.arange(S)][None, :, :]
           + params["type_emb"][token_type_ids])
    x = embed_layernorm(emb.reshape(B * S, H),
                        params["emb_ln_g"], params["emb_ln_b"])

    # --- extended additive attention mask (HF BERT convention), kept f32 ---
    ext_mask = ((1.0 - attn_mask.astype(jnp.float32)) * -10000.0)[:, None, :]  # (B,1,S)

    # --- transformer encoder layers (4 fused pallas_calls each) ---
    for layer in params["layers"]:
        qkv = qkv_proj(x, layer["qkv_w"], layer["qkv_b"])           # (M, 3H)
        ctx = attention(qkv, ext_mask, B, S)                        # (M, H)
        x = attn_out_layernorm(ctx, x, layer["o_w"], layer["o_b"],
                               layer["ln1_g"], layer["ln1_b"])
        x = ffn_layernorm(x, layer["ff1_w"], layer["ff1_b"],
                          layer["ff2_w"], layer["ff2_b"],
                          layer["ln2_g"], layer["ln2_b"])

    # --- pooler ([CLS] -> dense -> tanh) + dropout(identity) + classifier ---
    cls_tok = x.reshape(B, S, H)[:, 0, :]                           # (B, H)
    logits_pad = pool_and_classify(cls_tok, params["pool_w"], params["pool_b"],
                                   params["cls_w_pad"], params["cls_b_pad"])
    return logits_pad[:, :N_CLASSES]                                # (B, 29)


if __name__ == "__main__":
    B, S = 2, 128
    key = jax.random.PRNGKey(0)
    kp, ki = jax.random.split(key)
    params = init_params(kp)

    input_ids = jax.random.randint(ki, (B, S), 0, VOCAB, dtype=jnp.int32)
    attn_mask = jnp.ones((B, S), dtype=jnp.int32)
    token_type_ids = jnp.zeros((B, S), dtype=jnp.int32)

    fwd = jax.jit(bert_class_forward)
    logits = fwd(params, input_ids, attn_mask, token_type_ids)
    logits = jax.block_until_ready(logits)
    assert logits.shape == (B, N_CLASSES) and logits.dtype == jnp.float32
    assert bool(jnp.all(jnp.isfinite(logits)))
    print("KERNEL_OK")
</pallas_src>

<mosaic_0001>
module attributes {stable_mosaic.version = 11 : i64} {
  func.func @_emb_ln_kernel(%arg0: i32, %arg1: memref<128x128xf32, #tpu.memory_space<vmem>>, %arg2: memref<1x128xf32, #tpu.memory_space<vmem>>, %arg3: memref<1x128xf32, #tpu.memory_space<vmem>>, %arg4: memref<128x128xf32, #tpu.memory_space<vmem>>) attributes {dimension_semantics = [#tpu.dimension_semantics<parallel>], iteration_bounds = array<i64: 2>, scalar_prefetch = 0 : i64, scratch_operands = 0 : i64, tpu.core_type = #tpu.core_type<tc>, window_params = [{transform_indices = @transform_0, window_bounds = array<i64: 128, 128>}, {pipeline_mode = #tpu.pipeline_mode<synchronous>, transform_indices = @transform_1, window_bounds = array<i64: 1, 128>}, {pipeline_mode = #tpu.pipeline_mode<synchronous>, transform_indices = @transform_2, window_bounds = array<i64: 1, 128>}, {transform_indices = @transform_3, window_bounds = array<i64: 128, 128>}]} {
    %c0 = arith.constant 0 : index
    %c0_0 = arith.constant 0 : index
    %0 = vector.load %arg1[%c0, %c0_0] : memref<128x128xf32, #tpu.memory_space<vmem>>, vector<128x128xf32>
    %c0_1 = arith.constant 0 : index
    %c0_2 = arith.constant 0 : index
    %1 = vector.load %arg2[%c0_1, %c0_2] : memref<1x128xf32, #tpu.memory_space<vmem>>, vector<1x128xf32>
    %c0_3 = arith.constant 0 : index
    %c0_4 = arith.constant 0 : index
    %2 = vector.load %arg3[%c0_3, %c0_4] : memref<1x128xf32, #tpu.memory_space<vmem>>, vector<1x128xf32>
    %cst = arith.constant dense<0.000000e+00> : vector<128xf32>
    %3 = vector.multi_reduction <add>, %0, %cst [1] : vector<128x128xf32> to vector<128xf32>
    %4 = vector.shape_cast %3 : vector<128xf32> to vector<128x1xf32>
    %cst_5 = arith.constant 1.280000e+02 : f32
    %5 = vector.broadcast %cst_5 : f32 to vector<128x1xf32>
    %6 = arith.divf %4, %5 : vector<128x1xf32>
    %7 = vector.broadcast %6 : vector<128x1xf32> to vector<128x128xf32>
    %8 = arith.subf %0, %7 : vector<128x128xf32>
    %9 = arith.mulf %8, %8 : vector<128x128xf32>
    %cst_6 = arith.constant dense<0.000000e+00> : vector<128xf32>
    %10 = vector.multi_reduction <add>, %9, %cst_6 [1] : vector<128x128xf32> to vector<128xf32>
    %11 = vector.shape_cast %10 : vector<128xf32> to vector<128x1xf32>
    %cst_7 = arith.constant 1.280000e+02 : f32
    %12 = vector.broadcast %cst_7 : f32 to vector<128x1xf32>
    %13 = arith.divf %11, %12 : vector<128x1xf32>
    %cst_8 = arith.constant 9.99999996E-13 : f32
    %14 = vector.broadcast %cst_8 : f32 to vector<128x1xf32>
    %15 = arith.addf %13, %14 : vector<128x1xf32>
    %16 = math.rsqrt %15 : vector<128x1xf32>
    %17 = vector.broadcast %16 : vector<128x1xf32> to vector<128x128xf32>
    %18 = arith.mulf %8, %17 : vector<128x128xf32>
    %19 = vector.broadcast %1 : vector<1x128xf32> to vector<128x128xf32>
    %20 = arith.mulf %18, %19 : vector<128x128xf32>
    %21 = vector.broadcast %2 : vector<1x128xf32> to vector<128x128xf32>
    %22 = arith.addf %20, %21 : vector<128x128xf32>
    %c0_9 = arith.constant 0 : index
    %c0_10 = arith.constant 0 : index
    %23 = vector.load %arg4[%c0_9, %c0_10] : memref<128x128xf32, #tpu.memory_space<vmem>>, vector<128x128xf32>
    tpu.vector_store %arg4[%c0_9, %c0_10], %22 {strides = array<i32>} : memref<128x128xf32, #tpu.memory_space<vmem>>, vector<128x128xf32>,
    return
  }
  func.func @transform_0(%arg0: i32) -> (i32, i32) {
    %c0_i32 = arith.constant 0 : i32
    %c0_i32_0 = arith.constant 0 : i32
    return %arg0, %c0_i32 : i32, i32
  }
  func.func @transform_1(%arg0: i32) -> (i32, i32) {
    %c0_i32 = arith.constant 0 : i32
    %c0_i32_0 = arith.constant 0 : i32
    %c0_i32_1 = arith.constant 0 : i32
    return %c0_i32, %c0_i32_0 : i32, i32
  }
  func.func @transform_2(%arg0: i32) -> (i32, i32) {
    %c0_i32 = arith.constant 0 : i32
    %c0_i32_0 = arith.constant 0 : i32
    %c0_i32_1 = arith.constant 0 : i32
    return %c0_i32, %c0_i32_0 : i32, i32
  }
  func.func @transform_3(%arg0: i32) -> (i32, i32) {
    %c0_i32 = arith.constant 0 : i32
    %c0_i32_0 = arith.constant 0 : i32
    return %arg0, %c0_i32 : i32, i32
  }
}

module attributes {stable_mosaic.version = 11 : i64} {
  func.func @_qkv_kernel(%arg0: i32, %arg1: memref<128x128xf32, #tpu.memory_space<vmem>>, %arg2: memref<128x384xbf16, #tpu.memory_space<vmem>>, %arg3: memref<1x384xf32, #tpu.memory_space<vmem>>, %arg4: memref<128x384xf32, #tpu.memory_space<vmem>>) attributes {dimension_semantics = [#tpu.dimension_semantics<parallel>], iteration_bounds = array<i64: 2>, scalar_prefetch = 0 : i64, scratch_operands = 0 : i64, tpu.core_type = #tpu.core_type<tc>, window_params = [{transform_indices = @transform_0, window_bounds = array<i64: 128, 128>}, {pipeline_mode = #tpu.pipeline_mode<synchronous>, transform_indices = @transform_1, window_bounds = array<i64: 128, 384>}, {pipeline_mode = #tpu.pipeline_mode<synchronous>, transform_indices = @transform_2, window_bounds = array<i64: 1, 384>}, {transform_indices = @transform_3, window_bounds = array<i64: 128, 384>}]} {
    %c0 = arith.constant 0 : index
    %c0_0 = arith.constant 0 : index
    %0 = vector.load %arg1[%c0, %c0_0] : memref<128x128xf32, #tpu.memory_space<vmem>>, vector<128x128xf32>
    %1 = arith.truncf %0 : vector<128x128xf32> to vector<128x128xbf16>
    %c0_1 = arith.constant 0 : index
    %c0_2 = arith.constant 0 : index
    %2 = vector.load %arg2[%c0_1, %c0_2] : memref<128x384xbf16, #tpu.memory_space<vmem>>, vector<128x384xbf16>
    %cst = arith.constant dense<0.000000e+00> : vector<128x384xf32>
    %3 = tpu.matmul %1, %2, %cst {dimension_numbers = #tpu.dot_dimension_numbers<[1], [0], [0], [1], [0, 0, 1, 1], [], []>} : vector<128x128xbf16>, vector<128x384xbf16>, vector<128x384xf32> -> vector<128x384xf32>
    %c0_3 = arith.constant 0 : index
    %c0_4 = arith.constant 0 : index
    %4 = vector.load %arg3[%c0_3, %c0_4] : memref<1x384xf32, #tpu.memory_space<vmem>>, vector<1x384xf32>
    %5 = vector.broadcast %4 : vector<1x384xf32> to vector<128x384xf32>
    %6 = arith.addf %3, %5 : vector<128x384xf32>
    %c0_5 = arith.constant 0 : index
    %c0_6 = arith.constant 0 : index
    %7 = vector.load %arg4[%c0_5, %c0_6] : memref<128x384xf32, #tpu.memory_space<vmem>>, vector<128x384xf32>
    tpu.vector_store %arg4[%c0_5, %c0_6], %6 {strides = array<i32>} : memref<128x384xf32, #tpu.memory_space<vmem>>, vector<128x384xf32>,
    return
  }
  func.func @transform_0(%arg0: i32) -> (i32, i32) {
    %c0_i32 = arith.constant 0 : i32
    %c0_i32_0 = arith.constant 0 : i32
    return %arg0, %c0_i32 : i32, i32
  }
  func.func @transform_1(%arg0: i32) -> (i32, i32) {
    %c0_i32 = arith.constant 0 : i32
    %c0_i32_0 = arith.constant 0 : i32
    %c0_i32_1 = arith.constant 0 : i32
    return %c0_i32, %c0_i32_0 : i32, i32
  }
  func.func @transform_2(%arg0: i32) -> (i32, i32) {
    %c0_i32 = arith.constant 0 : i32
    %c0_i32_0 = arith.constant 0 : i32
    %c0_i32_1 = arith.constant 0 : i32
    return %c0_i32, %c0_i32_0 : i32, i32
  }
  func.func @transform_3(%arg0: i32) -> (i32, i32) {
    %c0_i32 = arith.constant 0 : i32
    %c0_i32_0 = arith.constant 0 : i32
    return %arg0, %c0_i32 : i32, i32
  }
}

module attributes {stable_mosaic.version = 11 : i64} {
  func.func @_attn_kernel(%arg0: i32, %arg1: memref<1x128x384xf32, #tpu.memory_space<vmem>>, %arg2: memref<1x1x128xf32, #tpu.memory_space<vmem>>, %arg3: memref<1x128x128xf32, #tpu.memory_space<vmem>>) attributes {dimension_semantics = [#tpu.dimension_semantics<parallel>], iteration_bounds = array<i64: 2>, scalar_prefetch = 0 : i64, scratch_operands = 0 : i64, tpu.core_type = #tpu.core_type<tc>, window_params = [{transform_indices = @transform_0, window_bounds = array<i64: 1, 128, 384>}, {transform_indices = @transform_1, window_bounds = array<i64: 1, 1, 128>}, {transform_indices = @transform_2, window_bounds = array<i64: 1, 128, 128>}]} {
    %c0 = arith.constant 0 : index
    %c0_0 = arith.constant 0 : index
    %c0_1 = arith.constant 0 : index
    %0 = vector.load %arg1[%c0, %c0_0, %c0_1] : memref<1x128x384xf32, #tpu.memory_space<vmem>>, vector<1x128x384xf32>
    %1 = vector.shape_cast %0 : vector<1x128x384xf32> to vector<128x384xf32>
    %2 = arith.truncf %1 : vector<128x384xf32> to vector<128x384xbf16>
    %c0_2 = arith.constant 0 : index
    %c0_3 = arith.constant 0 : index
    %c0_4 = arith.constant 0 : index
    %3 = vector.load %arg2[%c0_2, %c0_3, %c0_4] : memref<1x1x128xf32, #tpu.memory_space<vmem>>, vector<1x1x128xf32>
    %4 = vector.shape_cast %3 : vector<1x1x128xf32> to vector<1x128xf32>
    %5 = vector.extract_strided_slice %2 {offsets = [0, 0], sizes = [128, 32], strides = [1, 1]} : vector<128x384xbf16> to vector<128x32xbf16>
    %6 = vector.extract_strided_slice %2 {offsets = [0, 128], sizes = [128, 32], strides = [1, 1]} : vector<128x384xbf16> to vector<128x32xbf16>
    %7 = vector.extract_strided_slice %2 {offsets = [0, 256], sizes = [128, 32], strides = [1, 1]} : vector<128x384xbf16> to vector<128x32xbf16>
    %cst = arith.constant dense<0.000000e+00> : vector<128x128xf32>
    %8 = tpu.matmul %5, %6, %cst {dimension_numbers = #tpu.dot_dimension_numbers<[1], [1], [0], [0], [0, 0, 1, 0], [], []>} : vector<128x32xbf16>, vector<128x32xbf16>, vector<128x128xf32> -> vector<128x128xf32>
    %cst_5 = arith.constant 0.176776692 : f32
    %9 = vector.broadcast %cst_5 : f32 to vector<128x128xf32>
    %10 = arith.mulf %8, %9 : vector<128x128xf32>
    %11 = vector.broadcast %4 : vector<1x128xf32> to vector<128x128xf32>
    %12 = arith.addf %10, %11 : vector<128x128xf32>
    %cst_6 = arith.constant dense<0xFF800000> : vector<128xf32>
    %13 = vector.multi_reduction <maximumf>, %12, %cst_6 [1] : vector<128x128xf32> to vector<128xf32>
    %14 = vector.shape_cast %13 : vector<128xf32> to vector<128x1xf32>
    %15 = vector.broadcast %14 : vector<128x1xf32> to vector<128x128xf32>
    %16 = arith.subf %12, %15 : vector<128x128xf32>
    %17 = math.exp %16 : vector<128x128xf32>
    %cst_7 = arith.constant dense<0.000000e+00> : vector<128xf32>
    %18 = vector.multi_reduction <add>, %17, %cst_7 [1] : vector<128x128xf32> to vector<128xf32>
    %19 = vector.shape_cast %18 : vector<128xf32> to vector<128x1xf32>
    %20 = tpu.reciprocal %19 {approx = true} : vector<128x1xf32> -> vector<128x1xf32>
    %21 = vector.broadcast %20 : vector<128x1xf32> to vector<128x128xf32>
    %22 = arith.mulf %17, %21 : vector<128x128xf32>
    %23 = arith.truncf %22 : vector<128x128xf32> to vector<128x128xbf16>
    %cst_8 = arith.constant dense<0.000000e+00> : vector<128x32xf32>
    %24 = tpu.matmul %23, %7, %cst_8 {dimension_numbers = #tpu.dot_dimension_numbers<[1], [0], [0], [1], [0, 0, 1, 1], [], []>} : vector<128x128xbf16>, vector<128x32xbf16>, vector<128x32xf32> -> vector<128x32xf32>
    %25 = vector.extract_strided_slice %2 {offsets = [0, 32], sizes = [128, 32], strides = [1, 1]} : vector<128x384xbf16> to vector<128x32xbf16>
    %26 = vector.extract_strided_slice %2 {offsets = [0, 160], sizes = [128, 32], strides = [1, 1]} : vector<128x384xbf16> to vector<128x32xbf16>
    %27 = vector.extract_strided_slice %2 {offsets = [0, 288], sizes = [128, 32], strides = [1, 1]} : vector<128x384xbf16> to vector<128x32xbf16>
    %cst_9 = arith.constant dense<0.000000e+00> : vector<128x128xf32>
    %28 = tpu.matmul %25, %26, %cst_9 {dimension_numbers = #tpu.dot_dimension_numbers<[1], [1], [0], [0], [0, 0, 1, 0], [], []>} : vector<128x32xbf16>, vector<128x32xbf16>, vector<128x128xf32> -> vector<128x128xf32>
    %cst_10 = arith.constant 0.176776692 : f32
    %29 = vector.broadcast %cst_10 : f32 to vector<128x128xf32>
    %30 = arith.mulf %28, %29 : vector<128x128xf32>
    %31 = vector.broadcast %4 : vector<1x128xf32> to vector<128x128xf32>
    %32 = arith.addf %30, %31 : vector<128x128xf32>
    %cst_11 = arith.constant dense<0xFF800000> : vector<128xf32>
    %33 = vector.multi_reduction <maximumf>, %32, %cst_11 [1] : vector<128x128xf32> to vector<128xf32>
    %34 = vector.shape_cast %33 : vector<128xf32> to vector<128x1xf32>
    %35 = vector.broadcast %34 : vector<128x1xf32> to vector<128x128xf32>
    %36 = arith.subf %32, %35 : vector<128x128xf32>
    %37 = math.exp %36 : vector<128x128xf32>
    %cst_12 = arith.constant dense<0.000000e+00> : vector<128xf32>
    %38 = vector.multi_reduction <add>, %37, %cst_12 [1] : vector<128x128xf32> to vector<128xf32>
    %39 = vector.shape_cast %38 : vector<128xf32> to vector<128x1xf32>
    %40 = tpu.reciprocal %39 {approx = true} : vector<128x1xf32> -> vector<128x1xf32>
    %41 = vector.broadcast %40 : vector<128x1xf32> to vector<128x128xf32>
    %42 = arith.mulf %37, %41 : vector<128x128xf32>
    %43 = arith.truncf %42 : vector<128x128xf32> to vector<128x128xbf16>
    %cst_13 = arith.constant dense<0.000000e+00> : vector<128x32xf32>
    %44 = tpu.matmul %43, %27, %cst_13 {dimension_numbers = #tpu.dot_dimension_numbers<[1], [0], [0], [1], [0, 0, 1, 1], [], []>} : vector<128x128xbf16>, vector<128x32xbf16>, vector<128x32xf32> -> vector<128x32xf32>
    %45 = vector.extract_strided_slice %2 {offsets = [0, 64], sizes = [128, 32], strides = [1, 1]} : vector<128x384xbf16> to vector<128x32xbf16>
    %46 = vector.extract_strided_slice %2 {offsets = [0, 192], sizes = [128, 32], strides = [1, 1]} : vector<128x384xbf16> to vector<128x32xbf16>
    %47 = vector.extract_strided_slice %2 {offsets = [0, 320], sizes = [128, 32], strides = [1, 1]} : vector<128x384xbf16> to vector<128x32xbf16>
    %cst_14 = arith.constant dense<0.000000e+00> : vector<128x128xf32>
    %48 = tpu.matmul %45, %46, %cst_14 {dimension_numbers = #tpu.dot_dimension_numbers<[1], [1], [0], [0], [0, 0, 1, 0], [], []>} : vector<128x32xbf16>, vector<128x32xbf16>, vector<128x128xf32> -> vector<128x128xf32>
    %cst_15 = arith.constant 0.176776692 : f32
    %49 = vector.broadcast %cst_15 : f32 to vector<128x128xf32>
    %50 = arith.mulf %48, %49 : vector<128x128xf32>
    %51 = vector.broadcast %4 : vector<1x128xf32> to vector<128x128xf32>
    %52 = arith.addf %50, %51 : vector<128x128xf32>
    %cst_16 = arith.constant dense<0xFF800000> : vector<128xf32>
    %53 = vector.multi_reduction <maximumf>, %52, %cst_16 [1] : vector<128x128xf32> to vector<128xf32>
    %54 = vector.shape_cast %53 : vector<128xf32> to vector<128x1xf32>
    %55 = vector.broadcast %54 : vector<128x1xf32> to vector<128x128xf32>
    %56 = arith.subf %52, %55 : vector<128x128xf32>
    %57 = math.exp %56 : vector<128x128xf32>
    %cst_17 = arith.constant dense<0.000000e+00> : vector<128xf32>
    %58 = vector.multi_reduction <add>, %57, %cst_17 [1] : vector<128x128xf32> to vector<128xf32>
    %59 = vector.shape_cast %58 : vector<128xf32> to vector<128x1xf32>
    %60 = tpu.reciprocal %59 {approx = true} : vector<128x1xf32> -> vector<128x1xf32>
    %61 = vector.broadcast %60 : vector<128x1xf32> to vector<128x128xf32>
    %62 = arith.mulf %57, %61 : vector<128x128xf32>
    %63 = arith.truncf %62 : vector<128x128xf32> to vector<128x128xbf16>
    %cst_18 = arith.constant dense<0.000000e+00> : vector<128x32xf32>
    %64 = tpu.matmul %63, %47, %cst_18 {dimension_numbers = #tpu.dot_dimension_numbers<[1], [0], [0], [1], [0, 0, 1, 1], [], []>} : vector<128x128xbf16>, vector<128x32xbf16>, vector<128x32xf32> -> vector<128x32xf32>
    %65 = vector.extract_strided_slice %2 {offsets = [0, 96], sizes = [128, 32], strides = [1, 1]} : vector<128x384xbf16> to vector<128x32xbf16>
    %66 = vector.extract_strided_slice %2 {offsets = [0, 224], sizes = [128, 32], strides = [1, 1]} : vector<128x384xbf16> to vector<128x32xbf16>
    %67 = vector.extract_strided_slice %2 {offsets = [0, 352], sizes = [128, 32], strides = [1, 1]} : vector<128x384xbf16> to vector<128x32xbf16>
    %cst_19 = arith.constant dense<0.000000e+00> : vector<128x128xf32>
    %68 = tpu.matmul %65, %66, %cst_19 {dimension_numbers = #tpu.dot_dimension_numbers<[1], [1], [0], [0], [0, 0, 1, 0], [], []>} : vector<128x32xbf16>, vector<128x32xbf16>, vector<128x128xf32> -> vector<128x128xf32>
    %cst_20 = arith.constant 0.176776692 : f32
    %69 = vector.broadcast %cst_20 : f32 to vector<128x128xf32>
    %70 = arith.mulf %68, %69 : vector<128x128xf32>
    %71 = vector.broadcast %4 : vector<1x128xf32> to vector<128x128xf32>
    %72 = arith.addf %70, %71 : vector<128x128xf32>
    %cst_21 = arith.constant dense<0xFF800000> : vector<128xf32>
    %73 = vector.multi_reduction <maximumf>, %72, %cst_21 [1] : vector<128x128xf32> to vector<128xf32>
    %74 = vector.shape_cast %73 : vector<128xf32> to vector<128x1xf32>
    %75 = vector.broadcast %74 : vector<128x1xf32> to vector<128x128xf32>
    %76 = arith.subf %72, %75 : vector<128x128xf32>
    %77 = math.exp %76 : vector<128x128xf32>
    %cst_22 = arith.constant dense<0.000000e+00> : vector<128xf32>
    %78 = vector.multi_reduction <add>, %77, %cst_22 [1] : vector<128x128xf32> to vector<128xf32>
    %79 = vector.shape_cast %78 : vector<128xf32> to vector<128x1xf32>
    %80 = tpu.reciprocal %79 {approx = true} : vector<128x1xf32> -> vector<128x1xf32>
    %81 = vector.broadcast %80 : vector<128x1xf32> to vector<128x128xf32>
    %82 = arith.mulf %77, %81 : vector<128x128xf32>
    %83 = arith.truncf %82 : vector<128x128xf32> to vector<128x128xbf16>
    %cst_23 = arith.constant dense<0.000000e+00> : vector<128x32xf32>
    %84 = tpu.matmul %83, %67, %cst_23 {dimension_numbers = #tpu.dot_dimension_numbers<[1], [0], [0], [1], [0, 0, 1, 1], [], []>} : vector<128x128xbf16>, vector<128x32xbf16>, vector<128x32xf32> -> vector<128x32xf32>
    %85 = tpu.concatenate %24, %44, %64, %84 in 1 : vector<128x32xf32>, vector<128x32xf32>, vector<128x32xf32>, vector<128x32xf32> -> vector<128x128xf32>
    %c0_24 = arith.constant 0 : index
    %c0_25 = arith.constant 0 : index
    %c0_26 = arith.constant 0 : index
    %86 = vector.load %arg3[%c0_24, %c0_25, %c0_26] : memref<1x128x128xf32, #tpu.memory_space<vmem>>, vector<1x128x128xf32>
    %87 = vector.shape_cast %86 : vector<1x128x128xf32> to vector<128x128xf32>
    %88 = vector.shape_cast %85 : vector<128x128xf32> to vector<1x128x128xf32>
    tpu.vector_store %arg3[%c0_24, %c0_25, %c0_26], %88 {strides = array<i32>} : memref<1x128x128xf32, #tpu.memory_space<vmem>>, vector<1x128x128xf32>,
    return
  }
  func.func @transform_0(%arg0: i32) -> (i32, i32, i32) {
    %c0_i32 = arith.constant 0 : i32
    %c0_i32_0 = arith.constant 0 : i32
    %c0_i32_1 = arith.constant 0 : i32
    return %arg0, %c0_i32, %c0_i32_0 : i32, i32, i32
  }
  func.func @transform_1(%arg0: i32) -> (i32, i32, i32) {
    %c0_i32 = arith.constant 0 : i32
    %c0_i32_0 = arith.constant 0 : i32
    %c0_i32_1 = arith.constant 0 : i32
    return %arg0, %c0_i32, %c0_i32_0 : i32, i32, i32
  }
  func.func @transform_2(%arg0: i32) -> (i32, i32, i32) {
    %c0_i32 = arith.constant 0 : i32
    %c0_i32_0 = arith.constant 0 : i32
    %c0_i32_1 = arith.constant 0 : i32
    return %arg0, %c0_i32, %c0_i32_0 : i32, i32, i32
  }
}

module attributes {stable_mosaic.version = 11 : i64} {
  func.func @_attnout_ln_kernel(%arg0: i32, %arg1: memref<128x128xf32, #tpu.memory_space<vmem>>, %arg2: memref<128x128xf32, #tpu.memory_space<vmem>>, %arg3: memref<128x128xbf16, #tpu.memory_space<vmem>>, %arg4: memref<1x128xf32, #tpu.memory_space<vmem>>, %arg5: memref<1x128xf32, #tpu.memory_space<vmem>>, %arg6: memref<1x128xf32, #tpu.memory_space<vmem>>, %arg7: memref<128x128xf32, #tpu.memory_space<vmem>>) attributes {dimension_semantics = [#tpu.dimension_semantics<parallel>], iteration_bounds = array<i64: 2>, scalar_prefetch = 0 : i64, scratch_operands = 0 : i64, tpu.core_type = #tpu.core_type<tc>, window_params = [{transform_indices = @transform_0, window_bounds = array<i64: 128, 128>}, {transform_indices = @transform_1, window_bounds = array<i64: 128, 128>}, {pipeline_mode = #tpu.pipeline_mode<synchronous>, transform_indices = @transform_2, window_bounds = array<i64: 128, 128>}, {pipeline_mode = #tpu.pipeline_mode<synchronous>, transform_indices = @transform_3, window_bounds = array<i64: 1, 128>}, {pipeline_mode = #tpu.pipeline_mode<synchronous>, transform_indices = @transform_4, window_bounds = array<i64: 1, 128>}, {pipeline_mode = #tpu.pipeline_mode<synchronous>, transform_indices = @transform_5, window_bounds = array<i64: 1, 128>}, {transform_indices = @transform_6, window_bounds = array<i64: 128, 128>}]} {
    %c0 = arith.constant 0 : index
    %c0_0 = arith.constant 0 : index
    %0 = vector.load %arg1[%c0, %c0_0] : memref<128x128xf32, #tpu.memory_space<vmem>>, vector<128x128xf32>
    %1 = arith.truncf %0 : vector<128x128xf32> to vector<128x128xbf16>
    %c0_1 = arith.constant 0 : index
    %c0_2 = arith.constant 0 : index
    %2 = vector.load %arg3[%c0_1, %c0_2] : memref<128x128xbf16, #tpu.memory_space<vmem>>, vector<128x128xbf16>
    %cst = arith.constant dense<0.000000e+00> : vector<128x128xf32>
    %3 = tpu.matmul %1, %2, %cst {dimension_numbers = #tpu.dot_dimension_numbers<[1], [0], [0], [1], [0, 0, 1, 1], [], []>} : vector<128x128xbf16>, vector<128x128xbf16>, vector<128x128xf32> -> vector<128x128xf32>
    %c0_3 = arith.constant 0 : index
    %c0_4 = arith.constant 0 : index
    %4 = vector.load %arg4[%c0_3, %c0_4] : memref<1x128xf32, #tpu.memory_space<vmem>>, vector<1x128xf32>
    %5 = vector.broadcast %4 : vector<1x128xf32> to vector<128x128xf32>
    %6 = arith.addf %3, %5 : vector<128x128xf32>
    %c0_5 = arith.constant 0 : index
    %c0_6 = arith.constant 0 : index
    %7 = vector.load %arg2[%c0_5, %c0_6] : memref<128x128xf32, #tpu.memory_space<vmem>>, vector<128x128xf32>
    %8 = arith.addf %6, %7 : vector<128x128xf32>
    %c0_7 = arith.constant 0 : index
    %c0_8 = arith.constant 0 : index
    %9 = vector.load %arg5[%c0_7, %c0_8] : memref<1x128xf32, #tpu.memory_space<vmem>>, vector<1x128xf32>
    %c0_9 = arith.constant 0 : index
    %c0_10 = arith.constant 0 : index
    %10 = vector.load %arg6[%c0_9, %c0_10] : memref<1x128xf32, #tpu.memory_space<vmem>>, vector<1x128xf32>
    %cst_11 = arith.constant dense<0.000000e+00> : vector<128xf32>
    %11 = vector.multi_reduction <add>, %8, %cst_11 [1] : vector<128x128xf32> to vector<128xf32>
    %12 = vector.shape_cast %11 : vector<128xf32> to vector<128x1xf32>
    %cst_12 = arith.constant 1.280000e+02 : f32
    %13 = vector.broadcast %cst_12 : f32 to vector<128x1xf32>
    %14 = arith.divf %12, %13 : vector<128x1xf32>
    %15 = vector.broadcast %14 : vector<128x1xf32> to vector<128x128xf32>
    %16 = arith.subf %8, %15 : vector<128x128xf32>
    %17 = arith.mulf %16, %16 : vector<128x128xf32>
    %cst_13 = arith.constant dense<0.000000e+00> : vector<128xf32>
    %18 = vector.multi_reduction <add>, %17, %cst_13 [1] : vector<128x128xf32> to vector<128xf32>
    %19 = vector.shape_cast %18 : vector<128xf32> to vector<128x1xf32>
    %cst_14 = arith.constant 1.280000e+02 : f32
    %20 = vector.broadcast %cst_14 : f32 to vector<128x1xf32>
    %21 = arith.divf %19, %20 : vector<128x1xf32>
    %cst_15 = arith.constant 9.99999996E-13 : f32
    %22 = vector.broadcast %cst_15 : f32 to vector<128x1xf32>
    %23 = arith.addf %21, %22 : vector<128x1xf32>
    %24 = math.rsqrt %23 : vector<128x1xf32>
    %25 = vector.broadcast %24 : vector<128x1xf32> to vector<128x128xf32>
    %26 = arith.mulf %16, %25 : vector<128x128xf32>
    %27 = vector.broadcast %9 : vector<1x128xf32> to vector<128x128xf32>
    %28 = arith.mulf %26, %27 : vector<128x128xf32>
    %29 = vector.broadcast %10 : vector<1x128xf32> to vector<128x128xf32>
    %30 = arith.addf %28, %29 : vector<128x128xf32>
    %c0_16 = arith.constant 0 : index
    %c0_17 = arith.constant 0 : index
    %31 = vector.load %arg7[%c0_16, %c0_17] : memref<128x128xf32, #tpu.memory_space<vmem>>, vector<128x128xf32>
    tpu.vector_store %arg7[%c0_16, %c0_17], %30 {strides = array<i32>} : memref<128x128xf32, #tpu.memory_space<vmem>>, vector<128x128xf32>,
    return
  }
  func.func @transform_0(%arg0: i32) -> (i32, i32) {
    %c0_i32 = arith.constant 0 : i32
    %c0_i32_0 = arith.constant 0 : i32
    return %arg0, %c0_i32 : i32, i32
  }
  func.func @transform_1(%arg0: i32) -> (i32, i32) {
    %c0_i32 = arith.constant 0 : i32
    %c0_i32_0 = arith.constant 0 : i32
    return %arg0, %c0_i32 : i32, i32
  }
  func.func @transform_2(%arg0: i32) -> (i32, i32) {
    %c0_i32 = arith.constant 0 : i32
    %c0_i32_0 = arith.constant 0 : i32
    %c0_i32_1 = arith.constant 0 : i32
    return %c0_i32, %c0_i32_0 : i32, i32
  }
  func.func @transform_3(%arg0: i32) -> (i32, i32) {
    %c0_i32 = arith.constant 0 : i32
    %c0_i32_0 = arith.constant 0 : i32
    %c0_i32_1 = arith.constant 0 : i32
    return %c0_i32, %c0_i32_0 : i32, i32
  }
  func.func @transform_4(%arg0: i32) -> (i32, i32) {
    %c0_i32 = arith.constant 0 : i32
    %c0_i32_0 = arith.constant 0 : i32
    %c0_i32_1 = arith.constant 0 : i32
    return %c0_i32, %c0_i32_0 : i32, i32
  }
  func.func @transform_5(%arg0: i32) -> (i32, i32) {
    %c0_i32 = arith.constant 0 : i32
    %c0_i32_0 = arith.constant 0 : i32
    %c0_i32_1 = arith.constant 0 : i32
    return %c0_i32, %c0_i32_0 : i32, i32
  }
  func.func @transform_6(%arg0: i32) -> (i32, i32) {
    %c0_i32 = arith.constant 0 : i32
    %c0_i32_0 = arith.constant 0 : i32
    return %arg0, %c0_i32 : i32, i32
  }
}

module attributes {stable_mosaic.version = 11 : i64} {
  func.func @_ffn_ln_kernel(%arg0: i32, %arg1: memref<128x128xf32, #tpu.memory_space<vmem>>, %arg2: memref<128x512xbf16, #tpu.memory_space<vmem>>, %arg3: memref<1x512xf32, #tpu.memory_space<vmem>>, %arg4: memref<512x128xbf16, #tpu.memory_space<vmem>>, %arg5: memref<1x128xf32, #tpu.memory_space<vmem>>, %arg6: memref<1x128xf32, #tpu.memory_space<vmem>>, %arg7: memref<1x128xf32, #tpu.memory_space<vmem>>, %arg8: memref<128x128xf32, #tpu.memory_space<vmem>>) attributes {dimension_semantics = [#tpu.dimension_semantics<parallel>], iteration_bounds = array<i64: 2>, scalar_prefetch = 0 : i64, scratch_operands = 0 : i64, tpu.core_type = #tpu.core_type<tc>, window_params = [{transform_indices = @transform_0, window_bounds = array<i64: 128, 128>}, {pipeline_mode = #tpu.pipeline_mode<synchronous>, transform_indices = @transform_1, window_bounds = array<i64: 128, 512>}, {pipeline_mode = #tpu.pipeline_mode<synchronous>, transform_indices = @transform_2, window_bounds = array<i64: 1, 512>}, {pipeline_mode = #tpu.pipeline_mode<synchronous>, transform_indices = @transform_3, window_bounds = array<i64: 512, 128>}, {pipeline_mode = #tpu.pipeline_mode<synchronous>, transform_indices = @transform_4, window_bounds = array<i64: 1, 128>}, {pipeline_mode = #tpu.pipeline_mode<synchronous>, transform_indices = @transform_5, window_bounds = array<i64: 1, 128>}, {pipeline_mode = #tpu.pipeline_mode<synchronous>, transform_indices = @transform_6, window_bounds = array<i64: 1, 128>}, {transform_indices = @transform_7, window_bounds = array<i64: 128, 128>}]} {
    %c0 = arith.constant 0 : index
    %c0_0 = arith.constant 0 : index
    %0 = vector.load %arg1[%c0, %c0_0] : memref<128x128xf32, #tpu.memory_space<vmem>>, vector<128x128xf32>
    %1 = arith.truncf %0 : vector<128x128xf32> to vector<128x128xbf16>
    %c0_1 = arith.constant 0 : index
    %c0_2 = arith.constant 0 : index
    %2 = vector.load %arg2[%c0_1, %c0_2] : memref<128x512xbf16, #tpu.memory_space<vmem>>, vector<128x512xbf16>
    %cst = arith.constant dense<0.000000e+00> : vector<128x512xf32>
    %3 = tpu.matmul %1, %2, %cst {dimension_numbers = #tpu.dot_dimension_numbers<[1], [0], [0], [1], [0, 0, 1, 1], [], []>} : vector<128x128xbf16>, vector<128x512xbf16>, vector<128x512xf32> -> vector<128x512xf32>
    %c0_3 = arith.constant 0 : index
    %c0_4 = arith.constant 0 : index
    %4 = vector.load %arg3[%c0_3, %c0_4] : memref<1x512xf32, #tpu.memory_space<vmem>>, vector<1x512xf32>
    %5 = vector.broadcast %4 : vector<1x512xf32> to vector<128x512xf32>
    %6 = arith.addf %3, %5 : vector<128x512xf32>
    %7 = arith.mulf %6, %6 : vector<128x512xf32>
    %8 = arith.mulf %6, %7 : vector<128x512xf32>
    %cst_5 = arith.constant 4.471500e-02 : f32
    %9 = vector.broadcast %cst_5 : f32 to vector<128x512xf32>
    %10 = arith.mulf %9, %8 : vector<128x512xf32>
    %11 = arith.addf %6, %10 : vector<128x512xf32>
    %cst_6 = arith.constant 0.797884583 : f32
    %12 = vector.broadcast %cst_6 : f32 to vector<128x512xf32>
    %13 = arith.mulf %12, %11 : vector<128x512xf32>
    %14 = math.tanh %13 : vector<128x512xf32>
    %cst_7 = arith.constant 1.000000e+00 : f32
    %15 = vector.broadcast %cst_7 : f32 to vector<128x512xf32>
    %16 = arith.addf %15, %14 : vector<128x512xf32>
    %cst_8 = arith.constant 5.000000e-01 : f32
    %17 = vector.broadcast %cst_8 : f32 to vector<128x512xf32>
    %18 = arith.mulf %17, %16 : vector<128x512xf32>
    %19 = arith.mulf %6, %18 : vector<128x512xf32>
    %20 = arith.truncf %19 : vector<128x512xf32> to vector<128x512xbf16>
    %c0_9 = arith.constant 0 : index
    %c0_10 = arith.constant 0 : index
    %21 = vector.load %arg4[%c0_9, %c0_10] : memref<512x128xbf16, #tpu.memory_space<vmem>>, vector<512x128xbf16>
    %cst_11 = arith.constant dense<0.000000e+00> : vector<128x128xf32>
    %22 = tpu.matmul %20, %21, %cst_11 {dimension_numbers = #tpu.dot_dimension_numbers<[1], [0], [0], [1], [0, 0, 1, 1], [], []>} : vector<128x512xbf16>, vector<512x128xbf16>, vector<128x128xf32> -> vector<128x128xf32>
    %c0_12 = arith.constant 0 : index
    %c0_13 = arith.constant 0 : index
    %23 = vector.load %arg5[%c0_12, %c0_13] : memref<1x128xf32, #tpu.memory_space<vmem>>, vector<1x128xf32>
    %24 = vector.broadcast %23 : vector<1x128xf32> to vector<128x128xf32>
    %25 = arith.addf %22, %24 : vector<128x128xf32>
    %26 = arith.addf %25, %0 : vector<128x128xf32>
    %c0_14 = arith.constant 0 : index
    %c0_15 = arith.constant 0 : index
    %27 = vector.load %arg6[%c0_14, %c0_15] : memref<1x128xf32, #tpu.memory_space<vmem>>, vector<1x128xf32>
    %c0_16 = arith.constant 0 : index
    %c0_17 = arith.constant 0 : index
    %28 = vector.load %arg7[%c0_16, %c0_17] : memref<1x128xf32, #tpu.memory_space<vmem>>, vector<1x128xf32>
    %cst_18 = arith.constant dense<0.000000e+00> : vector<128xf32>
    %29 = vector.multi_reduction <add>, %26, %cst_18 [1] : vector<128x128xf32> to vector<128xf32>
    %30 = vector.shape_cast %29 : vector<128xf32> to vector<128x1xf32>
    %cst_19 = arith.constant 1.280000e+02 : f32
    %31 = vector.broadcast %cst_19 : f32 to vector<128x1xf32>
    %32 = arith.divf %30, %31 : vector<128x1xf32>
    %33 = vector.broadcast %32 : vector<128x1xf32> to vector<128x128xf32>
    %34 = arith.subf %26, %33 : vector<128x128xf32>
    %35 = arith.mulf %34, %34 : vector<128x128xf32>
    %cst_20 = arith.constant dense<0.000000e+00> : vector<128xf32>
    %36 = vector.multi_reduction <add>, %35, %cst_20 [1] : vector<128x128xf32> to vector<128xf32>
    %37 = vector.shape_cast %36 : vector<128xf32> to vector<128x1xf32>
    %cst_21 = arith.constant 1.280000e+02 : f32
    %38 = vector.broadcast %cst_21 : f32 to vector<128x1xf32>
    %39 = arith.divf %37, %38 : vector<128x1xf32>
    %cst_22 = arith.constant 9.99999996E-13 : f32
    %40 = vector.broadcast %cst_22 : f32 to vector<128x1xf32>
    %41 = arith.addf %39, %40 : vector<128x1xf32>
    %42 = math.rsqrt %41 : vector<128x1xf32>
    %43 = vector.broadcast %42 : vector<128x1xf32> to vector<128x128xf32>
    %44 = arith.mulf %34, %43 : vector<128x128xf32>
    %45 = vector.broadcast %27 : vector<1x128xf32> to vector<128x128xf32>
    %46 = arith.mulf %44, %45 : vector<128x128xf32>
    %47 = vector.broadcast %28 : vector<1x128xf32> to vector<128x128xf32>
    %48 = arith.addf %46, %47 : vector<128x128xf32>
    %c0_23 = arith.constant 0 : index
    %c0_24 = arith.constant 0 : index
    %49 = vector.load %arg8[%c0_23, %c0_24] : memref<128x128xf32, #tpu.memory_space<vmem>>, vector<128x128xf32>
    tpu.vector_store %arg8[%c0_23, %c0_24], %48 {strides = array<i32>} : memref<128x128xf32, #tpu.memory_space<vmem>>, vector<128x128xf32>,
    return
  }
  func.func @transform_0(%arg0: i32) -> (i32, i32) {
    %c0_i32 = arith.constant 0 : i32
    %c0_i32_0 = arith.constant 0 : i32
    return %arg0, %c0_i32 : i32, i32
  }
  func.func @transform_1(%arg0: i32) -> (i32, i32) {
    %c0_i32 = arith.constant 0 : i32
    %c0_i32_0 = arith.constant 0 : i32
    %c0_i32_1 = arith.constant 0 : i32
    return %c0_i32, %c0_i32_0 : i32, i32
  }
  func.func @transform_2(%arg0: i32) -> (i32, i32) {
    %c0_i32 = arith.constant 0 : i32
    %c0_i32_0 = arith.constant 0 : i32
    %c0_i32_1 = arith.constant 0 : i32
    return %c0_i32, %c0_i32_0 : i32, i32
  }
  func.func @transform_3(%arg0: i32) -> (i32, i32) {
    %c0_i32 = arith.constant 0 : i32
    %c0_i32_0 = arith.constant 0 : i32
    %c0_i32_1 = arith.constant 0 : i32
    return %c0_i32, %c0_i32_0 : i32, i32
  }
  func.func @transform_4(%arg0: i32) -> (i32, i32) {
    %c0_i32 = arith.constant 0 : i32
    %c0_i32_0 = arith.constant 0 : i32
    %c0_i32_1 = arith.constant 0 : i32
    return %c0_i32, %c0_i32_0 : i32, i32
  }
  func.func @transform_5(%arg0: i32) -> (i32, i32) {
    %c0_i32 = arith.constant 0 : i32
    %c0_i32_0 = arith.constant 0 : i32
    %c0_i32_1 = arith.constant 0 : i32
    return %c0_i32, %c0_i32_0 : i32, i32
  }
  func.func @transform_6(%arg0: i32) -> (i32, i32) {
    %c0_i32 = arith.constant 0 : i32
    %c0_i32_0 = arith.constant 0 : i32
    %c0_i32_1 = arith.constant 0 : i32
    return %c0_i32, %c0_i32_0 : i32, i32
  }
  func.func @transform_7(%arg0: i32) -> (i32, i32) {
    %c0_i32 = arith.constant 0 : i32
    %c0_i32_0 = arith.constant 0 : i32
    return %arg0, %c0_i32 : i32, i32
  }
}

module attributes {stable_mosaic.version = 11 : i64} {
  func.func @_pool_cls_kernel(%arg0: i32, %arg1: memref<2x128xf32, #tpu.memory_space<vmem>>, %arg2: memref<128x128xbf16, #tpu.memory_space<vmem>>, %arg3: memref<1x128xf32, #tpu.memory_space<vmem>>, %arg4: memref<128x128xbf16, #tpu.memory_space<vmem>>, %arg5: memref<1x128xf32, #tpu.memory_space<vmem>>, %arg6: memref<2x128xf32, #tpu.memory_space<vmem>>) attributes {dimension_semantics = [#tpu.dimension_semantics<arbitrary>], iteration_bounds = array<i64: 1>, scalar_prefetch = 0 : i64, scratch_operands = 0 : i64, tpu.core_type = #tpu.core_type<tc>, window_params = [{pipeline_mode = #tpu.pipeline_mode<synchronous>, transform_indices = @transform_0, window_bounds = array<i64: 2, 128>}, {pipeline_mode = #tpu.pipeline_mode<synchronous>, transform_indices = @transform_1, window_bounds = array<i64: 128, 128>}, {pipeline_mode = #tpu.pipeline_mode<synchronous>, transform_indices = @transform_2, window_bounds = array<i64: 1, 128>}, {pipeline_mode = #tpu.pipeline_mode<synchronous>, transform_indices = @transform_3, window_bounds = array<i64: 128, 128>}, {pipeline_mode = #tpu.pipeline_mode<synchronous>, transform_indices = @transform_4, window_bounds = array<i64: 1, 128>}, {pipeline_mode = #tpu.pipeline_mode<synchronous>, transform_indices = @transform_5, window_bounds = array<i64: 2, 128>}]} {
    %c0 = arith.constant 0 : index
    %c0_0 = arith.constant 0 : index
    %0 = vector.load %arg1[%c0, %c0_0] : memref<2x128xf32, #tpu.memory_space<vmem>>, vector<2x128xf32>
    %1 = arith.truncf %0 : vector<2x128xf32> to vector<2x128xbf16>
    %c0_1 = arith.constant 0 : index
    %c0_2 = arith.constant 0 : index
    %2 = vector.load %arg2[%c0_1, %c0_2] : memref<128x128xbf16, #tpu.memory_space<vmem>>, vector<128x128xbf16>
    %cst = arith.constant dense<0.000000e+00> : vector<2x128xf32>
    %3 = tpu.matmul %1, %2, %cst {dimension_numbers = #tpu.dot_dimension_numbers<[1], [0], [0], [1], [0, 0, 1, 1], [], []>} : vector<2x128xbf16>, vector<128x128xbf16>, vector<2x128xf32> -> vector<2x128xf32>
    %c0_3 = arith.constant 0 : index
    %c0_4 = arith.constant 0 : index
    %4 = vector.load %arg3[%c0_3, %c0_4] : memref<1x128xf32, #tpu.memory_space<vmem>>, vector<1x128xf32>
    %5 = vector.broadcast %4 : vector<1x128xf32> to vector<2x128xf32>
    %6 = arith.addf %3, %5 : vector<2x128xf32>
    %7 = math.tanh %6 : vector<2x128xf32>
    %8 = arith.truncf %7 : vector<2x128xf32> to vector<2x128xbf16>
    %c0_5 = arith.constant 0 : index
    %c0_6 = arith.constant 0 : index
    %9 = vector.load %arg4[%c0_5, %c0_6] : memref<128x128xbf16, #tpu.memory_space<vmem>>, vector<128x128xbf16>
    %cst_7 = arith.constant dense<0.000000e+00> : vector<2x128xf32>
    %10 = tpu.matmul %8, %9, %cst_7 {dimension_numbers = #tpu.dot_dimension_numbers<[1], [0], [0], [1], [0, 0, 1, 1], [], []>} : vector<2x128xbf16>, vector<128x128xbf16>, vector<2x128xf32> -> vector<2x128xf32>
    %c0_8 = arith.constant 0 : index
    %c0_9 = arith.constant 0 : index
    %11 = vector.load %arg5[%c0_8, %c0_9] : memref<1x128xf32, #tpu.memory_space<vmem>>, vector<1x128xf32>
    %12 = vector.broadcast %11 : vector<1x128xf32> to vector<2x128xf32>
    %13 = arith.addf %10, %12 : vector<2x128xf32>
    %c0_10 = arith.constant 0 : index
    %c0_11 = arith.constant 0 : index
    %14 = vector.load %arg6[%c0_10, %c0_11] : memref<2x128xf32, #tpu.memory_space<vmem>>, vector<2x128xf32>
    tpu.vector_store %arg6[%c0_10, %c0_11], %13 {strides = array<i32>} : memref<2x128xf32, #tpu.memory_space<vmem>>, vector<2x128xf32>,
    return
  }
  func.func @transform_0(%arg0: i32) -> (i32, i32) {
    %c0_i32 = arith.constant 0 : i32
    %c0_i32_0 = arith.constant 0 : i32
    %c0_i32_1 = arith.constant 0 : i32
    return %c0_i32, %c0_i32_0 : i32, i32
  }
  func.func @transform_1(%arg0: i32) -> (i32, i32) {
    %c0_i32 = arith.constant 0 : i32
    %c0_i32_0 = arith.constant 0 : i32
    %c0_i32_1 = arith.constant 0 : i32
    return %c0_i32, %c0_i32_0 : i32, i32
  }
  func.func @transform_2(%arg0: i32) -> (i32, i32) {
    %c0_i32 = arith.constant 0 : i32
    %c0_i32_0 = arith.constant 0 : i32
    %c0_i32_1 = arith.constant 0 : i32
    return %c0_i32, %c0_i32_0 : i32, i32
  }
  func.func @transform_3(%arg0: i32) -> (i32, i32) {
    %c0_i32 = arith.constant 0 : i32
    %c0_i32_0 = arith.constant 0 : i32
    %c0_i32_1 = arith.constant 0 : i32
    return %c0_i32, %c0_i32_0 : i32, i32
  }
  func.func @transform_4(%arg0: i32) -> (i32, i32) {
    %c0_i32 = arith.constant 0 : i32
    %c0_i32_0 = arith.constant 0 : i32
    %c0_i32_1 = arith.constant 0 : i32
    return %c0_i32, %c0_i32_0 : i32, i32
  }
  func.func @transform_5(%arg0: i32) -> (i32, i32) {
    %c0_i32 = arith.constant 0 : i32
    %c0_i32_0 = arith.constant 0 : i32
    %c0_i32_1 = arith.constant 0 : i32
    return %c0_i32, %c0_i32_0 : i32, i32
  }
}

</mosaic_0001>

<bundles_post_ra>
// kernel: bert_class_forward.10
= control target key start
LH: loop header
LB: loop body
LE: loop exit
PB: predicated region body
PF: predicated region fallthrough
CT: control target
= control target key end

     0   :  { %s566_s12 = smov 0   ;;  %s750_s0 = inlined_call_operand.vmem [shape: f32[256,128], index: 0, kind: input, shape index: {}]   ;;  %s751_s1 = inlined_call_operand.vmem [shape: f32[1,128], index: 1, kind: input, shape index: {}]   ;;  %s752_s2 = inlined_call_operand.vmem [shape: f32[1,128], index: 2, kind: input, shape index: {}]   ;;  %s753_s3 = inlined_call_operand.vmem [shape: f32[256,128], index: 3, kind: output, shape index: {}]  }
   0x1 LB: > { %s485_s13 = sadd.s32 4294967295, %s544_s12   ;;  %p489_p0 = scmp.ge.s32.totalorder %s544_s12, 1  ;;  %s544_s12 = sphi %s566_s12, %s13_s12  }
   0x2   : > { %p138_p1 = scmp.lt.s32.totalorder %s544_s12, 3 }
   0x4   : > { %p139_p2 = pnand %p489_p0, %p138_p1 }
   0x5   : > { %s490_s14 = sshll.u32 (!%p139_p2), %s485_s13, 4 }
   0x6   : > { %142 = sbr.rel (%p139_p2) target bundleno = 354 (0x162), region = 32  ;;  %p163_p3 = scmp.lt.s32.totalorder (!%p139_p2), %s490_s14, 31 }
   0xb   : > { %s755_s14 = smov (!%p163_p3, %s490_s14), 31 }
   0xc   : > { %s491_s15 = sshll.u32 %s755_s14, 3 }
   0xd   : > { %s166_s18 = scalar_lea.vmem %s750_s0, %s491_s15  ;;  %s683_s25 = scalar_lea.vmem %s753_s3, %s491_s15 }
   0xe   : > { %v174_v0 = vld [vmem:[%s166_s18] sm:$0xff]  ;;  %v176_v1 = vld [vmem:[%s166_s18 + $0x10] sm:$0xff]  ;;  %v175_v2 = vld [vmem:[%s166_s18 + $0x8] sm:$0xff] }
   0xf   : > { %192 = vadd.xlane.f32.xlu0 %v174_v0  ;;  %196 = vadd.xlane.f32.xlu1 %v176_v1  ;;  %v177_v3 = vld [vmem:[%s166_s18 + $0x18] sm:$0xff]  ;;  %v178_v4 = vld [vmem:[%s166_s18 + $0x20] sm:$0xff]  ;;  %v179_v5 = vld [vmem:[%s166_s18 + $0x28] sm:$0xff] }
  0x10   : > { %v180_v6 = vld [vmem:[%s166_s18 + $0x30] sm:$0xff]  ;;  %v181_v7 = vld [vmem:[%s166_s18 + $0x38] sm:$0xff]  ;;  %v182_v8 = vld [vmem:[%s166_s18 + $0x40] sm:$0xff] }
  0x11   : > { %v183_v9 = vld [vmem:[%s166_s18 + $0x48] sm:$0xff]  ;;  %v184_v10 = vld [vmem:[%s166_s18 + $0x50] sm:$0xff]  ;;  %v582_v11 = vld [vmem:[%s166_s18 + $0x58] sm:$0xff] }
  0x12   : > { %v585_v12 = vld [vmem:[%s166_s18 + $0x60] sm:$0xff]  ;;  %v587_v13 = vld [vmem:[%s166_s18 + $0x68] sm:$0xff]  ;;  %v591_v14 = vld [vmem:[%s166_s18 + $0x70] sm:$0xff] }
  0x13   : > { %194 = vadd.xlane.f32.xlu0 %v175_v2  ;;  %198 = vadd.xlane.f32.xlu1 %v177_v3  ;;  %v593_v15 = vld [vmem:[%s166_s18 + $0x78] sm:$0xff] }
  0x17   : > { %200 = vadd.xlane.f32.xlu0 %v178_v4  ;;  %202 = vadd.xlane.f32.xlu1 %v179_v5 }
  0x1b   : > { %204 = vadd.xlane.f32.xlu0 %v180_v6  ;;  %206 = vadd.xlane.f32.xlu1 %v181_v7 }
  0x1f   : > { %208 = vadd.xlane.f32.xlu0 %v182_v8  ;;  %210 = vadd.xlane.f32.xlu1 %v183_v9 }
  0x23   : > { %212 = vadd.xlane.f32.xlu0 %v184_v10  ;;  %214 = vadd.xlane.f32.xlu1 %v582_v11 }
  0x27   : > { %216 = vadd.xlane.f32.xlu0 %v585_v12  ;;  %218 = vadd.xlane.f32.xlu1 %v587_v13 }
  0x2b   : > { %220 = vadd.xlane.f32.xlu0 %v591_v14  ;;  %222 = vadd.xlane.f32.xlu1 %v593_v15 }
  0x98   : > { %v193_v16 = vpop.xlane.xlu0 %192  ;;  %v197_v17 = vpop.xlane.xlu1 %196 }
  0x99   : > { %v225_v18 = vmul.f32 0.0078125, %v193_v16  ;;  %v227_v19 = vmul.f32 0.0078125, %v197_v17 }
  0x9b   : > { %v597_v20 = vsub.f32 %v174_v0, %v225_v18  ;;  %v599_v21 = vsub.f32 %v176_v1, %v227_v19 }
  0x9c   : > { %v195_v22 = vpop.xlane.xlu0 %194  ;;  %v199_v23 = vpop.xlane.xlu1 %198 }
  0x9d   : > { %v226_v24 = vmul.f32 0.0078125, %v195_v22  ;;  %v257_v25 = vmul.f32 %v597_v20, %v597_v20  ;;  %v228_v26 = vmul.f32 0.0078125, %v199_v23  ;;  %v259_v29 = vmul.f32 %v599_v21, %v599_v21 }
  0x9f   : > { %v603_v27 = vsub.f32 %v175_v2, %v226_v24  ;;  %273 = vadd.xlane.f32.xlu0 %v257_v25  ;;  %v605_v28 = vsub.f32 %v177_v3, %v228_v26 }
  0xa0   : > { %v201_v30 = vpop.xlane.xlu0 %200  ;;  %v203_v31 = vpop.xlane.xlu1 %202 }
  0xa1   : > { %v229_v32 = vmul.f32 0.0078125, %v201_v30  ;;  %v258_v33 = vmul.f32 %v603_v27, %v603_v27  ;;  %v230_v34 = vmul.f32 0.0078125, %v203_v31  ;;  %v260_v37 = vmul.f32 %v605_v28, %v605_v28 }
  0xa3   : > { %v611_v35 = vsub.f32 %v178_v4, %v229_v32  ;;  %277 = vadd.xlane.f32.xlu0 %v259_v29  ;;  %275 = vadd.xlane.f32.xlu1 %v258_v33  ;;  %v613_v36 = vsub.f32 %v179_v5, %v230_v34 }
  0xa4   : > { %v205_v38 = vpop.xlane.xlu0 %204  ;;  %v207_v39 = vpop.xlane.xlu1 %206 }
  0xa5   : > { %v231_v40 = vmul.f32 0.0078125, %v205_v38  ;;  %v261_v41 = vmul.f32 %v611_v35, %v611_v35  ;;  %v232_v42 = vmul.f32 0.0078125, %v207_v39  ;;  %v262_v45 = vmul.f32 %v613_v36, %v613_v36 }
  0xa7   : > { %v619_v43 = vsub.f32 %v180_v6, %v231_v40  ;;  %279 = vadd.xlane.f32.xlu1 %v260_v37  ;;  %281 = vadd.xlane.f32.xlu0 %v261_v41  ;;  %v621_v44 = vsub.f32 %v181_v7, %v232_v42 }
  0xa8   : > { %v209_v46 = vpop.xlane.xlu0 %208  ;;  %v211_v47 = vpop.xlane.xlu1 %210 }
  0xa9   : > { %v233_v48 = vmul.f32 0.0078125, %v209_v46  ;;  %v263_v49 = vmul.f32 %v619_v43, %v619_v43  ;;  %v234_v50 = vmul.f32 0.0078125, %v211_v47  ;;  %v264_v53 = vmul.f32 %v621_v44, %v621_v44 }
  0xab   : > { %v627_v51 = vsub.f32 %v182_v8, %v233_v48  ;;  %283 = vadd.xlane.f32.xlu1 %v262_v45  ;;  %285 = vadd.xlane.f32.xlu0 %v263_v49  ;;  %v629_v52 = vsub.f32 %v183_v9, %v234_v50  ;;  %v669_v50 = vld [vmem:[%s751_s1] ss:$0 sm:$0xff] }
  0xac   : > { %v213_v54 = vpop.xlane.xlu0 %212  ;;  %v215_v55 = vpop.xlane.xlu1 %214 }
  0xad   : > { %v235_v56 = vmul.f32 0.0078125, %v213_v54  ;;  %v265_v57 = vmul.f32 %v627_v51, %v627_v51  ;;  %v236_v58 = vmul.f32 0.0078125, %v215_v55  ;;  %v266_v61 = vmul.f32 %v629_v52, %v629_v52 }
  0xaf   : > { %v635_v59 = vsub.f32 %v184_v10, %v235_v56  ;;  %287 = vadd.xlane.f32.xlu1 %v264_v53  ;;  %289 = vadd.xlane.f32.xlu0 %v265_v57  ;;  %v638_v60 = vsub.f32 %v582_v11, %v236_v58  ;;  %v675_v56 = vld [vmem:[%s752_s2] ss:$0 sm:$0xff] }
  0xb0   : > { %v217_v62 = vpop.xlane.xlu0 %216  ;;  %v219_v63 = vpop.xlane.xlu1 %218 }
  0xb1   : > { %v237_v0 = vmul.f32 0.0078125, %v217_v62  ;;  %v267_v1 = vmul.f32 %v635_v59, %v635_v59  ;;  %v238_v2 = vmul.f32 0.0078125, %v219_v63  ;;  %v268_v5 = vmul.f32 %v638_v60, %v638_v60 }
  0xb3   : > { %v645_v3 = vsub.f32 %v585_v12, %v237_v0  ;;  %291 = vadd.xlane.f32.xlu1 %v266_v61  ;;  %293 = vadd.xlane.f32.xlu0 %v267_v1  ;;  %v648_v4 = vsub.f32 %v587_v13, %v238_v2 }
  0xb4   : > { %v221_v6 = vpop.xlane.xlu0 %220  ;;  %v223_v7 = vpop.xlane.xlu1 %222 }
  0xb5   : > { %v239_v8 = vmul.f32 0.0078125, %v221_v6  ;;  %v269_v9 = vmul.f32 %v645_v3, %v645_v3  ;;  %v240_v10 = vmul.f32 0.0078125, %v223_v7  ;;  %v270_v13 = vmul.f32 %v648_v4, %v648_v4 }
  0xb7   : > { %v655_v11 = vsub.f32 %v591_v14, %v239_v8  ;;  %295 = vadd.xlane.f32.xlu1 %v268_v5  ;;  %297 = vadd.xlane.f32.xlu0 %v269_v9  ;;  %v658_v12 = vsub.f32 %v593_v15, %v240_v10 }
  0xb9   : > { %v271_v16 = vmul.f32 %v655_v11, %v655_v11  ;;  %v272_v17 = vmul.f32 %v658_v12, %v658_v12 }
  0xbb   : > { %299 = vadd.xlane.f32.xlu1 %v270_v13  ;;  %301 = vadd.xlane.f32.xlu0 %v271_v16 }
  0xbf   : > { %303 = vadd.xlane.f32.xlu1 %v272_v17 }
 0x128   : > { %v274_v18 = vpop.xlane.xlu0 %273 }
 0x129   : > { %v305_v14 = vmul.f32 0.0078125, %v274_v18 }
 0x12b   : > { %v321_v19 = vadd.f32 1e-12, %v305_v14 }
 0x12c   : > { %v276_v22 = vpop.xlane.xlu1 %275  ;;  %v278_v23 = vpop.xlane.xlu0 %277 }
 0x12d   : > { %506 = vrsqrt.f32 %v321_v19  ;;  %v306_v15 = vmul.f32 0.0078125, %v276_v22  ;;  %v307_v24 = vmul.f32 0.0078125, %v278_v23 }
 0x12f   : > { %v322_v25 = vadd.f32 1e-12, %v306_v15  ;;  %v323_v26 = vadd.f32 1e-12, %v307_v24 }
 0x130   : > { %v280_v29 = vpop.xlane.xlu1 %279  ;;  %v282_v30 = vpop.xlane.xlu0 %281 }
 0x131   : > { %508 = vrsqrt.f32 %v322_v25  ;;  %v308_v31 = vmul.f32 0.0078125, %v280_v29  ;;  %v309_v32 = vmul.f32 0.0078125, %v282_v30 }
 0x132   : > { %510 = vrsqrt.f32 %v323_v26 }
 0x133   : > { %v324_v33 = vadd.f32 1e-12, %v308_v31  ;;  %v325_v34 = vadd.f32 1e-12, %v309_v32 }
 0x134   : > { %v284_v37 = vpop.xlane.xlu1 %283  ;;  %v286_v38 = vpop.xlane.xlu0 %285 }
 0x135   : > { %512 = vrsqrt.f32 %v324_v33  ;;  %v310_v39 = vmul.f32 0.0078125, %v284_v37  ;;  %v311_v40 = vmul.f32 0.0078125, %v286_v38 }
 0x136   : > { %514 = vrsqrt.f32 %v325_v34 }
 0x137   : > { %v326_v41 = vadd.f32 1e-12, %v310_v39  ;;  %v327_v42 = vadd.f32 1e-12, %v311_v40 }
 0x138   : > { %v288_v45 = vpop.xlane.xlu1 %287  ;;  %v290_v46 = vpop.xlane.xlu0 %289 }
 0x139   : > { %516 = vrsqrt.f32 %v326_v41  ;;  %v312_v47 = vmul.f32 0.0078125, %v288_v45  ;;  %v313_v48 = vmul.f32 0.0078125, %v290_v46 }
 0x13a   : > { %v507_v49 = vpop.eup %506  ;;  %518 = vrsqrt.f32 %v327_v42 }
 0x13b   : > { %v353_v53 = vmul.f32 %v507_v49, %v597_v20  ;;  %v328_v54 = vadd.f32 1e-12, %v312_v47  ;;  %v329_v55 = vadd.f32 1e-12, %v313_v48 }
 0x13c   : > { %v292_v57 = vpop.xlane.xlu1 %291  ;;  %v294_v58 = vpop.xlane.xlu0 %293 }
 0x13d   : > { %v375_v61 = vmul.f32 %v669_v50, %v353_v53  ;;  %520 = vrsqrt.f32 %v328_v54  ;;  %v314_v62 = vmul.f32 0.0078125, %v292_v57  ;;  %v315_v63 = vmul.f32 0.0078125, %v294_v58 }
 0x13e   : > { %v509_v0 = vpop.eup %508  ;;  %522 = vrsqrt.f32 %v329_v55 }
 0x13f   : > { %v511_v20 = vpop.eup %510  ;;  %v397_v1 = vadd.f32 %v675_v56, %v375_v61  ;;  %v354_v2 = vmul.f32 %v509_v0, %v603_v27  ;;  %v330_v5 = vadd.f32 1e-12, %v314_v62  ;;  %v331_v6 = vadd.f32 1e-12, %v315_v63 }
 0x140   : > { %v355_v7 = vmul.f32 %v511_v20, %v599_v21  ;;  %v296_v8 = vpop.xlane.xlu1 %295  ;;  %v298_v9 = vpop.xlane.xlu0 %297 }
 0x141   : > { %413 = vst [vmem:[%s683_s25] sm:$0xff] %v397_v1  ;;  %v376_v10 = vmul.f32 %v669_v50, %v354_v2  ;;  %524 = vrsqrt.f32 %v330_v5  ;;  %v316_v13 = vmul.f32 0.0078125, %v296_v8  ;;  %v317_v16 = vmul.f32 0.0078125, %v298_v9 }
 0x142   : > { %v513_v17 = vpop.eup %512  ;;  %v377_v18 = vmul.f32 %v669_v50, %v355_v7  ;;  %526 = vrsqrt.f32 %v331_v6 }
 0x143   : > { %v515_v14 = vpop.eup %514  ;;  %v398_v27 = vadd.f32 %v675_v56, %v376_v10  ;;  %v356_v19 = vmul.f32 %v513_v17, %v605_v28  ;;  %v332_v21 = vadd.f32 1e-12, %v316_v13  ;;  %v333_v22 = vadd.f32 1e-12, %v317_v16 }
 0x144   : > { %v399_v23 = vadd.f32 %v675_v56, %v377_v18  ;;  %v357_v15 = vmul.f32 %v515_v14, %v611_v35  ;;  %v300_v24 = vpop.xlane.xlu1 %299  ;;  %v302_v25 = vpop.xlane.xlu0 %301 }
 0x145   : > { %414 = vst [vmem:[%s683_s25 + $0x8] sm:$0xff] %v398_v27  ;;  %v378_v26 = vmul.f32 %v669_v50, %v356_v19  ;;  %528 = vrsqrt.f32 %v332_v21  ;;  %v318_v29 = vmul.f32 0.0078125, %v300_v24  ;;  %v319_v30 = vmul.f32 0.0078125, %v302_v25 }
 0x146   : > { %v517_v31 = vpop.eup %516  ;;  %415 = vst [vmem:[%s683_s25 + $0x10] sm:$0xff] %v399_v23  ;;  %v379_v28 = vmul.f32 %v669_v50, %v357_v15  ;;  %530 = vrsqrt.f32 %v333_v22 }
 0x147   : > { %v519_v32 = vpop.eup %518  ;;  %v400_v33 = vadd.f32 %v675_v56, %v378_v26  ;;  %v358_v35 = vmul.f32 %v517_v31, %v613_v36  ;;  %v334_v34 = vadd.f32 1e-12, %v318_v29  ;;  %v335_v37 = vadd.f32 1e-12, %v319_v30 }
 0x148   : > { %v401_v38 = vadd.f32 %v675_v56, %v379_v28  ;;  %v359_v39 = vmul.f32 %v519_v32, %v619_v43  ;;  %v304_v40 = vpop.xlane.xlu1 %303 }
 0x149   : > { %416 = vst [vmem:[%s683_s25 + $0x18] sm:$0xff] %v400_v33  ;;  %v380_v41 = vmul.f32 %v669_v50, %v358_v35  ;;  %532 = vrsqrt.f32 %v334_v34  ;;  %v320_v42 = vmul.f32 0.0078125, %v304_v40 }
 0x14a   : > { %v521_v45 = vpop.eup %520  ;;  %417 = vst [vmem:[%s683_s25 + $0x20] sm:$0xff] %v401_v38  ;;  %v381_v46 = vmul.f32 %v669_v50, %v359_v39  ;;  %534 = vrsqrt.f32 %v335_v37 }
 0x14b   : > { %v523_v36 = vpop.eup %522  ;;  %v402_v47 = vadd.f32 %v675_v56, %v380_v41  ;;  %v360_v48 = vmul.f32 %v521_v45, %v621_v44  ;;  %v336_v43 = vadd.f32 1e-12, %v320_v42 }
 0x14c   : > { %v403_v49 = vadd.f32 %v675_v56, %v381_v46  ;;  %v361_v53 = vmul.f32 %v523_v36, %v627_v51 }
 0x14d   : > { %418 = vst [vmem:[%s683_s25 + $0x28] sm:$0xff] %v402_v47  ;;  %v382_v54 = vmul.f32 %v669_v50, %v360_v48  ;;  %536 = vrsqrt.f32 %v336_v43 }
 0x14e   : > { %v525_v55 = vpop.eup %524  ;;  %419 = vst [vmem:[%s683_s25 + $0x30] sm:$0xff] %v403_v49  ;;  %v383_v57 = vmul.f32 %v669_v50, %v361_v53 }
 0x14f   : > { %v527_v58 = vpop.eup %526  ;;  %v404_v61 = vadd.f32 %v675_v56, %v382_v54  ;;  %v362_v44 = vmul.f32 %v525_v55, %v629_v52 }
 0x150   : > { %v405_v62 = vadd.f32 %v675_v56, %v383_v57  ;;  %v363_v63 = vmul.f32 %v527_v58, %v635_v59 }
 0x151   : > { %420 = vst [vmem:[%s683_s25 + $0x38] sm:$0xff] %v404_v61  ;;  %v384_v51 = vmul.f32 %v669_v50, %v362_v44 }
 0x152   : > { %v529_v0 = vpop.eup %528  ;;  %421 = vst [vmem:[%s683_s25 + $0x40] sm:$0xff] %v405_v62  ;;  %v385_v20 = vmul.f32 %v669_v50, %v363_v63 }
 0x153   : > { %v531_v1 = vpop.eup %530  ;;  %v406_v2 = vadd.f32 %v675_v56, %v384_v51  ;;  %v364_v5 = vmul.f32 %v529_v0, %v638_v60 }
 0x154   : > { %v407_v52 = vadd.f32 %v675_v56, %v385_v20  ;;  %v365_v6 = vmul.f32 %v531_v1, %v645_v3 }
 0x155   : > { %422 = vst [vmem:[%s683_s25 + $0x48] sm:$0xff] %v406_v2  ;;  %v386_v59 = vmul.f32 %v669_v50, %v364_v5 }
 0x156   : > { %v533_v7 = vpop.eup %532  ;;  %423 = vst [vmem:[%s683_s25 + $0x50] sm:$0xff] %v407_v52  ;;  %v387_v8 = vmul.f32 %v669_v50, %v365_v6 }
 0x157   : > { %v535_v9 = vpop.eup %534  ;;  %v408_v10 = vadd.f32 %v675_v56, %v386_v59  ;;  %v366_v60 = vmul.f32 %v533_v7, %v648_v4 }
 0x158   : > { %v409_v13 = vadd.f32 %v675_v56, %v387_v8  ;;  %v367_v16 = vmul.f32 %v535_v9, %v655_v11 }
 0x159   : > { %424 = vst [vmem:[%s683_s25 + $0x58] sm:$0xff] %v408_v10  ;;  %v388_v3 = vmul.f32 %v669_v50, %v366_v60 }
 0x15a   : > { %v537_v17 = vpop.eup %536  ;;  %425 = vst [vmem:[%s683_s25 + $0x60] sm:$0xff] %v409_v13  ;;  %v389_v18 = vmul.f32 %v669_v50, %v367_v16 }
 0x15b   : > { %v410_v14 = vadd.f32 %v675_v56, %v388_v3  ;;  %v368_v27 = vmul.f32 %v537_v17, %v658_v12 }
 0x15c   : > { %v411_v19 = vadd.f32 %v675_v56, %v389_v18 }
 0x15d   : > { %426 = vst [vmem:[%s683_s25 + $0x68] sm:$0xff] %v410_v14  ;;  %v390_v4 = vmul.f32 %v669_v50, %v368_v27 }
 0x15e   : > { %427 = vst [vmem:[%s683_s25 + $0x70] sm:$0xff] %v411_v19 }
 0x15f   : > { %v412_v21 = vadd.f32 %v675_v56, %v390_v4 }
 0x161   : > { %428 = vst [vmem:[%s683_s25 + $0x78] sm:$0xff] %v412_v21 }
 0x162 PF: > { %s13_s12 = sadd.s32 1, %s544_s12  }
 0x163   : > { %p10_p4 = scmp.ge.s32.totalorder %s13_s12, 4  }
 0x165   :  { %12 = sbr.rel (!%p10_p4) target bundleno = 1 (0x1), region = 62 }

// kernel: bert_class_forward.11
= control target key start
LH: loop header
LB: loop body
LE: loop exit
PB: predicated region body
PF: predicated region fallthrough
CT: control target
= control target key end

     0   :  { %s848_s12 = smov 0   ;;  %s1074_s0 = inlined_call_operand.vmem [shape: f32[256,128], index: 0, kind: input, shape index: {}]   ;;  %s1075_s1 = inlined_call_operand.vmem [shape: bf16[128,384], index: 1, kind: input, shape index: {}]   ;;  %s1076_s2 = inlined_call_operand.vmem [shape: f32[1,384], index: 2, kind: input, shape index: {}]   ;;  %s1077_s3 = inlined_call_operand.vmem [shape: f32[256,384], index: 3, kind: output, shape index: {}]  }
   0x1 LB: > { %s694_s13 = sadd.s32 4294967295, %s825_s12   ;;  %p698_p0 = scmp.ge.s32.totalorder %s825_s12, 1  ;;  %s825_s12 = sphi %s848_s12, %s13_s12  }
   0x2   : > { %p138_p1 = scmp.lt.s32.totalorder %s825_s12, 3 }
   0x4   : > { %p139_p2 = pnand %p698_p0, %p138_p1 }
   0x5   : > { %s699_s16 = sshll.u32 (!%p139_p2), %s694_s13, 4 }
   0x6   : > { %142 = sbr.rel (%p139_p2) target bundleno = 302 (0x12e), region = 32  ;;  %p164_p3 = scmp.lt.s32.totalorder (!%p139_p2), %s699_s16, 31 }
   0xb   : > { %v787_v0 = vld [vmem:[%s1075_s1 + $0xac] ss:$12 sps:$4 sm:$0xff]   ;;  %v789_v1 = vld [vmem:[%s1075_s1 + $0xa8] ss:$12 sps:$4 sm:$0xff]   ;;  %v827_v2 = vmov 0   ;;  %s1079_s16 = smov (!%p164_p3, %s699_s16), 31  ;;  %v235_v49 = vlaneseq }
   0xc   : > { %410 = vmatprep.mubr.bf16.mxu0 %v827_v2  ;;  %378 = vmatprep.subr.bf16.mxu0 %v787_v0  ;;  %v790_v3 = vld [vmem:[%s1075_s1 + $0x94] ss:$12 sps:$4 sm:$0xff]   ;;  %v792_v4 = vld [vmem:[%s1075_s1 + $0x90] ss:$12 sps:$4 sm:$0xff]   ;;  %s700_s25 = sshll.u32 %s1079_s16, 3 }
   0xd   : > { %379 = vmatpush1.bf16.msra.mxu0 %v789_v1  ;;  %v793_v5 = vld [vmem:[%s1075_s1 + $0x7c] ss:$12 sps:$4 sm:$0xff]   ;;  %v795_v6 = vld [vmem:[%s1075_s1 + $0x78] ss:$12 sps:$4 sm:$0xff]   ;;  %s884_s5 = scalar_lea.vmem %s1074_s0, %s700_s25  ;;  %v798_v9 = vld [vmem:[%s1075_s1 + $0x60] ss:$12 sps:$4 sm:$0xff]  }
   0xe   : > { %380 = vmatprep.subr.bf16.mxu0 %v790_v3  ;;  %v796_v7 = vld [vmem:[%s1075_s1 + $0x64] ss:$12 sps:$4 sm:$0xff]   ;;  %v799_v10 = vld [vmem:[%s1075_s1 + $0x4c] ss:$12 sps:$4 sm:$0xff]   ;;  %v801_v16 = vld [vmem:[%s1075_s1 + $0x48] ss:$12 sps:$4 sm:$0xff]  }
   0xf   : > { %v808_v8 = vld [vmem:[%s1075_s1 + $0xb0] ss:$12 sps:$4 sm:$0xff]   ;;  %v812_v11 = vld [vmem:[%s1075_s1 + $0x98] ss:$12 sps:$4 sm:$0xff]   ;;  %v178_v13 = vld [vmem:[%s884_s5 + $0x8] sm:$0xff]  ;;  %v236_v50 = vshrl.u32 %v235_v49, 7 }
  0x10   : > { %745 = vmatprep.subr.bf16.mxu1 %v808_v8  ;;  %v177_v12 = vld [vmem:[%s884_s5] sm:$0xff]  ;;  %v814_v18 = vld [vmem:[%s1075_s1 + $0x68] ss:$12 sps:$4 sm:$0xff]   ;;  %v804_v19 = vld [vmem:[%s1075_s1 + $0x30] ss:$12 sps:$4 sm:$0xff]  }
  0x11   : > { %381 = vmatpush1.bf16.msra.mxu0 %v792_v4  ;;  %746 = vmatpush3.bf16.msra.mxu1 %v808_v8  ;;  %v193_v14 = vpack.c.bf16 %v178_v13, %v177_v12  ;;  %v813_v15 = vld [vmem:[%s1075_s1 + $0x80] ss:$12 sps:$4 sm:$0xff]   ;;  %v805_v20 = vld [vmem:[%s1075_s1 + $0x1c] ss:$12 sps:$4 sm:$0xff]   ;;  %v807_v22 = vld [vmem:[%s1075_s1 + $0x18] ss:$12 sps:$4 sm:$0xff]  }
  0x12   : > { %382 = vmatprep.subr.bf16.mxu0 %v793_v5  ;;  %747 = vmatprep.subr.bf16.mxu1 %v812_v11  ;;  %v802_v17 = vld [vmem:[%s1075_s1 + $0x34] ss:$12 sps:$4 sm:$0xff]   ;;  %v815_v21 = vld [vmem:[%s1075_s1 + $0x50] ss:$12 sps:$4 sm:$0xff]   ;;  %v816_v24 = vld [vmem:[%s1075_s1 + $0x38] ss:$12 sps:$4 sm:$0xff]  }
  0x13   : > { %761 = vmatprep.mubr.bf16.mxu1 %v193_v14  ;;  %v809_v23 = vld [vmem:[%s1075_s1 + $0x4] ss:$12 sps:$4 sm:$0xff]   ;;  %v811_v25 = vld [vmem:[%s1075_s1] ss:$12 sps:$4 sm:$0xff]   ;;  %v818_v27 = vld [vmem:[%s1075_s1 + $0x8] ss:$12 sps:$4 sm:$0xff]  }
  0x14   : > { %v817_v26 = vld [vmem:[%s1075_s1 + $0x20] ss:$12 sps:$4 sm:$0xff]   ;;  %v179_v28 = vld [vmem:[%s884_s5 + $0x10] sm:$0xff]  ;;  %v180_v29 = vld [vmem:[%s884_s5 + $0x18] sm:$0xff]  ;;  %v237_v51 = vsub.s32 0, %v236_v50  ;;  %v241_v53 = vsub.s32 1, %v236_v50 }
  0x15   : > { %383 = vmatpush1.bf16.msra.mxu0 %v795_v6  ;;  %748 = vmatpush3.bf16.msra.mxu1 %v812_v11  ;;  %v194_v30 = vpack.c.bf16 %v180_v29, %v179_v28  ;;  %v181_v31 = vld [vmem:[%s884_s5 + $0x20] sm:$0xff]  ;;  %v182_v32 = vld [vmem:[%s884_s5 + $0x28] sm:$0xff]  ;;  %v183_v34 = vld [vmem:[%s884_s5 + $0x30] sm:$0xff]  ;;  %v245_v60 = vsub.s32 2, %v236_v50 }
  0x16   : > { %384 = vmatprep.subr.bf16.mxu0 %v796_v7  ;;  %749 = vmatprep.subr.bf16.mxu1 %v813_v15  ;;  %v195_v33 = vpack.c.bf16 %v182_v32, %v181_v31  ;;  %v184_v35 = vld [vmem:[%s884_s5 + $0x38] sm:$0xff]  ;;  %v185_v36 = vld [vmem:[%s884_s5 + $0x40] sm:$0xff]  ;;  %v186_v37 = vld [vmem:[%s884_s5 + $0x48] sm:$0xff] }
  0x17   : > { %v196_v38 = vpack.c.bf16 %v184_v35, %v183_v34  ;;  %v197_v39 = vpack.c.bf16 %v186_v37, %v185_v36  ;;  %v189_v40 = vld [vmem:[%s884_s5 + $0x60] sm:$0xff]  ;;  %v190_v41 = vld [vmem:[%s884_s5 + $0x68] sm:$0xff]  ;;  %v187_v42 = vld [vmem:[%s884_s5 + $0x50] sm:$0xff] }
  0x18   : > { %v188_v43 = vld [vmem:[%s884_s5 + $0x58] sm:$0xff]  ;;  %v199_v44 = vpack.c.bf16 %v190_v41, %v189_v40  ;;  %v191_v46 = vld [vmem:[%s884_s5 + $0x70] sm:$0xff]  ;;  %v233_v52 = vld [vmem:[%s1076_s2] sm:$0x7] }
  0x19   : > { %385 = vmatpush1.bf16.msra.mxu0 %v798_v9  ;;  %750 = vmatpush3.bf16.msra.mxu1 %v813_v15  ;;  %v198_v45 = vpack.c.bf16 %v188_v43, %v187_v42  ;;  %v192_v47 = vld [vmem:[%s884_s5 + $0x78] sm:$0xff]  ;;  %s777_s5 = smul.u32 24, %s1079_s16  ;;  %v964_v54 = vrot.slane %v233_v52, %v237_v51  ;;  %v966_v55 = vrot.slane %v233_v52, %v241_v53 }
  0x1a   : > { %386 = vmatprep.subr.bf16.mxu0 %v799_v10  ;;  %751 = vmatprep.subr.bf16.mxu1 %v814_v18  ;;  %v200_v48 = vpack.c.bf16 %v192_v47, %v191_v46  ;;  %v980_v1 = vrot.slane %v233_v52, %v245_v60 }
  0x1b   : > { %s971_s22 = scalar_lea.vmem %s1077_s3, %s777_s5 }
  0x1d   : > { %387 = vmatpush1.bf16.msra.mxu0 %v801_v16  ;;  %752 = vmatpush3.bf16.msra.mxu1 %v814_v18 }
  0x1e   : > { %388 = vmatprep.subr.bf16.mxu0 %v802_v17  ;;  %753 = vmatprep.subr.bf16.mxu1 %v815_v21 }
  0x21   : > { %389 = vmatpush1.bf16.msra.mxu0 %v804_v19  ;;  %754 = vmatpush3.bf16.msra.mxu1 %v815_v21 }
  0x22   : > { %390 = vmatprep.subr.bf16.mxu0 %v805_v20  ;;  %755 = vmatprep.subr.bf16.mxu1 %v816_v24 }
  0x25   : > { %391 = vmatpush1.bf16.msra.mxu0 %v807_v22  ;;  %756 = vmatpush3.bf16.msra.mxu1 %v816_v24 }
  0x26   : > { %392 = vmatprep.subr.bf16.mxu0 %v809_v23  ;;  %757 = vmatprep.subr.bf16.mxu1 %v817_v26 }
  0x29   : > { %393 = vmatpush1.bf16.msra.mxu0 %v811_v25  ;;  %758 = vmatpush3.bf16.msra.mxu1 %v817_v26 }
  0x2a   : > { %759 = vmatprep.subr.bf16.mxu1 %v818_v27 }
  0x2c   : > { %411 = vmatmul.mubr.bf16.vlgmr.msra.gmra.mxu0 %v193_v14 }
  0x2d   : > { %420 = vmatprep.mubr.bf16.mxu0 %v827_v2  ;;  %760 = vmatpush3.bf16.msra.mxu1 %v818_v27 }
  0x30   : > { %762 = vmatmul.mubr.bf16.vlgmr.msra.gmra.mxu1 %v194_v30 }
  0x31   : > { %765 = vmatprep.mubr.bf16.mxu1 %v195_v33 }
  0x34   : > { %421 = vmatmul.mubr.bf16.gmra.mxu0 %v194_v30 }
  0x35   : > { %430 = vmatprep.mubr.bf16.mxu0 %v827_v2 }
  0x38   : > { %766 = vmatmul.mubr.bf16.gmra.mxu1 %v196_v38 }
  0x39   : > { %769 = vmatprep.mubr.bf16.mxu1 %v197_v39 }
  0x3c   : > { %431 = vmatmul.mubr.bf16.gmra.mxu0 %v195_v33 }
  0x3d   : > { %440 = vmatprep.mubr.bf16.mxu0 %v827_v2 }
  0x40   : > { %770 = vmatmul.mubr.bf16.gmra.mxu1 %v198_v45 }
  0x41   : > { %773 = vmatprep.mubr.bf16.mxu1 %v199_v44 }
  0x44   : > { %441 = vmatmul.mubr.bf16.gmra.mxu0 %v196_v38 }
  0x45   : > { %450 = vmatprep.mubr.bf16.mxu0 %v827_v2 }
  0x48   : > { %774 = vmatmul.mubr.bf16.gmra.mxu1 %v200_v48 }
  0x4c   : > { %451 = vmatmul.mubr.bf16.gmra.mxu0 %v197_v39 }
  0x4d   : > { %460 = vmatprep.mubr.bf16.mxu0 %v827_v2 }
  0x54   : > { %461 = vmatmul.mubr.bf16.gmra.mxu0 %v198_v45 }
  0x55   : > { %470 = vmatprep.mubr.bf16.mxu0 %v827_v2 }
  0x5c   : > { %471 = vmatmul.mubr.bf16.gmra.mxu0 %v199_v44 }
  0x5d   : > { %480 = vmatprep.mubr.bf16.mxu0 %v827_v2 }
  0x64   : > { %481 = vmatmul.mubr.bf16.gmra.mxu0 %v200_v48 }
  0xec   : > { %v412_v56 = vpop.f32.mrf.mxu0 }
  0xed   : > { %v413_v57 = vadd.f32 %v412_v56, %v964_v54 }
  0xee   : > { %v414_v58 = vpop.f32.mrf.mxu0 }
  0xef   : > { %588 = vst [vmem:[%s971_s22] sm:$0xff] %v413_v57  ;;  %v415_v59 = vadd.f32 %v414_v58, %v966_v55 }
  0xf0   : > { %v416_v61 = vpop.f32.mrf.mxu0  ;;  %v763_v5 = vpop.f32.mrf.mxu1 }
  0xf1   : > { %589 = vst [vmem:[%s971_s22 + $0x8] sm:$0xff] %v415_v59  ;;  %v417_v62 = vadd.f32 %v416_v61, %v964_v54  ;;  %v534_v7 = vadd.f32 %v763_v5, %v980_v1 }
  0xf2   : > { %v418_v63 = vpop.f32.mrf.mxu0  ;;  %v525_v9 = vpop.f32.mrf.mxu1 }
  0xf3   : > { %591 = vst [vmem:[%s971_s22 + $0x18] sm:$0xff] %v417_v62  ;;  %v419_v0 = vadd.f32 %v418_v63, %v966_v55  ;;  %596 = vst [vmem:[%s971_s22 + $0x40] sm:$0xff] %v534_v7  ;;  %v526_v11 = vadd.f32 %v525_v9, %v980_v1 }
  0xf4   : > { %v422_v2 = vpop.f32.mrf.mxu0  ;;  %v764_v13 = vpop.f32.mrf.mxu1 }
  0xf5   : > { %592 = vst [vmem:[%s971_s22 + $0x20] sm:$0xff] %v419_v0  ;;  %v423_v3 = vadd.f32 %v422_v2, %v964_v54  ;;  %590 = vst [vmem:[%s971_s22 + $0x10] sm:$0xff] %v526_v11  ;;  %v537_v15 = vadd.f32 %v764_v13, %v980_v1 }
  0xf6   : > { %v424_v4 = vpop.f32.mrf.mxu0  ;;  %v528_v17 = vpop.f32.mrf.mxu1 }
  0xf7   : > { %594 = vst [vmem:[%s971_s22 + $0x30] sm:$0xff] %v423_v3  ;;  %v425_v6 = vadd.f32 %v424_v4, %v966_v55  ;;  %599 = vst [vmem:[%s971_s22 + $0x58] sm:$0xff] %v537_v15  ;;  %v529_v19 = vadd.f32 %v528_v17, %v980_v1 }
  0xf8   : > { %v426_v8 = vpop.f32.mrf.mxu0  ;;  %v767_v21 = vpop.f32.mrf.mxu1 }
  0xf9   : > { %595 = vst [vmem:[%s971_s22 + $0x38] sm:$0xff] %v425_v6  ;;  %v427_v10 = vadd.f32 %v426_v8, %v964_v54  ;;  %593 = vst [vmem:[%s971_s22 + $0x28] sm:$0xff] %v529_v19  ;;  %v550_v23 = vadd.f32 %v767_v21, %v980_v1 }
  0xfa   : > { %v428_v12 = vpop.f32.mrf.mxu0  ;;  %v541_v25 = vpop.f32.mrf.mxu1 }
  0xfb   : > { %597 = vst [vmem:[%s971_s22 + $0x48] sm:$0xff] %v427_v10  ;;  %v429_v14 = vadd.f32 %v428_v12, %v966_v55  ;;  %608 = vst [vmem:[%s971_s22 + $0xa0] sm:$0xff] %v550_v23  ;;  %v542_v27 = vadd.f32 %v541_v25, %v980_v1 }
  0xfc   : > { %v432_v16 = vpop.f32.mrf.mxu0  ;;  %v768_v29 = vpop.f32.mrf.mxu1 }
  0xfd   : > { %598 = vst [vmem:[%s971_s22 + $0x50] sm:$0xff] %v429_v14  ;;  %v433_v18 = vadd.f32 %v432_v16, %v964_v54  ;;  %602 = vst [vmem:[%s971_s22 + $0x70] sm:$0xff] %v542_v27  ;;  %v553_v31 = vadd.f32 %v768_v29, %v980_v1 }
  0xfe   : > { %v434_v20 = vpop.f32.mrf.mxu0  ;;  %v544_v33 = vpop.f32.mrf.mxu1 }
  0xff   : > { %600 = vst [vmem:[%s971_s22 + $0x60] sm:$0xff] %v433_v18  ;;  %v435_v22 = vadd.f32 %v434_v20, %v966_v55  ;;  %611 = vst [vmem:[%s971_s22 + $0xb8] sm:$0xff] %v553_v31  ;;  %v545_v35 = vadd.f32 %v544_v33, %v980_v1 }
 0x100   : > { %v436_v24 = vpop.f32.mrf.mxu0  ;;  %v771_v37 = vpop.f32.mrf.mxu1 }
 0x101   : > { %601 = vst [vmem:[%s971_s22 + $0x68] sm:$0xff] %v435_v22  ;;  %v437_v26 = vadd.f32 %v436_v24, %v964_v54  ;;  %605 = vst [vmem:[%s971_s22 + $0x88] sm:$0xff] %v545_v35  ;;  %v566_v39 = vadd.f32 %v771_v37, %v980_v1 }
 0x102   : > { %v438_v28 = vpop.f32.mrf.mxu0  ;;  %v557_v41 = vpop.f32.mrf.mxu1 }
 0x103   : > { %603 = vst [vmem:[%s971_s22 + $0x78] sm:$0xff] %v437_v26  ;;  %v439_v30 = vadd.f32 %v438_v28, %v966_v55  ;;  %620 = vst [vmem:[%s971_s22 + $0x100] sm:$0xff] %v566_v39  ;;  %v558_v43 = vadd.f32 %v557_v41, %v980_v1 }
 0x104   : > { %v442_v32 = vpop.f32.mrf.mxu0  ;;  %v772_v45 = vpop.f32.mrf.mxu1 }
 0x105   : > { %604 = vst [vmem:[%s971_s22 + $0x80] sm:$0xff] %v439_v30  ;;  %v443_v34 = vadd.f32 %v442_v32, %v964_v54  ;;  %614 = vst [vmem:[%s971_s22 + $0xd0] sm:$0xff] %v558_v43  ;;  %v569_v47 = vadd.f32 %v772_v45, %v980_v1 }
 0x106   : > { %v444_v36 = vpop.f32.mrf.mxu0  ;;  %v560_v49 = vpop.f32.mrf.mxu1 }
 0x107   : > { %606 = vst [vmem:[%s971_s22 + $0x90] sm:$0xff] %v443_v34  ;;  %v445_v38 = vadd.f32 %v444_v36, %v966_v55  ;;  %623 = vst [vmem:[%s971_s22 + $0x118] sm:$0xff] %v569_v47  ;;  %v561_v51 = vadd.f32 %v560_v49, %v980_v1 }
 0x108   : > { %v446_v40 = vpop.f32.mrf.mxu0  ;;  %v775_v53 = vpop.f32.mrf.mxu1 }
 0x109   : > { %607 = vst [vmem:[%s971_s22 + $0x98] sm:$0xff] %v445_v38  ;;  %v447_v42 = vadd.f32 %v446_v40, %v964_v54  ;;  %617 = vst [vmem:[%s971_s22 + $0xe8] sm:$0xff] %v561_v51  ;;  %v582_v57 = vadd.f32 %v775_v53, %v980_v1 }
 0x10a   : > { %v448_v44 = vpop.f32.mrf.mxu0  ;;  %v573_v59 = vpop.f32.mrf.mxu1 }
 0x10b   : > { %609 = vst [vmem:[%s971_s22 + $0xa8] sm:$0xff] %v447_v42  ;;  %v449_v46 = vadd.f32 %v448_v44, %v966_v55  ;;  %632 = vst [vmem:[%s971_s22 + $0x160] sm:$0xff] %v582_v57  ;;  %v574_v61 = vadd.f32 %v573_v59, %v980_v1 }
 0x10c   : > { %v452_v48 = vpop.f32.mrf.mxu0  ;;  %v776_v63 = vpop.f32.mrf.mxu1 }
 0x10d   : > { %610 = vst [vmem:[%s971_s22 + $0xb0] sm:$0xff] %v449_v46  ;;  %v453_v50 = vadd.f32 %v452_v48, %v964_v54  ;;  %626 = vst [vmem:[%s971_s22 + $0x130] sm:$0xff] %v574_v61  ;;  %v585_v2 = vadd.f32 %v776_v63, %v980_v1 }
 0x10e   : > { %v454_v52 = vpop.f32.mrf.mxu0  ;;  %v576_v4 = vpop.f32.mrf.mxu1 }
 0x10f   : > { %612 = vst [vmem:[%s971_s22 + $0xc0] sm:$0xff] %v453_v50  ;;  %v455_v56 = vadd.f32 %v454_v52, %v966_v55  ;;  %635 = vst [vmem:[%s971_s22 + $0x178] sm:$0xff] %v585_v2  ;;  %v577_v6 = vadd.f32 %v576_v4, %v980_v1 }
 0x110   : > { %v456_v58 = vpop.f32.mrf.mxu0 }
 0x111   : > { %613 = vst [vmem:[%s971_s22 + $0xc8] sm:$0xff] %v455_v56  ;;  %v457_v60 = vadd.f32 %v456_v58, %v964_v54  ;;  %629 = vst [vmem:[%s971_s22 + $0x148] sm:$0xff] %v577_v6 }
 0x112   : > { %v458_v62 = vpop.f32.mrf.mxu0 }
 0x113   : > { %615 = vst [vmem:[%s971_s22 + $0xd8] sm:$0xff] %v457_v60  ;;  %v459_v0 = vadd.f32 %v458_v62, %v966_v55 }
 0x114   : > { %v462_v3 = vpop.f32.mrf.mxu0 }
 0x115   : > { %616 = vst [vmem:[%s971_s22 + $0xe0] sm:$0xff] %v459_v0  ;;  %v463_v5 = vadd.f32 %v462_v3, %v964_v54 }
 0x116   : > { %v464_v7 = vpop.f32.mrf.mxu0 }
 0x117   : > { %618 = vst [vmem:[%s971_s22 + $0xf0] sm:$0xff] %v463_v5  ;;  %v465_v8 = vadd.f32 %v464_v7, %v966_v55 }
 0x118   : > { %v466_v9 = vpop.f32.mrf.mxu0 }
 0x119   : > { %619 = vst [vmem:[%s971_s22 + $0xf8] sm:$0xff] %v465_v8  ;;  %v467_v10 = vadd.f32 %v466_v9, %v964_v54 }
 0x11a   : > { %v468_v11 = vpop.f32.mrf.mxu0 }
 0x11b   : > { %621 = vst [vmem:[%s971_s22 + $0x108] sm:$0xff] %v467_v10  ;;  %v469_v12 = vadd.f32 %v468_v11, %v966_v55 }
 0x11c   : > { %v472_v13 = vpop.f32.mrf.mxu0 }
 0x11d   : > { %622 = vst [vmem:[%s971_s22 + $0x110] sm:$0xff] %v469_v12  ;;  %v473_v1 = vadd.f32 %v472_v13, %v964_v54 }
 0x11e   : > { %v474_v14 = vpop.f32.mrf.mxu0 }
 0x11f   : > { %624 = vst [vmem:[%s971_s22 + $0x120] sm:$0xff] %v473_v1  ;;  %v475_v15 = vadd.f32 %v474_v14, %v966_v55 }
 0x120   : > { %v476_v16 = vpop.f32.mrf.mxu0 }
 0x121   : > { %625 = vst [vmem:[%s971_s22 + $0x128] sm:$0xff] %v475_v15  ;;  %v477_v17 = vadd.f32 %v476_v16, %v964_v54 }
 0x122   : > { %v478_v18 = vpop.f32.mrf.mxu0 }
 0x123   : > { %627 = vst [vmem:[%s971_s22 + $0x138] sm:$0xff] %v477_v17  ;;  %v479_v19 = vadd.f32 %v478_v18, %v966_v55 }
 0x124   : > { %v482_v20 = vpop.f32.mrf.mxu0 }
 0x125   : > { %628 = vst [vmem:[%s971_s22 + $0x140] sm:$0xff] %v479_v19  ;;  %v483_v21 = vadd.f32 %v482_v20, %v964_v54 }
 0x126   : > { %v484_v22 = vpop.f32.mrf.mxu0 }
 0x127   : > { %630 = vst [vmem:[%s971_s22 + $0x150] sm:$0xff] %v483_v21  ;;  %v485_v23 = vadd.f32 %v484_v22, %v966_v55 }
 0x128   : > { %v486_v24 = vpop.f32.mrf.mxu0 }
 0x129   : > { %631 = vst [vmem:[%s971_s22 + $0x158] sm:$0xff] %v485_v23  ;;  %v487_v25 = vadd.f32 %v486_v24, %v964_v54 }
 0x12a   : > { %v488_v26 = vpop.f32.mrf.mxu0 }
 0x12b   : > { %633 = vst [vmem:[%s971_s22 + $0x168] sm:$0xff] %v487_v25  ;;  %v489_v27 = vadd.f32 %v488_v26, %v966_v55 }
 0x12d   : > { %634 = vst [vmem:[%s971_s22 + $0x170] sm:$0xff] %v489_v27 }
 0x12e PF: > { %s13_s12 = sadd.s32 1, %s825_s12  }
 0x12f   : > { %p10_p4 = scmp.ge.s32.totalorder %s13_s12, 4  }
 0x131   :  { %12 = sbr.rel (!%p10_p4) target bundleno = 1 (0x1), region = 62 }

// kernel: bert_class_forward.13
= control target key start
LH: loop header
LB: loop body
LE: loop exit
PB: predicated region body
PF: predicated region fallthrough
CT: control target
= control target key end

     0   :  { %s988_s21 = smov 0   ;;  %s1298_s0 = inlined_call_operand.vmem [shape: f32[256,128], index: 0, kind: input, shape index: {}]   ;;  %s1299_s1 = inlined_call_operand.vmem [shape: f32[256,128], index: 1, kind: input, shape index: {}]   ;;  %s1300_s2 = inlined_call_operand.vmem [shape: bf16[128,128], index: 2, kind: input, shape index: {}]   ;;  %s1301_s3 = inlined_call_operand.vmem [shape: f32[1,128], index: 3, kind: input, shape index: {}]   ;;  %s1302_s4 = inlined_call_operand.vmem [shape: f32[1,128], index: 4, kind: input, shape index: {}]   ;;  %s1303_s5 = inlined_call_operand.vmem [shape: f32[1,128], index: 5, kind: input, shape index: {}]   ;;  %s1304_s6 = inlined_call_operand.vmem [shape: f32[256,128], index: 6, kind: output, shape index: {}]  }
   0x1 LB: > { %s809_s22 = sadd.s32 4294967295, %s951_s21   ;;  %p813_p0 = scmp.ge.s32.totalorder %s951_s21, 1  ;;  %s951_s21 = sphi %s988_s21, %s16_s21  }
   0x2   : > { %p224_p1 = scmp.lt.s32.totalorder %s951_s21, 3 }
   0x4   : > { %p225_p2 = pnand %p813_p0, %p224_p1 }
   0x5   : > { %s814_s25 = sshll.u32 (!%p225_p2), %s809_s22, 4 }
   0x6   : > { %228 = sbr.rel (%p225_p2) target bundleno = 580 (0x244), region = 44  ;;  %p260_p3 = scmp.lt.s32.totalorder (!%p225_p2), %s814_s25, 31 }
   0xb   : > { %v905_v0 = vld [vmem:[%s1300_s2 + $0x38] sm:$0xff]   ;;  %v906_v1 = vld [vmem:[%s1300_s2 + $0x30] sm:$0xff]   ;;  %s1306_s25 = smov (!%p260_p3, %s814_s25), 31  ;;  %v907_v2 = vld [vmem:[%s1300_s2 + $0x28] sm:$0xff]  }
   0xc   : > { %849 = vmatprep.subr.bf16.mxu0 %v905_v0  ;;  %881 = vmatprep.subr.bf16.mxu1 %v905_v0  ;;  %s1005_s30 = sshll.u32 %s1306_s25, 3  ;;  %v908_v3 = vld [vmem:[%s1300_s2 + $0x20] sm:$0xff]   ;;  %v909_v10 = vld [vmem:[%s1300_s2 + $0x18] sm:$0xff]   ;;  %v910_v11 = vld [vmem:[%s1300_s2 + $0x10] sm:$0xff]  }
   0xd   : > { %850 = vmatpush3.bf16.msra.mxu0 %v905_v0  ;;  %889 = vmatpush3.bf16.msra.mxu1 %v905_v0  ;;  %s1011_s9 = scalar_lea.vmem %s1298_s0, %s1005_s30  ;;  %v911_v12 = vld [vmem:[%s1300_s2 + $0x8] sm:$0xff]   ;;  %v912_v13 = vld [vmem:[%s1300_s2] sm:$0xff]   ;;  %s1048_s23 = scalar_lea.vmem %s1299_s1, %s1005_s30 }
   0xe   : > { %851 = vmatprep.subr.bf16.mxu0 %v906_v1  ;;  %882 = vmatprep.subr.bf16.mxu1 %v906_v1  ;;  %v278_v4 = vld [vmem:[%s1011_s9] sm:$0xff]  ;;  %v279_v5 = vld [vmem:[%s1011_s9 + $0x8] sm:$0xff]  ;;  %v280_v14 = vld [vmem:[%s1011_s9 + $0x10] sm:$0xff] }
   0xf   : > { %v286_v6 = vld [vmem:[%s1011_s9 + $0x40] sm:$0xff]  ;;  %v294_v7 = vpack.c.bf16 %v279_v5, %v278_v4  ;;  %v287_v8 = vld [vmem:[%s1011_s9 + $0x48] sm:$0xff]  ;;  %v281_v15 = vld [vmem:[%s1011_s9 + $0x18] sm:$0xff] }
  0x10   : > { %v298_v9 = vpack.c.bf16 %v287_v8, %v286_v6  ;;  %v288_v16 = vld [vmem:[%s1011_s9 + $0x50] sm:$0xff]  ;;  %v289_v17 = vld [vmem:[%s1011_s9 + $0x58] sm:$0xff]  ;;  %v282_v18 = vld [vmem:[%s1011_s9 + $0x20] sm:$0xff]  ;;  %v295_v22 = vpack.c.bf16 %v281_v15, %v280_v14 }
  0x11   : > { %852 = vmatpush3.bf16.msra.mxu0 %v906_v1  ;;  %890 = vmatpush3.bf16.msra.mxu1 %v906_v1  ;;  %v283_v19 = vld [vmem:[%s1011_s9 + $0x28] sm:$0xff]  ;;  %v290_v20 = vld [vmem:[%s1011_s9 + $0x60] sm:$0xff]  ;;  %v299_v23 = vpack.c.bf16 %v289_v17, %v288_v16  ;;  %v284_v26 = vld [vmem:[%s1011_s9 + $0x30] sm:$0xff] }
  0x12   : > { %853 = vmatprep.subr.bf16.mxu0 %v907_v2  ;;  %883 = vmatprep.subr.bf16.mxu1 %v907_v2  ;;  %v291_v21 = vld [vmem:[%s1011_s9 + $0x68] sm:$0xff]  ;;  %v296_v24 = vpack.c.bf16 %v283_v19, %v282_v18  ;;  %v285_v27 = vld [vmem:[%s1011_s9 + $0x38] sm:$0xff]  ;;  %v292_v28 = vld [vmem:[%s1011_s9 + $0x70] sm:$0xff] }
  0x13   : > { %865 = vmatprep.mubr.bf16.mxu0 %v294_v7  ;;  %873 = vmatprep.mubr.bf16.mxu1 %v298_v9  ;;  %v300_v25 = vpack.c.bf16 %v291_v21, %v290_v20  ;;  %v293_v29 = vld [vmem:[%s1011_s9 + $0x78] sm:$0xff]  ;;  %v297_v30 = vpack.c.bf16 %v285_v27, %v284_v26  ;;  %v1053_v32 = vld [vmem:[%s1301_s3] ss:$0 sm:$0xff]  ;;  %v480_v35 = vld [vmem:[%s1048_s23 + $0x50] sm:$0xff]  ;;  %s1231_s9 = scalar_lea.vmem %s1304_s6, %s1005_s30 }
  0x14   : > { %v301_v31 = vpack.c.bf16 %v293_v29, %v292_v28  ;;  %v472_v36 = vld [vmem:[%s1048_s23 + $0x10] sm:$0xff]  ;;  %v473_v46 = vld [vmem:[%s1048_s23 + $0x18] sm:$0xff]  ;;  %v470_v47 = vld [vmem:[%s1048_s23] sm:$0xff] }
  0x15   : > { %854 = vmatpush3.bf16.msra.mxu0 %v907_v2  ;;  %891 = vmatpush3.bf16.msra.mxu1 %v907_v2  ;;  %v481_v56 = vld [vmem:[%s1048_s23 + $0x58] sm:$0xff]  ;;  %v478_v57 = vld [vmem:[%s1048_s23 + $0x40] sm:$0xff]  ;;  %v479_v1 = vld [vmem:[%s1048_s23 + $0x48] sm:$0xff] }
  0x16   : > { %855 = vmatprep.subr.bf16.mxu0 %v908_v3  ;;  %884 = vmatprep.subr.bf16.mxu1 %v908_v3  ;;  %v471_v2 = vld [vmem:[%s1048_s23 + $0x8] sm:$0xff]  ;;  %v477_v6 = vld [vmem:[%s1048_s23 + $0x38] sm:$0xff]  ;;  %v476_v7 = vld [vmem:[%s1048_s23 + $0x30] sm:$0xff] }
  0x17   : > { %v475_v17 = vld [vmem:[%s1048_s23 + $0x28] sm:$0xff]  ;;  %v474_v18 = vld [vmem:[%s1048_s23 + $0x20] sm:$0xff]  ;;  %v485_v29 = vld [vmem:[%s1048_s23 + $0x78] sm:$0xff] }
  0x19   : > { %856 = vmatpush3.bf16.msra.mxu0 %v908_v3  ;;  %892 = vmatpush3.bf16.msra.mxu1 %v908_v3 }
  0x1a   : > { %857 = vmatprep.subr.bf16.mxu0 %v909_v10  ;;  %885 = vmatprep.subr.bf16.mxu1 %v909_v10 }
  0x1d   : > { %858 = vmatpush3.bf16.msra.mxu0 %v909_v10  ;;  %893 = vmatpush3.bf16.msra.mxu1 %v909_v10 }
  0x1e   : > { %859 = vmatprep.subr.bf16.mxu0 %v910_v11  ;;  %886 = vmatprep.subr.bf16.mxu1 %v910_v11 }
  0x21   : > { %860 = vmatpush3.bf16.msra.mxu0 %v910_v11  ;;  %894 = vmatpush3.bf16.msra.mxu1 %v910_v11 }
  0x22   : > { %861 = vmatprep.subr.bf16.mxu0 %v911_v12  ;;  %887 = vmatprep.subr.bf16.mxu1 %v911_v12 }
  0x25   : > { %862 = vmatpush3.bf16.msra.mxu0 %v911_v12  ;;  %895 = vmatpush3.bf16.msra.mxu1 %v911_v12 }
  0x26   : > { %863 = vmatprep.subr.bf16.mxu0 %v912_v13  ;;  %888 = vmatprep.subr.bf16.mxu1 %v912_v13 }
  0x29   : > { %864 = vmatpush3.bf16.msra.mxu0 %v912_v13  ;;  %896 = vmatpush3.bf16.msra.mxu1 %v912_v13 }
  0x2c   : > { %866 = vmatmul.mubr.bf16.vlgmr.msra.gmra.mxu0 %v295_v22  ;;  %874 = vmatmul.mubr.bf16.vlgmr.msra.gmra.mxu1 %v299_v23  ;;  %v483_v23 = vld [vmem:[%s1048_s23 + $0x68] sm:$0xff] }
  0x2d   : > { %869 = vmatprep.mubr.bf16.mxu0 %v296_v24  ;;  %877 = vmatprep.mubr.bf16.mxu1 %v300_v25  ;;  %v482_v24 = vld [vmem:[%s1048_s23 + $0x60] sm:$0xff] }
  0x34   : > { %870 = vmatmul.mubr.bf16.gmra.mxu0 %v297_v30  ;;  %878 = vmatmul.mubr.bf16.gmra.mxu1 %v301_v31  ;;  %v484_v30 = vld [vmem:[%s1048_s23 + $0x70] sm:$0xff] }
  0xec   : > { %v867_v33 = vpop.f32.mrf.mxu0  ;;  %v875_v34 = vpop.f32.mrf.mxu1 }
  0xed   : > { %v416_v37 = vadd.f32 %v867_v33, %v1053_v32  ;;  %v448_v38 = vadd.f32 %v875_v34, %v1053_v32 }
  0xee   : > { %v407_v39 = vpop.f32.mrf.mxu0  ;;  %v439_v40 = vpop.f32.mrf.mxu1 }
  0xef   : > { %v408_v41 = vadd.f32 %v1053_v32, %v407_v39  ;;  %v1060_v42 = vadd.f32 %v480_v35, %v448_v38  ;;  %v1062_v43 = vadd.f32 %v472_v36, %v416_v37  ;;  %v440_v51 = vadd.f32 %v1053_v32, %v439_v40 }
  0xf0   : > { %v868_v44 = vpop.f32.mrf.mxu0  ;;  %v876_v45 = vpop.f32.mrf.mxu1 }
  0xf1   : > { %v419_v48 = vadd.f32 %v868_v44, %v1053_v32  ;;  %524 = vadd.xlane.f32.xlu0 %v1060_v42  ;;  %508 = vadd.xlane.f32.xlu1 %v1062_v43  ;;  %v451_v52 = vadd.f32 %v876_v45, %v1053_v32  ;;  %v1073_v54 = vadd.f32 %v470_v47, %v408_v41 }
  0xf2   : > { %v410_v49 = vpop.f32.mrf.mxu0  ;;  %v442_v50 = vpop.f32.mrf.mxu1  ;;  %v1083_v63 = vadd.f32 %v478_v57, %v440_v51 }
  0xf3   : > { %v1071_v53 = vadd.f32 %v473_v46, %v419_v48  ;;  %v411_v60 = vadd.f32 %v1053_v32, %v410_v49  ;;  %v443_v61 = vadd.f32 %v1053_v32, %v442_v50  ;;  %v1081_v62 = vadd.f32 %v481_v56, %v451_v52 }
  0xf4   : > { %v871_v55 = vpop.f32.mrf.mxu0  ;;  %v879_v58 = vpop.f32.mrf.mxu1 }
  0xf5   : > { %510 = vadd.xlane.f32.xlu1 %v1071_v53  ;;  %504 = vadd.xlane.f32.xlu0 %v1073_v54  ;;  %v432_v4 = vadd.f32 %v871_v55, %v1053_v32  ;;  %v1093_v8 = vadd.f32 %v479_v1, %v443_v61  ;;  %v1095_v9 = vadd.f32 %v471_v2, %v411_v60 }
  0xf6   : > { %v423_v59 = vpop.f32.mrf.mxu0  ;;  %v455_v3 = vpop.f32.mrf.mxu1  ;;  %v464_v25 = vadd.f32 %v879_v58, %v1053_v32 }
  0xf7   : > { %v1101_v13 = vadd.f32 %v476_v7, %v432_v4  ;;  %v424_v14 = vadd.f32 %v1053_v32, %v423_v59  ;;  %v456_v19 = vadd.f32 %v1053_v32, %v455_v3 }
  0xf8   : > { %v872_v0 = vpop.f32.mrf.mxu0  ;;  %v880_v11 = vpop.f32.mrf.mxu1  ;;  %v1131_v33 = vadd.f32 %v484_v30, %v464_v25 }
  0xf9   : > { %526 = vadd.xlane.f32.xlu1 %v1081_v62  ;;  %520 = vadd.xlane.f32.xlu0 %v1083_v63  ;;  %v435_v5 = vadd.f32 %v872_v0, %v1053_v32  ;;  %v1113_v22 = vadd.f32 %v474_v18, %v424_v14  ;;  %v467_v26 = vadd.f32 %v880_v11, %v1053_v32 }
  0xfa   : > { %v426_v10 = vpop.f32.mrf.mxu0  ;;  %v458_v16 = vpop.f32.mrf.mxu1  ;;  %v1123_v28 = vadd.f32 %v482_v24, %v456_v19 }
  0xfb   : > { %v1099_v12 = vadd.f32 %v477_v6, %v435_v5  ;;  %v427_v15 = vadd.f32 %v1053_v32, %v426_v10  ;;  %v459_v20 = vadd.f32 %v1053_v32, %v458_v16  ;;  %v1129_v31 = vadd.f32 %v485_v29, %v467_v26 }
  0xfd   : > { %522 = vadd.xlane.f32.xlu1 %v1093_v8  ;;  %506 = vadd.xlane.f32.xlu0 %v1095_v9  ;;  %v1111_v21 = vadd.f32 %v475_v17, %v427_v15  ;;  %v1121_v27 = vadd.f32 %v483_v23, %v459_v20 }
 0x101   : > { %518 = vadd.xlane.f32.xlu1 %v1099_v12  ;;  %516 = vadd.xlane.f32.xlu0 %v1101_v13 }
 0x105   : > { %514 = vadd.xlane.f32.xlu1 %v1111_v21  ;;  %512 = vadd.xlane.f32.xlu0 %v1113_v22 }
 0x109   : > { %530 = vadd.xlane.f32.xlu1 %v1121_v27  ;;  %528 = vadd.xlane.f32.xlu0 %v1123_v28 }
 0x10d   : > { %534 = vadd.xlane.f32.xlu1 %v1129_v31  ;;  %532 = vadd.xlane.f32.xlu0 %v1131_v33 }
 0x17a   : > { %v525_v34 = vpop.xlane.xlu0 %524  ;;  %v509_v32 = vpop.xlane.xlu1 %508 }
 0x17b   : > { %v547_v35 = vmul.f32 0.0078125, %v525_v34  ;;  %v539_v36 = vmul.f32 0.0078125, %v509_v32 }
 0x17d   : > { %v1136_v37 = vsub.f32 %v1062_v43, %v539_v36  ;;  %v1139_v40 = vsub.f32 %v1060_v42, %v547_v35 }
 0x17e   : > { %v511_v38 = vpop.xlane.xlu1 %510  ;;  %v505_v39 = vpop.xlane.xlu0 %504 }
 0x17f   : > { %v540_v41 = vmul.f32 0.0078125, %v511_v38  ;;  %v537_v44 = vmul.f32 0.0078125, %v505_v39  ;;  %v571_v45 = vmul.f32 %v1136_v37, %v1136_v37  ;;  %v579_v51 = vmul.f32 %v1139_v40, %v1139_v40 }
 0x181   : > { %v1144_v46 = vsub.f32 %v1071_v53, %v540_v41  ;;  %589 = vadd.xlane.f32.xlu0 %v571_v45  ;;  %v1147_v47 = vsub.f32 %v1073_v54, %v537_v44 }
 0x182   : > { %v527_v48 = vpop.xlane.xlu1 %526  ;;  %v521_v43 = vpop.xlane.xlu0 %520 }
 0x183   : > { %v548_v49 = vmul.f32 0.0078125, %v527_v48  ;;  %v545_v50 = vmul.f32 0.0078125, %v521_v43  ;;  %v572_v42 = vmul.f32 %v1144_v46, %v1144_v46  ;;  %v569_v54 = vmul.f32 %v1147_v47, %v1147_v47 }
 0x185   : > { %v1154_v52 = vsub.f32 %v1081_v62, %v548_v49  ;;  %591 = vadd.xlane.f32.xlu1 %v572_v42  ;;  %605 = vadd.xlane.f32.xlu0 %v579_v51  ;;  %v1159_v56 = vsub.f32 %v1083_v63, %v545_v50 }
 0x186   : > { %v523_v53 = vpop.xlane.xlu1 %522  ;;  %v507_v55 = vpop.xlane.xlu0 %506 }
 0x187   : > { %v546_v57 = vmul.f32 0.0078125, %v523_v53  ;;  %v538_v58 = vmul.f32 0.0078125, %v507_v55  ;;  %v580_v59 = vmul.f32 %v1154_v52, %v1154_v52  ;;  %v577_v63 = vmul.f32 %v1159_v56, %v1159_v56 }
 0x189   : > { %v1164_v60 = vsub.f32 %v1095_v9, %v538_v58  ;;  %607 = vadd.xlane.f32.xlu1 %v580_v59  ;;  %585 = vadd.xlane.f32.xlu0 %v569_v54  ;;  %v1167_v61 = vsub.f32 %v1093_v8, %v546_v57 }
 0x18a   : > { %v519_v62 = vpop.xlane.xlu1 %518  ;;  %v517_v0 = vpop.xlane.xlu0 %516 }
 0x18b   : > { %v544_v1 = vmul.f32 0.0078125, %v519_v62  ;;  %v543_v2 = vmul.f32 0.0078125, %v517_v0  ;;  %v570_v3 = vmul.f32 %v1164_v60, %v1164_v60  ;;  %v578_v7 = vmul.f32 %v1167_v61, %v1167_v61 }
 0x18d   : > { %v1174_v4 = vsub.f32 %v1101_v13, %v543_v2  ;;  %601 = vadd.xlane.f32.xlu0 %v577_v63  ;;  %587 = vadd.xlane.f32.xlu1 %v570_v3  ;;  %v1179_v8 = vsub.f32 %v1099_v12, %v544_v1  ;;  %v1218_v3 = vld [vmem:[%s1302_s4] ss:$0 sm:$0xff] }
 0x18e   : > { %v515_v5 = vpop.xlane.xlu1 %514  ;;  %v513_v6 = vpop.xlane.xlu0 %512 }
 0x18f   : > { %v542_v9 = vmul.f32 0.0078125, %v515_v5  ;;  %v541_v10 = vmul.f32 0.0078125, %v513_v6  ;;  %v575_v11 = vmul.f32 %v1174_v4, %v1174_v4  ;;  %v576_v12 = vmul.f32 %v1179_v8, %v1179_v8 }
 0x191   : > { %v1184_v14 = vsub.f32 %v1113_v22, %v541_v10  ;;  %603 = vadd.xlane.f32.xlu1 %v578_v7  ;;  %597 = vadd.xlane.f32.xlu0 %v575_v11  ;;  %v1187_v13 = vsub.f32 %v1111_v21, %v542_v9  ;;  %v1224_v9 = vld [vmem:[%s1303_s5] ss:$0 sm:$0xff] }
 0x192   : > { %v531_v15 = vpop.xlane.xlu1 %530  ;;  %v529_v16 = vpop.xlane.xlu0 %528 }
 0x193   : > { %v550_v17 = vmul.f32 0.0078125, %v531_v15  ;;  %v549_v18 = vmul.f32 0.0078125, %v529_v16  ;;  %v573_v19 = vmul.f32 %v1184_v14, %v1184_v14  ;;  %v574_v21 = vmul.f32 %v1187_v13, %v1187_v13 }
 0x195   : > { %v1194_v20 = vsub.f32 %v1123_v28, %v549_v18  ;;  %599 = vadd.xlane.f32.xlu1 %v576_v12  ;;  %593 = vadd.xlane.f32.xlu0 %v573_v19  ;;  %v1199_v24 = vsub.f32 %v1121_v27, %v550_v17 }
 0x196   : > { %v535_v22 = vpop.xlane.xlu1 %534  ;;  %v533_v23 = vpop.xlane.xlu0 %532 }
 0x197   : > { %v552_v25 = vmul.f32 0.0078125, %v535_v22  ;;  %v551_v26 = vmul.f32 0.0078125, %v533_v23  ;;  %v581_v29 = vmul.f32 %v1194_v20, %v1194_v20  ;;  %v582_v34 = vmul.f32 %v1199_v24, %v1199_v24 }
 0x199   : > { %v1204_v30 = vsub.f32 %v1131_v33, %v551_v26  ;;  %595 = vadd.xlane.f32.xlu1 %v574_v21  ;;  %609 = vadd.xlane.f32.xlu0 %v581_v29  ;;  %v1207_v28 = vsub.f32 %v1129_v31, %v552_v25 }
 0x19b   : > { %v583_v27 = vmul.f32 %v1204_v30, %v1204_v30  ;;  %v584_v32 = vmul.f32 %v1207_v28, %v1207_v28 }
 0x19d   : > { %611 = vadd.xlane.f32.xlu1 %v582_v34  ;;  %613 = vadd.xlane.f32.xlu0 %v583_v27 }
 0x1a1   : > { %615 = vadd.xlane.f32.xlu1 %v584_v32 }
 0x20a   : > { %v590_v35 = vpop.xlane.xlu0 %589 }
 0x20b   : > { %v619_v33 = vmul.f32 0.0078125, %v590_v35 }
 0x20d   : > { %v635_v36 = vadd.f32 1e-12, %v619_v33 }
 0x20e   : > { %v592_v38 = vpop.xlane.xlu1 %591  ;;  %v606_v39 = vpop.xlane.xlu0 %605 }
 0x20f   : > { %913 = vrsqrt.f32 %v635_v36  ;;  %v620_v31 = vmul.f32 0.0078125, %v592_v38  ;;  %v627_v41 = vmul.f32 0.0078125, %v606_v39 }
 0x211   : > { %v636_v44 = vadd.f32 1e-12, %v620_v31  ;;  %v643_v45 = vadd.f32 1e-12, %v627_v41 }
 0x212   : > { %v608_v48 = vpop.xlane.xlu1 %607  ;;  %v586_v43 = vpop.xlane.xlu0 %585 }
 0x213   : > { %915 = vrsqrt.f32 %v636_v44  ;;  %v628_v49 = vmul.f32 0.0078125, %v608_v48  ;;  %v617_v50 = vmul.f32 0.0078125, %v586_v43 }
 0x214   : > { %917 = vrsqrt.f32 %v643_v45 }
 0x215   : > { %v644_v42 = vadd.f32 1e-12, %v628_v49  ;;  %v633_v51 = vadd.f32 1e-12, %v617_v50 }
 0x216   : > { %v588_v53 = vpop.xlane.xlu1 %587  ;;  %v602_v55 = vpop.xlane.xlu0 %601 }
 0x217   : > { %919 = vrsqrt.f32 %v644_v42  ;;  %v618_v54 = vmul.f32 0.0078125, %v588_v53  ;;  %v625_v57 = vmul.f32 0.0078125, %v602_v55 }
 0x218   : > { %921 = vrsqrt.f32 %v633_v51 }
 0x219   : > { %v634_v58 = vadd.f32 1e-12, %v618_v54  ;;  %v641_v59 = vadd.f32 1e-12, %v625_v57 }
 0x21a   : > { %v604_v62 = vpop.xlane.xlu1 %603  ;;  %v598_v0 = vpop.xlane.xlu0 %597 }
 0x21b   : > { %923 = vrsqrt.f32 %v634_v58  ;;  %v626_v1 = vmul.f32 0.0078125, %v604_v62  ;;  %v623_v2 = vmul.f32 0.0078125, %v598_v0 }
 0x21c   : > { %v914_v63 = vpop.eup %913  ;;  %925 = vrsqrt.f32 %v641_v59 }
 0x21d   : > { %v667_v5 = vmul.f32 %v914_v63, %v1136_v37  ;;  %v642_v6 = vadd.f32 1e-12, %v626_v1  ;;  %v639_v7 = vadd.f32 1e-12, %v623_v2 }
 0x21e   : > { %v600_v10 = vpop.xlane.xlu1 %599  ;;  %v594_v11 = vpop.xlane.xlu0 %593 }
 0x21f   : > { %v689_v15 = vmul.f32 %v1218_v3, %v667_v5  ;;  %927 = vrsqrt.f32 %v642_v6  ;;  %v624_v16 = vmul.f32 0.0078125, %v600_v10  ;;  %v621_v17 = vmul.f32 0.0078125, %v594_v11 }
 0x220   : > { %v916_v18 = vpop.eup %915  ;;  %929 = vrsqrt.f32 %v639_v7 }
 0x221   : > { %v918_v37 = vpop.eup %917  ;;  %v711_v12 = vadd.f32 %v1224_v9, %v689_v15  ;;  %v668_v19 = vmul.f32 %v916_v18, %v1144_v46  ;;  %v640_v22 = vadd.f32 1e-12, %v624_v16  ;;  %v637_v23 = vadd.f32 1e-12, %v621_v17 }
 0x222   : > { %v675_v21 = vmul.f32 %v918_v37, %v1139_v40  ;;  %v596_v25 = vpop.xlane.xlu1 %595  ;;  %v610_v26 = vpop.xlane.xlu0 %609 }
 0x223   : > { %727 = vst [vmem:[%s1231_s9 + $0x10] sm:$0xff] %v711_v12  ;;  %v690_v29 = vmul.f32 %v1218_v3, %v668_v19  ;;  %931 = vrsqrt.f32 %v640_v22  ;;  %v622_v34 = vmul.f32 0.0078125, %v596_v25  ;;  %v629_v27 = vmul.f32 0.0078125, %v610_v26 }
 0x224   : > { %v920_v32 = vpop.eup %919  ;;  %v697_v35 = vmul.f32 %v1218_v3, %v675_v21  ;;  %933 = vrsqrt.f32 %v637_v23 }
 0x225   : > { %v922_v33 = vpop.eup %921  ;;  %v712_v46 = vadd.f32 %v1224_v9, %v690_v29  ;;  %v676_v36 = vmul.f32 %v920_v32, %v1154_v52  ;;  %v638_v40 = vadd.f32 1e-12, %v622_v34  ;;  %v645_v38 = vadd.f32 1e-12, %v629_v27 }
 0x226   : > { %v719_v39 = vadd.f32 %v1224_v9, %v697_v35  ;;  %v665_v31 = vmul.f32 %v922_v33, %v1147_v47  ;;  %v612_v41 = vpop.xlane.xlu1 %611  ;;  %v614_v44 = vpop.xlane.xlu0 %613 }
 0x227   : > { %728 = vst [vmem:[%s1231_s9 + $0x18] sm:$0xff] %v712_v46  ;;  %v698_v45 = vmul.f32 %v1218_v3, %v676_v36  ;;  %935 = vrsqrt.f32 %v638_v40  ;;  %v630_v48 = vmul.f32 0.0078125, %v612_v41  ;;  %v631_v43 = vmul.f32 0.0078125, %v614_v44 }
 0x228   : > { %v924_v49 = vpop.eup %923  ;;  %735 = vst [vmem:[%s1231_s9 + $0x50] sm:$0xff] %v719_v39  ;;  %v687_v52 = vmul.f32 %v1218_v3, %v665_v31  ;;  %937 = vrsqrt.f32 %v645_v38 }
 0x229   : > { %v926_v50 = vpop.eup %925  ;;  %v720_v42 = vadd.f32 %v1224_v9, %v698_v45  ;;  %v666_v47 = vmul.f32 %v924_v49, %v1164_v60  ;;  %v646_v51 = vadd.f32 1e-12, %v630_v48  ;;  %v647_v53 = vadd.f32 1e-12, %v631_v43 }
 0x22a   : > { %v709_v55 = vadd.f32 %v1224_v9, %v687_v52  ;;  %v673_v54 = vmul.f32 %v926_v50, %v1159_v56  ;;  %v616_v57 = vpop.xlane.xlu1 %615 }
 0x22b   : > { %736 = vst [vmem:[%s1231_s9 + $0x58] sm:$0xff] %v720_v42  ;;  %v688_v58 = vmul.f32 %v1218_v3, %v666_v47  ;;  %939 = vrsqrt.f32 %v646_v51  ;;  %v632_v59 = vmul.f32 0.0078125, %v616_v57 }
 0x22c   : > { %v928_v62 = vpop.eup %927  ;;  %725 = vst [vmem:[%s1231_s9] sm:$0xff] %v709_v55  ;;  %v695_v0 = vmul.f32 %v1218_v3, %v673_v54  ;;  %941 = vrsqrt.f32 %v647_v53 }
 0x22d   : > { %v930_v60 = vpop.eup %929  ;;  %v710_v1 = vadd.f32 %v1224_v9, %v688_v58  ;;  %v674_v2 = vmul.f32 %v928_v62, %v1167_v61  ;;  %v648_v56 = vadd.f32 1e-12, %v632_v59 }
 0x22e   : > { %v717_v63 = vadd.f32 %v1224_v9, %v695_v0  ;;  %v671_v5 = vmul.f32 %v930_v60, %v1174_v4 }
 0x22f   : > { %726 = vst [vmem:[%s1231_s9 + $0x8] sm:$0xff] %v710_v1  ;;  %v696_v6 = vmul.f32 %v1218_v3, %v674_v2  ;;  %943 = vrsqrt.f32 %v648_v56 }
 0x230   : > { %v932_v7 = vpop.eup %931  ;;  %733 = vst [vmem:[%s1231_s9 + $0x40] sm:$0xff] %v717_v63  ;;  %v693_v10 = vmul.f32 %v1218_v3, %v671_v5 }
 0x231   : > { %v934_v11 = vpop.eup %933  ;;  %v718_v15 = vadd.f32 %v1224_v9, %v696_v6  ;;  %v672_v61 = vmul.f32 %v932_v7, %v1179_v8 }
 0x232   : > { %v715_v16 = vadd.f32 %v1224_v9, %v693_v10  ;;  %v669_v17 = vmul.f32 %v934_v11, %v1184_v14 }
 0x233   : > { %734 = vst [vmem:[%s1231_s9 + $0x48] sm:$0xff] %v718_v15  ;;  %v694_v4 = vmul.f32 %v1218_v3, %v672_v61 }
 0x234   : > { %v936_v18 = vpop.eup %935  ;;  %731 = vst [vmem:[%s1231_s9 + $0x30] sm:$0xff] %v715_v16  ;;  %v691_v37 = vmul.f32 %v1218_v3, %v669_v17 }
 0x235   : > { %v938_v12 = vpop.eup %937  ;;  %v716_v19 = vadd.f32 %v1224_v9, %v694_v4  ;;  %v670_v22 = vmul.f32 %v936_v18, %v1187_v13 }
 0x236   : > { %v713_v8 = vadd.f32 %v1224_v9, %v691_v37  ;;  %v677_v23 = vmul.f32 %v938_v12, %v1194_v20 }
 0x237   : > { %732 = vst [vmem:[%s1231_s9 + $0x38] sm:$0xff] %v716_v19  ;;  %v692_v14 = vmul.f32 %v1218_v3, %v670_v22 }
 0x238   : > { %v940_v21 = vpop.eup %939  ;;  %729 = vst [vmem:[%s1231_s9 + $0x20] sm:$0xff] %v713_v8  ;;  %v699_v25 = vmul.f32 %v1218_v3, %v677_v23 }
 0x239   : > { %v942_v26 = vpop.eup %941  ;;  %v714_v29 = vadd.f32 %v1224_v9, %v692_v14  ;;  %v678_v13 = vmul.f32 %v940_v21, %v1199_v24 }
 0x23a   : > { %v721_v34 = vadd.f32 %v1224_v9, %v699_v25  ;;  %v679_v27 = vmul.f32 %v942_v26, %v1204_v30 }
 0x23b   : > { %730 = vst [vmem:[%s1231_s9 + $0x28] sm:$0xff] %v714_v29  ;;  %v700_v20 = vmul.f32 %v1218_v3, %v678_v13 }
 0x23c   : > { %v944_v32 = vpop.eup %943  ;;  %737 = vst [vmem:[%s1231_s9 + $0x60] sm:$0xff] %v721_v34  ;;  %v701_v35 = vmul.f32 %v1218_v3, %v679_v27 }
 0x23d   : > { %v722_v33 = vadd.f32 %v1224_v9, %v700_v20  ;;  %v680_v46 = vmul.f32 %v944_v32, %v1207_v28 }
 0x23e   : > { %v723_v36 = vadd.f32 %v1224_v9, %v701_v35 }
 0x23f   : > { %738 = vst [vmem:[%s1231_s9 + $0x68] sm:$0xff] %v722_v33  ;;  %v702_v24 = vmul.f32 %v1218_v3, %v680_v46 }
 0x240   : > { %739 = vst [vmem:[%s1231_s9 + $0x70] sm:$0xff] %v723_v36 }
 0x241   : > { %v724_v40 = vadd.f32 %v1224_v9, %v702_v24 }
 0x243   : > { %740 = vst [vmem:[%s1231_s9 + $0x78] sm:$0xff] %v724_v40 }
 0x244 PF: > { %s16_s21 = sadd.s32 1, %s951_s21  }
 0x245   : > { %p13_p4 = scmp.ge.s32.totalorder %s16_s21, 4  }
 0x247   :  { %15 = sbr.rel (!%p13_p4) target bundleno = 1 (0x1), region = 77 }

// kernel: bert_class_forward.12
= control target key start
LH: loop header
LB: loop body
LE: loop exit
PB: predicated region body
PF: predicated region fallthrough
CT: control target
= control target key end

     0   :  { %s3212_s9 = smov 0   ;;  %s4569_s0 = inlined_call_operand.vmem [shape: f32[2,128,384], index: 0, kind: input, shape index: {}]   ;;  %s4570_s1 = inlined_call_operand.vmem [shape: f32[2,1,128], index: 1, kind: input, shape index: {}]   ;;  %s4571_s2 = inlined_call_operand.vmem [shape: f32[2,128,128], index: 2, kind: output, shape index: {}]  }
   0x1 LB: > { %s2457_s10 = sadd.s32 4294967295, %s3192_s9   ;;  %p2461_p0 = scmp.ge.s32.totalorder %s3192_s9, 1  ;;  %s3192_s9 = sphi %s3212_s9, %s12_s9  }
   0x2   : > { %p120_p1 = scmp.lt.s32.totalorder %s3192_s9, 3 }
   0x4   : > { %p121_p2 = pnand %p2461_p0, %p120_p1 }
   0x6   : > { %124 = sbr.rel (%p121_p2) target bundleno = 2825 (0xb09), region = 28 }
   0xb   : > { %p145_p3 = scmp.lt.s32.totalorder %s2457_s10, 1  ;;  %vm232_vm0 = vcmask 261120   ;;  %s3194_s15 = smov 96   ;;  %vm2343_vm1 = vcmask 523264   ;;  %vm2360_vm2 = vcmask 785408  }
   0xc   : > { %s3195_s19 = smov 64   ;;  %s3196_s20 = smov 32  }
   0xd   : > { %s4611_s10 = smov (!%p145_p3, %s2457_s10), 1 }
   0xe   : > { %s2917_s11 = smul.u32 384, %s4611_s10  ;;  %s3400_s18 = scalar_lea.vmem %s4570_s1, %s4611_s10 }
   0xf   : > { %s2500_s21 = sshll.u32 %s4611_s10, 7 }
  0x10   : > { %s3226_s14 = scalar_lea.vmem %s4569_s0, %s2917_s11  ;;  %s4464_s24 = scalar_lea.vmem %s4571_s2, %s2500_s21 }
  0x11   : > { %v202_v0 = vld [vmem:[%s3226_s14 + $0x158] sm:$0xff]  ;;  %v205_v1 = vld [vmem:[%s3226_s14 + $0x170] sm:$0xff]  ;;  %v196_v2 = vld [vmem:[%s3226_s14 + $0x128] sm:$0xff] }
  0x12   : > { %v3231_v3 = vpack.c.bf16 %v205_v1, %v202_v0  ;;  %v199_v4 = vld [vmem:[%s3226_s14 + $0x140] sm:$0xff]  ;;  %v162_v8 = vld [vmem:[%s3226_s14 + $0x18] sm:$0xff]  ;;  %v193_v10 = vld [vmem:[%s3226_s14 + $0x110] sm:$0xff] }
  0x13   : > { %v3234_v5 = vpack.c.bf16 %v199_v4, %v196_v2  ;;  %v159_v7 = vld [vmem:[%s3226_s14] sm:$0xff]  ;;  %v190_v9 = vld [vmem:[%s3226_s14 + $0xf8] sm:$0xff]  ;;  %v184_v14 = vld [vmem:[%s3226_s14 + $0xc8] sm:$0xff] }
  0x14   : > { %2885 = vmatprep.subr.msk.bf16.mxu0 %vm232_vm0, %v3231_v3  ;;  %v279_v6 = vsel %vm232_vm0, %v3231_v3, 0  ;;  %711 = vrot.lane.b32.xlu0 %v3231_v3, %s3194_s15  ;;  %v3250_v11 = vpack.c.bf16 %v162_v8, %v159_v7  ;;  %v3256_v13 = vpack.c.bf16 %v193_v10, %v190_v9  ;;  %v187_v15 = vld [vmem:[%s3226_s14 + $0xe0] sm:$0xff]  ;;  %v178_v18 = vld [vmem:[%s3226_s14 + $0x98] sm:$0xff]  ;;  %v181_v19 = vld [vmem:[%s3226_s14 + $0xb0] sm:$0xff] }
  0x15   : > { %2630 = vmatpush3.bf16.xpose.msra.mxu0 %v279_v6  ;;  %709 = vrot.lane.b32.xlu1 %v3234_v5, %s3194_s15  ;;  %v276_v12 = vsel %vm232_vm0, %v3234_v5, 0  ;;  %v3264_v17 = vpack.c.bf16 %v187_v15, %v184_v14  ;;  %v3272_v21 = vpack.c.bf16 %v181_v19, %v178_v18  ;;  %v172_v22 = vld [vmem:[%s3226_s14 + $0x68] sm:$0xff]  ;;  %v175_v23 = vld [vmem:[%s3226_s14 + $0x80] sm:$0xff]  ;;  %v166_v26 = vld [vmem:[%s3226_s14 + $0x38] sm:$0xff] }
  0x16   : > { %2886 = vmatprep.subr.msk.bf16.mxu0 %vm232_vm0, %v3234_v5  ;;  %2645 = vmatprep.mubr.msk.bf16.mxu0 %vm232_vm0, %v3250_v11  ;;  %v273_v16 = vsel %vm232_vm0, %v3256_v13, 0  ;;  %v3280_v25 = vpack.c.bf16 %v175_v23, %v172_v22  ;;  %v169_v27 = vld [vmem:[%s3226_s14 + $0x50] sm:$0xff]  ;;  %v160_v30 = vld [vmem:[%s3226_s14 + $0x8] sm:$0xff]  ;;  %v163_v31 = vld [vmem:[%s3226_s14 + $0x20] sm:$0xff] }
  0x17   : > { %v270_v20 = vsel %vm232_vm0, %v3264_v17, 0  ;;  %v267_v24 = vsel %vm232_vm0, %v3272_v21, 0  ;;  %v3288_v29 = vpack.c.bf16 %v169_v27, %v166_v26  ;;  %v3296_v33 = vpack.c.bf16 %v163_v31, %v160_v30  ;;  %v165_v35 = vld [vmem:[%s3226_s14 + $0x30] sm:$0xff]  ;;  %v168_v36 = vld [vmem:[%s3226_s14 + $0x48] sm:$0xff]  ;;  %v171_v37 = vld [vmem:[%s3226_s14 + $0x60] sm:$0xff] }
  0x18   : > { %v264_v28 = vsel %vm232_vm0, %v3280_v25, 0  ;;  %v174_v38 = vld [vmem:[%s3226_s14 + $0x78] sm:$0xff]  ;;  %v3306_v39 = vpack.c.bf16 %v168_v36, %v165_v35  ;;  %v177_v41 = vld [vmem:[%s3226_s14 + $0x90] sm:$0xff]  ;;  %v180_v42 = vld [vmem:[%s3226_s14 + $0xa8] sm:$0xff] }
  0x19   : > { %v261_v32 = vsel %vm232_vm0, %v3288_v29, 0  ;;  %v258_v34 = vsel %vm232_vm0, %v3296_v33, 0  ;;  %v3308_v40 = vpack.c.bf16 %v174_v38, %v171_v37  ;;  %v183_v43 = vld [vmem:[%s3226_s14 + $0xc0] sm:$0xff]  ;;  %v186_v44 = vld [vmem:[%s3226_s14 + $0xd8] sm:$0xff]  ;;  %v3318_v45 = vpack.c.bf16 %v180_v42, %v177_v41  ;;  %v189_v47 = vld [vmem:[%s3226_s14 + $0xf0] sm:$0xff] }
  0x1a   : > { %v3320_v46 = vpack.c.bf16 %v186_v44, %v183_v43  ;;  %v192_v48 = vld [vmem:[%s3226_s14 + $0x108] sm:$0xff]  ;;  %v195_v49 = vld [vmem:[%s3226_s14 + $0x120] sm:$0xff]  ;;  %v198_v50 = vld [vmem:[%s3226_s14 + $0x138] sm:$0xff] }
  0x1b   : > { %v3330_v51 = vpack.c.bf16 %v192_v48, %v189_v47  ;;  %v3332_v52 = vpack.c.bf16 %v198_v50, %v195_v49  ;;  %v201_v53 = vld [vmem:[%s3226_s14 + $0x150] sm:$0xff]  ;;  %v204_v54 = vld [vmem:[%s3226_s14 + $0x168] sm:$0xff]  ;;  %v203_v56 = vld [vmem:[%s3226_s14 + $0x160] sm:$0xff] }
  0x1c   : > { %v3340_v55 = vpack.c.bf16 %v204_v54, %v201_v53  ;;  %v206_v57 = vld [vmem:[%s3226_s14 + $0x178] sm:$0xff]  ;;  %v197_v58 = vld [vmem:[%s3226_s14 + $0x130] sm:$0xff]  ;;  %v200_v60 = vld [vmem:[%s3226_s14 + $0x148] sm:$0xff] }
  0x1d   : > { %2632 = vmatpush3.bf16.xpose.msra.mxu0 %v276_v12  ;;  %v3347_v59 = vpack.c.bf16 %v206_v57, %v203_v56  ;;  %v3350_v61 = vpack.c.bf16 %v200_v60, %v197_v58  ;;  %v191_v62 = vld [vmem:[%s3226_s14 + $0x100] sm:$0xff]  ;;  %v194_v63 = vld [vmem:[%s3226_s14 + $0x118] sm:$0xff]  ;;  %v185_v1 = vld [vmem:[%s3226_s14 + $0xd0] sm:$0xff] }
  0x1e   : > { %2887 = vmatprep.subr.msk.bf16.mxu0 %vm232_vm0, %v3256_v13  ;;  %v3357_v0 = vpack.c.bf16 %v194_v63, %v191_v62  ;;  %v188_v2 = vld [vmem:[%s3226_s14 + $0xe8] sm:$0xff]  ;;  %v179_v6 = vld [vmem:[%s3226_s14 + $0xa0] sm:$0xff]  ;;  %v182_v7 = vld [vmem:[%s3226_s14 + $0xb8] sm:$0xff] }
  0x1f   : > { %2661 = vmatprep.subr.bf16.mxu1 %v3347_v59  ;;  %v3363_v4 = vpack.c.bf16 %v188_v2, %v185_v1  ;;  %v3369_v8 = vpack.c.bf16 %v182_v7, %v179_v6  ;;  %v173_v9 = vld [vmem:[%s3226_s14 + $0x70] sm:$0xff]  ;;  %v176_v10 = vld [vmem:[%s3226_s14 + $0x88] sm:$0xff]  ;;  %v167_v14 = vld [vmem:[%s3226_s14 + $0x40] sm:$0xff] }
  0x20   : > { %2662 = vmatpush3.bf16.msra.mxu1 %v3347_v59  ;;  %v3376_v12 = vpack.c.bf16 %v176_v10, %v173_v9  ;;  %v170_v15 = vld [vmem:[%s3226_s14 + $0x58] sm:$0xff]  ;;  %v161_v18 = vld [vmem:[%s3226_s14 + $0x10] sm:$0xff]  ;;  %v164_v19 = vld [vmem:[%s3226_s14 + $0x28] sm:$0xff] }
  0x21   : > { %2663 = vmatprep.subr.bf16.mxu1 %v3350_v61  ;;  %v3403_v23 = vld [vmem:[%s3400_s18] ss:$0 sm:$0xff] }
  0x24   : > { %2664 = vmatpush3.bf16.msra.mxu1 %v3350_v61 }
  0x25   : > { %2634 = vmatpush3.bf16.xpose.msra.mxu0 %v273_v16  ;;  %2665 = vmatprep.subr.bf16.mxu1 %v3357_v0  ;;  %v3382_v16 = vpack.c.bf16 %v170_v15, %v167_v14 }
  0x26   : > { %2888 = vmatprep.subr.msk.bf16.mxu0 %vm232_vm0, %v3264_v17 }
  0x28   : > { %2666 = vmatpush3.bf16.msra.mxu1 %v3357_v0 }
  0x29   : > { %2667 = vmatprep.subr.bf16.mxu1 %v3363_v4 }
  0x2c   : > { %2668 = vmatpush3.bf16.msra.mxu1 %v3363_v4 }
  0x2d   : > { %2636 = vmatpush3.bf16.xpose.msra.mxu0 %v270_v20  ;;  %2669 = vmatprep.subr.bf16.mxu1 %v3369_v8  ;;  %v3387_v20 = vpack.c.bf16 %v164_v19, %v161_v18 }
  0x2e   : > { %2889 = vmatprep.subr.msk.bf16.mxu0 %vm232_vm0, %v3272_v21 }
  0x30   : > { %2670 = vmatpush3.bf16.msra.mxu1 %v3369_v8 }
  0x31   : > { %2671 = vmatprep.subr.bf16.mxu1 %v3376_v12 }
  0x34   : > { %2672 = vmatpush3.bf16.msra.mxu1 %v3376_v12 }
  0x35   : > { %2638 = vmatpush3.bf16.xpose.msra.mxu0 %v267_v24  ;;  %2673 = vmatprep.subr.bf16.mxu1 %v3382_v16 }
  0x36   : > { %2890 = vmatprep.subr.msk.bf16.mxu0 %vm232_vm0, %v3280_v25 }
  0x38   : > { %2674 = vmatpush3.bf16.msra.mxu1 %v3382_v16 }
  0x39   : > { %2675 = vmatprep.subr.bf16.mxu1 %v3387_v20 }
  0x3c   : > { %2676 = vmatpush3.bf16.msra.mxu1 %v3387_v20 }
  0x3d   : > { %2640 = vmatpush3.bf16.xpose.msra.mxu0 %v264_v28 }
  0x3e   : > { %2891 = vmatprep.subr.msk.bf16.mxu0 %vm232_vm0, %v3288_v29 }
  0x45   : > { %2642 = vmatpush3.bf16.xpose.msra.mxu0 %v261_v32 }
  0x46   : > { %2892 = vmatprep.subr.msk.bf16.mxu0 %vm232_vm0, %v3296_v33 }
  0x4d   : > { %2644 = vmatpush3.bf16.xpose.msra.mxu0 %v258_v34 }
  0x54   : > { %2646 = vmatmul.mubr.msk.bf16.vlgmr.msra.gmra.mxu0 %vm232_vm0, %v3306_v39 }
  0x55   : > { %2649 = vmatprep.mubr.msk.bf16.mxu0 %vm232_vm0, %v3308_v40 }
  0x5c   : > { %2650 = vmatmul.mubr.msk.bf16.gmra.mxu0 %vm232_vm0, %v3318_v45 }
  0x5d   : > { %2653 = vmatprep.mubr.msk.bf16.mxu0 %vm232_vm0, %v3320_v46 }
  0x64   : > { %2654 = vmatmul.mubr.msk.bf16.gmra.mxu0 %vm232_vm0, %v3330_v51 }
  0x65   : > { %2657 = vmatprep.mubr.msk.bf16.mxu0 %vm232_vm0, %v3332_v52 }
  0x6c   : > { %2658 = vmatmul.mubr.msk.bf16.gmra.mxu0 %vm232_vm0, %v3340_v55 }
  0x86   : > { %v3391_v22 = vpop.permute.xlu0 %711 }
  0x87   : > { %2893 = vmatprep.subr.msk.bf16.mxu1 %vm232_vm0, %v3391_v22 }
 0x114   : > { %v2647_v24 = vpop.f32.mrf.mxu0 }
 0x115   : > { %v380_v26 = vmul.f32 0.17677669, %v2647_v24 }
 0x116   : > { %v315_v27 = vpop.f32.mrf.mxu0 }
 0x117   : > { %v378_v28 = vmul.f32 0.17677669, %v315_v27  ;;  %v3406_v30 = vadd.f32 %v3403_v23, %v380_v26 }
 0x118   : > { %v2648_v31 = vpop.f32.mrf.mxu0 }
 0x119   : > { %v381_v32 = vmul.f32 0.17677669, %v2648_v31  ;;  %420 = vmax.xlane.f32.xlu1 %v3406_v30  ;;  %v3410_v34 = vadd.f32 %v3403_v23, %v378_v28 }
 0x11a   : > { %v318_v35 = vpop.f32.mrf.mxu0 }
 0x11b   : > { %v379_v36 = vmul.f32 0.17677669, %v318_v35  ;;  %416 = vmax.xlane.f32.xlu0 %v3410_v34  ;;  %v3414_v37 = vadd.f32 %v3403_v23, %v381_v32 }
 0x11c   : > { %v2651_v38 = vpop.f32.mrf.mxu0 }
 0x11d   : > { %v384_v41 = vmul.f32 0.17677669, %v2651_v38  ;;  %422 = vmax.xlane.f32.xlu1 %v3414_v37  ;;  %v3418_v42 = vadd.f32 %v3403_v23, %v379_v36 }
 0x11e   : > { %v331_v43 = vpop.f32.mrf.mxu0 }
 0x11f   : > { %v382_v44 = vmul.f32 0.17677669, %v331_v43  ;;  %418 = vmax.xlane.f32.xlu0 %v3418_v42  ;;  %v3422_v47 = vadd.f32 %v3403_v23, %v384_v41  ;;  %v3473_v43 = vpop.permute.xlu1 %709 }
 0x120   : > { %v2652_v48 = vpop.f32.mrf.mxu0 }
 0x121   : > { %v385_v49 = vmul.f32 0.17677669, %v2652_v48  ;;  %v3429_v56 = vadd.f32 %v3403_v23, %v382_v44 }
 0x122   : > { %v334_v50 = vpop.f32.mrf.mxu0 }
 0x123   : > { %v383_v53 = vmul.f32 0.17677669, %v334_v50  ;;  %428 = vmax.xlane.f32.xlu0 %v3422_v47  ;;  %v3426_v54 = vadd.f32 %v3403_v23, %v385_v49 }
 0x124   : > { %v2655_v57 = vpop.f32.mrf.mxu0 }
 0x125   : > { %v388_v58 = vmul.f32 0.17677669, %v2655_v57  ;;  %430 = vmax.xlane.f32.xlu1 %v3426_v54  ;;  %v3433_v60 = vadd.f32 %v3403_v23, %v383_v53 }
 0x126   : > { %v347_v62 = vpop.f32.mrf.mxu0 }
 0x127   : > { %v386_v63 = vmul.f32 0.17677669, %v347_v62  ;;  %424 = vmax.xlane.f32.xlu0 %v3429_v56  ;;  %v3437_v1 = vadd.f32 %v3403_v23, %v388_v58 }
 0x128   : > { %v2656_v2 = vpop.f32.mrf.mxu0 }
 0x129   : > { %v389_v6 = vmul.f32 0.17677669, %v2656_v2  ;;  %426 = vmax.xlane.f32.xlu1 %v3433_v60  ;;  %v3445_v14 = vadd.f32 %v3403_v23, %v386_v63 }
 0x12a   : > { %v350_v7 = vpop.f32.mrf.mxu0 }
 0x12b   : > { %436 = vmax.xlane.f32.xlu0 %v3437_v1  ;;  %v387_v9 = vmul.f32 0.17677669, %v350_v7  ;;  %v3442_v10 = vadd.f32 %v3403_v23, %v389_v6 }
 0x12c   : > { %v2659_v15 = vpop.f32.mrf.mxu0 }
 0x12d   : > { %438 = vmax.xlane.f32.xlu1 %v3442_v10  ;;  %v392_v18 = vmul.f32 0.17677669, %v2659_v15  ;;  %v3449_v19 = vadd.f32 %v3403_v23, %v387_v9 }
 0x12e   : > { %v363_v24 = vpop.f32.mrf.mxu0 }
 0x12f   : > { %432 = vmax.xlane.f32.xlu0 %v3445_v14  ;;  %v390_v26 = vmul.f32 0.17677669, %v363_v24  ;;  %v3453_v27 = vadd.f32 %v3403_v23, %v392_v18 }
 0x130   : > { %v2660_v31 = vpop.f32.mrf.mxu0 }
 0x131   : > { %434 = vmax.xlane.f32.xlu1 %v3449_v19  ;;  %v3458_v28 = vadd.f32 %v3403_v23, %v390_v26  ;;  %v393_v32 = vmul.f32 0.17677669, %v2660_v31 }
 0x132   : > { %v366_v35 = vpop.f32.mrf.mxu0 }
 0x133   : > { %444 = vmax.xlane.f32.xlu0 %v3453_v27  ;;  %v391_v36 = vmul.f32 0.17677669, %v366_v35  ;;  %v3466_v38 = vadd.f32 %v3403_v23, %v393_v32 }
 0x135   : > { %v3470_v41 = vadd.f32 %v3403_v23, %v391_v36 }
 0x137   : > { %440 = vmax.xlane.f32.xlu0 %v3458_v28 }
 0x142   : > { %705 = vrot.lane.b32.xlu1 %v3264_v17, %s3194_s15 }
 0x14d   : > { %707 = vrot.lane.b32.xlu0 %v3256_v13, %s3194_s15 }
 0x166   : > { %446 = vmax.xlane.f32.xlu1 %v3466_v38 }
 0x16a   : > { %442 = vmax.xlane.f32.xlu1 %v3470_v41 }
 0x1a2   : > { %v421_v44 = vpop.xlane.xlu1 %420 }
 0x1a3   : > { %v450_v48 = vsub.f32 %v3406_v30, %v421_v44 }
 0x1a4   : > { %v417_v49 = vpop.xlane.xlu0 %416 }
 0x1a5   : > { %v468_v50 = vmul.f32 1.442695, %v450_v48  ;;  %v448_v53 = vsub.f32 %v3410_v34, %v417_v49 }
 0x1a6   : > { %v423_v57 = vpop.xlane.xlu1 %422 }
 0x1a7   : > { %2929 = vpow2.f32 %v468_v50  ;;  %v464_v58 = vmul.f32 1.442695, %v448_v53  ;;  %v451_v62 = vsub.f32 %v3414_v37, %v423_v57 }
 0x1a8   : > { %v419_v63 = vpop.xlane.xlu0 %418 }
 0x1a9   : > { %v470_v2 = vmul.f32 1.442695, %v451_v62  ;;  %v449_v6 = vsub.f32 %v3418_v42, %v419_v63  ;;  %2931 = vpow2.f32 %v464_v58 }
 0x1ab   : > { %2933 = vpow2.f32 %v470_v2  ;;  %v466_v7 = vmul.f32 1.442695, %v449_v6 }
 0x1ac   : > { %v429_v42 = vpop.xlane.xlu0 %428 }
 0x1ad   : > { %2935 = vpow2.f32 %v466_v7  ;;  %v454_v31 = vsub.f32 %v3422_v47, %v429_v42 }
 0x1ae   : > { %v431_v24 = vpop.xlane.xlu1 %430 }
 0x1af   : > { %v476_v44 = vmul.f32 1.442695, %v454_v31  ;;  %v455_v49 = vsub.f32 %v3426_v54, %v431_v24 }
 0x1b0   : > { %v425_v15 = vpop.xlane.xlu0 %424 }
 0x1b1   : > { %v452_v35 = vsub.f32 %v3429_v56, %v425_v15  ;;  %2937 = vpow2.f32 %v476_v44  ;;  %v478_v63 = vmul.f32 1.442695, %v455_v49 }
 0x1b2   : > { %v427_v32 = vpop.xlane.xlu1 %426 }
 0x1b3   : > { %v453_v48 = vsub.f32 %v3433_v60, %v427_v32  ;;  %v472_v50 = vmul.f32 1.442695, %v452_v35 }
 0x1b4   : > { %v3479_v9 = vpop.eup %2929  ;;  %v437_v18 = vpop.xlane.xlu0 %436 }
 0x1b5   : > { %500 = vadd.xlane.f32.xlu0 %v3479_v9  ;;  %v474_v57 = vmul.f32 1.442695, %v453_v48  ;;  %2939 = vpow2.f32 %v472_v50  ;;  %v458_v47 = vsub.f32 %v3437_v1, %v437_v18 }
 0x1b6   : > { %v3482_v30 = vpop.eup %2931  ;;  %v439_v53 = vpop.xlane.xlu1 %438 }
 0x1b7   : > { %2941 = vpow2.f32 %v474_v57  ;;  %v484_v60 = vmul.f32 1.442695, %v458_v47  ;;  %v459_v42 = vsub.f32 %v3442_v10, %v439_v53 }
 0x1b8   : > { %v3484_v34 = vpop.eup %2933  ;;  %v433_v26 = vpop.xlane.xlu0 %432  ;;  %2943 = vpow2.f32 %v478_v63 }
 0x1b9   : > { %496 = vadd.xlane.f32.xlu0 %v3482_v30  ;;  %502 = vadd.xlane.f32.xlu1 %v3484_v34  ;;  %v456_v54 = vsub.f32 %v3445_v14, %v433_v26  ;;  %v486_v1 = vmul.f32 1.442695, %v459_v42 }
 0x1ba   : > { %v3488_v37 = vpop.eup %2935  ;;  %v435_v6 = vpop.xlane.xlu1 %434 }
 0x1bb   : > { %v480_v15 = vmul.f32 1.442695, %v456_v54  ;;  %v457_v14 = vsub.f32 %v3449_v19, %v435_v6 }
 0x1bc   : > { %v445_v36 = vpop.xlane.xlu0 %444 }
 0x1bd   : > { %498 = vadd.xlane.f32.xlu1 %v3488_v37  ;;  %v462_v58 = vsub.f32 %v3453_v27, %v445_v36  ;;  %v482_v36 = vmul.f32 1.442695, %v457_v14 }
 0x1be   : > { %v3504_v27 = vpop.permute.xlu1 %705  ;;  %v3506_v24 = vpop.eup %2937 }
 0x1bf   : > { %v492_v2 = vmul.f32 1.442695, %v462_v58 }
 0x1c0   : > { %v441_v62 = vpop.xlane.xlu0 %440 }
 0x1c1   : > { %v460_v56 = vsub.f32 %v3458_v28, %v441_v62  ;;  %2945 = vpow2.f32 %v492_v2 }
 0x1c2   : > { %2947 = vpow2.f32 %v484_v60  ;;  %v3509_v18 = vpop.eup %2939 }
 0x1c3   : > { %v488_v7 = vmul.f32 1.442695, %v460_v56 }
 0x1c4   : > { %v3513_v31 = vpop.eup %2941  ;;  %v708_v62 = vpop.permute.xlu0 %707 }
 0x1c5   : > { %2949 = vpow2.f32 %v488_v7  ;;  %v3517_v35 = vpop.eup %2943 }
 0x1c6   : > { %2951 = vpow2.f32 %v480_v15 }
 0x1c7   : > { %2953 = vpow2.f32 %v486_v1 }
 0x1ce   : > { %701 = vrot.lane.b32.xlu1 %v3280_v25, %s3194_s15  ;;  %v3520_v48 = vpop.eup %2945 }
 0x1cf   : > { %703 = vrot.lane.b32.xlu0 %v3272_v21, %s3194_s15  ;;  %v3524_v19 = vpop.eup %2947 }
 0x1d2   : > { %v3526_v49 = vpop.eup %2949 }
 0x1d3   : > { %v3530_v50 = vpop.eup %2951 }
 0x1ee   : > { %508 = vadd.xlane.f32.xlu0 %v3506_v24 }
 0x1ef   : > { %v447_v28 = vpop.xlane.xlu1 %446 }
 0x1f0   : > { %v463_v26 = vsub.f32 %v3466_v38, %v447_v28 }
 0x1f2   : > { %v494_v10 = vmul.f32 1.442695, %v463_v26  ;;  %506 = vadd.xlane.f32.xlu0 %v3513_v31  ;;  %504 = vadd.xlane.f32.xlu1 %v3509_v18 }
 0x1f3   : > { %v443_v32 = vpop.xlane.xlu1 %442 }
 0x1f4   : > { %2955 = vpow2.f32 %v494_v10  ;;  %v461_v44 = vsub.f32 %v3470_v41, %v443_v32  ;;  %v3533_v41 = vpop.eup %2953  ;;  %v759_v10 = vsel %vm232_vm0, %v3391_v22, 0 }
 0x1f5   : > { %2957 = vpow2.f32 %v482_v36 }
 0x1f6   : > { %524 = vadd.xlane.f32.xlu0 %v3520_v48  ;;  %510 = vadd.xlane.f32.xlu1 %v3517_v35  ;;  %v490_v38 = vmul.f32 1.442695, %v461_v44 }
 0x1f8   : > { %2959 = vpow2.f32 %v490_v38 }
 0x1fa   : > { %520 = vadd.xlane.f32.xlu0 %v3526_v49  ;;  %516 = vadd.xlane.f32.xlu1 %v3524_v19 }
 0x1fe   : > { %512 = vadd.xlane.f32.xlu1 %v3530_v50 }
 0x201   : > { %v3535_v53 = vpop.eup %2955 }
 0x202   : > { %526 = vadd.xlane.f32.xlu0 %v3535_v53  ;;  %518 = vadd.xlane.f32.xlu1 %v3533_v41  ;;  %v3539_v57 = vpop.eup %2957 }
 0x205   : > { %v3542_v58 = vpop.eup %2959 }
 0x206   : > { %514 = vadd.xlane.f32.xlu1 %v3539_v57 }
 0x20a   : > { %522 = vadd.xlane.f32.xlu1 %v3542_v58 }
 0x218   : > { %699 = vrot.lane.b32.xlu0 %v3288_v29, %s3194_s15 }
 0x21b   : > { %697 = vrot.lane.b32.xlu1 %v3296_v33, %s3194_s15 }
 0x21c   : > { %673 = vrot.lane.b32.xlu0 %v3250_v11, %s3194_s15 }
 0x21f   : > { %675 = vrot.lane.b32.xlu1 %v3306_v39, %s3194_s15 }
 0x220   : > { %677 = vrot.lane.b32.xlu0 %v3308_v40, %s3194_s15 }
 0x223   : > { %679 = vrot.lane.b32.xlu1 %v3318_v45, %s3194_s15 }
 0x224   : > { %681 = vrot.lane.b32.xlu0 %v3320_v46, %s3194_s15 }
 0x227   : > { %683 = vrot.lane.b32.xlu1 %v3330_v51, %s3194_s15 }
 0x228   : > { %685 = vrot.lane.b32.xlu0 %v3332_v52, %s3194_s15 }
 0x22b   : > { %687 = vrot.lane.b32.xlu1 %v3340_v55, %s3194_s15 }
 0x22c   : > { %1064 = vrot.lane.b32.xlu0 %v3347_v59, %s3194_s15 }
 0x22f   : > { %1062 = vrot.lane.b32.xlu1 %v3350_v61, %s3194_s15 }
 0x230   : > { %1060 = vrot.lane.b32.xlu0 %v3357_v0, %s3194_s15 }
 0x233   : > { %1054 = vrot.lane.b32.xlu1 %v3376_v12, %s3194_s15 }
 0x234   : > { %1058 = vrot.lane.b32.xlu0 %v3363_v4, %s3194_s15 }
 0x237   : > { %1050 = vrot.lane.b32.xlu1 %v3387_v20, %s3194_s15 }
 0x238   : > { %1056 = vrot.lane.b32.xlu0 %v3369_v8, %s3194_s15 }
 0x23e   : > { %v501_v63 = vpop.xlane.xlu0 %500 }
 0x242   : > { %v497_v47 = vpop.xlane.xlu0 %496  ;;  %v503_v2 = vpop.xlane.xlu1 %502 }
 0x243   : > { %2961 = vrcp.f32 %v503_v2 }
 0x244   : > { %2963 = vrcp.f32 %v497_v47 }
 0x245   : > { %2965 = vrcp.f32 %v501_v63 }
 0x246   : > { %v499_v56 = vpop.xlane.xlu1 %498  ;;  %v704_v22 = vpop.permute.xlu0 %703 }
 0x247   : > { %2967 = vrcp.f32 %v499_v56 }
 0x250   : > { %v2962_v6 = vpop.eup %2961 }
 0x251   : > { %v2964_v60 = vpop.eup %2963  ;;  %v547_v42 = vmul.f32 %v2962_v6, %v3484_v34  ;;  %v756_v34 = vsel %vm232_vm0, %v3473_v43, 0 }
 0x252   : > { %v2966_v54 = vpop.eup %2965  ;;  %v544_v15 = vmul.f32 %v2964_v60, %v3482_v30  ;;  %v753_v30 = vsel %vm232_vm0, %v708_v62, 0 }
 0x253   : > { %v546_v28 = vmul.f32 %v2966_v54, %v3479_v9  ;;  %v750_v9 = vsel %vm232_vm0, %v3504_v27, 0 }
 0x254   : > { %v2968_v7 = vpop.eup %2967 }
 0x255   : > { %v545_v1 = vmul.f32 %v2968_v7, %v3488_v37  ;;  %v561_v26 = vpack.c.bf16 %v547_v42, %v546_v28  ;;  %v702_v37 = vpop.permute.xlu1 %701 }
 0x257   : > { %v560_v14 = vpack.c.bf16 %v545_v1, %v544_v15 }
 0x259   : > { %2677 = vmatprep.mubr.bf16.mxu1 %v560_v14 }
 0x25a   : > { %2678 = vmatmul.mubr.bf16.vlgmr.msra.gmra.mxu1 %v561_v26 }
 0x25b   : > { %2694 = vmatpush3.bf16.xpose.msra.mxu1 %v759_v10 }
 0x25c   : > { %2894 = vmatprep.subr.msk.bf16.mxu1 %vm232_vm0, %v3473_v43  ;;  %v747_v43 = vsel %vm232_vm0, %v704_v22, 0 }
 0x263   : > { %2696 = vmatpush3.bf16.xpose.msra.mxu1 %v756_v34 }
 0x264   : > { %2895 = vmatprep.subr.msk.bf16.mxu1 %vm232_vm0, %v708_v62 }
 0x26b   : > { %2698 = vmatpush3.bf16.xpose.msra.mxu1 %v753_v30 }
 0x26c   : > { %2896 = vmatprep.subr.msk.bf16.mxu1 %vm232_vm0, %v3504_v27  ;;  %v744_v27 = vsel %vm232_vm0, %v702_v37, 0 }
 0x273   : > { %2700 = vmatpush3.bf16.xpose.msra.mxu1 %v750_v9 }
 0x274   : > { %2897 = vmatprep.subr.msk.bf16.mxu1 %vm232_vm0, %v704_v22 }
 0x277   : > { %v509_v32 = vpop.xlane.xlu0 %508 }
 0x27b   : > { %2702 = vmatpush3.bf16.xpose.msra.mxu1 %v747_v43  ;;  %v507_v36 = vpop.xlane.xlu0 %506  ;;  %v505_v44 = vpop.xlane.xlu1 %504 }
 0x27c   : > { %2969 = vrcp.f32 %v507_v36  ;;  %2898 = vmatprep.subr.msk.bf16.mxu1 %vm232_vm0, %v702_v37 }
 0x27d   : > { %2971 = vrcp.f32 %v505_v44 }
 0x27e   : > { %2973 = vrcp.f32 %v509_v32 }
 0x27f   : > { %v511_v38 = vpop.xlane.xlu1 %510  ;;  %v525_v62 = vpop.xlane.xlu0 %524 }
 0x280   : > { %2975 = vrcp.f32 %v511_v38 }
 0x283   : > { %2704 = vmatpush3.bf16.xpose.msra.mxu1 %v744_v27  ;;  %v517_v63 = vpop.xlane.xlu1 %516  ;;  %v521_v47 = vpop.xlane.xlu0 %520 }
 0x287   : > { %v513_v2 = vpop.xlane.xlu1 %512 }
 0x289   : > { %v2970_v56 = vpop.eup %2969 }
 0x28a   : > { %v2972_v6 = vpop.eup %2971  ;;  %v549_v60 = vmul.f32 %v2970_v56, %v3513_v31 }
 0x28b   : > { %v527_v54 = vpop.xlane.xlu0 %526  ;;  %v519_v7 = vpop.xlane.xlu1 %518  ;;  %v548_v42 = vmul.f32 %v2972_v6, %v3509_v18 }
 0x28c   : > { %v2974_v15 = vpop.eup %2973  ;;  %2977 = vrcp.f32 %v519_v7 }
 0x28d   : > { %v562_v1 = vpack.c.bf16 %v549_v60, %v548_v42  ;;  %v2976_v28 = vpop.eup %2975  ;;  %2979 = vrcp.f32 %v513_v2  ;;  %v550_v26 = vmul.f32 %v2974_v15, %v3506_v24 }
 0x28e   : > { %2981 = vrcp.f32 %v517_v63  ;;  %v551_v10 = vmul.f32 %v2976_v28, %v3517_v35 }
 0x28f   : > { %2681 = vmatprep.mubr.bf16.mxu1 %v562_v1  ;;  %v515_v14 = vpop.xlane.xlu1 %514  ;;  %v700_v34 = vpop.permute.xlu0 %699 }
 0x290   : > { %2983 = vrcp.f32 %v515_v14  ;;  %2899 = vmatprep.subr.msk.bf16.mxu1 %vm232_vm0, %v700_v34  ;;  %v741_v31 = vsel %vm232_vm0, %v700_v34, 0  ;;  %v563_v30 = vpack.c.bf16 %v551_v10, %v550_v26 }
 0x291   : > { %2706 = vmatpush3.bf16.xpose.msra.mxu1 %v741_v31  ;;  %2985 = vrcp.f32 %v521_v47 }
 0x292   : > { %2682 = vmatmul.mubr.bf16.gmra.mxu1 %v563_v30 }
 0x293   : > { %v523_v18 = vpop.xlane.xlu1 %522  ;;  %v674_v7 = vpop.permute.xlu0 %673 }
 0x294   : > { %2987 = vrcp.f32 %v523_v18 }
 0x295   : > { %2989 = vrcp.f32 %v527_v54 }
 0x296   : > { %2991 = vrcp.f32 %v525_v62 }
 0x297   : > { %v698_v9 = vpop.permute.xlu1 %697  ;;  %v678_v42 = vpop.permute.xlu0 %677 }
 0x298   : > { %2900 = vmatprep.subr.msk.bf16.mxu1 %vm232_vm0, %v698_v9  ;;  %v738_v24 = vsel %vm232_vm0, %v698_v9, 0 }
 0x299   : > { %2708 = vmatpush3.bf16.xpose.msra.mxu1 %v738_v24  ;;  %v2978_v35 = vpop.eup %2977 }
 0x29a   : > { %v2980_v22 = vpop.eup %2979  ;;  %v555_v43 = vmul.f32 %v2978_v35, %v3533_v41 }
 0x29b   : > { %v2982_v37 = vpop.eup %2981  ;;  %v552_v36 = vmul.f32 %v2980_v22, %v3530_v50 }
 0x29c   : > { %v554_v27 = vmul.f32 %v2982_v37, %v3524_v19  ;;  %v676_v19 = vpop.permute.xlu1 %675 }
 0x29d   : > { %v2984_v32 = vpop.eup %2983 }
 0x29e   : > { %v553_v44 = vmul.f32 %v2984_v32, %v3539_v57  ;;  %v2986_v38 = vpop.eup %2985  ;;  %v565_v47 = vpack.c.bf16 %v555_v43, %v554_v27 }
 0x29f   : > { %v556_v56 = vmul.f32 %v2986_v38, %v3526_v49 }
 0x2a0   : > { %v564_v62 = vpack.c.bf16 %v553_v44, %v552_v36  ;;  %v680_v49 = vpop.permute.xlu1 %679 }
 0x2a1   : > { %v2988_v63 = vpop.eup %2987 }
 0x2a2   : > { %v2990_v2 = vpop.eup %2989  ;;  %2685 = vmatprep.mubr.bf16.mxu1 %v564_v62  ;;  %v557_v6 = vmul.f32 %v2988_v63, %v3542_v58  ;;  %v682_v58 = vpop.permute.xlu0 %681 }
 0x2a3   : > { %2686 = vmatmul.mubr.bf16.gmra.mxu1 %v565_v47  ;;  %v2992_v60 = vpop.eup %2991  ;;  %v559_v41 = vmul.f32 %v2990_v2, %v3535_v53 }
 0x2a4   : > { %v566_v54 = vpack.c.bf16 %v557_v6, %v556_v56  ;;  %v558_v50 = vmul.f32 %v2992_v60, %v3520_v48  ;;  %v684_v53 = vpop.permute.xlu1 %683 }
 0x2a6   : > { %2689 = vmatprep.mubr.bf16.mxu1 %v566_v54  ;;  %v567_v57 = vpack.c.bf16 %v559_v41, %v558_v50  ;;  %v686_v15 = vpop.permute.xlu0 %685 }
 0x2a8   : > { %v688_v48 = vpop.permute.xlu1 %687 }
 0x2aa   : > { %v1065_v1 = vpop.permute.xlu0 %1064 }
 0x2ab   : > { %2690 = vmatmul.mubr.bf16.gmra.mxu1 %v567_v57  ;;  %2725 = vmatprep.subr.bf16.mxu0 %v1065_v1 }
 0x2ac   : > { %2709 = vmatprep.mubr.msk.bf16.mxu1 %vm232_vm0, %v674_v7  ;;  %2726 = vmatpush3.bf16.msra.mxu0 %v1065_v1  ;;  %v1063_v28 = vpop.permute.xlu1 %1062 }
 0x2ad   : > { %2727 = vmatprep.subr.bf16.mxu0 %v1063_v28 }
 0x2ae   : > { %v1061_v14 = vpop.permute.xlu0 %1060 }
 0x2b0   : > { %2728 = vmatpush3.bf16.msra.mxu0 %v1063_v28  ;;  %v1055_v30 = vpop.permute.xlu1 %1054 }
 0x2b1   : > { %2729 = vmatprep.subr.bf16.mxu0 %v1061_v14 }
 0x2b2   : > { %v1059_v26 = vpop.permute.xlu0 %1058 }
 0x2b3   : > { %2710 = vmatmul.mubr.msk.bf16.vlgmr.msra.gmra.mxu1 %vm232_vm0, %v676_v19 }
 0x2b4   : > { %2713 = vmatprep.mubr.msk.bf16.mxu1 %vm232_vm0, %v678_v42  ;;  %2730 = vmatpush3.bf16.msra.mxu0 %v1061_v14 }
 0x2b5   : > { %2731 = vmatprep.subr.bf16.mxu0 %v1059_v26 }
 0x2b6   : > { %v1057_v10 = vpop.permute.xlu0 %1056 }
 0x2b8   : > { %2732 = vmatpush3.bf16.msra.mxu0 %v1059_v26 }
 0x2b9   : > { %2733 = vmatprep.subr.bf16.mxu0 %v1057_v10 }
 0x2bb   : > { %2714 = vmatmul.mubr.msk.bf16.gmra.mxu1 %vm232_vm0, %v680_v49 }
 0x2bc   : > { %2717 = vmatprep.mubr.msk.bf16.mxu1 %vm232_vm0, %v682_v58  ;;  %2734 = vmatpush3.bf16.msra.mxu0 %v1057_v10 }
 0x2bd   : > { %2735 = vmatprep.subr.bf16.mxu0 %v1055_v30 }
 0x2c0   : > { %2736 = vmatpush3.bf16.msra.mxu0 %v1055_v30 }
 0x2c3   : > { %2718 = vmatmul.mubr.msk.bf16.gmra.mxu1 %vm232_vm0, %v684_v53 }
 0x2c4   : > { %2721 = vmatprep.mubr.msk.bf16.mxu1 %vm232_vm0, %v686_v15 }
 0x2cb   : > { %2722 = vmatmul.mubr.msk.bf16.gmra.mxu1 %vm232_vm0, %v688_v48 }
 0x31a   : > { %v3623_v34 = vpop.f32.mrf.mxu1 }
 0x31b   : > { %4572 = vst [vmem:[#allocation2_spill] sm:$0xff] %v3623_v34 }
 0x31c   : > { %v3625_v31 = vpop.f32.mrf.mxu1 }
 0x31d   : > { %4573 = vst [vmem:[#allocation3_spill] sm:$0xff] %v3625_v31 }
 0x31e   : > { %v3627_v18 = vpop.f32.mrf.mxu1 }
 0x31f   : > { %4574 = vst [vmem:[#allocation4_spill] sm:$0xff] %v3627_v18 }
 0x320   : > { %v3629_v9 = vpop.f32.mrf.mxu1 }
 0x321   : > { %4575 = vst [vmem:[#allocation5_spill] sm:$0xff] %v3629_v9 }
 0x352   : > { %v3631_v24 = vpop.f32.mrf.mxu1 }
 0x353   : > { %4576 = vst [vmem:[#allocation6_spill] sm:$0xff] %v3631_v24 }
 0x354   : > { %v3633_v35 = vpop.f32.mrf.mxu1 }
 0x355   : > { %4577 = vst [vmem:[#allocation7_spill] sm:$0xff] %v3633_v35 }
 0x356   : > { %v3635_v22 = vpop.f32.mrf.mxu1 }
 0x357   : > { %4578 = vst [vmem:[#allocation8_spill] sm:$0xff] %v3635_v22 }
 0x358   : > { %v3637_v37 = vpop.f32.mrf.mxu1 }
 0x359   : > { %4579 = vst [vmem:[#allocation9_spill] sm:$0xff] %v3637_v37 }
 0x363   : > { %v3639_v32 = vpop.f32.mrf.mxu1 }
 0x364   : > { %4580 = vst [vmem:[#allocation10_spill] sm:$0xff] %v3639_v32 }
 0x365   : > { %v3641_v43 = vpop.f32.mrf.mxu1 }
 0x366   : > { %4581 = vst [vmem:[#allocation11_spill] sm:$0xff] %v3641_v43 }
 0x367   : > { %v3643_v36 = vpop.f32.mrf.mxu1 }
 0x368   : > { %4582 = vst [vmem:[#allocation12_spill] sm:$0xff] %v3643_v36 }
 0x369   : > { %v3645_v44 = vpop.f32.mrf.mxu1 }
 0x36a   : > { %4583 = vst [vmem:[#allocation13_spill] sm:$0xff] %v3645_v44 }
 0x36b   : > { %v3647_v38 = vpop.f32.mrf.mxu1 }
 0x36c   : > { %4584 = vst [vmem:[#allocation14_spill] sm:$0xff] %v3647_v38 }
 0x36d   : > { %v3649_v27 = vpop.f32.mrf.mxu1 }
 0x36e   : > { %4585 = vst [vmem:[#allocation15_spill] sm:$0xff] %v3649_v27 }
 0x36f   : > { %v3651_v62 = vpop.f32.mrf.mxu1 }
 0x370   : > { %4586 = vst [vmem:[#allocation16_spill] sm:$0xff] %v3651_v62 }
 0x371   : > { %v3653_v63 = vpop.f32.mrf.mxu1 }
 0x372   : > { %4587 = vst [vmem:[#allocation17_spill] sm:$0xff] %v3653_v63 }
 0x373   : > { %v2711_v47 = vpop.f32.mrf.mxu1 }
 0x374   : > { %v860_v2 = vmul.f32 0.17677669, %v2711_v47 }
 0x375   : > { %v795_v56 = vpop.f32.mrf.mxu1 }
 0x376   : > { %v858_v6 = vmul.f32 0.17677669, %v795_v56  ;;  %v3656_v60 = vadd.f32 %v3403_v23, %v860_v2 }
 0x377   : > { %v2712_v54 = vpop.f32.mrf.mxu1 }
 0x378   : > { %894 = vmax.xlane.f32.xlu0 %v3656_v60  ;;  %v861_v50 = vmul.f32 0.17677669, %v2712_v54  ;;  %v3660_v7 = vadd.f32 %v3403_v23, %v858_v6 }
 0x379   : > { %v798_v41 = vpop.f32.mrf.mxu1 }
 0x37a   : > { %v859_v57 = vmul.f32 0.17677669, %v798_v41  ;;  %v3668_v58 = vadd.f32 %v3403_v23, %v861_v50 }
 0x37b   : > { %v2715_v19 = vpop.f32.mrf.mxu1 }
 0x37c   : > { %890 = vmax.xlane.f32.xlu0 %v3660_v7  ;;  %v3664_v42 = vadd.f32 %v3403_v23, %v859_v57  ;;  %v864_v41 = vmul.f32 0.17677669, %v2715_v19 }
 0x37d   : > { %v811_v49 = vpop.f32.mrf.mxu1 }
 0x37e   : > { %892 = vmax.xlane.f32.xlu1 %v3664_v42  ;;  %v862_v50 = vmul.f32 0.17677669, %v811_v49  ;;  %v3694_v57 = vadd.f32 %v3403_v23, %v864_v41 }
 0x37f   : > { %v2716_v53 = vpop.f32.mrf.mxu1 }
 0x380   : > { %v865_v15 = vmul.f32 0.17677669, %v2716_v53  ;;  %896 = vmax.xlane.f32.xlu0 %v3668_v58 }
 0x381   : > { %v814_v48 = vpop.f32.mrf.mxu1 }
 0x382   : > { %v863_v1 = vmul.f32 0.17677669, %v814_v48  ;;  %v3672_v28 = vadd.f32 %v3403_v23, %v865_v15  ;;  %v3698_v15 = vadd.f32 %v3403_v23, %v862_v50 }
 0x383   : > { %v2719_v14 = vpop.f32.mrf.mxu1 }
 0x384   : > { %904 = vmax.xlane.f32.xlu1 %v3672_v28  ;;  %v3676_v10 = vadd.f32 %v3403_v23, %v863_v1  ;;  %v868_v53 = vmul.f32 0.17677669, %v2719_v14 }
 0x385   : > { %v827_v26 = vpop.f32.mrf.mxu1 }
 0x386   : > { %v866_v1 = vmul.f32 0.17677669, %v827_v26 }
 0x387   : > { %v2720_v30 = vpop.f32.mrf.mxu1 }
 0x388   : > { %v869_v47 = vmul.f32 0.17677669, %v2720_v30  ;;  %900 = vmax.xlane.f32.xlu1 %v3676_v10  ;;  %v3702_v30 = vadd.f32 %v3403_v23, %v868_v53  ;;  %v3706_v49 = vadd.f32 %v3403_v23, %v866_v1 }
 0x389   : > { %v830_v2 = vpop.f32.mrf.mxu1 }
 0x38a   : > { %v867_v56 = vmul.f32 0.17677669, %v830_v2  ;;  %v3680_v6 = vadd.f32 %v3403_v23, %v869_v47 }
 0x38b   : > { %v2723_v48 = vpop.f32.mrf.mxu1 }
 0x38c   : > { %912 = vmax.xlane.f32.xlu1 %v3680_v6  ;;  %v3684_v54 = vadd.f32 %v3403_v23, %v867_v56  ;;  %v872_v19 = vmul.f32 0.17677669, %v2723_v48 }
 0x38d   : > { %v843_v47 = vpop.f32.mrf.mxu1 }
 0x38e   : > { %v870_v56 = vmul.f32 0.17677669, %v843_v47  ;;  %v3710_v41 = vadd.f32 %v3403_v23, %v872_v19 }
 0x38f   : > { %v2724_v2 = vpop.f32.mrf.mxu1 }
 0x390   : > { %908 = vmax.xlane.f32.xlu1 %v3684_v54  ;;  %v873_v14 = vmul.f32 0.17677669, %v2724_v2  ;;  %v3714_v26 = vadd.f32 %v3403_v23, %v870_v56  ;;  %v1051_v2 = vpop.permute.xlu1 %1050 }
 0x391   : > { %v846_v50 = vpop.f32.mrf.mxu1 }
 0x392   : > { %v3717_v53 = vadd.f32 %v3403_v23, %v873_v14  ;;  %v871_v48 = vmul.f32 0.17677669, %v846_v50 }
 0x394   : > { %v3722_v1 = vadd.f32 %v3403_v23, %v871_v48 }
 0x396   : > { %1052 = vrot.lane.b32.xlu0 %v3382_v16, %s3194_s15 }
 0x3a1   : > { %1199 = vrot.lane.b32.xlu1 %v3234_v5, %s3195_s19 }
 0x3a5   : > { %1195 = vrot.lane.b32.xlu1 %v3264_v17, %s3195_s19 }
 0x3b5   : > { %902 = vmax.xlane.f32.xlu0 %v3694_v57 }
 0x3b9   : > { %898 = vmax.xlane.f32.xlu0 %v3698_v15 }
 0x3bd   : > { %910 = vmax.xlane.f32.xlu0 %v3702_v30 }
 0x3c1   : > { %906 = vmax.xlane.f32.xlu0 %v3706_v49 }
 0x3c5   : > { %918 = vmax.xlane.f32.xlu0 %v3710_v41 }
 0x3c9   : > { %914 = vmax.xlane.f32.xlu0 %v3714_v26  ;;  %920 = vmax.xlane.f32.xlu1 %v3717_v53 }
 0x3cd   : > { %916 = vmax.xlane.f32.xlu1 %v3722_v1 }
 0x3df   : > { %1201 = vrot.lane.b32.xlu0 %v3231_v3, %s3195_s19 }
 0x3e3   : > { %1197 = vrot.lane.b32.xlu0 %v3256_v13, %s3195_s19 }
 0x3e7   : > { %1193 = vrot.lane.b32.xlu0 %v3272_v21, %s3195_s19 }
 0x401   : > { %v895_v47 = vpop.xlane.xlu0 %894 }
 0x402   : > { %v924_v19 = vsub.f32 %v3656_v60, %v895_v47 }
 0x404   : > { %v942_v56 = vmul.f32 1.442695, %v924_v19 }
 0x405   : > { %v891_v14 = vpop.xlane.xlu0 %890 }
 0x406   : > { %2993 = vpow2.f32 %v942_v56  ;;  %v922_v23 = vsub.f32 %v3660_v7, %v891_v14 }
 0x407   : > { %v893_v50 = vpop.xlane.xlu1 %892 }
 0x408   : > { %v938_v48 = vmul.f32 1.442695, %v922_v23  ;;  %v923_v38 = vsub.f32 %v3664_v42, %v893_v50 }
 0x409   : > { %v897_v62 = vpop.xlane.xlu0 %896 }
 0x40a   : > { %2995 = vpow2.f32 %v938_v48  ;;  %v925_v44 = vsub.f32 %v3668_v58, %v897_v62  ;;  %v940_v32 = vmul.f32 1.442695, %v923_v38 }
 0x40c   : > { %v944_v43 = vmul.f32 1.442695, %v925_v44 }
 0x40d   : > { %v1053_v36 = vpop.permute.xlu0 %1052 }
 0x40e   : > { %2997 = vpow2.f32 %v944_v43  ;;  %2737 = vmatprep.subr.bf16.mxu0 %v1053_v36  ;;  %v905_v43 = vpop.xlane.xlu1 %904 }
 0x40f   : > { %2738 = vmatpush3.bf16.msra.mxu0 %v1053_v36  ;;  %2999 = vpow2.f32 %v940_v32  ;;  %v929_v19 = vsub.f32 %v3672_v28, %v905_v43 }
 0x410   : > { %2739 = vmatprep.subr.bf16.mxu0 %v1051_v2 }
 0x411   : > { %v952_v48 = vmul.f32 1.442695, %v929_v19 }
 0x412   : > { %v901_v32 = vpop.xlane.xlu1 %900 }
 0x413   : > { %v3735_v60 = vpop.eup %2993  ;;  %2740 = vmatpush3.bf16.msra.mxu0 %v1051_v2  ;;  %v927_v38 = vsub.f32 %v3676_v10, %v901_v32 }
 0x414   : > { %974 = vadd.xlane.f32.xlu1 %v3735_v60 }
 0x415   : > { %v948_v2 = vmul.f32 1.442695, %v927_v38 }
 0x416   : > { %v913_v36 = vpop.xlane.xlu1 %912 }
 0x417   : > { %v3738_v7 = vpop.eup %2995 }
 0x418   : > { %970 = vadd.xlane.f32.xlu1 %v3738_v7 }
 0x41a   : > { %v909_v56 = vpop.xlane.xlu1 %908 }
 0x41b   : > { %v3741_v42 = vpop.eup %2997 }
 0x41c   : > { %976 = vadd.xlane.f32.xlu1 %v3741_v42  ;;  %v3744_v44 = vpop.eup %2999 }
 0x41e   : > { %v3754_v10 = vpop.permute.xlu1 %1199 }
 0x420   : > { %972 = vadd.xlane.f32.xlu1 %v3744_v44 }
 0x431   : > { %1191 = vrot.lane.b32.xlu1 %v3280_v25, %s3195_s19 }
 0x43e   : > { %v903_v62 = vpop.xlane.xlu0 %902 }
 0x43f   : > { %v928_v58 = vsub.f32 %v3694_v57, %v903_v62  ;;  %v933_v57 = vsub.f32 %v3680_v6, %v913_v36 }
 0x441   : > { %v950_v47 = vmul.f32 1.442695, %v928_v58  ;;  %v960_v62 = vmul.f32 1.442695, %v933_v57  ;;  %v3759_v58 = vpop.permute.xlu1 %1195 }
 0x442   : > { %v899_v14 = vpop.xlane.xlu0 %898 }
 0x443   : > { %3001 = vpow2.f32 %v950_v47  ;;  %v926_v23 = vsub.f32 %v3698_v15, %v899_v14  ;;  %v931_v15 = vsub.f32 %v3684_v54, %v909_v56 }
 0x444   : > { %3003 = vpow2.f32 %v948_v2 }
 0x445   : > { %v946_v50 = vmul.f32 1.442695, %v926_v23  ;;  %v956_v6 = vmul.f32 1.442695, %v931_v15 }
 0x446   : > { %v911_v37 = vpop.xlane.xlu0 %910 }
 0x447   : > { %3005 = vpow2.f32 %v946_v50  ;;  %v932_v35 = vsub.f32 %v3702_v30, %v911_v37 }
 0x448   : > { %3007 = vpow2.f32 %v952_v48 }
 0x449   : > { %v958_v32 = vmul.f32 1.442695, %v932_v35 }
 0x44a   : > { %v907_v28 = vpop.xlane.xlu0 %906 }
 0x44b   : > { %3009 = vpow2.f32 %v958_v32  ;;  %v930_v43 = vsub.f32 %v3706_v49, %v907_v28 }
 0x44d   : > { %v954_v38 = vmul.f32 1.442695, %v930_v43 }
 0x44e   : > { %v919_v47 = vpop.xlane.xlu0 %918 }
 0x44f   : > { %3011 = vpow2.f32 %v954_v38  ;;  %v936_v37 = vsub.f32 %v3710_v41, %v919_v47 }
 0x450   : > { %v3762_v30 = vpop.eup %3001  ;;  %3013 = vpow2.f32 %v960_v62 }
 0x451   : > { %v966_v35 = vmul.f32 1.442695, %v936_v37  ;;  %982 = vadd.xlane.f32.xlu0 %v3762_v30  ;;  %v3765_v49 = vpop.eup %3003 }
 0x452   : > { %v915_v36 = vpop.xlane.xlu0 %914  ;;  %v921_v19 = vpop.xlane.xlu1 %920 }
 0x453   : > { %3015 = vpow2.f32 %v966_v35  ;;  %v934_v54 = vsub.f32 %v3714_v26, %v915_v36  ;;  %v937_v2 = vsub.f32 %v3717_v53, %v921_v19 }
 0x454   : > { %v3769_v56 = vpop.eup %3005  ;;  %3017 = vpow2.f32 %v956_v6 }
 0x455   : > { %v962_v14 = vmul.f32 1.442695, %v934_v54  ;;  %978 = vadd.xlane.f32.xlu0 %v3769_v56  ;;  %980 = vadd.xlane.f32.xlu1 %v3765_v49  ;;  %v968_v41 = vmul.f32 1.442695, %v937_v2  ;;  %v3773_v48 = vpop.eup %3007 }
 0x456   : > { %v917_v23 = vpop.xlane.xlu1 %916  ;;  %v1202_v50 = vpop.permute.xlu0 %1201 }
 0x457   : > { %3019 = vpow2.f32 %v962_v14  ;;  %v935_v32 = vsub.f32 %v3722_v1, %v917_v23  ;;  %2901 = vmatprep.subr.msk.bf16.mxu0 %vm232_vm0, %v1202_v50 }
 0x458   : > { %v3777_v26 = vpop.eup %3009  ;;  %3021 = vpow2.f32 %v968_v41 }
 0x459   : > { %v964_v53 = vmul.f32 1.442695, %v935_v32  ;;  %984 = vadd.xlane.f32.xlu0 %v3773_v48  ;;  %990 = vadd.xlane.f32.xlu1 %v3777_v26 }
 0x45b   : > { %3023 = vpow2.f32 %v964_v53 }
 0x45c   : > { %v3781_v57 = vpop.eup %3011 }
 0x45d   : > { %986 = vadd.xlane.f32.xlu1 %v3781_v57  ;;  %v3784_v28 = vpop.eup %3013 }
 0x460   : > { %v3786_v43 = vpop.eup %3015 }
 0x461   : > { %998 = vadd.xlane.f32.xlu0 %v3786_v43  ;;  %992 = vadd.xlane.f32.xlu1 %v3784_v28  ;;  %v3790_v1 = vpop.eup %3017 }
 0x464   : > { %v3792_v38 = vpop.eup %3019 }
 0x465   : > { %994 = vadd.xlane.f32.xlu0 %v3792_v38  ;;  %988 = vadd.xlane.f32.xlu1 %v3790_v1  ;;  %v3796_v62 = vpop.eup %3021 }
 0x468   : > { %v3798_v15 = vpop.eup %3023 }
 0x469   : > { %1000 = vadd.xlane.f32.xlu0 %v3796_v62  ;;  %996 = vadd.xlane.f32.xlu1 %v3798_v15 }
 0x47a   : > { %1187 = vrot.lane.b32.xlu1 %v3296_v33, %s3195_s19 }
 0x47e   : > { %1173 = vrot.lane.b32.xlu1 %v3306_v39, %s3195_s19 }
 0x47f   : > { %1189 = vrot.lane.b32.xlu0 %v3288_v29, %s3195_s19 }
 0x482   : > { %1177 = vrot.lane.b32.xlu1 %v3318_v45, %s3195_s19 }
 0x483   : > { %1171 = vrot.lane.b32.xlu0 %v3250_v11, %s3195_s19 }
 0x486   : > { %1181 = vrot.lane.b32.xlu1 %v3330_v51, %s3195_s19 }
 0x487   : > { %1175 = vrot.lane.b32.xlu0 %v3308_v40, %s3195_s19 }
 0x48a   : > { %1185 = vrot.lane.b32.xlu1 %v3340_v55, %s3195_s19 }
 0x48b   : > { %1179 = vrot.lane.b32.xlu0 %v3320_v46, %s3195_s19 }
 0x48e   : > { %1544 = vrot.lane.b32.xlu1 %v3350_v61, %s3195_s19 }
 0x48f   : > { %1183 = vrot.lane.b32.xlu0 %v3332_v52, %s3195_s19 }
 0x492   : > { %1536 = vrot.lane.b32.xlu1 %v3376_v12, %s3195_s19 }
 0x493   : > { %1546 = vrot.lane.b32.xlu0 %v3347_v59, %s3195_s19 }
 0x496   : > { %1532 = vrot.lane.b32.xlu1 %v3387_v20, %s3195_s19 }
 0x497   : > { %1542 = vrot.lane.b32.xlu0 %v3357_v0, %s3195_s19 }
 0x49b   : > { %1540 = vrot.lane.b32.xlu0 %v3363_v4, %s3195_s19 }
 0x49d   : > { %v975_v47 = vpop.xlane.xlu1 %974 }
 0x49f   : > { %1538 = vrot.lane.b32.xlu0 %v3369_v8, %s3195_s19 }
 0x4a1   : > { %v971_v37 = vpop.xlane.xlu1 %970 }
 0x4a5   : > { %v977_v35 = vpop.xlane.xlu1 %976 }
 0x4a6   : > { %3025 = vrcp.f32 %v977_v35 }
 0x4a7   : > { %3027 = vrcp.f32 %v971_v37  ;;  %v1246_v37 = vsel %vm232_vm0, %v3754_v10, 0 }
 0x4a8   : > { %3029 = vrcp.f32 %v975_v47  ;;  %v1249_v47 = vsel %vm232_vm0, %v1202_v50, 0 }
 0x4a9   : > { %v973_v6 = vpop.xlane.xlu1 %972 }
 0x4aa   : > { %3031 = vrcp.f32 %v973_v6 }
 0x4b3   : > { %v3026_v36 = vpop.eup %3025 }
 0x4b4   : > { %v3028_v19 = vpop.eup %3027  ;;  %v1021_v14 = vmul.f32 %v3026_v36, %v3741_v42  ;;  %v1198_v42 = vpop.permute.xlu0 %1197 }
 0x4b5   : > { %v3030_v54 = vpop.eup %3029  ;;  %v1018_v41 = vmul.f32 %v3028_v19, %v3738_v7  ;;  %v1243_v7 = vsel %vm232_vm0, %v1198_v42, 0 }
 0x4b6   : > { %v1020_v32 = vmul.f32 %v3030_v54, %v3735_v60 }
 0x4b7   : > { %v3032_v2 = vpop.eup %3031 }
 0x4b8   : > { %v1019_v23 = vmul.f32 %v3032_v2, %v3744_v44  ;;  %v1035_v22 = vpack.c.bf16 %v1021_v14, %v1020_v32  ;;  %v1194_v60 = vpop.permute.xlu0 %1193  ;;  %v1192_v44 = vpop.permute.xlu1 %1191 }
 0x4ba   : > { %v1034_v53 = vpack.c.bf16 %v1019_v23, %v1018_v41 }
 0x4bc   : > { %2741 = vmatprep.mubr.bf16.mxu0 %v1034_v53 }
 0x4bd   : > { %2742 = vmatmul.mubr.bf16.vlgmr.msra.gmra.mxu0 %v1035_v22  ;;  %v1240_v22 = vsel %vm232_vm0, %v3759_v58, 0 }
 0x4be   : > { %2758 = vmatpush3.bf16.xpose.msra.mxu0 %v1249_v47 }
 0x4bf   : > { %2902 = vmatprep.subr.msk.bf16.mxu0 %vm232_vm0, %v3754_v10  ;;  %v1237_v10 = vsel %vm232_vm0, %v1194_v60, 0 }
 0x4c6   : > { %2760 = vmatpush3.bf16.xpose.msra.mxu0 %v1246_v37 }
 0x4c7   : > { %2903 = vmatprep.subr.msk.bf16.mxu0 %vm232_vm0, %v1198_v42 }
 0x4ce   : > { %2762 = vmatpush3.bf16.xpose.msra.mxu0 %v1243_v7 }
 0x4cf   : > { %2904 = vmatprep.subr.msk.bf16.mxu0 %vm232_vm0, %v3759_v58  ;;  %v1234_v58 = vsel %vm232_vm0, %v1192_v44, 0 }
 0x4d6   : > { %2764 = vmatpush3.bf16.xpose.msra.mxu0 %v1240_v22 }
 0x4d7   : > { %2905 = vmatprep.subr.msk.bf16.mxu0 %vm232_vm0, %v1194_v60 }
 0x4da   : > { %v983_v50 = vpop.xlane.xlu0 %982 }
 0x4de   : > { %2766 = vmatpush3.bf16.xpose.msra.mxu0 %v1237_v10  ;;  %v979_v35 = vpop.xlane.xlu0 %978  ;;  %v981_v6 = vpop.xlane.xlu1 %980 }
 0x4df   : > { %3033 = vrcp.f32 %v979_v35  ;;  %2906 = vmatprep.subr.msk.bf16.mxu0 %vm232_vm0, %v1192_v44 }
 0x4e0   : > { %3035 = vrcp.f32 %v981_v6 }
 0x4e1   : > { %3037 = vrcp.f32 %v983_v50 }
 0x4e2   : > { %v985_v36 = vpop.xlane.xlu0 %984  ;;  %v991_v19 = vpop.xlane.xlu1 %990 }
 0x4e3   : > { %3039 = vrcp.f32 %v985_v36 }
 0x4e6   : > { %2768 = vmatpush3.bf16.xpose.msra.mxu0 %v1234_v58  ;;  %v987_v54 = vpop.xlane.xlu1 %986 }
 0x4ea   : > { %v999_v2 = vpop.xlane.xlu0 %998  ;;  %v993_v14 = vpop.xlane.xlu1 %992 }
 0x4eb   : > { %3041 = vrcp.f32 %v993_v14 }
 0x4ec   : > { %v3034_v41 = vpop.eup %3033  ;;  %3043 = vrcp.f32 %v987_v54 }
 0x4ed   : > { %v3036_v23 = vpop.eup %3035  ;;  %v1022_v32 = vmul.f32 %v3034_v41, %v3769_v56  ;;  %3045 = vrcp.f32 %v991_v19 }
 0x4ee   : > { %v3038_v53 = vpop.eup %3037  ;;  %v995_v47 = vpop.xlane.xlu0 %994  ;;  %v1023_v42 = vmul.f32 %v3036_v23, %v3765_v49 }
 0x4ef   : > { %v989_v37 = vpop.xlane.xlu1 %988  ;;  %v1024_v60 = vmul.f32 %v3038_v53, %v3762_v30 }
 0x4f0   : > { %v3040_v7 = vpop.eup %3039  ;;  %3047 = vrcp.f32 %v989_v37  ;;  %v1036_v22 = vpack.c.bf16 %v1023_v42, %v1022_v32 }
 0x4f1   : > { %v1025_v44 = vmul.f32 %v3040_v7, %v3773_v48  ;;  %3049 = vrcp.f32 %v995_v47 }
 0x4f2   : > { %2745 = vmatprep.mubr.bf16.mxu0 %v1036_v22  ;;  %v1001_v50 = vpop.xlane.xlu0 %1000 }
 0x4f3   : > { %v997_v10 = vpop.xlane.xlu1 %996  ;;  %v1037_v35 = vpack.c.bf16 %v1025_v44, %v1024_v60 }
 0x4f4   : > { %3051 = vrcp.f32 %v997_v10 }
 0x4f5   : > { %3053 = vrcp.f32 %v1001_v50  ;;  %2746 = vmatmul.mubr.bf16.gmra.mxu0 %v1037_v35 }
 0x4f6   : > { %v1190_v56 = vpop.permute.xlu0 %1189  ;;  %3055 = vrcp.f32 %v999_v2 }
 0x4f7   : > { %v1188_v6 = vpop.permute.xlu1 %1187  ;;  %2907 = vmatprep.subr.msk.bf16.mxu0 %vm232_vm0, %v1190_v56  ;;  %v1231_v49 = vsel %vm232_vm0, %v1190_v56, 0 }
 0x4f8   : > { %2770 = vmatpush3.bf16.xpose.msra.mxu0 %v1231_v49  ;;  %v3042_v30 = vpop.eup %3041  ;;  %v1228_v54 = vsel %vm232_vm0, %v1188_v6, 0 }
 0x4f9   : > { %2908 = vmatprep.subr.msk.bf16.mxu0 %vm232_vm0, %v1188_v6  ;;  %v3044_v48 = vpop.eup %3043  ;;  %v1029_v58 = vmul.f32 %v3042_v30, %v3784_v28 }
 0x4fa   : > { %v3046_v36 = vpop.eup %3045  ;;  %v1026_v14 = vmul.f32 %v3044_v48, %v3781_v57 }
 0x4fb   : > { %v1028_v23 = vmul.f32 %v3046_v36, %v3777_v26  ;;  %v1172_v26 = vpop.permute.xlu0 %1171  ;;  %v1174_v44 = vpop.permute.xlu1 %1173 }
 0x4fd   : > { %v3048_v19 = vpop.eup %3047  ;;  %v1039_v47 = vpack.c.bf16 %v1029_v58, %v1028_v23 }
 0x4fe   : > { %v1027_v41 = vmul.f32 %v3048_v19, %v3790_v1  ;;  %v3050_v2 = vpop.eup %3049 }
 0x4ff   : > { %v1030_v42 = vmul.f32 %v3050_v2, %v3792_v38  ;;  %v1176_v50 = vpop.permute.xlu0 %1175  ;;  %v1178_v38 = vpop.permute.xlu1 %1177 }
 0x500   : > { %v1038_v32 = vpack.c.bf16 %v1027_v41, %v1026_v14  ;;  %2772 = vmatpush3.bf16.xpose.msra.mxu0 %v1228_v54 }
 0x501   : > { %v3052_v53 = vpop.eup %3051 }
 0x502   : > { %v3054_v37 = vpop.eup %3053  ;;  %2749 = vmatprep.mubr.bf16.mxu0 %v1038_v32  ;;  %v1031_v7 = vmul.f32 %v3052_v53, %v3798_v15 }
 0x503   : > { %2750 = vmatmul.mubr.bf16.gmra.mxu0 %v1039_v47  ;;  %v3056_v28 = vpop.eup %3055  ;;  %v1033_v57 = vmul.f32 %v3054_v37, %v3796_v62  ;;  %v1180_v15 = vpop.permute.xlu0 %1179 }
 0x504   : > { %v1040_v22 = vpack.c.bf16 %v1031_v7, %v1030_v42  ;;  %v1032_v1 = vmul.f32 %v3056_v28, %v3786_v43  ;;  %v1182_v62 = vpop.permute.xlu1 %1181 }
 0x506   : > { %2753 = vmatprep.mubr.bf16.mxu0 %v1040_v22  ;;  %v1041_v60 = vpack.c.bf16 %v1033_v57, %v1032_v1 }
 0x507   : > { %v1184_v10 = vpop.permute.xlu0 %1183 }
 0x508   : > { %v1186_v43 = vpop.permute.xlu1 %1185 }
 0x50b   : > { %2754 = vmatmul.mubr.bf16.gmra.mxu0 %v1041_v60  ;;  %v1547_v35 = vpop.permute.xlu0 %1546 }
 0x50c   : > { %2773 = vmatprep.mubr.msk.bf16.mxu0 %vm232_vm0, %v1172_v26  ;;  %2789 = vmatprep.subr.bf16.mxu1 %v1547_v35  ;;  %v1545_v56 = vpop.permute.xlu1 %1544  ;;  %v3912_v26 = vld [vmem:[%s3400_s18] ss:$0 sm:$0xff] }
 0x50d   : > { %2790 = vmatpush3.bf16.msra.mxu1 %v1547_v35 }
 0x50e   : > { %2791 = vmatprep.subr.bf16.mxu1 %v1545_v56 }
 0x50f   : > { %v1543_v6 = vpop.permute.xlu0 %1542 }
 0x510   : > { %v1537_v19 = vpop.permute.xlu1 %1536 }
 0x511   : > { %2792 = vmatpush3.bf16.msra.mxu1 %v1545_v56 }
 0x512   : > { %2793 = vmatprep.subr.bf16.mxu1 %v1543_v6 }
 0x513   : > { %2774 = vmatmul.mubr.msk.bf16.vlgmr.msra.gmra.mxu0 %vm232_vm0, %v1174_v44  ;;  %v1541_v49 = vpop.permute.xlu0 %1540 }
 0x514   : > { %2777 = vmatprep.mubr.msk.bf16.mxu0 %vm232_vm0, %v1176_v50 }
 0x515   : > { %2794 = vmatpush3.bf16.msra.mxu1 %v1543_v6 }
 0x516   : > { %2795 = vmatprep.subr.bf16.mxu1 %v1541_v49 }
 0x517   : > { %v1539_v30 = vpop.permute.xlu0 %1538 }
 0x519   : > { %2796 = vmatpush3.bf16.msra.mxu1 %v1541_v49 }
 0x51a   : > { %2797 = vmatprep.subr.bf16.mxu1 %v1539_v30 }
 0x51b   : > { %2778 = vmatmul.mubr.msk.bf16.gmra.mxu0 %vm232_vm0, %v1178_v38 }
 0x51c   : > { %2781 = vmatprep.mubr.msk.bf16.mxu0 %vm232_vm0, %v1180_v15 }
 0x51d   : > { %2798 = vmatpush3.bf16.msra.mxu1 %v1539_v30 }
 0x51e   : > { %2799 = vmatprep.subr.bf16.mxu1 %v1537_v19 }
 0x521   : > { %2800 = vmatpush3.bf16.msra.mxu1 %v1537_v19 }
 0x523   : > { %2782 = vmatmul.mubr.msk.bf16.gmra.mxu0 %vm232_vm0, %v1182_v62 }
 0x524   : > { %2785 = vmatprep.mubr.msk.bf16.mxu0 %vm232_vm0, %v1184_v10 }
 0x52b   : > { %2786 = vmatmul.mubr.msk.bf16.gmra.mxu0 %vm232_vm0, %v1186_v43 }
 0x57d   : > { %v3879_v48 = vpop.f32.mrf.mxu0 }
 0x57f   : > { %v3881_v36 = vpop.f32.mrf.mxu0 }
 0x581   : > { %v3883_v58 = vpop.f32.mrf.mxu0 }
 0x583   : > { %v3885_v54 = vpop.f32.mrf.mxu0 }
 0x5b5   : > { %v3887_v14 = vpop.f32.mrf.mxu0 }
 0x5b7   : > { %v3889_v41 = vpop.f32.mrf.mxu0 }
 0x5b9   : > { %v3891_v2 = vpop.f32.mrf.mxu0 }
 0x5bb   : > { %v3893_v23 = vpop.f32.mrf.mxu0 }
 0x5c3   : > { %v3895_v32 = vpop.f32.mrf.mxu0 }
 0x5c4   : > { %4588 = vst [vmem:[#allocation18_spill] sm:$0xff] %v3895_v32 }
 0x5c5   : > { %v3897_v53 = vpop.f32.mrf.mxu0 }
 0x5c7   : > { %v3899_v47 = vpop.f32.mrf.mxu0 }
 0x5c9   : > { %v3901_v37 = vpop.f32.mrf.mxu0 }
 0x5cb   : > { %v3903_v42 = vpop.f32.mrf.mxu0 }
 0x5cc   : > { %4589 = vst [vmem:[#allocation19_spill] sm:$0xff] %v3903_v42 }
 0x5cd   : > { %v3905_v7 = vpop.f32.mrf.mxu0 }
 0x5ce   : > { %4590 = vst [vmem:[#allocation20_spill] sm:$0xff] %v3905_v7 }
 0x5cf   : > { %v3907_v28 = vpop.f32.mrf.mxu0 }
 0x5d1   : > { %v3909_v22 = vpop.f32.mrf.mxu0 }
 0x5d3   : > { %v2775_v57 = vpop.f32.mrf.mxu0 }
 0x5d4   : > { %v1350_v1 = vmul.f32 0.17677669, %v2775_v57 }
 0x5d5   : > { %v1285_v60 = vpop.f32.mrf.mxu0 }
 0x5d6   : > { %v3915_v44 = vadd.f32 %v3912_v26, %v1350_v1  ;;  %v1348_v50 = vmul.f32 0.17677669, %v1285_v60 }
 0x5d7   : > { %v2776_v38 = vpop.f32.mrf.mxu0 }
 0x5d8   : > { %1384 = vmax.xlane.f32.xlu0 %v3915_v44  ;;  %v3919_v62 = vadd.f32 %v3912_v26, %v1348_v50  ;;  %v1351_v10 = vmul.f32 0.17677669, %v2776_v38 }
 0x5d9   : > { %v1288_v15 = vpop.f32.mrf.mxu0 }
 0x5da   : > { %v1349_v43 = vmul.f32 0.17677669, %v1288_v15  ;;  %v3926_v49 = vadd.f32 %v3912_v26, %v1351_v10 }
 0x5db   : > { %v2779_v35 = vpop.f32.mrf.mxu0 }
 0x5dc   : > { %v3922_v56 = vadd.f32 %v3912_v26, %v1349_v43  ;;  %1380 = vmax.xlane.f32.xlu0 %v3919_v62 }
 0x5dd   : > { %v1301_v6 = vpop.f32.mrf.mxu0 }
 0x5de   : > { %1382 = vmax.xlane.f32.xlu1 %v3922_v56 }
 0x5df   : > { %v2780_v30 = vpop.f32.mrf.mxu0 }
 0x5e0   : > { %v1355_v19 = vmul.f32 0.17677669, %v2780_v30  ;;  %1386 = vmax.xlane.f32.xlu0 %v3926_v49 }
 0x5e1   : > { %v1304_v57 = vpop.f32.mrf.mxu0 }
 0x5e2   : > { %v3931_v1 = vadd.f32 %v3912_v26, %v1355_v19  ;;  %v1353_v60 = vmul.f32 0.17677669, %v1304_v57  ;;  %v1354_v57 = vmul.f32 0.17677669, %v2779_v35 }
 0x5e3   : > { %v2783_v50 = vpop.f32.mrf.mxu0 }
 0x5e4   : > { %1394 = vmax.xlane.f32.xlu1 %v3931_v1  ;;  %v3935_v15 = vadd.f32 %v3912_v26, %v1353_v60  ;;  %v1352_v60 = vmul.f32 0.17677669, %v1301_v6 }
 0x5e5   : > { %v1317_v38 = vpop.f32.mrf.mxu0 }
 0x5e7   : > { %v2784_v10 = vpop.f32.mrf.mxu0 }
 0x5e8   : > { %v1359_v43 = vmul.f32 0.17677669, %v2784_v10  ;;  %1390 = vmax.xlane.f32.xlu1 %v3935_v15  ;;  %v1358_v10 = vmul.f32 0.17677669, %v2783_v50 }
 0x5e9   : > { %v1320_v24 = vpop.f32.mrf.mxu0 }
 0x5ea   : > { %v3939_v30 = vadd.f32 %v3912_v26, %v1359_v43  ;;  %v1357_v9 = vmul.f32 0.17677669, %v1320_v24  ;;  %v3953_v24 = vadd.f32 %v3912_v26, %v1354_v57  ;;  %v3961_v31 = vadd.f32 %v3912_v26, %v1358_v10 }
 0x5eb   : > { %v2787_v43 = vpop.f32.mrf.mxu0 }
 0x5ec   : > { %1402 = vmax.xlane.f32.xlu1 %v3939_v30  ;;  %v3943_v19 = vadd.f32 %v3912_v26, %v1357_v9  ;;  %v3957_v9 = vadd.f32 %v3912_v26, %v1352_v60 }
 0x5ed   : > { %v1333_v18 = vpop.f32.mrf.mxu0 }
 0x5ee   : > { %v1360_v60 = vmul.f32 0.17677669, %v1333_v18 }
 0x5ef   : > { %v2788_v6 = vpop.f32.mrf.mxu0 }
 0x5f0   : > { %1398 = vmax.xlane.f32.xlu1 %v3943_v19  ;;  %v1363_v50 = vmul.f32 0.17677669, %v2788_v6  ;;  %v3972_v10 = vadd.f32 %v3912_v26, %v1360_v60 }
 0x5f1   : > { %v1336_v34 = vpop.f32.mrf.mxu0 }
 0x5f6   : > { %1534 = vrot.lane.b32.xlu0 %v3382_v16, %s3195_s19 }
 0x601   : > { %1681 = vrot.lane.b32.xlu1 %v3234_v5, %s3196_s20  ;;  %v1356_v5 = vmul.f32 0.17677669, %v1317_v38  ;;  %v3975_v38 = vadd.f32 %v3912_v26, %v1363_v50 }
 0x603   : > { %v3965_v35 = vadd.f32 %v3912_v26, %v1356_v5 }
 0x605   : > { %1677 = vrot.lane.b32.xlu1 %v3264_v17, %s3196_s20  ;;  %v1362_v17 = vmul.f32 0.17677669, %v2787_v43  ;;  %v1361_v43 = vmul.f32 0.17677669, %v1336_v34 }
 0x607   : > { %v3968_v57 = vadd.f32 %v3912_v26, %v1362_v17  ;;  %v3981_v5 = vadd.f32 %v3912_v26, %v1361_v43  ;;  %v1533_v17 = vpop.permute.xlu1 %1532 }
 0x615   : > { %1392 = vmax.xlane.f32.xlu0 %v3953_v24 }
 0x619   : > { %1388 = vmax.xlane.f32.xlu0 %v3957_v9 }
 0x61d   : > { %1400 = vmax.xlane.f32.xlu0 %v3961_v31 }
 0x621   : > { %1396 = vmax.xlane.f32.xlu0 %v3965_v35 }
 0x625   : > { %1408 = vmax.xlane.f32.xlu0 %v3968_v57 }
 0x629   : > { %1404 = vmax.xlane.f32.xlu0 %v3972_v10  ;;  %1410 = vmax.xlane.f32.xlu1 %v3975_v38 }
 0x62d   : > { %1406 = vmax.xlane.f32.xlu1 %v3981_v5 }
 0x63f   : > { %1683 = vrot.lane.b32.xlu0 %v3231_v3, %s3196_s20 }
 0x643   : > { %1679 = vrot.lane.b32.xlu0 %v3256_v13, %s3196_s20 }
 0x647   : > { %1675 = vrot.lane.b32.xlu0 %v3272_v21, %s3196_s20 }
 0x661   : > { %v1385_v18 = vpop.xlane.xlu0 %1384 }
 0x662   : > { %v1414_v34 = vsub.f32 %v3915_v44, %v1385_v18 }
 0x664   : > { %v1432_v6 = vmul.f32 1.442695, %v1414_v34 }
 0x665   : > { %v1381_v60 = vpop.xlane.xlu0 %1380 }
 0x666   : > { %3057 = vpow2.f32 %v1432_v6  ;;  %v1412_v50 = vsub.f32 %v3919_v62, %v1381_v60 }
 0x667   : > { %v1383_v43 = vpop.xlane.xlu1 %1382 }
 0x668   : > { %v1428_v27 = vmul.f32 1.442695, %v1412_v50  ;;  %v1413_v3 = vsub.f32 %v3922_v56, %v1383_v43 }
 0x669   : > { %v1387_v63 = vpop.xlane.xlu0 %1386 }
 0x66a   : > { %3059 = vpow2.f32 %v1428_v27  ;;  %v1415_v13 = vsub.f32 %v3926_v49, %v1387_v63  ;;  %v1430_v21 = vmul.f32 1.442695, %v1413_v3 }
 0x66c   : > { %v1434_v42 = vmul.f32 1.442695, %v1415_v13 }
 0x66d   : > { %v1535_v7 = vpop.permute.xlu0 %1534 }
 0x66e   : > { %3061 = vpow2.f32 %v1434_v42  ;;  %2801 = vmatprep.subr.bf16.mxu1 %v1535_v7  ;;  %v1395_v42 = vpop.xlane.xlu1 %1394 }
 0x66f   : > { %2802 = vmatpush3.bf16.msra.mxu1 %v1535_v7  ;;  %3063 = vpow2.f32 %v1430_v21  ;;  %v1419_v6 = vsub.f32 %v3931_v1, %v1395_v42 }
 0x670   : > { %2803 = vmatprep.subr.bf16.mxu1 %v1533_v17 }
 0x671   : > { %v1442_v21 = vmul.f32 1.442695, %v1419_v6 }
 0x672   : > { %v1391_v7 = vpop.xlane.xlu1 %1390 }
 0x673   : > { %v3994_v44 = vpop.eup %3057  ;;  %2804 = vmatpush3.bf16.msra.mxu1 %v1533_v17  ;;  %v1417_v49 = vsub.f32 %v3935_v15, %v1391_v7 }
 0x674   : > { %1464 = vadd.xlane.f32.xlu1 %v3994_v44 }
 0x675   : > { %v1438_v60 = vmul.f32 1.442695, %v1417_v49 }
 0x676   : > { %v1403_v56 = vpop.xlane.xlu1 %1402 }
 0x677   : > { %v3997_v62 = vpop.eup %3059 }
 0x678   : > { %1460 = vadd.xlane.f32.xlu1 %v3997_v62 }
 0x67a   : > { %v1399_v50 = vpop.xlane.xlu1 %1398 }
 0x67b   : > { %v4000_v27 = vpop.eup %3061 }
 0x67c   : > { %1466 = vadd.xlane.f32.xlu1 %v4000_v27  ;;  %v4003_v63 = vpop.eup %3063 }
 0x67e   : > { %v4013_v15 = vpop.permute.xlu1 %1681 }
 0x680   : > { %1462 = vadd.xlane.f32.xlu1 %v4003_v63 }
 0x691   : > { %1673 = vrot.lane.b32.xlu1 %v3280_v25, %s3196_s20 }
 0x69e   : > { %v1393_v18 = vpop.xlane.xlu0 %1392 }
 0x69f   : > { %v1418_v34 = vsub.f32 %v3953_v24, %v1393_v18  ;;  %v1423_v24 = vsub.f32 %v3939_v30, %v1403_v56 }
 0x6a1   : > { %v1440_v17 = vmul.f32 1.442695, %v1418_v34  ;;  %v1450_v18 = vmul.f32 1.442695, %v1423_v24  ;;  %v4018_v34 = vpop.permute.xlu1 %1677 }
 0x6a2   : > { %v1389_v43 = vpop.xlane.xlu0 %1388 }
 0x6a3   : > { %3065 = vpow2.f32 %v1440_v17  ;;  %v1416_v3 = vsub.f32 %v3957_v9, %v1389_v43  ;;  %v1421_v9 = vsub.f32 %v3943_v19, %v1399_v50 }
 0x6a4   : > { %3067 = vpow2.f32 %v1438_v60 }
 0x6a5   : > { %v1436_v13 = vmul.f32 1.442695, %v1416_v3  ;;  %v1446_v30 = vmul.f32 1.442695, %v1421_v9 }
 0x6a6   : > { %v1401_v25 = vpop.xlane.xlu0 %1400 }
 0x6a7   : > { %3069 = vpow2.f32 %v1436_v13  ;;  %v1422_v32 = vsub.f32 %v3961_v31, %v1401_v25 }
 0x6a8   : > { %3071 = vpow2.f32 %v1442_v21 }
 0x6a9   : > { %v1448_v7 = vmul.f32 1.442695, %v1422_v32 }
 0x6aa   : > { %v1397_v1 = vpop.xlane.xlu0 %1396 }
 0x6ab   : > { %3073 = vpow2.f32 %v1448_v7  ;;  %v1420_v42 = vsub.f32 %v3965_v35, %v1397_v1 }
 0x6ad   : > { %v1444_v49 = vmul.f32 1.442695, %v1420_v42 }
 0x6ae   : > { %v1409_v17 = vpop.xlane.xlu0 %1408 }
 0x6af   : > { %3075 = vpow2.f32 %v1444_v49  ;;  %v1426_v31 = vsub.f32 %v3968_v57, %v1409_v17 }
 0x6b0   : > { %v4021_v6 = vpop.eup %3065  ;;  %3077 = vpow2.f32 %v1450_v18 }
 0x6b1   : > { %v1456_v32 = vmul.f32 1.442695, %v1426_v31  ;;  %1472 = vadd.xlane.f32.xlu0 %v4021_v6  ;;  %v4024_v35 = vpop.eup %3067 }
 0x6b2   : > { %v1405_v56 = vpop.xlane.xlu0 %1404  ;;  %v1411_v60 = vpop.xlane.xlu1 %1410 }
 0x6b3   : > { %3079 = vpow2.f32 %v1456_v32  ;;  %v1424_v19 = vsub.f32 %v3972_v10, %v1405_v56  ;;  %v1427_v50 = vsub.f32 %v3975_v38, %v1411_v60  ;;  %v1728_v32 = vsel %vm232_vm0, %v4013_v15, 0 }
 0x6b4   : > { %v4028_v43 = vpop.eup %3069  ;;  %3081 = vpow2.f32 %v1446_v30 }
 0x6b5   : > { %v1452_v3 = vmul.f32 1.442695, %v1424_v19  ;;  %1468 = vadd.xlane.f32.xlu0 %v4028_v43  ;;  %1470 = vadd.xlane.f32.xlu1 %v4024_v35  ;;  %v1458_v57 = vmul.f32 1.442695, %v1427_v50  ;;  %v4032_v25 = vpop.eup %3071 }
 0x6b6   : > { %v1407_v13 = vpop.xlane.xlu1 %1406  ;;  %v1684_v21 = vpop.permute.xlu0 %1683 }
 0x6b7   : > { %3083 = vpow2.f32 %v1452_v3  ;;  %v1425_v7 = vsub.f32 %v3981_v5, %v1407_v13  ;;  %2909 = vmatprep.subr.msk.bf16.mxu1 %vm232_vm0, %v1684_v21  ;;  %v1731_v31 = vsel %vm232_vm0, %v1684_v21, 0 }
 0x6b8   : > { %v4036_v10 = vpop.eup %3073  ;;  %3085 = vpow2.f32 %v1458_v57 }
 0x6b9   : > { %v1454_v38 = vmul.f32 1.442695, %v1425_v7  ;;  %1474 = vadd.xlane.f32.xlu0 %v4032_v25  ;;  %1480 = vadd.xlane.f32.xlu1 %v4036_v10 }
 0x6bb   : > { %3087 = vpow2.f32 %v1454_v38 }
 0x6bc   : > { %v4040_v24 = vpop.eup %3075 }
 0x6bd   : > { %1476 = vadd.xlane.f32.xlu1 %v4040_v24  ;;  %v4043_v1 = vpop.eup %3077 }
 0x6c0   : > { %v4045_v42 = vpop.eup %3079 }
 0x6c1   : > { %1488 = vadd.xlane.f32.xlu0 %v4045_v42  ;;  %1482 = vadd.xlane.f32.xlu1 %v4043_v1  ;;  %v4049_v5 = vpop.eup %3081 }
 0x6c4   : > { %v4051_v49 = vpop.eup %3083 }
 0x6c5   : > { %1484 = vadd.xlane.f32.xlu0 %v4051_v49  ;;  %1478 = vadd.xlane.f32.xlu1 %v4049_v5  ;;  %v4055_v18 = vpop.eup %3085 }
 0x6c8   : > { %v4057_v9 = vpop.eup %3087 }
 0x6c9   : > { %1490 = vadd.xlane.f32.xlu0 %v4055_v18  ;;  %1486 = vadd.xlane.f32.xlu1 %v4057_v9 }
 0x6da   : > { %1669 = vrot.lane.b32.xlu1 %v3296_v33, %s3196_s20 }
 0x6de   : > { %1655 = vrot.lane.b32.xlu1 %v3306_v39, %s3196_s20 }
 0x6df   : > { %1671 = vrot.lane.b32.xlu0 %v3288_v29, %s3196_s20 }
 0x6e2   : > { %1659 = vrot.lane.b32.xlu1 %v3318_v45, %s3196_s20 }
 0x6e3   : > { %1653 = vrot.lane.b32.xlu0 %v3250_v11, %s3196_s20 }
 0x6e6   : > { %1663 = vrot.lane.b32.xlu1 %v3330_v51, %s3196_s20 }
 0x6e7   : > { %1657 = vrot.lane.b32.xlu0 %v3308_v40, %s3196_s20 }
 0x6ea   : > { %1667 = vrot.lane.b32.xlu1 %v3340_v55, %s3196_s20 }
 0x6eb   : > { %1661 = vrot.lane.b32.xlu0 %v3320_v46, %s3196_s20 }
 0x6ee   : > { %2026 = vrot.lane.b32.xlu1 %v3350_v61, %s3196_s20 }
 0x6ef   : > { %1665 = vrot.lane.b32.xlu0 %v3332_v52, %s3196_s20 }
 0x6f3   : > { %2028 = vrot.lane.b32.xlu0 %v3347_v59, %s3196_s20 }
 0x6f7   : > { %2024 = vrot.lane.b32.xlu0 %v3357_v0, %s3196_s20 }
 0x6fd   : > { %v1465_v11 = vpop.xlane.xlu1 %1464 }
 0x701   : > { %v1461_v29 = vpop.xlane.xlu1 %1460 }
 0x705   : > { %v1467_v33 = vpop.xlane.xlu1 %1466 }
 0x706   : > { %3089 = vrcp.f32 %v1467_v33 }
 0x707   : > { %3091 = vrcp.f32 %v1461_v29 }
 0x708   : > { %3093 = vrcp.f32 %v1465_v11 }
 0x709   : > { %v1463_v39 = vpop.xlane.xlu1 %1462 }
 0x70a   : > { %3095 = vrcp.f32 %v1463_v39 }
 0x70d   : > { %v1674_v30 = vpop.permute.xlu1 %1673 }
 0x713   : > { %v3090_v40 = vpop.eup %3089 }
 0x714   : > { %v3092_v45 = vpop.eup %3091  ;;  %v1511_v52 = vmul.f32 %v3090_v40, %v4000_v27  ;;  %v1680_v27 = vpop.permute.xlu0 %1679 }
 0x715   : > { %v3094_v46 = vpop.eup %3093  ;;  %v1508_v55 = vmul.f32 %v3092_v45, %v3997_v62  ;;  %v1725_v62 = vsel %vm232_vm0, %v1680_v27, 0 }
 0x716   : > { %v1510_v61 = vmul.f32 %v3094_v46, %v3994_v44  ;;  %v1722_v44 = vsel %vm232_vm0, %v4018_v34, 0 }
 0x717   : > { %v3096_v51 = vpop.eup %3095 }
 0x718   : > { %v1509_v59 = vmul.f32 %v3096_v51, %v4003_v63  ;;  %v1525_v17 = vpack.c.bf16 %v1511_v52, %v1510_v61  ;;  %v1676_v63 = vpop.permute.xlu0 %1675 }
 0x71a   : > { %v1524_v0 = vpack.c.bf16 %v1509_v59, %v1508_v55 }
 0x71c   : > { %2805 = vmatprep.mubr.bf16.mxu1 %v1524_v0 }
 0x71d   : > { %2806 = vmatmul.mubr.bf16.vlgmr.msra.gmra.mxu1 %v1525_v17 }
 0x71e   : > { %2822 = vmatpush3.bf16.xpose.msra.mxu1 %v1731_v31 }
 0x71f   : > { %2910 = vmatprep.subr.msk.bf16.mxu1 %vm232_vm0, %v4013_v15  ;;  %v1719_v15 = vsel %vm232_vm0, %v1676_v63, 0 }
 0x726   : > { %2824 = vmatpush3.bf16.xpose.msra.mxu1 %v1728_v32 }
 0x727   : > { %2911 = vmatprep.subr.msk.bf16.mxu1 %vm232_vm0, %v1680_v27 }
 0x72e   : > { %2826 = vmatpush3.bf16.xpose.msra.mxu1 %v1725_v62 }
 0x72f   : > { %2912 = vmatprep.subr.msk.bf16.mxu1 %vm232_vm0, %v4018_v34  ;;  %v1716_v34 = vsel %vm232_vm0, %v1674_v30, 0 }
 0x736   : > { %2828 = vmatpush3.bf16.xpose.msra.mxu1 %v1722_v44 }
 0x737   : > { %2913 = vmatprep.subr.msk.bf16.mxu1 %vm232_vm0, %v1676_v63 }
 0x73a   : > { %v1473_v56 = vpop.xlane.xlu0 %1472 }
 0x73e   : > { %2830 = vmatpush3.bf16.xpose.msra.mxu1 %v1719_v15  ;;  %v1469_v60 = vpop.xlane.xlu0 %1468  ;;  %v1471_v19 = vpop.xlane.xlu1 %1470 }
 0x73f   : > { %3097 = vrcp.f32 %v1469_v60  ;;  %2914 = vmatprep.subr.msk.bf16.mxu1 %vm232_vm0, %v1674_v30 }
 0x740   : > { %3099 = vrcp.f32 %v1471_v19 }
 0x741   : > { %3101 = vrcp.f32 %v1473_v56 }
 0x742   : > { %v1475_v50 = vpop.xlane.xlu0 %1474  ;;  %v1481_v3 = vpop.xlane.xlu1 %1480 }
 0x743   : > { %3103 = vrcp.f32 %v1475_v50 }
 0x746   : > { %2832 = vmatpush3.bf16.xpose.msra.mxu1 %v1716_v34  ;;  %v1477_v57 = vpop.xlane.xlu1 %1476 }
 0x74a   : > { %v1489_v13 = vpop.xlane.xlu0 %1488  ;;  %v1483_v21 = vpop.xlane.xlu1 %1482 }
 0x74b   : > { %3105 = vrcp.f32 %v1483_v21 }
 0x74c   : > { %v3098_v7 = vpop.eup %3097  ;;  %3107 = vrcp.f32 %v1477_v57 }
 0x74d   : > { %v3100_v38 = vpop.eup %3099  ;;  %v1512_v11 = vmul.f32 %v3098_v7, %v4028_v43  ;;  %3109 = vrcp.f32 %v1481_v3 }
 0x74e   : > { %v3102_v29 = vpop.eup %3101  ;;  %v1485_v33 = vpop.xlane.xlu0 %1484  ;;  %v1513_v40 = vmul.f32 %v3100_v38, %v4024_v35 }
 0x74f   : > { %v1479_v39 = vpop.xlane.xlu1 %1478  ;;  %v1514_v51 = vmul.f32 %v3102_v29, %v4021_v6 }
 0x750   : > { %v3104_v45 = vpop.eup %3103  ;;  %3111 = vrcp.f32 %v1479_v39  ;;  %v1526_v46 = vpack.c.bf16 %v1513_v40, %v1512_v11 }
 0x751   : > { %v1515_v52 = vmul.f32 %v3104_v45, %v4032_v25  ;;  %3113 = vrcp.f32 %v1485_v33 }
 0x752   : > { %2809 = vmatprep.mubr.bf16.mxu1 %v1526_v46  ;;  %v1491_v55 = vpop.xlane.xlu0 %1490 }
 0x753   : > { %v1487_v59 = vpop.xlane.xlu1 %1486  ;;  %v1527_v61 = vpack.c.bf16 %v1515_v52, %v1514_v51 }
 0x754   : > { %3115 = vrcp.f32 %v1487_v59 }
 0x755   : > { %3117 = vrcp.f32 %v1491_v55  ;;  %2810 = vmatmul.mubr.bf16.gmra.mxu1 %v1527_v61 }
 0x756   : > { %v1672_v43 = vpop.permute.xlu0 %1671  ;;  %3119 = vrcp.f32 %v1489_v13 }
 0x757   : > { %v1670_v0 = vpop.permute.xlu1 %1669  ;;  %v1713_v35 = vsel %vm232_vm0, %v1672_v43, 0  ;;  %2915 = vmatprep.subr.msk.bf16.mxu1 %vm232_vm0, %v1672_v43 }
 0x758   : > { %2834 = vmatpush3.bf16.xpose.msra.mxu1 %v1713_v35  ;;  %v3106_v6 = vpop.eup %3105  ;;  %v1710_v27 = vsel %vm232_vm0, %v1670_v0, 0 }
 0x759   : > { %2916 = vmatprep.subr.msk.bf16.mxu1 %vm232_vm0, %v1670_v0  ;;  %v3108_v25 = vpop.eup %3107  ;;  %v1519_v32 = vmul.f32 %v3106_v6, %v4043_v1 }
 0x75a   : > { %v3110_v17 = vpop.eup %3109  ;;  %v1516_v62 = vmul.f32 %v3108_v25, %v4040_v24 }
 0x75b   : > { %v1518_v30 = vmul.f32 %v3110_v17, %v4036_v10  ;;  %v1654_v10 = vpop.permute.xlu0 %1653  ;;  %v1656_v13 = vpop.permute.xlu1 %1655 }
 0x75d   : > { %v3112_v31 = vpop.eup %3111  ;;  %v1529_v60 = vpack.c.bf16 %v1519_v32, %v1518_v30 }
 0x75e   : > { %v1517_v44 = vmul.f32 %v3112_v31, %v4049_v5  ;;  %v3114_v63 = vpop.eup %3113 }
 0x75f   : > { %v1520_v50 = vmul.f32 %v3114_v63, %v4051_v49  ;;  %v1658_v21 = vpop.permute.xlu0 %1657  ;;  %v1660_v49 = vpop.permute.xlu1 %1659 }
 0x760   : > { %v1528_v56 = vpack.c.bf16 %v1517_v44, %v1516_v62  ;;  %2836 = vmatpush3.bf16.xpose.msra.mxu1 %v1710_v27 }
 0x761   : > { %v3116_v15 = vpop.eup %3115 }
 0x762   : > { %v3118_v19 = vpop.eup %3117  ;;  %2813 = vmatprep.mubr.bf16.mxu1 %v1528_v56  ;;  %v1521_v3 = vmul.f32 %v3116_v15, %v4057_v9 }
 0x763   : > { %2814 = vmatmul.mubr.bf16.gmra.mxu1 %v1529_v60  ;;  %v3120_v1 = vpop.eup %3119  ;;  %v1523_v24 = vmul.f32 %v3118_v19, %v4055_v18  ;;  %v1662_v9 = vpop.permute.xlu0 %1661 }
 0x764   : > { %v1530_v34 = vpack.c.bf16 %v1521_v3, %v1520_v50  ;;  %v1522_v5 = vmul.f32 %v3120_v1, %v4045_v42  ;;  %v1664_v18 = vpop.permute.xlu1 %1663 }
 0x766   : > { %2817 = vmatprep.mubr.bf16.mxu1 %v1530_v34  ;;  %v1531_v57 = vpack.c.bf16 %v1523_v24, %v1522_v5 }
 0x767   : > { %v1666_v7 = vpop.permute.xlu0 %1665 }
 0x768   : > { %v1668_v42 = vpop.permute.xlu1 %1667 }
 0x76b   : > { %2818 = vmatmul.mubr.bf16.gmra.mxu1 %v1531_v57  ;;  %v2029_v38 = vpop.permute.xlu0 %2028 }
 0x76c   : > { %2837 = vmatprep.mubr.msk.bf16.mxu1 %vm232_vm0, %v1654_v10  ;;  %2853 = vmatprep.subr.bf16.mxu0 %v2029_v38  ;;  %v2027_v11 = vpop.permute.xlu1 %2026 }
 0x76d   : > { %2854 = vmatpush3.bf16.msra.mxu0 %v2029_v38 }
 0x76e   : > { %2855 = vmatprep.subr.bf16.mxu0 %v2027_v11 }
 0x76f   : > { %v2025_v33 = vpop.permute.xlu0 %2024 }
 0x771   : > { %2856 = vmatpush3.bf16.msra.mxu0 %v2027_v11 }
 0x772   : > { %2857 = vmatprep.subr.bf16.mxu0 %v2025_v33 }
 0x773   : > { %2838 = vmatmul.mubr.msk.bf16.vlgmr.msra.gmra.mxu1 %vm232_vm0, %v1656_v13 }
 0x774   : > { %2841 = vmatprep.mubr.msk.bf16.mxu1 %vm232_vm0, %v1658_v21 }
 0x775   : > { %2858 = vmatpush3.bf16.msra.mxu0 %v2025_v33 }
 0x77b   : > { %2842 = vmatmul.mubr.msk.bf16.gmra.mxu1 %vm232_vm0, %v1660_v49 }
 0x77c   : > { %2845 = vmatprep.mubr.msk.bf16.mxu1 %vm232_vm0, %v1662_v9 }
 0x783   : > { %2846 = vmatmul.mubr.msk.bf16.gmra.mxu1 %vm232_vm0, %v1664_v18 }
 0x784   : > { %2849 = vmatprep.mubr.msk.bf16.mxu1 %vm232_vm0, %v1666_v7 }
 0x78b   : > { %2850 = vmatmul.mubr.msk.bf16.gmra.mxu1 %vm232_vm0, %v1668_v42 }
 0x7dd   : > { %v4130_v29 = vpop.f32.mrf.mxu1 }
 0x7df   : > { %v4132_v39 = vpop.f32.mrf.mxu1 }
 0x7e1   : > { %v4134_v40 = vpop.f32.mrf.mxu1 }
 0x7e3   : > { %v4136_v45 = vpop.f32.mrf.mxu1 }
 0x815   : > { %v4138_v46 = vpop.f32.mrf.mxu1 }
 0x817   : > { %v4140_v51 = vpop.f32.mrf.mxu1 }
 0x819   : > { %v4142_v52 = vpop.f32.mrf.mxu1 }
 0x81b   : > { %v4144_v55 = vpop.f32.mrf.mxu1 }
 0x823   : > { %v4146_v59 = vpop.f32.mrf.mxu1 }
 0x825   : > { %v4148_v61 = vpop.f32.mrf.mxu1 }
 0x827   : > { %v4150_v43 = vpop.f32.mrf.mxu1 }
 0x829   : > { %v4152_v0 = vpop.f32.mrf.mxu1 }
 0x82b   : > { %v4154_v35 = vpop.f32.mrf.mxu1 }
 0x82d   : > { %v4156_v6 = vpop.f32.mrf.mxu1 }
 0x82f   : > { %v4158_v25 = vpop.f32.mrf.mxu1 }
 0x831   : > { %v4160_v17 = vpop.f32.mrf.mxu1 }
 0x833   : > { %v2839_v31 = vpop.f32.mrf.mxu1 }
 0x834   : > { %v1832_v32 = vmul.f32 0.17677669, %v2839_v31 }
 0x835   : > { %v1767_v27 = vpop.f32.mrf.mxu1 }
 0x836   : > { %v4163_v62 = vadd.f32 %v3912_v26, %v1832_v32  ;;  %v1830_v44 = vmul.f32 0.17677669, %v1767_v27 }
 0x837   : > { %v2840_v63 = vpop.f32.mrf.mxu1 }
 0x838   : > { %1866 = vmax.xlane.f32.xlu0 %v4163_v62  ;;  %v4167_v56 = vadd.f32 %v3912_v26, %v1830_v44  ;;  %v1833_v15 = vmul.f32 0.17677669, %v2840_v63 }
 0x839   : > { %v1770_v30 = vpop.f32.mrf.mxu1 }
 0x83a   : > { %v1831_v60 = vmul.f32 0.17677669, %v1770_v30  ;;  %v4174_v34 = vadd.f32 %v3912_v26, %v1833_v15 }
 0x83b   : > { %v2843_v19 = vpop.f32.mrf.mxu1 }
 0x83c   : > { %v4170_v50 = vadd.f32 %v3912_v26, %v1831_v60  ;;  %v1836_v3 = vmul.f32 0.17677669, %v2843_v19  ;;  %1862 = vmax.xlane.f32.xlu0 %v4167_v56 }
 0x83d   : > { %v1783_v1 = vpop.f32.mrf.mxu1 }
 0x83e   : > { %1864 = vmax.xlane.f32.xlu1 %v4170_v50  ;;  %v4178_v5 = vadd.f32 %v3912_v26, %v1836_v3  ;;  %v1834_v13 = vmul.f32 0.17677669, %v1783_v1 }
 0x83f   : > { %v2844_v24 = vpop.f32.mrf.mxu1 }
 0x840   : > { %v1837_v57 = vmul.f32 0.17677669, %v2844_v24  ;;  %1868 = vmax.xlane.f32.xlu0 %v4174_v34  ;;  %v4187_v42 = vadd.f32 %v3912_v26, %v1834_v13 }
 0x841   : > { %v1786_v10 = vpop.f32.mrf.mxu1 }
 0x842   : > { %v4182_v21 = vadd.f32 %v3912_v26, %v1837_v57  ;;  %v1835_v49 = vmul.f32 0.17677669, %v1786_v10 }
 0x843   : > { %v2847_v9 = vpop.f32.mrf.mxu1 }
 0x844   : > { %v1840_v18 = vmul.f32 0.17677669, %v2847_v9  ;;  %1874 = vmax.xlane.f32.xlu0 %v4178_v5  ;;  %1876 = vmax.xlane.f32.xlu1 %v4182_v21  ;;  %v4190_v38 = vadd.f32 %v3912_v26, %v1835_v49 }
 0x845   : > { %v1799_v7 = vpop.f32.mrf.mxu1 }
 0x846   : > { %v4193_v33 = vadd.f32 %v3912_v26, %v1840_v18  ;;  %v1838_v27 = vmul.f32 0.17677669, %v1799_v7 }
 0x847   : > { %v2848_v11 = vpop.f32.mrf.mxu1 }
 0x848   : > { %v1841_v31 = vmul.f32 0.17677669, %v2848_v11  ;;  %1870 = vmax.xlane.f32.xlu0 %v4187_v42  ;;  %1872 = vmax.xlane.f32.xlu1 %v4190_v38  ;;  %v4203_v19 = vadd.f32 %v3912_v26, %v1838_v27 }
 0x849   : > { %v1802_v32 = vpop.f32.mrf.mxu1 }
 0x84a   : > { %v4198_v44 = vadd.f32 %v3912_v26, %v1841_v31  ;;  %v1839_v63 = vmul.f32 0.17677669, %v1802_v32 }
 0x84b   : > { %v2851_v30 = vpop.f32.mrf.mxu1 }
 0x84c   : > { %1882 = vmax.xlane.f32.xlu0 %v4193_v33  ;;  %1884 = vmax.xlane.f32.xlu1 %v4198_v44  ;;  %v1844_v15 = vmul.f32 0.17677669, %v2851_v30  ;;  %v4206_v3 = vadd.f32 %v3912_v26, %v1839_v63 }
 0x84d   : > { %v1815_v60 = vpop.f32.mrf.mxu1 }
 0x84e   : > { %v4209_v1 = vadd.f32 %v3912_v26, %v1844_v15  ;;  %v1842_v24 = vmul.f32 0.17677669, %v1815_v60 }
 0x84f   : > { %v2852_v10 = vpop.f32.mrf.mxu1 }
 0x850   : > { %1878 = vmax.xlane.f32.xlu0 %v4203_v19  ;;  %1880 = vmax.xlane.f32.xlu1 %v4206_v3  ;;  %v4214_v57 = vadd.f32 %v3912_v26, %v1842_v24  ;;  %v1845_v13 = vmul.f32 0.17677669, %v2852_v10 }
 0x851   : > { %v1818_v49 = vpop.f32.mrf.mxu1 }
 0x852   : > { %v4223_v9 = vadd.f32 %v3912_v26, %v1845_v13  ;;  %v1843_v18 = vmul.f32 0.17677669, %v1818_v49 }
 0x854   : > { %1890 = vmax.xlane.f32.xlu0 %v4209_v1  ;;  %v4227_v7 = vadd.f32 %v3912_v26, %v1843_v18 }
 0x858   : > { %1886 = vmax.xlane.f32.xlu0 %v4214_v57 }
 0x861   : > { %2020 = vrot.lane.b32.xlu1 %v3369_v8, %s3196_s20 }
 0x86e   : > { %2022 = vrot.lane.b32.xlu0 %v3363_v4, %s3196_s20 }
 0x885   : > { %1892 = vmax.xlane.f32.xlu1 %v4223_v9 }
 0x889   : > { %1888 = vmax.xlane.f32.xlu1 %v4227_v7 }
 0x89a   : > { %2018 = vrot.lane.b32.xlu1 %v3376_v12, %s3196_s20 }
 0x8c1   : > { %v1867_v8 = vpop.xlane.xlu0 %1866 }
 0x8c2   : > { %v1896_v4 = vsub.f32 %v4163_v62, %v1867_v8 }
 0x8c4   : > { %v1914_v11 = vmul.f32 1.442695, %v1896_v4 }
 0x8c5   : > { %v1863_v31 = vpop.xlane.xlu0 %1862 }
 0x8c6   : > { %3121 = vpow2.f32 %v1914_v11  ;;  %v1894_v32 = vsub.f32 %v4167_v56, %v1863_v31 }
 0x8c7   : > { %v1865_v27 = vpop.xlane.xlu1 %1864 }
 0x8c8   : > { %v1910_v63 = vmul.f32 1.442695, %v1894_v32  ;;  %v1895_v30 = vsub.f32 %v4170_v50, %v1865_v27 }
 0x8c9   : > { %v1869_v15 = vpop.xlane.xlu0 %1868 }
 0x8ca   : > { %3123 = vpow2.f32 %v1910_v63  ;;  %v1897_v26 = vsub.f32 %v4174_v34, %v1869_v15  ;;  %v1912_v24 = vmul.f32 1.442695, %v1895_v30 }
 0x8cc   : > { %v1916_v60 = vmul.f32 1.442695, %v1897_v26 }
 0x8cd   : > { %v1875_v10 = vpop.xlane.xlu0 %1874  ;;  %v1877_v12 = vpop.xlane.xlu1 %1876 }
 0x8ce   : > { %3125 = vpow2.f32 %v1916_v60  ;;  %v1900_v62 = vsub.f32 %v4178_v5, %v1875_v10  ;;  %v1901_v56 = vsub.f32 %v4182_v21, %v1877_v12 }
 0x8cf   : > { %3127 = vpow2.f32 %v1912_v24 }
 0x8d0   : > { %v1922_v13 = vmul.f32 1.442695, %v1900_v62  ;;  %v1924_v5 = vmul.f32 1.442695, %v1901_v56 }
 0x8d1   : > { %v1871_v49 = vpop.xlane.xlu0 %1870  ;;  %v1873_v18 = vpop.xlane.xlu1 %1872 }
 0x8d2   : > { %3129 = vpow2.f32 %v1922_v13  ;;  %v1898_v50 = vsub.f32 %v4187_v42, %v1871_v49  ;;  %v1899_v8 = vsub.f32 %v4190_v38, %v1873_v18 }
 0x8d3   : > { %v4240_v4 = vpop.eup %3121 }
 0x8d4   : > { %v1918_v34 = vmul.f32 1.442695, %v1898_v50  ;;  %v1920_v11 = vmul.f32 1.442695, %v1899_v8  ;;  %1946 = vadd.xlane.f32.xlu1 %v4240_v4 }
 0x8d5   : > { %v1883_v31 = vpop.xlane.xlu0 %1882  ;;  %v1885_v32 = vpop.xlane.xlu1 %1884 }
 0x8d6   : > { %3131 = vpow2.f32 %v1918_v34  ;;  %v1904_v27 = vsub.f32 %v4193_v33, %v1883_v31  ;;  %v1905_v42 = vsub.f32 %v4198_v44, %v1885_v32 }
 0x8d7   : > { %v4244_v63 = vpop.eup %3123  ;;  %3133 = vpow2.f32 %v1920_v11 }
 0x8d8   : > { %1942 = vadd.xlane.f32.xlu1 %v4244_v63  ;;  %v1930_v21 = vmul.f32 1.442695, %v1904_v27  ;;  %3135 = vpow2.f32 %v1924_v5  ;;  %v1932_v33 = vmul.f32 1.442695, %v1905_v42 }
 0x8d9   : > { %v1879_v38 = vpop.xlane.xlu0 %1878  ;;  %v1881_v15 = vpop.xlane.xlu1 %1880 }
 0x8da   : > { %v1902_v30 = vsub.f32 %v4203_v19, %v1879_v38  ;;  %3137 = vpow2.f32 %v1930_v21  ;;  %v1903_v24 = vsub.f32 %v4206_v3, %v1881_v15 }
 0x8db   : > { %v4249_v26 = vpop.eup %3125 }
 0x8dc   : > { %v1926_v60 = vmul.f32 1.442695, %v1902_v30  ;;  %1948 = vadd.xlane.f32.xlu1 %v4249_v26  ;;  %v4253_v12 = vpop.eup %3127  ;;  %v1928_v19 = vmul.f32 1.442695, %v1903_v24 }
 0x8dd   : > { %v1891_v10 = vpop.xlane.xlu0 %1890  ;;  %v2021_v34 = vpop.permute.xlu1 %2020 }
 0x8de   : > { %3139 = vpow2.f32 %v1926_v60  ;;  %v1908_v44 = vsub.f32 %v4209_v1, %v1891_v10 }
 0x8df   : > { %v4256_v62 = vpop.eup %3129  ;;  %3141 = vpow2.f32 %v1932_v33 }
 0x8e0   : > { %v1938_v13 = vmul.f32 1.442695, %v1908_v44  ;;  %1954 = vadd.xlane.f32.xlu0 %v4256_v62  ;;  %1944 = vadd.xlane.f32.xlu1 %v4253_v12 }
 0x8e1   : > { %v1887_v49 = vpop.xlane.xlu0 %1886 }
 0x8e2   : > { %3143 = vpow2.f32 %v1938_v13  ;;  %v1906_v18 = vsub.f32 %v4214_v57, %v1887_v49 }
 0x8e3   : > { %v4261_v3 = vpop.eup %3131  ;;  %3145 = vpow2.f32 %v1928_v19 }
 0x8e4   : > { %v4263_v56 = vpop.eup %3133  ;;  %v1934_v50 = vmul.f32 1.442695, %v1906_v18  ;;  %1950 = vadd.xlane.f32.xlu0 %v4261_v3 }
 0x8e5   : > { %1952 = vadd.xlane.f32.xlu1 %v4263_v56  ;;  %v2023_v1 = vpop.permute.xlu0 %2022  ;;  %v4267_v8 = vpop.eup %3135 }
 0x8e6   : > { %3147 = vpow2.f32 %v1934_v50  ;;  %2859 = vmatprep.subr.bf16.mxu0 %v2023_v1 }
 0x8e7   : > { %2860 = vmatpush3.bf16.msra.mxu0 %v2023_v1  ;;  %v4270_v57 = vpop.eup %3137 }
 0x8e8   : > { %1956 = vadd.xlane.f32.xlu0 %v4267_v8  ;;  %2861 = vmatprep.subr.bf16.mxu0 %v2021_v34 }
 0x8eb   : > { %v4272_v11 = vpop.eup %3139  ;;  %2862 = vmatpush3.bf16.msra.mxu0 %v2021_v34 }
 0x8ec   : > { %1962 = vadd.xlane.f32.xlu0 %v4270_v57  ;;  %1958 = vadd.xlane.f32.xlu1 %v4272_v11  ;;  %v4276_v31 = vpop.eup %3141 }
 0x8ef   : > { %v4278_v32 = vpop.eup %3143 }
 0x8f0   : > { %1970 = vadd.xlane.f32.xlu1 %v4278_v32  ;;  %1964 = vadd.xlane.f32.xlu0 %v4276_v31  ;;  %v4282_v5 = vpop.eup %3145 }
 0x8f3   : > { %v4284_v27 = vpop.eup %3147 }
 0x8f4   : > { %1966 = vadd.xlane.f32.xlu1 %v4284_v27  ;;  %1960 = vadd.xlane.f32.xlu0 %v4282_v5 }
 0x905   : > { %2014 = vrot.lane.b32.xlu1 %v3387_v20, %s3196_s20 }
 0x909   : > { %2153 = vrot.lane.b32.xlu1 %v3885_v54, %s3196_s20 }
 0x90a   : > { %2016 = vrot.lane.b32.xlu0 %v3382_v16, %s3196_s20 }
 0x90d   : > { %2155 = vrot.lane.b32.xlu1 %v3879_v48, %s3196_s20 }
 0x90e   : > { %v1893_v21 = vpop.xlane.xlu1 %1892 }
 0x90f   : > { %v1909_v30 = vsub.f32 %v4223_v9, %v1893_v21 }
 0x911   : > { %2157 = vrot.lane.b32.xlu1 %v3883_v58, %s3196_s20  ;;  %v1940_v16 = vmul.f32 1.442695, %v1909_v30 }
 0x912   : > { %v1889_v42 = vpop.xlane.xlu1 %1888 }
 0x913   : > { %v1907_v38 = vsub.f32 %v4227_v7, %v1889_v42 }
 0x915   : > { %2161 = vrot.lane.b32.xlu1 %v3893_v23, %s3196_s20  ;;  %v1936_v54 = vmul.f32 1.442695, %v1907_v38  ;;  %v4593_v23 = vld [vmem:[#allocation19_spill] sm:$0xff] }
 0x916   : > { %v2019_v20 = vpop.permute.xlu1 %2018 }
 0x917   : > { %2863 = vmatprep.subr.bf16.mxu0 %v2019_v20  ;;  %3149 = vpow2.f32 %v1936_v54 }
 0x918   : > { %2864 = vmatpush3.bf16.msra.mxu0 %v2019_v20  ;;  %3151 = vpow2.f32 %v1940_v16 }
 0x919   : > { %2165 = vrot.lane.b32.xlu1 %v3891_v2, %s3196_s20  ;;  %v4591_v2 = vld [vmem:[#allocation18_spill] sm:$0xff] }
 0x91d   : > { %2169 = vrot.lane.b32.xlu1 %v3901_v37, %s3196_s20 }
 0x921   : > { %2173 = vrot.lane.b32.xlu1 %v3899_v47, %s3196_s20 }
 0x924   : > { %v4310_v48 = vpop.eup %3149 }
 0x925   : > { %2177 = vrot.lane.b32.xlu1 %v3909_v22, %s3196_s20  ;;  %v4315_v58 = vpop.eup %3151 }
 0x929   : > { %2181 = vrot.lane.b32.xlu1 %v3907_v28, %s3196_s20  ;;  %1968 = vadd.xlane.f32.xlu0 %v4310_v48 }
 0x92d   : > { %2217 = vrot.lane.b32.xlu1 %v4136_v45, %s3195_s19  ;;  %1972 = vadd.xlane.f32.xlu0 %v4315_v58 }
 0x931   : > { %2221 = vrot.lane.b32.xlu1 %v4134_v40, %s3195_s19 }
 0x935   : > { %2225 = vrot.lane.b32.xlu1 %v4144_v55, %s3195_s19 }
 0x939   : > { %2229 = vrot.lane.b32.xlu1 %v4142_v52, %s3195_s19 }
 0x93d   : > { %2233 = vrot.lane.b32.xlu1 %v4152_v0, %s3195_s19 }
 0x941   : > { %2237 = vrot.lane.b32.xlu1 %v4150_v43, %s3195_s19 }
 0x943   : > { %2151 = vrot.lane.b32.xlu0 %v3881_v36, %s3196_s20  ;;  %v4592_v36 = vld [vmem:[#allocation20_spill] sm:$0xff] }
 0x945   : > { %2241 = vrot.lane.b32.xlu1 %v4160_v17, %s3195_s19 }
 0x947   : > { %2159 = vrot.lane.b32.xlu0 %v3889_v41, %s3196_s20 }
 0x949   : > { %2245 = vrot.lane.b32.xlu1 %v4158_v25, %s3195_s19 }
 0x94b   : > { %2163 = vrot.lane.b32.xlu0 %v3887_v14, %s3196_s20 }
 0x94f   : > { %2167 = vrot.lane.b32.xlu0 %v3897_v53, %s3196_s20 }
 0x953   : > { %2171 = vrot.lane.b32.xlu0 %v4591_v2, %s3196_s20 }
 0x957   : > { %2175 = vrot.lane.b32.xlu0 %v4592_v36, %s3196_s20 }
 0x95b   : > { %2179 = vrot.lane.b32.xlu0 %v4593_v23, %s3196_s20 }
 0x95d   : > { %v1947_v47 = vpop.xlane.xlu1 %1946 }
 0x95f   : > { %2215 = vrot.lane.b32.xlu0 %v4132_v39, %s3195_s19 }
 0x961   : > { %v1943_v41 = vpop.xlane.xlu1 %1942 }
 0x962   : > { %3153 = vrcp.f32 %v1943_v41 }
 0x963   : > { %2219 = vrot.lane.b32.xlu0 %v4130_v29, %s3195_s19 }
 0x965   : > { %v1949_v14 = vpop.xlane.xlu1 %1948 }
 0x967   : > { %2223 = vrot.lane.b32.xlu0 %v4140_v51, %s3195_s19 }
 0x969   : > { %v1955_v53 = vpop.xlane.xlu0 %1954  ;;  %v1945_v37 = vpop.xlane.xlu1 %1944 }
 0x96a   : > { %3155 = vrcp.f32 %v1945_v37 }
 0x96b   : > { %2227 = vrot.lane.b32.xlu0 %v4138_v46, %s3195_s19  ;;  %3157 = vrcp.f32 %v1949_v14 }
 0x96d   : > { %v1951_v28 = vpop.xlane.xlu0 %1950 }
 0x96e   : > { %v1953_v22 = vpop.xlane.xlu1 %1952  ;;  %3159 = vrcp.f32 %v1951_v28 }
 0x96f   : > { %2231 = vrot.lane.b32.xlu0 %v4148_v61, %s3195_s19  ;;  %3161 = vrcp.f32 %v1953_v22  ;;  %v3154_v45 = vpop.eup %3153 }
 0x970   : > { %3163 = vrcp.f32 %v1947_v47  ;;  %v1990_v55 = vmul.f32 %v3154_v45, %v4244_v63 }
 0x971   : > { %v1957_v39 = vpop.xlane.xlu0 %1956 }
 0x972   : > { %3165 = vrcp.f32 %v1957_v39  ;;  %v4594_v39 = vld [vmem:[#allocation17_spill] sm:$0xff] }
 0x973   : > { %2235 = vrot.lane.b32.xlu0 %v4146_v59, %s3195_s19  ;;  %3167 = vrcp.f32 %v1955_v53 }
 0x975   : > { %v1963_v29 = vpop.xlane.xlu0 %1962  ;;  %v1959_v40 = vpop.xlane.xlu1 %1958 }
 0x977   : > { %2239 = vrot.lane.b32.xlu0 %v4156_v6, %s3195_s19  ;;  %v3156_v46 = vpop.eup %3155 }
 0x978   : > { %v1991_v61 = vmul.f32 %v3156_v46, %v4253_v12  ;;  %v3158_v6 = vpop.eup %3157 }
 0x979   : > { %v1965_v51 = vpop.xlane.xlu0 %1964  ;;  %v4362_v52 = vpop.xlane.xlu1 %1970 }
 0x97a   : > { %v2006_v59 = vpack.c.bf16 %v1991_v61, %v1990_v55 }
 0x97b   : > { %2243 = vrot.lane.b32.xlu0 %v4154_v35, %s3195_s19  ;;  %v3160_v25 = vpop.eup %3159  ;;  %v1993_v35 = vmul.f32 %v3158_v6, %v4249_v26 }
 0x97c   : > { %2869 = vmatprep.mubr.bf16.mxu0 %v2006_v59  ;;  %v3162_v7 = vpop.eup %3161  ;;  %v1994_v60 = vmul.f32 %v3160_v25, %v4261_v3 }
 0x97d   : > { %v1961_v43 = vpop.xlane.xlu0 %1960  ;;  %v1967_v0 = vpop.xlane.xlu1 %1966  ;;  %v1995_v33 = vmul.f32 %v3162_v7, %v4263_v56 }
 0x97e   : > { %3169 = vrcp.f32 %v1961_v43  ;;  %v3164_v63 = vpop.eup %3163 }
 0x97f   : > { %3171 = vrcp.f32 %v1959_v40  ;;  %v1992_v24 = vmul.f32 %v3164_v63, %v4240_v4  ;;  %v3166_v12 = vpop.eup %3165  ;;  %v2008_v13 = vpack.c.bf16 %v1995_v33, %v1994_v60 }
 0x980   : > { %3173 = vrcp.f32 %v1965_v51  ;;  %v3168_v19 = vpop.eup %3167  ;;  %v1997_v18 = vmul.f32 %v3166_v12, %v4267_v8 }
 0x981   : > { %v2017_v17 = vpop.permute.xlu0 %2016  ;;  %v2015_v9 = vpop.permute.xlu1 %2014  ;;  %3175 = vrcp.f32 %v1963_v29  ;;  %v2007_v10 = vpack.c.bf16 %v1993_v35, %v1992_v24  ;;  %v1996_v56 = vmul.f32 %v3168_v19, %v4256_v62 }
 0x982   : > { %2865 = vmatprep.subr.bf16.mxu0 %v2017_v17  ;;  %3177 = vrcp.f32 %v1967_v0 }
 0x983   : > { %2866 = vmatpush3.bf16.msra.mxu0 %v2017_v17  ;;  %v2009_v1 = vpack.c.bf16 %v1997_v18, %v1996_v56 }
 0x984   : > { %2867 = vmatprep.subr.bf16.mxu0 %v2015_v9 }
 0x985   : > { %v4369_v15 = vpop.permute.xlu1 %2153 }
 0x987   : > { %2868 = vmatpush3.bf16.msra.mxu0 %v2015_v9 }
 0x989   : > { %v4374_v44 = vpop.permute.xlu1 %2155 }
 0x98a   : > { %2870 = vmatmul.mubr.bf16.vlgmr.msra.gmra.mxu0 %v2007_v10 }
 0x98b   : > { %v3170_v49 = vpop.eup %3169  ;;  %2873 = vmatprep.mubr.bf16.mxu0 %v2008_v13 }
 0x98c   : > { %v3172_v26 = vpop.eup %3171  ;;  %v1999_v3 = vmul.f32 %v3170_v49, %v4282_v5 }
 0x98d   : > { %v4377_v50 = vpop.permute.xlu1 %2157  ;;  %v1998_v4 = vmul.f32 %v3172_v26, %v4272_v11  ;;  %v3174_v34 = vpop.eup %3173 }
 0x98e   : > { %v3176_v38 = vpop.eup %3175  ;;  %v2001_v20 = vmul.f32 %v3174_v34, %v4276_v31 }
 0x98f   : > { %v2010_v42 = vpack.c.bf16 %v1999_v3, %v1998_v4  ;;  %v2000_v8 = vmul.f32 %v3176_v38, %v4270_v57  ;;  %v3178_v37 = vpop.eup %3177 }
 0x990   : > { %v2002_v45 = vmul.f32 %v3178_v37, %v4284_v27 }
 0x991   : > { %v4382_v21 = vpop.permute.xlu1 %2161  ;;  %v2011_v54 = vpack.c.bf16 %v2001_v20, %v2000_v8 }
 0x992   : > { %2874 = vmatmul.mubr.bf16.gmra.mxu0 %v2009_v1 }
 0x993   : > { %2877 = vmatprep.mubr.bf16.mxu0 %v2010_v42 }
 0x995   : > { %v4385_v30 = vpop.permute.xlu1 %2165 }
 0x999   : > { %v4388_v5 = vpop.permute.xlu1 %2169 }
 0x99a   : > { %2878 = vmatmul.mubr.bf16.gmra.mxu0 %v2011_v54 }
 0x99d   : > { %v4390_v62 = vpop.permute.xlu1 %2173 }
 0x9a1   : > { %v2178_v11 = vpop.permute.xlu1 %2177 }
 0x9a2   : > { %v2340_v29 = vsel %vm232_vm0, %v4594_v39, %v2178_v11 }
 0x9a5   : > { %v4392_v16 = vpop.permute.xlu1 %2181 }
 0x9a9   : > { %v4394_v2 = vpop.permute.xlu1 %2217 }
 0x9ad   : > { %v4396_v36 = vpop.permute.xlu1 %2221 }
 0x9b1   : > { %v4398_v23 = vpop.permute.xlu1 %2225 }
 0x9b2   : > { %v1969_v31 = vpop.xlane.xlu0 %1968 }
 0x9b3   : > { %3179 = vrcp.f32 %v1969_v31  ;;  %v4596_v31 = vld [vmem:[#allocation2_spill] sm:$0xff] }
 0x9b4   : > { %3181 = vrcp.f32 %v4362_v52 }
 0x9b5   : > { %v4401_v57 = vpop.permute.xlu1 %2229 }
 0x9b6   : > { %v1973_v47 = vpop.xlane.xlu0 %1972 }
 0x9b7   : > { %3183 = vrcp.f32 %v1973_v47  ;;  %v2329_v47 = vsel %vm232_vm0, %v4596_v31, %v4374_v44 }
 0x9b9   : > { %v4403_v41 = vpop.permute.xlu1 %2233 }
 0x9ba   : > { %v4405_v14 = vpop.permute.xlu0 %2151 }
 0x9bd   : > { %v4407_v53 = vpop.permute.xlu1 %2237 }
 0x9be   : > { %v4409_v28 = vpop.permute.xlu0 %2159 }
 0x9c0   : > { %v3180_v22 = vpop.eup %3179 }
 0x9c1   : > { %v2242_v40 = vpop.permute.xlu1 %2241  ;;  %v2003_v46 = vmul.f32 %v3180_v22, %v4310_v48  ;;  %v3182_v51 = vpop.eup %3181 }
 0x9c2   : > { %v4416_v52 = vsel %vm2343_vm1, %v2340_v29, %v2242_v40  ;;  %v4418_v55 = vpop.permute.xlu0 %2163  ;;  %v2004_v43 = vmul.f32 %v3182_v51, %v4278_v32  ;;  %v4595_v32 = vld [vmem:[#allocation15_spill] sm:$0xff]  ;;  %v4597_v40 = vld [vmem:[#allocation4_spill] sm:$0xff] }
 0x9c3   : > { %v2012_v61 = vpack.c.bf16 %v2003_v46, %v2002_v45  ;;  %v2330_v44 = vsel %vm232_vm0, %v4597_v40, %v4377_v50  ;;  %v4598_v45 = vld [vmem:[#allocation3_spill] sm:$0xff]  ;;  %v4599_v50 = vld [vmem:[#allocation5_spill] sm:$0xff] }
 0x9c4   : > { %v3184_v59 = vpop.eup %3183  ;;  %v2327_v46 = vsel %vm232_vm0, %v4598_v45, %v4405_v14  ;;  %v2347_v51 = vsel %vm2343_vm1, %v2330_v44, %v4396_v36  ;;  %v4600_v14 = vld [vmem:[#allocation6_spill] sm:$0xff] }
 0x9c5   : > { %2881 = vmatprep.mubr.bf16.mxu0 %v2012_v61  ;;  %v2005_v0 = vmul.f32 %v3184_v59, %v4315_v58  ;;  %v4466_v37 = vpop.permute.xlu1 %2245  ;;  %v2333_v36 = vsel %vm232_vm0, %v4600_v14, %v4418_v55  ;;  %v4602_v55 = vld [vmem:[#allocation7_spill] sm:$0xff]  ;;  %v4608_v44 = vld [vmem:[#allocation14_spill] sm:$0xff] }
 0x9c6   : > { %v4422_v6 = vpop.permute.xlu0 %2167 }
 0x9c7   : > { %v2013_v25 = vpack.c.bf16 %v2005_v0, %v2004_v43 }
 0x9c9   : > { %2882 = vmatmul.mubr.bf16.gmra.mxu0 %v2013_v25 }
 0x9ca   : > { %v4424_v27 = vpop.permute.xlu0 %2171 }
 0x9ce   : > { %v2176_v48 = vpop.permute.xlu0 %2175 }
 0x9cf   : > { %v2339_v58 = vsel %vm232_vm0, %v4595_v32, %v2176_v48  ;;  %v2328_v48 = vsel %vm232_vm0, %v4599_v50, %v4369_v15  ;;  %v4601_v15 = vld [vmem:[#allocation8_spill] sm:$0xff] }
 0x9d2   : > { %v4426_v17 = vpop.permute.xlu0 %2179 }
 0x9d3   : > { %v2341_v45 = vsel %vm232_vm0, %v4608_v44, %v4426_v17 }
 0x9d6   : > { %v2216_v9 = vpop.permute.xlu0 %2215 }
 0x9d7   : > { %v2344_v61 = vsel %vm2343_vm1, %v2327_v46, %v2216_v9  ;;  %v2345_v9 = vsel %vm2343_vm1, %v2328_v48, %v4394_v2  ;;  %v2331_v2 = vsel %vm232_vm0, %v4602_v55, %v4409_v28 }
 0x9da   : > { %v2220_v7 = vpop.permute.xlu0 %2219 }
 0x9db   : > { %v2346_v22 = vsel %vm2343_vm1, %v2329_v47, %v2220_v7 }
 0x9de   : > { %v4428_v63 = vpop.permute.xlu0 %2223 }
 0x9e2   : > { %v2228_v35 = vpop.permute.xlu0 %2227 }
 0x9e3   : > { %v2350_v7 = vsel %vm2343_vm1, %v2333_v36, %v2228_v35 }
 0x9e6   : > { %v4430_v60 = vpop.permute.xlu0 %2231 }
 0x9ea   : > { %v4432_v33 = vpop.permute.xlu0 %2235 }
 0x9ee   : > { %v2240_v24 = vpop.permute.xlu0 %2239 }
 0x9ef   : > { %v4437_v10 = vsel %vm2343_vm1, %v2339_v58, %v2240_v24 }
 0x9f2   : > { %v4455_v11 = vpop.permute.xlu0 %2243 }
 0xa4a   : > { %v2871_v12 = vpop.f32.mrf.mxu0 }
 0xa4b   : > { %2283 = vrot.lane.b32.xlu0 %v2871_v12, %s3194_s15 }
 0xa4c   : > { %v2072_v13 = vpop.f32.mrf.mxu0 }
 0xa4e   : > { %v2872_v19 = vpop.f32.mrf.mxu0 }
 0xa4f   : > { %2279 = vrot.lane.b32.xlu0 %v2072_v13, %s3194_s15  ;;  %2285 = vrot.lane.b32.xlu1 %v2872_v19, %s3194_s15  ;;  %v2334_v13 = vsel %vm232_vm0, %v4601_v15, %v4385_v30  ;;  %v2348_v19 = vsel %vm2343_vm1, %v2331_v2, %v4428_v63  ;;  %v4603_v30 = vld [vmem:[#allocation9_spill] sm:$0xff] }
 0xa50   : > { %v2075_v49 = vpop.f32.mrf.mxu0  ;;  %v2351_v35 = vsel %vm2343_vm1, %v2334_v13, %v4401_v57  ;;  %v2332_v28 = vsel %vm232_vm0, %v4603_v30, %v4382_v21  ;;  %v4605_v21 = vld [vmem:[#allocation12_spill] sm:$0xff] }
 0xa51   : > { %v2349_v63 = vsel %vm2343_vm1, %v2332_v28, %v4398_v23  ;;  %v4606_v23 = vld [vmem:[#allocation11_spill] sm:$0xff] }
 0xa52   : > { %v2875_v26 = vpop.f32.mrf.mxu0 }
 0xa53   : > { %2281 = vrot.lane.b32.xlu1 %v2075_v49, %s3194_s15  ;;  %2291 = vrot.lane.b32.xlu0 %v2875_v26, %s3194_s15 }
 0xa54   : > { %v2088_v18 = vpop.f32.mrf.mxu0 }
 0xa56   : > { %v2876_v3 = vpop.f32.mrf.mxu0 }
 0xa57   : > { %2287 = vrot.lane.b32.xlu0 %v2088_v18, %s3194_s15  ;;  %2293 = vrot.lane.b32.xlu1 %v2876_v3, %s3194_s15 }
 0xa58   : > { %v2091_v56 = vpop.f32.mrf.mxu0 }
 0xa5a   : > { %v2879_v4 = vpop.f32.mrf.mxu0 }
 0xa5b   : > { %2289 = vrot.lane.b32.xlu1 %v2091_v56, %s3194_s15  ;;  %2299 = vrot.lane.b32.xlu0 %v2879_v4, %s3194_s15  ;;  %v4604_v56 = vld [vmem:[#allocation10_spill] sm:$0xff] }
 0xa5c   : > { %v2104_v1 = vpop.f32.mrf.mxu0  ;;  %v2337_v57 = vsel %vm232_vm0, %v4604_v56, %v4424_v27  ;;  %v2338_v27 = vsel %vm232_vm0, %v4605_v21, %v4390_v62  ;;  %v4607_v62 = vld [vmem:[#allocation13_spill] sm:$0xff] }
 0xa5d   : > { %v2354_v4 = vsel %vm2343_vm1, %v2337_v57, %v4432_v33  ;;  %v2355_v33 = vsel %vm2343_vm1, %v2338_v27, %v4407_v53 }
 0xa5e   : > { %v2880_v34 = vpop.f32.mrf.mxu0 }
 0xa5f   : > { %2295 = vrot.lane.b32.xlu0 %v2104_v1, %s3194_s15  ;;  %2301 = vrot.lane.b32.xlu1 %v2880_v34, %s3194_s15 }
 0xa60   : > { %v2107_v42 = vpop.f32.mrf.mxu0 }
 0xa63   : > { %2297 = vrot.lane.b32.xlu1 %v2107_v42, %s3194_s15 }
 0xa89   : > { %v2883_v38 = vpop.f32.mrf.mxu0 }
 0xa8b   : > { %v2120_v20 = vpop.f32.mrf.mxu0 }
 0xa8c   : > { %2303 = vrot.lane.b32.xlu0 %v2120_v20, %s3194_s15  ;;  %v2335_v20 = vsel %vm232_vm0, %v4606_v23, %v4422_v6  ;;  %v2336_v6 = vsel %vm232_vm0, %v4607_v62, %v4388_v5  ;;  %v2358_v5 = vsel %vm2343_vm1, %v2341_v45, %v4455_v11 }
 0xa8d   : > { %v2884_v8 = vpop.f32.mrf.mxu0  ;;  %v2353_v53 = vsel %vm2343_vm1, %v2336_v6, %v4403_v41 }
 0xa8f   : > { %v2123_v54 = vpop.f32.mrf.mxu0 }
 0xa90   : > { %2307 = vrot.lane.b32.xlu0 %v2883_v38, %s3194_s15  ;;  %2305 = vrot.lane.b32.xlu1 %v2123_v54, %s3194_s15 }
 0xa94   : > { %2309 = vrot.lane.b32.xlu1 %v2884_v8, %s3194_s15  ;;  %v2352_v8 = vsel %vm2343_vm1, %v2335_v20, %v4430_v60 }
 0xabd   : > { %v2284_v39 = vpop.permute.xlu0 %2283 }
 0xabe   : > { %v2363_v29 = vsel %vm2360_vm2, %v2346_v22, %v2284_v39 }
 0xabf   : > { %2379 = vst [vmem:[%s4464_s24 + $0x10] sm:$0xff] %v2363_v29 }
 0xac1   : > { %v2280_v59 = vpop.permute.xlu0 %2279  ;;  %v2286_v43 = vpop.permute.xlu1 %2285 }
 0xac2   : > { %v2361_v0 = vsel %vm2360_vm2, %v2344_v61, %v2280_v59  ;;  %v2364_v25 = vsel %vm2360_vm2, %v2347_v51, %v2286_v43  ;;  %v4609_v59 = vld [vmem:[#allocation16_spill] sm:$0xff] }
 0xac3   : > { %2377 = vst [vmem:[%s4464_s24] sm:$0xff] %v2361_v0  ;;  %2380 = vst [vmem:[%s4464_s24 + $0x18] sm:$0xff] %v2364_v25 }
 0xac5   : > { %v2292_v32 = vpop.permute.xlu0 %2291  ;;  %v2282_v58 = vpop.permute.xlu1 %2281 }
 0xac6   : > { %v2367_v24 = vsel %vm2360_vm2, %v2350_v7, %v2292_v32  ;;  %v2362_v12 = vsel %vm2360_vm2, %v2345_v9, %v2282_v58 }
 0xac7   : > { %2383 = vst [vmem:[%s4464_s24 + $0x30] sm:$0xff] %v2367_v24  ;;  %2378 = vst [vmem:[%s4464_s24 + $0x8] sm:$0xff] %v2362_v12 }
 0xac9   : > { %v2288_v49 = vpop.permute.xlu0 %2287  ;;  %v2294_v26 = vpop.permute.xlu1 %2293 }
 0xaca   : > { %v2365_v18 = vsel %vm2360_vm2, %v2348_v19, %v2288_v49  ;;  %v2368_v3 = vsel %vm2360_vm2, %v2351_v35, %v2294_v26 }
 0xacb   : > { %2381 = vst [vmem:[%s4464_s24 + $0x20] sm:$0xff] %v2365_v18  ;;  %2384 = vst [vmem:[%s4464_s24 + $0x38] sm:$0xff] %v2368_v3 }
 0xacd   : > { %v2300_v1 = vpop.permute.xlu0 %2299  ;;  %v2290_v34 = vpop.permute.xlu1 %2289 }
 0xace   : > { %v2371_v42 = vsel %vm2360_vm2, %v2354_v4, %v2300_v1  ;;  %v2366_v38 = vsel %vm2360_vm2, %v2349_v63, %v2290_v34 }
 0xacf   : > { %2387 = vst [vmem:[%s4464_s24 + $0x50] sm:$0xff] %v2371_v42  ;;  %2382 = vst [vmem:[%s4464_s24 + $0x28] sm:$0xff] %v2366_v38 }
 0xad1   : > { %v2296_v54 = vpop.permute.xlu0 %2295  ;;  %v2302_v31 = vpop.permute.xlu1 %2301 }
 0xad2   : > { %v2369_v47 = vsel %vm2360_vm2, %v2352_v8, %v2296_v54  ;;  %v2372_v22 = vsel %vm2360_vm2, %v2355_v33, %v2302_v31 }
 0xad3   : > { %2385 = vst [vmem:[%s4464_s24 + $0x40] sm:$0xff] %v2369_v47  ;;  %2388 = vst [vmem:[%s4464_s24 + $0x58] sm:$0xff] %v2372_v22 }
 0xad5   : > { %v2298_v39 = vpop.permute.xlu1 %2297 }
 0xad6   : > { %v2370_v60 = vsel %vm2360_vm2, %v2353_v53, %v2298_v39 }
 0xad7   : > { %2386 = vst [vmem:[%s4464_s24 + $0x48] sm:$0xff] %v2370_v60 }
 0xafe   : > { %v2304_v29 = vpop.permute.xlu0 %2303 }
 0xaff   : > { %v2373_v40 = vsel %vm2360_vm2, %v4437_v10, %v2304_v29  ;;  %v2342_v10 = vsel %vm232_vm0, %v4609_v59, %v4392_v16 }
 0xb00   : > { %2389 = vst [vmem:[%s4464_s24 + $0x60] sm:$0xff] %v2373_v40  ;;  %v2359_v43 = vsel %vm2343_vm1, %v2342_v10, %v4466_v37 }
 0xb02   : > { %v2308_v46 = vpop.permute.xlu0 %2307  ;;  %v2306_v51 = vpop.permute.xlu1 %2305 }
 0xb03   : > { %v2375_v41 = vsel %vm2360_vm2, %v2358_v5, %v2308_v46  ;;  %v2374_v61 = vsel %vm2360_vm2, %v4416_v52, %v2306_v51 }
 0xb04   : > { %2391 = vst [vmem:[%s4464_s24 + $0x70] sm:$0xff] %v2375_v41  ;;  %2390 = vst [vmem:[%s4464_s24 + $0x68] sm:$0xff] %v2374_v61 }
 0xb06   : > { %v2310_v17 = vpop.permute.xlu1 %2309 }
 0xb07   : > { %v2376_v0 = vsel %vm2360_vm2, %v2359_v43, %v2310_v17 }
 0xb08   : > { %2392 = vst [vmem:[%s4464_s24 + $0x78] sm:$0xff] %v2376_v0 }
 0xb09 PF: > { %s12_s9 = sadd.s32 1, %s3192_s9  }
 0xb0a   : > { %p9_p4 = scmp.ge.s32.totalorder %s12_s9, 4  }
 0xb0c   :  { %11 = sbr.rel (!%p9_p4) target bundleno = 1 (0x1), region = 61 }

// kernel: bert_class_forward.19
= control target key start
LH: loop header
LB: loop body
LE: loop exit
PB: predicated region body
PF: predicated region fallthrough
CT: control target
= control target key end

     0   :  { %v382_v1 = vmov 0.0   ;;  %vm383_vm0 = vmmov 0   ;;  %s475_s0 = inlined_call_operand.vmem [shape: f32[2,128], index: 0, kind: input, shape index: {}]   ;;  %s476_s1 = inlined_call_operand.vmem [shape: bf16[128,128], index: 1, kind: input, shape index: {}]   ;;  %s477_s2 = inlined_call_operand.vmem [shape: f32[1,128], index: 2, kind: input, shape index: {}]   ;;  %s478_s3 = inlined_call_operand.vmem [shape: bf16[128,128], index: 3, kind: input, shape index: {}]   ;;  %s479_s4 = inlined_call_operand.vmem [shape: f32[1,128], index: 4, kind: input, shape index: {}]   ;;  %s480_s5 = inlined_call_operand.hbm [shape: f32[2,128], index: 5, kind: output, shape index: {}]  }
   0x1   :  { %v342_v0 = vld [vmem:[%s476_s1 + $0x38] sm:$0xff]   ;;  %299 = vmatprep.subr.bf16.mxu0 %v382_v1  ;;  %319 = vmatprep.subr.bf16.mxu1 %v382_v1  ;;  %v343_v2 = vld [vmem:[%s476_s1 + $0x30] sm:$0xff]   ;;  %v344_v3 = vld [vmem:[%s476_s1 + $0x28] sm:$0xff]  }
   0x2   :  { %300 = vmatpush3.bf16.msra.mxu0 %v342_v0  ;;  %315 = vmatprep.mubr.msk.bf16.mxu0 %vm383_vm0, %v382_v1  ;;  %v350_v4 = vld [vmem:[%s478_s3 + $0x38] sm:$0xff]   ;;  %v345_v5 = vld [vmem:[%s476_s1 + $0x20] sm:$0xff]   ;;  %v351_v6 = vld [vmem:[%s478_s3 + $0x30] sm:$0xff]  }
   0x3   :  { %301 = vmatprep.subr.bf16.mxu0 %v382_v1  ;;  %335 = vmatprep.mubr.msk.bf16.mxu1 %vm383_vm0, %v382_v1  ;;  %v346_v7 = vld [vmem:[%s476_s1 + $0x18] sm:$0xff]   ;;  %v352_v8 = vld [vmem:[%s478_s3 + $0x28] sm:$0xff]  }
   0x4   :  { %320 = vmatpush3.bf16.msra.mxu1 %v350_v4 }
   0x5   :  { %321 = vmatprep.subr.bf16.mxu1 %v382_v1 }
   0x6   :  { %302 = vmatpush3.bf16.msra.mxu0 %v343_v2 }
   0x7   :  { %303 = vmatprep.subr.bf16.mxu0 %v382_v1 }
   0x8   :  { %322 = vmatpush3.bf16.msra.mxu1 %v351_v6 }
   0xa   :  { %304 = vmatpush3.bf16.msra.mxu0 %v344_v3 }
   0xb   :  { %305 = vmatprep.subr.bf16.mxu0 %v382_v1 }
   0xe   :  { %306 = vmatpush3.bf16.msra.mxu0 %v345_v5 }
   0xf   :  { %307 = vmatprep.subr.bf16.mxu0 %v382_v1 }
  0x10   :  { %10 = vsyncpa [#allocation3], 0  ;;  %323 = vmatprep.subr.bf16.mxu1 %v382_v1  ;;  %v347_v9 = vld [vmem:[%s476_s1 + $0x10] sm:$0xff]   ;;  %v348_v10 = vld [vmem:[%s476_s1 + $0x8] sm:$0xff]  }
  0x11   :  { %324 = vmatpush3.bf16.msra.mxu1 %v352_v8  ;;  %v349_v11 = vld [vmem:[%s476_s1] sm:$0xff]   ;;  %v354_v15 = vld [vmem:[%s478_s3 + $0x18] sm:$0xff]   ;;  %v355_v16 = vld [vmem:[%s478_s3 + $0x10] sm:$0xff]  }
  0x12   :  { %308 = vmatpush3.bf16.msra.mxu0 %v346_v7  ;;  %325 = vmatprep.subr.bf16.mxu1 %v382_v1  ;;  %v22_v12 = vld [vmem:[%s475_s0] sm:$0x3]  ;;  %v356_v17 = vld [vmem:[%s478_s3 + $0x8] sm:$0xff]  }
  0x13   :  { %309 = vmatprep.subr.bf16.mxu0 %v382_v1  ;;  %v23_v13 = vpack.c.bf16 %v22_v12, %v22_v12  ;;  %v353_v14 = vld [vmem:[%s478_s3 + $0x20] sm:$0xff]  }
  0x14   :  { %v357_v18 = vld [vmem:[%s478_s3] sm:$0xff]   ;;  %s384_s3 = smov [#allocation2]  }
  0x15   :  { %326 = vmatpush3.bf16.msra.mxu1 %v353_v14  ;;  %v263_v19 = vld [vmem:[%s477_s2] ss:$0 sm:$0xff]  ;;  %s255_s29 = sshll.u32 %s384_s3, 4  ;;  %s256_s29 = int_to_ptr.vmem [resolvable:$true] %s255_s29 }
  0x16   :  { %310 = vmatpush3.bf16.msra.mxu0 %v347_v9  ;;  %327 = vmatprep.subr.bf16.mxu1 %v382_v1  ;;  %v272_v27 = vld [vmem:[%s479_s4] ss:$0 sm:$0xff]  ;;  %s360_s2 = scalar_lea.vmem %s256_s29, 32  ;;  %p365_p1 = scmp.lt.s32.totalorder %s256_s29, %s256_s29 }
  0x17   :  { %311 = vmatprep.subr.bf16.mxu0 %v382_v1  ;;  %p361_p0 = scmp.ne.s32.totalorder %s256_s29, %s360_s2  ;;  %p366_p2 = scmp.lt.s32.totalorder %s360_s2, %s360_s2 }
  0x19   :  { %328 = vmatpush3.bf16.msra.mxu1 %v354_v15  ;;  %p367_p3 = por %p366_p2, %p365_p1 }
  0x1a   :  { %312 = vmatpush3.bf16.msra.mxu0 %v348_v10  ;;  %329 = vmatprep.subr.bf16.mxu1 %v382_v1 }
  0x1b   :  { %313 = vmatprep.subr.bf16.mxu0 %v382_v1  ;;  %p368_p4 = pnand %p367_p3, %p361_p0 }
  0x1d   :  { %330 = vmatpush3.bf16.msra.mxu1 %v355_v16 }
  0x1e   :  { %314 = vmatpush3.bf16.msra.mxu0 %v349_v11  ;;  %331 = vmatprep.subr.bf16.mxu1 %v382_v1 }
  0x21   :  { %316 = vmatmul.mubr.bf16.vlgmr.msra.gmra.mxu0 %v23_v13  ;;  %332 = vmatpush3.bf16.msra.mxu1 %v356_v17 }
  0x22   :  { %333 = vmatprep.subr.bf16.mxu1 %v382_v1 }
  0x25   :  { %334 = vmatpush3.bf16.msra.mxu1 %v357_v18 }
  0xe1   :  { %v129_v20 = vpop.f32.mrf.mxu0 }
  0xe2   :  { %v130_v21 = vadd.f32 %v263_v19, %v129_v20 }
  0xe3   :  { %v317_v22 = vpop.f32.mrf.mxu0 }
  0xe4   :  { %358 = vtanh.f32 %v130_v21 }
  0xe5   :  { %v132_v23 = vpop.f32.mrf.mxu0 }
  0xe7   :  { %v318_v24 = vpop.f32.mrf.mxu0 }
  0xf1   :  { %v359_v25 = vpop.eup %358 }
  0xf2   :  { %v136_v26 = vpack.c.bf16 %v359_v25, %v359_v25 }
  0xf4   :  { %336 = vmatmul.mubr.bf16.vlgmr.msra.gmra.mxu1 %v136_v26 }
 0x1b4   :  { %v242_v28 = vpop.f32.mrf.mxu1 }
 0x1b5   :  { %v243_v29 = vadd.f32 %v272_v27, %v242_v28 }
 0x1b6   :  { %v337_v30 = vpop.f32.mrf.mxu1 }
 0x1b7   :  { %248 = vst [vmem:[#allocation2] sm:$0x3] %v243_v29 }
 0x1b8   :  { %v245_v31 = vpop.f32.mrf.mxu1 }
 0x1b9   :  { %371 = shalt.err (!%p368_p4)
}
 0x1ba   :  { %258 = dma.vmem_to_hbm [thread:$0]  %s256_s29, 32, %s480_s5, [#allocation3]   ;;  %v338_v32 = vpop.f32.mrf.mxu1 }
 0x1bb   :  { %380 = dma.done.wait [#allocation3], 32  }
 0x1bc   :  { %381 = vsyncadd [#allocation3], 4294967264 }
 0x1bd   :  { %262 = vsyncpa [#allocation3], 1 }

// kernel: bert_class_forward.14
= control target key start
LH: loop header
LB: loop body
LE: loop exit
PB: predicated region body
PF: predicated region fallthrough
CT: control target
= control target key end

     0   :  { %s2643_s24 = smov 0   ;;  %s3854_s0 = inlined_call_operand.vmem [shape: f32[256,128], index: 0, kind: input, shape index: {}]   ;;  %s3855_s1 = inlined_call_operand.vmem [shape: bf16[128,512], index: 1, kind: input, shape index: {}]   ;;  %s3856_s2 = inlined_call_operand.vmem [shape: f32[1,512], index: 2, kind: input, shape index: {}]   ;;  %s3857_s3 = inlined_call_operand.vmem [shape: bf16[512,128], index: 3, kind: input, shape index: {}]   ;;  %s3858_s4 = inlined_call_operand.vmem [shape: f32[1,128], index: 4, kind: input, shape index: {}]   ;;  %s3859_s5 = inlined_call_operand.vmem [shape: f32[1,128], index: 5, kind: input, shape index: {}]   ;;  %s3860_s6 = inlined_call_operand.vmem [shape: f32[1,128], index: 6, kind: input, shape index: {}]   ;;  %s3861_s7 = inlined_call_operand.vmem [shape: f32[256,128], index: 7, kind: output, shape index: {}]  }
   0x1 LB: > { %s2123_s25 = sadd.s32 4294967295, %s2600_s24   ;;  %p2127_p0 = scmp.ge.s32.totalorder %s2600_s24, 1  ;;  %s2600_s24 = sphi %s2643_s24, %s17_s24  }
   0x2   : > { %p238_p1 = scmp.lt.s32.totalorder %s2600_s24, 3 }
   0x4   : > { %p239_p2 = pnand %p2127_p0, %p238_p1 }
   0x6   : > { %242 = sbr.rel (%p239_p2) target bundleno = 930 (0x3a2), region = 48 }
   0xb   : > { %v2338_v0 = vld [vmem:[%s3855_s1 + $0xe4] ss:$16 sps:$4 sm:$0xff]   ;;  %v2340_v1 = vld [vmem:[%s3855_s1 + $0xec] ss:$16 sps:$4 sm:$0xff]   ;;  %v2602_v2 = vmov 0   ;;  %s2128_s10 = sshll.u32 %s2123_s25, 4 }
   0xc   : > { %553 = vmatprep.mubr.bf16.mxu0 %v2602_v2  ;;  %666 = vmatprep.mubr.bf16.mxu1 %v2602_v2  ;;  %v2342_v3 = vld [vmem:[%s3855_s1 + $0xe0] ss:$16 sps:$4 sm:$0xff]   ;;  %v2343_v4 = vld [vmem:[%s3855_s1 + $0xe8] ss:$16 sps:$4 sm:$0xff]   ;;  %v2344_v5 = vld [vmem:[%s3855_s1 + $0xc4] ss:$16 sps:$4 sm:$0xff]  }
   0xd   : > { %521 = vmatprep.subr.bf16.mxu0 %v2338_v0  ;;  %634 = vmatprep.subr.bf16.mxu1 %v2340_v1  ;;  %v2346_v6 = vld [vmem:[%s3855_s1 + $0xcc] ss:$16 sps:$4 sm:$0xff]   ;;  %v2348_v7 = vld [vmem:[%s3855_s1 + $0xc0] ss:$16 sps:$4 sm:$0xff]   ;;  %v2349_v8 = vld [vmem:[%s3855_s1 + $0xc8] ss:$16 sps:$4 sm:$0xff]  }
   0xe   : > { %522 = vmatpush1.bf16.msra.mxu0 %v2342_v3  ;;  %635 = vmatpush1.bf16.msra.mxu1 %v2343_v4  ;;  %v2350_v9 = vld [vmem:[%s3855_s1 + $0xa4] ss:$16 sps:$4 sm:$0xff]   ;;  %v2352_v10 = vld [vmem:[%s3855_s1 + $0xac] ss:$16 sps:$4 sm:$0xff]   ;;  %v2354_v11 = vld [vmem:[%s3855_s1 + $0xa0] ss:$16 sps:$4 sm:$0xff]  }
   0xf   : > { %523 = vmatprep.subr.bf16.mxu0 %v2344_v5  ;;  %636 = vmatprep.subr.bf16.mxu1 %v2346_v6  ;;  %v2355_v12 = vld [vmem:[%s3855_s1 + $0xa8] ss:$16 sps:$4 sm:$0xff]   ;;  %v2356_v13 = vld [vmem:[%s3855_s1 + $0x84] ss:$16 sps:$4 sm:$0xff]   ;;  %v2358_v14 = vld [vmem:[%s3855_s1 + $0x8c] ss:$16 sps:$4 sm:$0xff]  }
  0x10   : > { %v2360_v15 = vld [vmem:[%s3855_s1 + $0x80] ss:$16 sps:$4 sm:$0xff]   ;;  %v2361_v16 = vld [vmem:[%s3855_s1 + $0x88] ss:$16 sps:$4 sm:$0xff]   ;;  %v2362_v17 = vld [vmem:[%s3855_s1 + $0x64] ss:$16 sps:$4 sm:$0xff]  }
  0x11   : > { %p271_p3 = scmp.lt.s32.totalorder %s2128_s10, 31  ;;  %v2364_v18 = vld [vmem:[%s3855_s1 + $0x6c] ss:$16 sps:$4 sm:$0xff]   ;;  %v2366_v19 = vld [vmem:[%s3855_s1 + $0x60] ss:$16 sps:$4 sm:$0xff]  }
  0x12   : > { %524 = vmatpush1.bf16.msra.mxu0 %v2348_v7  ;;  %637 = vmatpush1.bf16.msra.mxu1 %v2349_v8  ;;  %v2367_v20 = vld [vmem:[%s3855_s1 + $0x68] ss:$16 sps:$4 sm:$0xff]   ;;  %v2368_v21 = vld [vmem:[%s3855_s1 + $0x44] ss:$16 sps:$4 sm:$0xff]   ;;  %v2370_v22 = vld [vmem:[%s3855_s1 + $0x4c] ss:$16 sps:$4 sm:$0xff]  }
  0x13   : > { %525 = vmatprep.subr.bf16.mxu0 %v2350_v9  ;;  %638 = vmatprep.subr.bf16.mxu1 %v2352_v10  ;;  %s3978_s10 = smov (!%p271_p3, %s2128_s10), 31  ;;  %v2372_v23 = vld [vmem:[%s3855_s1 + $0x40] ss:$16 sps:$4 sm:$0xff]   ;;  %v2373_v24 = vld [vmem:[%s3855_s1 + $0x48] ss:$16 sps:$4 sm:$0xff]  }
  0x14   : > { %s2129_s9 = sshll.u32 %s3978_s10, 3  ;;  %v2374_v25 = vld [vmem:[%s3855_s1 + $0x24] ss:$16 sps:$4 sm:$0xff]   ;;  %v2376_v26 = vld [vmem:[%s3855_s1 + $0x2c] ss:$16 sps:$4 sm:$0xff]  }
  0x15   : > { %s2741_s17 = scalar_lea.vmem %s3854_s0, %s2129_s9  ;;  %v2378_v27 = vld [vmem:[%s3855_s1 + $0x20] ss:$16 sps:$4 sm:$0xff]   ;;  %v2379_v28 = vld [vmem:[%s3855_s1 + $0x28] ss:$16 sps:$4 sm:$0xff]   ;;  %v2380_v29 = vld [vmem:[%s3855_s1 + $0x4] ss:$16 sps:$4 sm:$0xff]   ;;  %s3787_s28 = scalar_lea.vmem %s3861_s7, %s2129_s9 }
  0x16   : > { %526 = vmatpush1.bf16.msra.mxu0 %v2354_v11  ;;  %639 = vmatpush1.bf16.msra.mxu1 %v2355_v12  ;;  %v2382_v30 = vld [vmem:[%s3855_s1 + $0xc] ss:$16 sps:$4 sm:$0xff]   ;;  %v2384_v31 = vld [vmem:[%s3855_s1] ss:$16 sps:$4 sm:$0xff]   ;;  %v2385_v32 = vld [vmem:[%s3855_s1 + $0x8] ss:$16 sps:$4 sm:$0xff]  }
  0x17   : > { %527 = vmatprep.subr.bf16.mxu0 %v2356_v13  ;;  %640 = vmatprep.subr.bf16.mxu1 %v2358_v14  ;;  %v283_v33 = vld [vmem:[%s2741_s17] sm:$0xff]  ;;  %v284_v34 = vld [vmem:[%s2741_s17 + $0x8] sm:$0xff]  ;;  %v2386_v35 = vld [vmem:[%s3857_s3 + $0x78] sm:$0xff]  }
  0x18   : > { %v2388_v36 = vld [vmem:[%s3857_s3 + $0xf8] sm:$0xff]   ;;  %v299_v37 = vpack.c.bf16 %v284_v34, %v283_v33  ;;  %v2390_v40 = vld [vmem:[%s3857_s3 + $0x70] sm:$0xff]   ;;  %v2394_v46 = vld [vmem:[%s3857_s3 + $0x68] sm:$0xff]  }
  0x19   : > { %v2387_v38 = vld [vmem:[%s3857_s3 + $0x38] sm:$0xff]   ;;  %v285_v41 = vld [vmem:[%s2741_s17 + $0x10] sm:$0xff]  ;;  %v2396_v47 = vld [vmem:[%s3857_s3 + $0xe8] sm:$0xff]  }
  0x1a   : > { %528 = vmatpush1.bf16.msra.mxu0 %v2360_v15  ;;  %641 = vmatpush1.bf16.msra.mxu1 %v2361_v16  ;;  %v2389_v39 = vld [vmem:[%s3857_s3 + $0xb8] sm:$0xff]   ;;  %v2392_v42 = vld [vmem:[%s3857_s3 + $0xf0] sm:$0xff]   ;;  %v2395_v49 = vld [vmem:[%s3857_s3 + $0x28] sm:$0xff]  }
  0x1b   : > { %529 = vmatprep.subr.bf16.mxu0 %v2362_v17  ;;  %642 = vmatprep.subr.bf16.mxu1 %v2364_v18  ;;  %v286_v43 = vld [vmem:[%s2741_s17 + $0x18] sm:$0xff]  ;;  %v2391_v44 = vld [vmem:[%s3857_s3 + $0x30] sm:$0xff]   ;;  %v2397_v50 = vld [vmem:[%s3857_s3 + $0xa8] sm:$0xff]  }
  0x1c   : > { %v2393_v45 = vld [vmem:[%s3857_s3 + $0xb0] sm:$0xff]   ;;  %v300_v48 = vpack.c.bf16 %v286_v43, %v285_v41  ;;  %v287_v51 = vld [vmem:[%s2741_s17 + $0x20] sm:$0xff]  ;;  %v288_v52 = vld [vmem:[%s2741_s17 + $0x28] sm:$0xff] }
  0x1d   : > { %v301_v53 = vpack.c.bf16 %v288_v52, %v287_v51  ;;  %v289_v54 = vld [vmem:[%s2741_s17 + $0x30] sm:$0xff]  ;;  %v290_v55 = vld [vmem:[%s2741_s17 + $0x38] sm:$0xff]  ;;  %v291_v57 = vld [vmem:[%s2741_s17 + $0x40] sm:$0xff] }
  0x1e   : > { %530 = vmatpush1.bf16.msra.mxu0 %v2366_v19  ;;  %643 = vmatpush1.bf16.msra.mxu1 %v2367_v20  ;;  %v302_v56 = vpack.c.bf16 %v290_v55, %v289_v54  ;;  %v292_v58 = vld [vmem:[%s2741_s17 + $0x48] sm:$0xff]  ;;  %v293_v60 = vld [vmem:[%s2741_s17 + $0x50] sm:$0xff]  ;;  %v294_v61 = vld [vmem:[%s2741_s17 + $0x58] sm:$0xff] }
  0x1f   : > { %531 = vmatprep.subr.bf16.mxu0 %v2368_v21  ;;  %644 = vmatprep.subr.bf16.mxu1 %v2370_v22  ;;  %v303_v59 = vpack.c.bf16 %v292_v58, %v291_v57  ;;  %v304_v62 = vpack.c.bf16 %v294_v61, %v293_v60  ;;  %v295_v63 = vld [vmem:[%s2741_s17 + $0x60] sm:$0xff]  ;;  %v296_v0 = vld [vmem:[%s2741_s17 + $0x68] sm:$0xff]  ;;  %v297_v3 = vld [vmem:[%s2741_s17 + $0x70] sm:$0xff] }
  0x20   : > { %v305_v1 = vpack.c.bf16 %v296_v0, %v295_v63  ;;  %v298_v4 = vld [vmem:[%s2741_s17 + $0x78] sm:$0xff]  ;;  %v2398_v6 = vld [vmem:[%s3857_s3 + $0x60] sm:$0xff]   ;;  %v2406_v13 = vld [vmem:[%s3857_s3 + $0x50] sm:$0xff]  }
  0x21   : > { %v306_v5 = vpack.c.bf16 %v298_v4, %v297_v3  ;;  %v2400_v7 = vld [vmem:[%s3857_s3 + $0xe0] sm:$0xff]   ;;  %v2402_v9 = vld [vmem:[%s3857_s3 + $0x58] sm:$0xff]   ;;  %v2408_v14 = vld [vmem:[%s3857_s3 + $0xd0] sm:$0xff]  }
  0x22   : > { %532 = vmatpush1.bf16.msra.mxu0 %v2372_v23  ;;  %645 = vmatpush1.bf16.msra.mxu1 %v2373_v24  ;;  %v2399_v8 = vld [vmem:[%s3857_s3 + $0x20] sm:$0xff]   ;;  %v2404_v10 = vld [vmem:[%s3857_s3 + $0xd8] sm:$0xff]   ;;  %v2407_v15 = vld [vmem:[%s3857_s3 + $0x10] sm:$0xff]  }
  0x23   : > { %533 = vmatprep.subr.bf16.mxu0 %v2374_v25  ;;  %646 = vmatprep.subr.bf16.mxu1 %v2376_v26  ;;  %v2403_v11 = vld [vmem:[%s3857_s3 + $0x18] sm:$0xff]   ;;  %v2409_v16 = vld [vmem:[%s3857_s3 + $0x90] sm:$0xff]   ;;  %v2410_v17 = vld [vmem:[%s3857_s3 + $0x48] sm:$0xff]   ;;  %v341_v25 = vlaneseq }
  0x24   : > { %v2405_v12 = vld [vmem:[%s3857_s3 + $0x98] sm:$0xff]   ;;  %v2412_v18 = vld [vmem:[%s3857_s3 + $0xc8] sm:$0xff]   ;;  %v2414_v21 = vld [vmem:[%s3857_s3 + $0x40] sm:$0xff]  }
  0x25   : > { %v2411_v19 = vld [vmem:[%s3857_s3 + $0x8] sm:$0xff]   ;;  %v2416_v22 = vld [vmem:[%s3857_s3 + $0xc0] sm:$0xff]   ;;  %v342_v26 = vshrl.u32 %v341_v25, 7 }
  0x26   : > { %534 = vmatpush1.bf16.msra.mxu0 %v2378_v27  ;;  %647 = vmatpush1.bf16.msra.mxu1 %v2379_v28  ;;  %v2413_v20 = vld [vmem:[%s3857_s3 + $0x88] sm:$0xff]   ;;  %v2415_v23 = vld [vmem:[%s3857_s3] sm:$0xff]  }
  0x27   : > { %535 = vmatprep.subr.bf16.mxu0 %v2380_v29  ;;  %648 = vmatprep.subr.bf16.mxu1 %v2382_v30  ;;  %v2417_v24 = vld [vmem:[%s3857_s3 + $0x80] sm:$0xff]   ;;  %v343_v27 = vsub.s32 0, %v342_v26  ;;  %v351_v28 = vsub.s32 2, %v342_v26  ;;  %v347_v30 = vsub.s32 1, %v342_v26 }
  0x28   : > { %v339_v29 = vld [vmem:[%s3856_s2] sm:$0xf] }
  0x29   : > { %v2892_v33 = vrot.slane %v339_v29, %v351_v28  ;;  %v2894_v34 = vrot.slane %v339_v29, %v347_v30 }
  0x2a   : > { %536 = vmatpush1.bf16.msra.mxu0 %v2384_v31  ;;  %649 = vmatpush1.bf16.msra.mxu1 %v2385_v32  ;;  %v355_v31 = vsub.s32 3, %v342_v26  ;;  %v2890_v32 = vrot.slane %v339_v29, %v343_v27 }
  0x2b   : > { %2201 = vmatprep.subr.bf16.mxu0 %v2386_v35  ;;  %2265 = vmatprep.subr.bf16.mxu1 %v2388_v36 }
  0x2c   : > { %v2896_v35 = vrot.slane %v339_v29, %v355_v31 }
  0x2d   : > { %554 = vmatmul.mubr.bf16.vlgmr.msra.gmra.mxu0 %v299_v37  ;;  %667 = vmatmul.mubr.bf16.vlgmr.msra.gmra.mxu1 %v299_v37 }
  0x2e   : > { %563 = vmatprep.mubr.bf16.mxu0 %v2602_v2  ;;  %676 = vmatprep.mubr.bf16.mxu1 %v2602_v2 }
  0x2f   : > { %2202 = vmatpush3.bf16.msra.mxu0 %v2387_v38  ;;  %2266 = vmatpush3.bf16.msra.mxu1 %v2389_v39 }
  0x30   : > { %2203 = vmatprep.subr.bf16.mxu0 %v2390_v40  ;;  %2267 = vmatprep.subr.bf16.mxu1 %v2392_v42 }
  0x33   : > { %2204 = vmatpush3.bf16.msra.mxu0 %v2391_v44  ;;  %2268 = vmatpush3.bf16.msra.mxu1 %v2393_v45 }
  0x34   : > { %2205 = vmatprep.subr.bf16.mxu0 %v2394_v46  ;;  %2269 = vmatprep.subr.bf16.mxu1 %v2396_v47 }
  0x35   : > { %564 = vmatmul.mubr.bf16.gmra.mxu0 %v300_v48  ;;  %677 = vmatmul.mubr.bf16.gmra.mxu1 %v300_v48 }
  0x36   : > { %573 = vmatprep.mubr.bf16.mxu0 %v2602_v2  ;;  %686 = vmatprep.mubr.bf16.mxu1 %v2602_v2 }
  0x37   : > { %2206 = vmatpush3.bf16.msra.mxu0 %v2395_v49  ;;  %2270 = vmatpush3.bf16.msra.mxu1 %v2397_v50 }
  0x38   : > { %2207 = vmatprep.subr.bf16.mxu0 %v2398_v6  ;;  %2271 = vmatprep.subr.bf16.mxu1 %v2400_v7 }
  0x3b   : > { %2208 = vmatpush3.bf16.msra.mxu0 %v2399_v8 }
  0x3c   : > { %2209 = vmatprep.subr.bf16.mxu0 %v2402_v9 }
  0x3d   : > { %574 = vmatmul.mubr.bf16.gmra.mxu0 %v301_v53  ;;  %687 = vmatmul.mubr.bf16.gmra.mxu1 %v301_v53 }
  0x3e   : > { %583 = vmatprep.mubr.bf16.mxu0 %v2602_v2  ;;  %696 = vmatprep.mubr.bf16.mxu1 %v2602_v2 }
  0x3f   : > { %2210 = vmatpush3.bf16.msra.mxu0 %v2403_v11 }
  0x40   : > { %2211 = vmatprep.subr.bf16.mxu0 %v2406_v13 }
  0x43   : > { %2212 = vmatpush3.bf16.msra.mxu0 %v2407_v15 }
  0x44   : > { %2213 = vmatprep.subr.bf16.mxu0 %v2410_v17 }
  0x45   : > { %584 = vmatmul.mubr.bf16.gmra.mxu0 %v302_v56  ;;  %697 = vmatmul.mubr.bf16.gmra.mxu1 %v302_v56 }
  0x46   : > { %593 = vmatprep.mubr.bf16.mxu0 %v2602_v2  ;;  %706 = vmatprep.mubr.bf16.mxu1 %v2602_v2 }
  0x47   : > { %2214 = vmatpush3.bf16.msra.mxu0 %v2411_v19 }
  0x48   : > { %2215 = vmatprep.subr.bf16.mxu0 %v2414_v21 }
  0x4b   : > { %2216 = vmatpush3.bf16.msra.mxu0 %v2415_v23 }
  0x4d   : > { %594 = vmatmul.mubr.bf16.gmra.mxu0 %v303_v59  ;;  %707 = vmatmul.mubr.bf16.gmra.mxu1 %v303_v59 }
  0x4e   : > { %603 = vmatprep.mubr.bf16.mxu0 %v2602_v2  ;;  %716 = vmatprep.mubr.bf16.mxu1 %v2602_v2 }
  0x55   : > { %604 = vmatmul.mubr.bf16.gmra.mxu0 %v304_v62  ;;  %717 = vmatmul.mubr.bf16.gmra.mxu1 %v304_v62 }
  0x56   : > { %613 = vmatprep.mubr.bf16.mxu0 %v2602_v2  ;;  %726 = vmatprep.mubr.bf16.mxu1 %v2602_v2 }
  0x5d   : > { %614 = vmatmul.mubr.bf16.gmra.mxu0 %v305_v1  ;;  %727 = vmatmul.mubr.bf16.gmra.mxu1 %v305_v1 }
  0x5e   : > { %623 = vmatprep.mubr.bf16.mxu0 %v2602_v2  ;;  %736 = vmatprep.mubr.bf16.mxu1 %v2602_v2  ;;  %v2401_v2 = vld [vmem:[%s3857_s3 + $0xa0] sm:$0xff]  }
  0x5f   : > { %2272 = vmatpush3.bf16.msra.mxu1 %v2401_v2 }
  0x60   : > { %2273 = vmatprep.subr.bf16.mxu1 %v2404_v10 }
  0x63   : > { %2274 = vmatpush3.bf16.msra.mxu1 %v2405_v12 }
  0x64   : > { %2275 = vmatprep.subr.bf16.mxu1 %v2408_v14 }
  0x65   : > { %624 = vmatmul.mubr.bf16.gmra.mxu0 %v306_v5  ;;  %737 = vmatmul.mubr.bf16.gmra.mxu1 %v306_v5 }
  0x67   : > { %2276 = vmatpush3.bf16.msra.mxu1 %v2409_v16 }
  0x68   : > { %2277 = vmatprep.subr.bf16.mxu1 %v2412_v18 }
  0x6b   : > { %2278 = vmatpush3.bf16.msra.mxu1 %v2413_v20 }
  0x6c   : > { %2279 = vmatprep.subr.bf16.mxu1 %v2416_v22 }
  0x6f   : > { %2280 = vmatpush3.bf16.msra.mxu1 %v2417_v24 }
  0xed   : > { %v555_v36 = vpop.f32.mrf.mxu0  ;;  %v668_v37 = vpop.f32.mrf.mxu1 }
  0xee   : > { %v2899_v38 = vadd.f32 %v555_v36, %v2890_v32  ;;  %v2902_v39 = vadd.f32 %v668_v37, %v2892_v33 }
  0xef   : > { %v557_v40 = vpop.f32.mrf.mxu0  ;;  %v670_v41 = vpop.f32.mrf.mxu1 }
  0xf0   : > { %v747_v42 = vmul.f32 %v2899_v38, %v2899_v38  ;;  %v749_v43 = vmul.f32 %v2902_v39, %v2902_v39  ;;  %v2909_v44 = vadd.f32 %v557_v40, %v2894_v34  ;;  %v2912_v45 = vadd.f32 %v670_v41, %v2896_v35 }
  0xf1   : > { %v559_v46 = vpop.f32.mrf.mxu0  ;;  %v672_v47 = vpop.f32.mrf.mxu1 }
  0xf2   : > { %v811_v48 = vmul.f32 %v747_v42, %v2899_v38  ;;  %v813_v49 = vmul.f32 %v749_v43, %v2902_v39  ;;  %v748_v50 = vmul.f32 %v2909_v44, %v2909_v44  ;;  %v750_v51 = vmul.f32 %v2912_v45, %v2912_v45 }
  0xf3   : > { %v2921_v52 = vadd.f32 %v559_v46, %v2890_v32  ;;  %v2924_v53 = vadd.f32 %v672_v47, %v2892_v33  ;;  %v561_v54 = vpop.f32.mrf.mxu0  ;;  %v674_v55 = vpop.f32.mrf.mxu1 }
  0xf4   : > { %v875_v56 = vmul.f32 0.044715, %v811_v48  ;;  %v877_v57 = vmul.f32 0.044715, %v813_v49  ;;  %v812_v58 = vmul.f32 %v748_v50, %v2909_v44  ;;  %v814_v59 = vmul.f32 %v750_v51, %v2912_v45 }
  0xf5   : > { %v751_v60 = vmul.f32 %v2921_v52, %v2921_v52  ;;  %v753_v61 = vmul.f32 %v2924_v53, %v2924_v53  ;;  %v2933_v62 = vadd.f32 %v561_v54, %v2894_v34  ;;  %v2936_v63 = vadd.f32 %v674_v55, %v2896_v35  ;;  %v565_v0 = vpop.f32.mrf.mxu0  ;;  %v678_v1 = vpop.f32.mrf.mxu1 }
  0xf6   : > { %v939_v3 = vadd.f32 %v875_v56, %v2899_v38  ;;  %v941_v4 = vadd.f32 %v877_v57, %v2902_v39  ;;  %v876_v5 = vmul.f32 0.044715, %v812_v58  ;;  %v878_v6 = vmul.f32 0.044715, %v814_v59 }
  0xf7   : > { %v815_v7 = vmul.f32 %v751_v60, %v2921_v52  ;;  %v817_v8 = vmul.f32 %v753_v61, %v2924_v53  ;;  %v752_v2 = vmul.f32 %v2933_v62, %v2933_v62  ;;  %v754_v9 = vmul.f32 %v2936_v63, %v2936_v63  ;;  %v567_v10 = vpop.f32.mrf.mxu0  ;;  %v680_v11 = vpop.f32.mrf.mxu1 }
  0xf8   : > { %v1003_v12 = vmul.f32 0.7978846, %v939_v3  ;;  %v1005_v13 = vmul.f32 0.7978846, %v941_v4  ;;  %v940_v14 = vadd.f32 %v876_v5, %v2909_v44  ;;  %v942_v15 = vadd.f32 %v878_v6, %v2912_v45 }
  0xf9   : > { %v879_v16 = vmul.f32 0.044715, %v815_v7  ;;  %v881_v17 = vmul.f32 0.044715, %v817_v8  ;;  %v816_v18 = vmul.f32 %v752_v2, %v2933_v62  ;;  %v818_v19 = vmul.f32 %v754_v9, %v2936_v63  ;;  %v569_v20 = vpop.f32.mrf.mxu0  ;;  %v682_v24 = vpop.f32.mrf.mxu1 }
  0xfa   : > { %2418 = vtanh.f32 %v1003_v12  ;;  %v1004_v21 = vmul.f32 0.7978846, %v940_v14  ;;  %v1006_v22 = vmul.f32 0.7978846, %v942_v15  ;;  %v2951_v23 = vadd.f32 %v565_v0, %v2890_v32 }
  0xfb   : > { %2420 = vtanh.f32 %v1005_v13  ;;  %v943_v25 = vadd.f32 %v879_v16, %v2921_v52  ;;  %v945_v26 = vadd.f32 %v881_v17, %v2924_v53  ;;  %v880_v27 = vmul.f32 0.044715, %v816_v18  ;;  %v571_v40 = vpop.f32.mrf.mxu0  ;;  %v684_v47 = vpop.f32.mrf.mxu1 }
  0xfc   : > { %2422 = vtanh.f32 %v1004_v21  ;;  %v882_v28 = vmul.f32 0.044715, %v818_v19  ;;  %v755_v29 = vmul.f32 %v2951_v23, %v2951_v23  ;;  %v2958_v30 = vadd.f32 %v678_v1, %v2892_v33 }
  0xfd   : > { %2424 = vtanh.f32 %v1006_v22  ;;  %v1007_v31 = vmul.f32 0.7978846, %v943_v25  ;;  %v1009_v36 = vmul.f32 0.7978846, %v945_v26  ;;  %v944_v37 = vadd.f32 %v880_v27, %v2933_v62  ;;  %v575_v59 = vpop.f32.mrf.mxu0  ;;  %v2985_v1 = vpop.f32.mrf.mxu1 }
  0xfe   : > { %v946_v41 = vadd.f32 %v882_v28, %v2936_v63  ;;  %v819_v42 = vmul.f32 %v755_v29, %v2951_v23  ;;  %v757_v43 = vmul.f32 %v2958_v30, %v2958_v30  ;;  %v2966_v46 = vadd.f32 %v567_v10, %v2894_v34 }
  0xff   : > { %2426 = vtanh.f32 %v1007_v31  ;;  %v1008_v48 = vmul.f32 0.7978846, %v944_v37  ;;  %v2969_v49 = vadd.f32 %v680_v11, %v2896_v35  ;;  %v2972_v50 = vadd.f32 %v569_v20, %v2890_v32  ;;  %v577_v14 = vpop.f32.mrf.mxu0  ;;  %v690_v18 = vpop.f32.mrf.mxu1 }
 0x100   : > { %2428 = vtanh.f32 %v1009_v36  ;;  %v1010_v51 = vmul.f32 0.7978846, %v946_v41  ;;  %v883_v54 = vmul.f32 0.044715, %v819_v42  ;;  %v821_v55 = vmul.f32 %v757_v43, %v2958_v30 }
 0x101   : > { %2430 = vtanh.f32 %v1008_v48  ;;  %v756_v56 = vmul.f32 %v2966_v46, %v2966_v46  ;;  %v758_v57 = vmul.f32 %v2969_v49, %v2969_v49  ;;  %v759_v58 = vmul.f32 %v2972_v50, %v2972_v50  ;;  %v579_v41 = vpop.f32.mrf.mxu0 }
 0x102   : > { %2432 = vtanh.f32 %v1010_v51  ;;  %v947_v60 = vadd.f32 %v883_v54, %v2951_v23  ;;  %v885_v61 = vmul.f32 0.044715, %v821_v55  ;;  %v2983_v0 = vadd.f32 %v682_v24, %v2892_v33  ;;  %v692_v54 = vpop.f32.mrf.mxu1 }
 0x103   : > { %v820_v3 = vmul.f32 %v756_v56, %v2966_v46  ;;  %v822_v4 = vmul.f32 %v758_v57, %v2969_v49  ;;  %v823_v5 = vmul.f32 %v759_v58, %v2972_v50  ;;  %v2991_v6 = vadd.f32 %v571_v40, %v2894_v34 }
 0x104   : > { %v1011_v7 = vmul.f32 0.7978846, %v947_v60  ;;  %v949_v8 = vadd.f32 %v885_v61, %v2958_v30  ;;  %v761_v2 = vmul.f32 %v2983_v0, %v2983_v0  ;;  %v2997_v9 = vadd.f32 %v684_v47, %v2896_v35 }
 0x105   : > { %v884_v10 = vmul.f32 0.044715, %v820_v3  ;;  %v886_v11 = vmul.f32 0.044715, %v822_v4  ;;  %v887_v12 = vmul.f32 0.044715, %v823_v5  ;;  %v760_v13 = vmul.f32 %v2991_v6, %v2991_v6 }
 0x106   : > { %2434 = vtanh.f32 %v1011_v7  ;;  %v1013_v15 = vmul.f32 0.7978846, %v949_v8  ;;  %v825_v16 = vmul.f32 %v761_v2, %v2983_v0  ;;  %v762_v17 = vmul.f32 %v2997_v9, %v2997_v9  ;;  %v581_v8 = vpop.f32.mrf.mxu0 }
 0x107   : > { %v2419_v19 = vpop.eup %2418  ;;  %v948_v20 = vadd.f32 %v884_v10, %v2966_v46  ;;  %v950_v21 = vadd.f32 %v886_v11, %v2969_v49  ;;  %v951_v22 = vadd.f32 %v887_v12, %v2972_v50  ;;  %v824_v24 = vmul.f32 %v760_v13, %v2991_v6  ;;  %v694_v12 = vpop.f32.mrf.mxu1 }
 0x108   : > { %v2421_v25 = vpop.eup %2420  ;;  %v1131_v26 = vadd.f32 1.0, %v2419_v19  ;;  %2436 = vtanh.f32 %v1013_v15  ;;  %v889_v27 = vmul.f32 0.044715, %v825_v16  ;;  %v826_v28 = vmul.f32 %v762_v17, %v2997_v9 }
 0x109   : > { %v3009_v29 = vpop.eup %2422  ;;  %v1133_v31 = vadd.f32 1.0, %v2421_v25  ;;  %v1012_v36 = vmul.f32 0.7978846, %v948_v20  ;;  %v1014_v37 = vmul.f32 0.7978846, %v950_v21  ;;  %v3012_v40 = vadd.f32 %v575_v59, %v2890_v32  ;;  %v585_v25 = vpop.f32.mrf.mxu0 }
 0x10a   : > { %v3014_v42 = vpop.eup %2424  ;;  %v1195_v43 = vmul.f32 0.5, %v1131_v26  ;;  %v1015_v47 = vmul.f32 0.7978846, %v951_v22  ;;  %v953_v48 = vadd.f32 %v889_v27, %v2983_v0  ;;  %v888_v51 = vmul.f32 0.044715, %v824_v24 }
 0x10b   : > { %3893 = vst [vmem:[#allocation2_spill] sm:$0xff] %v3012_v40  ;;  %v1197_v55 = vmul.f32 0.5, %v1133_v31  ;;  %2438 = vtanh.f32 %v1012_v36  ;;  %v890_v56 = vmul.f32 0.044715, %v826_v28  ;;  %v763_v57 = vmul.f32 %v3012_v40, %v3012_v40 }
 0x10c   : > { %v2427_v58 = vpop.eup %2426  ;;  %v3020_v60 = vmul.f32 %v1195_v43, %v2899_v38  ;;  %2440 = vtanh.f32 %v1014_v37  ;;  %v1017_v59 = vmul.f32 0.7978846, %v953_v48  ;;  %v952_v61 = vadd.f32 %v888_v51, %v2991_v6 }
 0x10d   : > { %v2429_v3 = vpop.eup %2428  ;;  %v3024_v4 = vmul.f32 %v1197_v55, %v2902_v39  ;;  %v1135_v5 = vadd.f32 1.0, %v2427_v58  ;;  %2442 = vtanh.f32 %v1015_v47  ;;  %v954_v7 = vadd.f32 %v890_v56, %v2997_v9 }
 0x10e   : > { %v3027_v2 = vpop.eup %2430  ;;  %v1137_v10 = vadd.f32 1.0, %v2429_v3  ;;  %2444 = vtanh.f32 %v1017_v59  ;;  %v1016_v11 = vmul.f32 0.7978846, %v952_v61  ;;  %v827_v38 = vmul.f32 %v763_v57, %v3012_v40 }
 0x10f   : > { %v3030_v13 = vpop.eup %2432  ;;  %v1199_v15 = vmul.f32 0.5, %v1135_v5  ;;  %v1018_v16 = vmul.f32 0.7978846, %v954_v7  ;;  %v3034_v39 = vadd.f32 %v2985_v1, %v2892_v33  ;;  %v3037_v17 = vadd.f32 %v577_v14, %v2894_v34 }
 0x110   : > { %v1201_v19 = vmul.f32 0.5, %v1137_v10  ;;  %2446 = vtanh.f32 %v1016_v11  ;;  %v891_v20 = vmul.f32 0.044715, %v827_v38  ;;  %v3040_v21 = vadd.f32 %v690_v18, %v2896_v35 }
 0x111   : > { %3894 = vst [vmem:[#allocation3_spill] sm:$0xff] %v3034_v39  ;;  %v3043_v22 = vmul.f32 %v1199_v15, %v2921_v52  ;;  %2448 = vtanh.f32 %v1018_v16  ;;  %v765_v24 = vmul.f32 %v3034_v39, %v3034_v39  ;;  %v764_v1 = vmul.f32 %v3037_v17, %v3037_v17  ;;  %v698_v52 = vpop.f32.mrf.mxu1 }
 0x112   : > { %3895 = vst [vmem:[#allocation4_spill] sm:$0xff] %v3040_v21  ;;  %v3050_v14 = vmul.f32 %v1201_v19, %v2924_v53  ;;  %v955_v26 = vadd.f32 %v891_v20, %v3012_v40  ;;  %v766_v18 = vmul.f32 %v3040_v21, %v3040_v21  ;;  %v3056_v27 = vadd.f32 %v579_v41, %v2890_v32 }
 0x113   : > { %v3058_v28 = vpop.eup %2434  ;;  %v829_v36 = vmul.f32 %v765_v24, %v3034_v39  ;;  %v828_v37 = vmul.f32 %v764_v1, %v3037_v17  ;;  %v3065_v53 = vadd.f32 %v692_v54, %v2892_v33  ;;  %v3077_v58 = vadd.f32 %v581_v8, %v2894_v34  ;;  %v587_v54 = vpop.f32.mrf.mxu0 }
 0x114   : > { %3896 = vst [vmem:[#allocation5_spill] sm:$0xff] %v3056_v27  ;;  %v1019_v47 = vmul.f32 0.7978846, %v955_v26  ;;  %v830_v41 = vmul.f32 %v766_v18, %v3040_v21  ;;  %v767_v48 = vmul.f32 %v3056_v27, %v3056_v27  ;;  %v3081_v3 = vadd.f32 %v694_v12, %v2896_v35  ;;  %v700_v5 = vpop.f32.mrf.mxu1 }
 0x115   : > { %3897 = vst [vmem:[#allocation6_spill] sm:$0xff] %v3065_v53  ;;  %v3072_v51 = vpop.eup %2436  ;;  %v893_v55 = vmul.f32 0.044715, %v829_v36  ;;  %v892_v56 = vmul.f32 0.044715, %v828_v37  ;;  %v769_v57 = vmul.f32 %v3065_v53, %v3065_v53  ;;  %v768_v38 = vmul.f32 %v3077_v58, %v3077_v58  ;;  %v589_v36 = vpop.f32.mrf.mxu0 }
 0x116   : > { %2450 = vtanh.f32 %v1019_v47  ;;  %v894_v59 = vmul.f32 0.044715, %v830_v41  ;;  %v831_v61 = vmul.f32 %v767_v48, %v3056_v27  ;;  %3898 = vst [vmem:[#allocation7_spill] sm:$0xff] %v3081_v3  ;;  %v770_v19 = vmul.f32 %v3081_v3, %v3081_v3 }
 0x117   : > { %v957_v7 = vadd.f32 %v893_v55, %v3034_v39  ;;  %v956_v10 = vadd.f32 %v892_v56, %v3037_v17  ;;  %v833_v11 = vmul.f32 %v769_v57, %v3065_v53  ;;  %v3094_v12 = vadd.f32 %v585_v25, %v2890_v32  ;;  %v702_v25 = vpop.f32.mrf.mxu1 }
 0x118   : > { %v3088_v8 = vpop.eup %2438  ;;  %v958_v15 = vadd.f32 %v894_v59, %v3040_v21  ;;  %v895_v16 = vmul.f32 0.044715, %v831_v61  ;;  %v832_v18 = vmul.f32 %v768_v38, %v3077_v58  ;;  %v834_v48 = vmul.f32 %v770_v19, %v3081_v3 }
 0x119   : > { %3899 = vst [vmem:[#allocation8_spill] sm:$0xff] %v3094_v12  ;;  %v3096_v20 = vpop.eup %2440  ;;  %v1021_v24 = vmul.f32 0.7978846, %v957_v7  ;;  %v1020_v1 = vmul.f32 0.7978846, %v956_v10  ;;  %v771_v55 = vmul.f32 %v3094_v12, %v3094_v12  ;;  %v3109_v61 = vadd.f32 %v698_v52, %v2892_v33 }
 0x11a   : > { %v897_v26 = vmul.f32 0.044715, %v833_v11  ;;  %v3099_v37 = vpop.eup %2442  ;;  %v1022_v47 = vmul.f32 0.7978846, %v958_v15  ;;  %v959_v41 = vadd.f32 %v895_v16, %v3056_v27  ;;  %v896_v59 = vmul.f32 0.044715, %v832_v18 }
 0x11b   : > { %v3105_v56 = vpop.eup %2444  ;;  %2452 = vtanh.f32 %v1021_v24  ;;  %3900 = vst [vmem:[#allocation9_spill] sm:$0xff] %v3109_v61  ;;  %v898_v10 = vmul.f32 0.044715, %v834_v48  ;;  %v835_v11 = vmul.f32 %v771_v55, %v3094_v12  ;;  %v773_v19 = vmul.f32 %v3109_v61, %v3109_v61  ;;  %v591_v24 = vpop.f32.mrf.mxu0 }
 0x11c   : > { %v961_v57 = vadd.f32 %v897_v26, %v3065_v53  ;;  %2454 = vtanh.f32 %v1020_v1  ;;  %v1023_v7 = vmul.f32 0.7978846, %v959_v41  ;;  %v960_v16 = vadd.f32 %v896_v59, %v3077_v58  ;;  %v704_v41 = vpop.f32.mrf.mxu1 }
 0x11d   : > { %v3112_v38 = vpop.eup %2446  ;;  %2456 = vtanh.f32 %v1022_v47  ;;  %v962_v52 = vadd.f32 %v898_v10, %v3081_v3  ;;  %v899_v1 = vmul.f32 0.044715, %v835_v11  ;;  %v3121_v18 = vadd.f32 %v587_v54, %v2894_v34 }
 0x11e   : > { %v1025_v15 = vmul.f32 0.7978846, %v961_v57  ;;  %v3117_v26 = vpop.eup %2448  ;;  %2458 = vtanh.f32 %v1023_v7  ;;  %v1024_v48 = vmul.f32 0.7978846, %v960_v16  ;;  %v837_v47 = vmul.f32 %v773_v19, %v3109_v61  ;;  %v595_v16 = vpop.f32.mrf.mxu0 }
 0x11f   : > { %3901 = vst [vmem:[#allocation10_spill] sm:$0xff] %v3121_v18  ;;  %v3125_v55 = vadd.f32 %v700_v5, %v2896_v35  ;;  %v1026_v57 = vmul.f32 0.7978846, %v962_v52  ;;  %v963_v59 = vadd.f32 %v899_v1, %v3094_v12  ;;  %v772_v7 = vmul.f32 %v3121_v18, %v3121_v18  ;;  %v708_v1 = vpop.f32.mrf.mxu1 }
 0x120   : > { %2460 = vtanh.f32 %v1025_v15  ;;  %v3131_v10 = vadd.f32 %v589_v36, %v2890_v32  ;;  %v901_v54 = vmul.f32 0.044715, %v837_v47  ;;  %v3136_v15 = vadd.f32 %v702_v25, %v2892_v33 }
 0x121   : > { %3902 = vst [vmem:[#allocation11_spill] sm:$0xff] %v3125_v55  ;;  %2462 = vtanh.f32 %v1024_v48  ;;  %v774_v11 = vmul.f32 %v3125_v55, %v3125_v55  ;;  %v1027_v5 = vmul.f32 0.7978846, %v963_v59  ;;  %v836_v19 = vmul.f32 %v772_v7, %v3121_v18 }
 0x122   : > { %3903 = vst [vmem:[#allocation12_spill] sm:$0xff] %v3131_v10  ;;  %3904 = vst [vmem:[#allocation13_spill] sm:$0xff] %v3136_v15  ;;  %2464 = vtanh.f32 %v1026_v57  ;;  %v775_v52 = vmul.f32 %v3131_v10, %v3131_v10  ;;  %v965_v36 = vadd.f32 %v901_v54, %v3109_v61  ;;  %v777_v47 = vmul.f32 %v3136_v15, %v3136_v15 }
 0x123   : > { %v3141_v43 = vpop.eup %2450  ;;  %v838_v48 = vmul.f32 %v774_v11, %v3125_v55  ;;  %v3148_v25 = vadd.f32 %v591_v24, %v2894_v34  ;;  %2466 = vtanh.f32 %v1027_v5  ;;  %v900_v57 = vmul.f32 0.044715, %v836_v19  ;;  %v597_v11 = vpop.f32.mrf.mxu0 }
 0x124   : > { %3905 = vst [vmem:[#allocation14_spill] sm:$0xff] %v3141_v43  ;;  %v839_v59 = vmul.f32 %v775_v52, %v3131_v10  ;;  %v3152_v7 = vadd.f32 %v704_v41, %v2896_v35  ;;  %v1029_v31 = vmul.f32 0.7978846, %v965_v36  ;;  %v841_v53 = vmul.f32 %v777_v47, %v3136_v15  ;;  %v710_v19 = vpop.f32.mrf.mxu1 }
 0x125   : > { %3906 = vst [vmem:[#allocation15_spill] sm:$0xff] %v3148_v25  ;;  %v902_v12 = vmul.f32 0.044715, %v838_v48  ;;  %v776_v54 = vmul.f32 %v3148_v25, %v3148_v25  ;;  %v964_v61 = vadd.f32 %v900_v57, %v3121_v18  ;;  %v3161_v5 = vadd.f32 %v595_v16, %v2890_v32 }
 0x126   : > { %3907 = vst [vmem:[#allocation16_spill] sm:$0xff] %v3152_v7  ;;  %v903_v39 = vmul.f32 0.044715, %v839_v59  ;;  %v778_v24 = vmul.f32 %v3152_v7, %v3152_v7  ;;  %2468 = vtanh.f32 %v1029_v31  ;;  %v905_v52 = vmul.f32 0.044715, %v841_v53 }
 0x127   : > { %3908 = vst [vmem:[#allocation17_spill] sm:$0xff] %v3161_v5  ;;  %v966_v41 = vadd.f32 %v902_v12, %v3125_v55  ;;  %v840_v36 = vmul.f32 %v776_v54, %v3148_v25  ;;  %v1028_v47 = vmul.f32 0.7978846, %v964_v61  ;;  %v779_v59 = vmul.f32 %v3161_v5, %v3161_v5  ;;  %v599_v12 = vpop.f32.mrf.mxu0 }
 0x128   : > { %v3165_v48 = vpop.eup %2452  ;;  %v967_v27 = vadd.f32 %v903_v39, %v3131_v10  ;;  %v842_v57 = vmul.f32 %v778_v24, %v3152_v7  ;;  %v969_v31 = vadd.f32 %v905_v52, %v3136_v15  ;;  %v3175_v53 = vadd.f32 %v708_v1, %v2892_v33  ;;  %v712_v10 = vpop.f32.mrf.mxu1 }
 0x129   : > { %3909 = vst [vmem:[#allocation18_spill] sm:$0xff] %v3165_v48  ;;  %v3171_v18 = vpop.eup %2454  ;;  %v1030_v16 = vmul.f32 0.7978846, %v966_v41  ;;  %v904_v40 = vmul.f32 0.044715, %v840_v36  ;;  %2470 = vtanh.f32 %v1028_v47  ;;  %v843_v24 = vmul.f32 %v779_v59, %v3161_v5 }
 0x12a   : > { %3910 = vst [vmem:[#allocation19_spill] sm:$0xff] %v3175_v53  ;;  %v3177_v54 = vpop.eup %2456  ;;  %v1031_v61 = vmul.f32 0.7978846, %v967_v27  ;;  %v906_v39 = vmul.f32 0.044715, %v842_v57  ;;  %v781_v52 = vmul.f32 %v3175_v53, %v3175_v53  ;;  %v3189_v27 = vadd.f32 %v597_v11, %v2894_v34  ;;  %v714_v11 = vpop.f32.mrf.mxu1 }
 0x12b   : > { %v3180_v55 = vpop.eup %2458  ;;  %2472 = vtanh.f32 %v1030_v16  ;;  %v1033_v48 = vmul.f32 0.7978846, %v969_v31  ;;  %v968_v41 = vadd.f32 %v904_v40, %v3148_v25  ;;  %v907_v47 = vmul.f32 0.044715, %v843_v24  ;;  %v601_v40 = vpop.f32.mrf.mxu0 }
 0x12c   : > { %3911 = vst [vmem:[#allocation20_spill] sm:$0xff] %v3180_v55  ;;  %2474 = vtanh.f32 %v1031_v61  ;;  %v970_v36 = vadd.f32 %v906_v39, %v3152_v7  ;;  %3913 = vst [vmem:[#allocation22_spill] sm:$0xff] %v3189_v27  ;;  %v845_v59 = vmul.f32 %v781_v52, %v3175_v53  ;;  %v3193_v16 = vadd.f32 %v710_v19, %v2896_v35 }
 0x12d   : > { %v3185_v1 = vpop.eup %2460  ;;  %2476 = vtanh.f32 %v1033_v48  ;;  %v1032_v57 = vmul.f32 0.7978846, %v968_v41  ;;  %v971_v25 = vadd.f32 %v907_v47, %v3161_v5  ;;  %v780_v61 = vmul.f32 %v3189_v27, %v3189_v27 }
 0x12e   : > { %3912 = vst [vmem:[#allocation21_spill] sm:$0xff] %v3185_v1  ;;  %3914 = vst [vmem:[#allocation23_spill] sm:$0xff] %v3193_v16  ;;  %v3195_v31 = vpop.eup %2462  ;;  %v1034_v15 = vmul.f32 0.7978846, %v970_v36  ;;  %v3201_v39 = vadd.f32 %v599_v12, %v2890_v32  ;;  %v909_v24 = vmul.f32 0.044715, %v845_v59  ;;  %v782_v19 = vmul.f32 %v3193_v16, %v3193_v16  ;;  %v718_v1 = vpop.f32.mrf.mxu1 }
 0x12f   : > { %v3203_v48 = vpop.eup %2464  ;;  %2478 = vtanh.f32 %v1032_v57  ;;  %v3208_v41 = vadd.f32 %v712_v10, %v2892_v33  ;;  %v1035_v52 = vmul.f32 0.7978846, %v971_v25  ;;  %v844_v36 = vmul.f32 %v780_v61, %v3189_v27  ;;  %v605_v10 = vpop.f32.mrf.mxu0 }
 0x130   : > { %3915 = vst [vmem:[#allocation24_spill] sm:$0xff] %v3201_v39  ;;  %2480 = vtanh.f32 %v1034_v15  ;;  %v783_v47 = vmul.f32 %v3201_v39, %v3201_v39  ;;  %v3213_v12 = vpop.eup %2466  ;;  %v973_v5 = vadd.f32 %v909_v24, %v3175_v53  ;;  %v846_v57 = vmul.f32 %v782_v19, %v3193_v16 }
 0x131   : > { %3916 = vst [vmem:[#allocation25_spill] sm:$0xff] %v3208_v41  ;;  %3917 = vst [vmem:[#allocation26_spill] sm:$0xff] %v3213_v12  ;;  %v785_v59 = vmul.f32 %v3208_v41, %v3208_v41  ;;  %v3220_v7 = vadd.f32 %v601_v40, %v2894_v34  ;;  %2482 = vtanh.f32 %v1035_v52  ;;  %v908_v15 = vmul.f32 0.044715, %v844_v36 }
 0x132   : > { %v847_v25 = vmul.f32 %v783_v47, %v3201_v39  ;;  %v3224_v61 = vadd.f32 %v714_v11, %v2896_v35  ;;  %v1037_v12 = vmul.f32 0.7978846, %v973_v5  ;;  %v910_v55 = vmul.f32 0.044715, %v846_v57 }
 0x133   : > { %3918 = vst [vmem:[#allocation27_spill] sm:$0xff] %v3220_v7  ;;  %v849_v24 = vmul.f32 %v785_v59, %v3208_v41  ;;  %v784_v19 = vmul.f32 %v3220_v7, %v3220_v7  ;;  %v3229_v53 = vpop.eup %2468  ;;  %v972_v40 = vadd.f32 %v908_v15, %v3189_v27  ;;  %v3235_v36 = vadd.f32 %v605_v10, %v2890_v32  ;;  %v720_v27 = vpop.f32.mrf.mxu1 }
 0x134   : > { %3919 = vst [vmem:[#allocation28_spill] sm:$0xff] %v3224_v61  ;;  %3920 = vst [vmem:[#allocation29_spill] sm:$0xff] %v3229_v53  ;;  %v911_v3 = vmul.f32 0.044715, %v847_v25  ;;  %v786_v52 = vmul.f32 %v3224_v61, %v3224_v61  ;;  %2484 = vtanh.f32 %v1037_v12  ;;  %v974_v5 = vadd.f32 %v910_v55, %v3193_v16  ;;  %v607_v25 = vpop.f32.mrf.mxu0 }
 0x135   : > { %3921 = vst [vmem:[#allocation30_spill] sm:$0xff] %v3235_v36  ;;  %v913_v11 = vmul.f32 0.044715, %v849_v24  ;;  %v848_v47 = vmul.f32 %v784_v19, %v3220_v7  ;;  %v1036_v57 = vmul.f32 0.7978846, %v972_v40  ;;  %v787_v15 = vmul.f32 %v3235_v36, %v3235_v36 }
 0x136   : > { %v975_v59 = vadd.f32 %v911_v3, %v3201_v39  ;;  %v850_v53 = vmul.f32 %v786_v52, %v3224_v61  ;;  %v3243_v21 = vpop.eup %2470  ;;  %v1038_v10 = vmul.f32 0.7978846, %v974_v5  ;;  %v3247_v55 = vadd.f32 %v718_v1, %v2892_v33 }
 0x137   : > { %v977_v12 = vadd.f32 %v913_v11, %v3208_v41  ;;  %v912_v43 = vmul.f32 0.044715, %v848_v47  ;;  %2486 = vtanh.f32 %v1036_v57  ;;  %v851_v40 = vmul.f32 %v787_v15, %v3235_v36 }
 0x138   : > { %3922 = vst [vmem:[#allocation31_spill] sm:$0xff] %v3247_v55  ;;  %v3249_v24 = vpop.eup %2472  ;;  %v1039_v3 = vmul.f32 0.7978846, %v975_v59  ;;  %v914_v19 = vmul.f32 0.044715, %v850_v53  ;;  %2488 = vtanh.f32 %v1038_v10  ;;  %v789_v5 = vmul.f32 %v3247_v55, %v3247_v55  ;;  %v609_v53 = vpop.f32.mrf.mxu0 }
 0x139   : > { %v3252_v52 = vpop.eup %2474  ;;  %v1041_v39 = vmul.f32 0.7978846, %v977_v12  ;;  %v976_v16 = vadd.f32 %v912_v43, %v3220_v7  ;;  %v915_v47 = vmul.f32 0.044715, %v851_v40  ;;  %v1132_v57 = vadd.f32 1.0, %v3009_v29  ;;  %v722_v59 = vpop.f32.mrf.mxu1 }
 0x13a   : > { %3923 = vst [vmem:[#allocation32_spill] sm:$0xff] %v3252_v52  ;;  %v3257_v11 = vpop.eup %2476  ;;  %2490 = vtanh.f32 %v1039_v3  ;;  %v978_v1 = vadd.f32 %v914_v19, %v3224_v61  ;;  %v853_v10 = vmul.f32 %v789_v5, %v3247_v55  ;;  %v1136_v12 = vadd.f32 1.0, %v3027_v2  ;;  %v611_v61 = vpop.f32.mrf.mxu0 }
 0x13b   : > { %3924 = vst [vmem:[#allocation33_spill] sm:$0xff] %v3257_v11  ;;  %2492 = vtanh.f32 %v1041_v39  ;;  %v1040_v15 = vmul.f32 0.7978846, %v976_v16  ;;  %v979_v7 = vadd.f32 %v915_v47, %v3235_v36  ;;  %v1196_v11 = vmul.f32 0.5, %v1132_v57  ;;  %v724_v52 = vpop.f32.mrf.mxu1 }
 0x13c   : > { %v3263_v43 = vpop.eup %2478  ;;  %v1042_v41 = vmul.f32 0.7978846, %v978_v1  ;;  %v1134_v3 = vadd.f32 1.0, %v3014_v42  ;;  %v917_v29 = vmul.f32 0.044715, %v853_v10  ;;  %v1200_v40 = vmul.f32 0.5, %v1136_v12 }
 0x13d   : > { %v3267_v19 = vpop.eup %2480  ;;  %2494 = vtanh.f32 %v1040_v15  ;;  %v1138_v39 = vadd.f32 1.0, %v3030_v13  ;;  %v1043_v16 = vmul.f32 0.7978846, %v979_v7  ;;  %v1260_v5 = vmul.f32 %v1196_v11, %v2909_v44 }
 0x13e   : > { %2496 = vtanh.f32 %v1042_v41  ;;  %v1198_v2 = vmul.f32 0.5, %v1134_v3  ;;  %v3271_v1 = vpop.eup %2482  ;;  %v981_v47 = vadd.f32 %v917_v29, %v3247_v55  ;;  %v1264_v42 = vmul.f32 %v1200_v40, %v2933_v62  ;;  %v615_v3 = vpop.f32.mrf.mxu0 }
 0x13f   : > { %v1202_v57 = vmul.f32 0.5, %v1138_v39  ;;  %v3276_v15 = vadd.f32 %v607_v25, %v2894_v34  ;;  %2498 = vtanh.f32 %v1043_v16  ;;  %v3280_v7 = vadd.f32 %v720_v27, %v2896_v35  ;;  %v728_v29 = vpop.f32.mrf.mxu1 }
 0x140   : > { %v1262_v13 = vmul.f32 %v1198_v2, %v2912_v45  ;;  %v3283_v44 = vadd.f32 %v609_v53, %v2890_v32  ;;  %v1045_v41 = vmul.f32 0.7978846, %v981_v47  ;;  %v1324_v11 = vpack.c.bf16 %v1264_v42, %v1260_v5 }
 0x141   : > { %3925 = vst [vmem:[#allocation34_spill] sm:$0xff] %v3276_v15  ;;  %v1266_v10 = vmul.f32 %v1202_v57, %v2936_v63  ;;  %v788_v62 = vmul.f32 %v3276_v15, %v3276_v15  ;;  %v3288_v12 = vpop.eup %2484  ;;  %v790_v25 = vmul.f32 %v3280_v7, %v3280_v7  ;;  %v3295_v27 = vadd.f32 %v722_v59, %v2892_v33 }
 0x142   : > { %v791_v45 = vmul.f32 %v3283_v44, %v3283_v44  ;;  %v3298_v53 = vadd.f32 %v611_v61, %v2894_v34  ;;  %2500 = vtanh.f32 %v1045_v41  ;;  %1650 = vmatprep.mubr.bf16.mxu0 %v1324_v11  ;;  %v3302_v39 = vadd.f32 %v724_v52, %v2896_v35 }
 0x143   : > { %v1326_v63 = vpack.c.bf16 %v1266_v10, %v1262_v13  ;;  %v852_v40 = vmul.f32 %v788_v62, %v3276_v15  ;;  %v854_v16 = vmul.f32 %v790_v25, %v3280_v7  ;;  %v3926_v5 = vpack.c.bf16 %v3043_v22, %v3020_v60 }
 0x144   : > { %v855_v59 = vmul.f32 %v791_v45, %v3283_v44  ;;  %v793_v61 = vmul.f32 %v3295_v27, %v3295_v27  ;;  %v792_v2 = vmul.f32 %v3298_v53, %v3298_v53  ;;  %v3313_v47 = vpop.eup %2486  ;;  %v794_v52 = vmul.f32 %v3302_v39, %v3302_v39 }
 0x145   : > { %1651 = vmatmul.mubr.bf16.vlgmr.msra.gmra.mxu0 %v3926_v5  ;;  %1747 = vmatprep.mubr.bf16.mxu1 %v1326_v63  ;;  %v916_v42 = vmul.f32 0.044715, %v852_v40  ;;  %v3318_v57 = vadd.f32 %v615_v3, %v2890_v32  ;;  %v3321_v60 = vadd.f32 %v728_v29, %v2892_v33  ;;  %v3323_v22 = vpop.eup %2488  ;;  %v918_v13 = vmul.f32 0.044715, %v854_v16 }
 0x146   : > { %v3928_v41 = vpack.c.bf16 %v3050_v14, %v3024_v4  ;;  %v919_v11 = vmul.f32 0.044715, %v855_v59  ;;  %v857_v10 = vmul.f32 %v793_v61, %v3295_v27  ;;  %v856_v62 = vmul.f32 %v792_v2, %v3298_v53 }
 0x147   : > { %3927 = vst [vmem:[#allocation35_spill] sm:$0xff] %v3321_v60  ;;  %v3330_v25 = vpop.eup %2490  ;;  %v980_v45 = vadd.f32 %v916_v42, %v3276_v15  ;;  %v858_v3 = vmul.f32 %v794_v52, %v3302_v39  ;;  %v795_v29 = vmul.f32 %v3318_v57, %v3318_v57  ;;  %v797_v63 = vmul.f32 %v3321_v60, %v3321_v60 }
 0x148   : > { %1748 = vmatmul.mubr.bf16.vlgmr.msra.gmra.mxu1 %v3928_v41  ;;  %v3338_v40 = vpop.eup %2492  ;;  %v982_v4 = vadd.f32 %v918_v13, %v3280_v7  ;;  %v983_v14 = vadd.f32 %v919_v11, %v3283_v44  ;;  %v921_v16 = vmul.f32 0.044715, %v857_v10  ;;  %v920_v5 = vmul.f32 0.044715, %v856_v62 }
 0x149   : > { %3929 = vst [vmem:[#allocation36_spill] sm:$0xff] %v3338_v40  ;;  %v1044_v59 = vmul.f32 0.7978846, %v980_v45  ;;  %v922_v61 = vmul.f32 0.044715, %v858_v3  ;;  %v859_v2 = vmul.f32 %v795_v29, %v3318_v57  ;;  %v861_v42 = vmul.f32 %v797_v63, %v3321_v60  ;;  %v617_v29 = vpop.f32.mrf.mxu0 }
 0x14a   : > { %v3344_v52 = vpop.eup %2494  ;;  %v1046_v41 = vmul.f32 0.7978846, %v982_v4  ;;  %v1047_v55 = vmul.f32 0.7978846, %v983_v14  ;;  %v985_v36 = vadd.f32 %v921_v16, %v3295_v27  ;;  %v984_v15 = vadd.f32 %v920_v5, %v3298_v53  ;;  %v730_v5 = vpop.f32.mrf.mxu1 }
 0x14b   : > { %v3348_v40 = vpop.eup %2496  ;;  %2502 = vtanh.f32 %v1044_v59  ;;  %v986_v13 = vadd.f32 %v922_v61, %v3302_v39  ;;  %v923_v11 = vmul.f32 0.044715, %v859_v2  ;;  %v925_v10 = vmul.f32 0.044715, %v861_v42 }
 0x14c   : > { %2504 = vtanh.f32 %v1046_v41  ;;  %v1049_v62 = vmul.f32 0.7978846, %v985_v36  ;;  %v1048_v45 = vmul.f32 0.7978846, %v984_v15  ;;  %v1140_v3 = vadd.f32 1.0, %v3088_v8  ;;  %v3352_v63 = vpop.eup %2498 }
 0x14d   : > { %2506 = vtanh.f32 %v1047_v55  ;;  %v1050_v4 = vmul.f32 0.7978846, %v986_v13  ;;  %v987_v14 = vadd.f32 %v923_v11, %v3318_v57  ;;  %v989_v16 = vadd.f32 %v925_v10, %v3321_v60  ;;  %v619_v11 = vpop.f32.mrf.mxu0 }
 0x14e   : > { %2508 = vtanh.f32 %v1049_v62  ;;  %v1144_v59 = vadd.f32 1.0, %v3112_v38  ;;  %v1204_v61 = vmul.f32 0.5, %v1140_v3  ;;  %v1142_v2 = vadd.f32 1.0, %v3096_v20  ;;  %v732_v62 = vpop.f32.mrf.mxu1 }
 0x14f   : > { %2510 = vtanh.f32 %v1048_v45  ;;  %v1051_v36 = vmul.f32 0.7978846, %v987_v14  ;;  %v1053_v15 = vmul.f32 0.7978846, %v989_v16  ;;  %v1146_v8 = vadd.f32 1.0, %v3117_v26  ;;  %v3359_v42 = vpop.eup %2500 }
 0x150   : > { %2512 = vtanh.f32 %v1050_v4  ;;  %v1208_v55 = vmul.f32 0.5, %v1144_v59  ;;  %v1268_v41 = vmul.f32 %v1204_v61, %v2966_v46  ;;  %v1206_v13 = vmul.f32 0.5, %v1142_v2  ;;  %v621_v61 = vpop.f32.mrf.mxu0 }
 0x151   : > { %2514 = vtanh.f32 %v1051_v36  ;;  %v1210_v10 = vmul.f32 0.5, %v1146_v8  ;;  %v3363_v38 = vadd.f32 %v617_v29, %v2894_v34  ;;  %v3366_v20 = vadd.f32 %v730_v5, %v2896_v35  ;;  %v734_v36 = vpop.f32.mrf.mxu1 }
 0x152   : > { %2516 = vtanh.f32 %v1053_v15  ;;  %v1272_v26 = vmul.f32 %v1208_v55, %v2991_v6  ;;  %v1270_v45 = vmul.f32 %v1206_v13, %v2969_v49  ;;  %v1139_v3 = vadd.f32 1.0, %v3058_v28 }
 0x153   : > { %v1274_v46 = vmul.f32 %v1210_v10, %v2997_v9  ;;  %v796_v4 = vmul.f32 %v3363_v38, %v3363_v38  ;;  %v798_v29 = vmul.f32 %v3366_v20, %v3366_v20  ;;  %v1143_v14 = vadd.f32 1.0, %v3099_v37 }
 0x154   : > { %v1328_v16 = vpack.c.bf16 %v1272_v26, %v1268_v41  ;;  %v1203_v5 = vmul.f32 0.5, %v1139_v3  ;;  %v1141_v59 = vadd.f32 1.0, %v3072_v51  ;;  %v1145_v6 = vadd.f32 1.0, %v3105_v56  ;;  %v625_v3 = vpop.f32.mrf.mxu0 }
 0x155   : > { %v1330_v49 = vpack.c.bf16 %v1274_v46, %v1270_v45  ;;  %v860_v28 = vmul.f32 %v796_v4, %v3363_v38  ;;  %v862_v9 = vmul.f32 %v798_v29, %v3366_v20  ;;  %v1207_v2 = vmul.f32 0.5, %v1143_v14 }
 0x156   : > { %1658 = vmatprep.mubr.bf16.mxu0 %v1328_v16  ;;  %v1267_v15 = vmul.f32 %v1203_v5, %v2951_v23  ;;  %v1205_v8 = vmul.f32 0.5, %v1141_v59  ;;  %v1209_v55 = vmul.f32 0.5, %v1145_v6  ;;  %v3383_v37 = vadd.f32 %v619_v11, %v2890_v32  ;;  %v627_v60 = vpop.f32.mrf.mxu0 }
 0x157   : > { %1755 = vmatprep.mubr.bf16.mxu1 %v1330_v49  ;;  %v924_v51 = vmul.f32 0.044715, %v860_v28  ;;  %v926_v41 = vmul.f32 0.044715, %v862_v9  ;;  %v1271_v56 = vmul.f32 %v1207_v2, %v2972_v50  ;;  %v3387_v13 = vadd.f32 %v732_v62, %v2892_v33 }
 0x158   : > { %v3389_v10 = vpop.eup %2502  ;;  %v1269_v26 = vmul.f32 %v1205_v8, %v2958_v30  ;;  %v1273_v45 = vmul.f32 %v1209_v55, %v2983_v0  ;;  %v799_v23 = vmul.f32 %v3383_v37, %v3383_v37  ;;  %v3396_v11 = vadd.f32 %v621_v61, %v2894_v34  ;;  %v738_v30 = vpop.f32.mrf.mxu1 }
 0x159   : > { %3930 = vst [vmem:[#allocation37_spill] sm:$0xff] %v3387_v13  ;;  %v3398_v46 = vpop.eup %2504  ;;  %v988_v50 = vadd.f32 %v924_v51, %v3363_v38  ;;  %v990_v62 = vadd.f32 %v926_v41, %v3366_v20  ;;  %v1327_v4 = vpack.c.bf16 %v1271_v56, %v1267_v15  ;;  %v801_v29 = vmul.f32 %v3387_v13, %v3387_v13 }
 0x15a   : > { %v3404_v14 = vpop.eup %2506  ;;  %v1329_v0 = vpack.c.bf16 %v1273_v45, %v1269_v26  ;;  %v863_v16 = vmul.f32 %v799_v23, %v3383_v37  ;;  %v800_v5 = vmul.f32 %v3396_v11, %v3396_v11  ;;  %v3410_v59 = vadd.f32 %v734_v36, %v2896_v35 }
 0x15b   : > { %v3412_v6 = vpop.eup %2508  ;;  %v1052_v61 = vmul.f32 0.7978846, %v988_v50  ;;  %v1054_v49 = vmul.f32 0.7978846, %v990_v62  ;;  %1659 = vmatmul.mubr.bf16.gmra.mxu0 %v1327_v4  ;;  %v865_v28 = vmul.f32 %v801_v29, %v3387_v13  ;;  %v3416_v9 = vadd.f32 %v625_v3, %v2890_v32 }
 0x15c   : > { %v3418_v2 = vpop.eup %2510  ;;  %1756 = vmatmul.mubr.bf16.gmra.mxu1 %v1329_v0  ;;  %v927_v15 = vmul.f32 0.044715, %v863_v16  ;;  %v864_v8 = vmul.f32 %v800_v5, %v3396_v11  ;;  %v802_v36 = vmul.f32 %v3410_v59, %v3410_v59  ;;  %v3424_v55 = vadd.f32 %v738_v30, %v2892_v33 }
 0x15d   : > { %3931 = vst [vmem:[#allocation38_spill] sm:$0xff] %v3416_v9  ;;  %v3426_v51 = vpop.eup %2512  ;;  %2518 = vtanh.f32 %v1052_v61  ;;  %v929_v41 = vmul.f32 0.044715, %v865_v28  ;;  %v803_v56 = vmul.f32 %v3416_v9, %v3416_v9  ;;  %v1148_v26 = vadd.f32 1.0, %v3171_v18 }
 0x15e   : > { %3932 = vst [vmem:[#allocation39_spill] sm:$0xff] %v3424_v55  ;;  %v3431_v45 = vpop.eup %2514  ;;  %2520 = vtanh.f32 %v1054_v49  ;;  %v991_v23 = vadd.f32 %v927_v15, %v3383_v37  ;;  %v928_v3 = vmul.f32 0.044715, %v864_v8  ;;  %v866_v50 = vmul.f32 %v802_v36, %v3410_v59 }
 0x15f   : > { %v3435_v62 = vpop.eup %2516  ;;  %v993_v4 = vadd.f32 %v929_v41, %v3387_v13  ;;  %v867_v29 = vmul.f32 %v803_v56, %v3416_v9  ;;  %v805_v30 = vmul.f32 %v3424_v55, %v3424_v55  ;;  %v1152_v0 = vadd.f32 1.0, %v3195_v31 }
 0x160   : > { %v1055_v18 = vmul.f32 0.7978846, %v991_v23  ;;  %v992_v16 = vadd.f32 %v928_v3, %v3396_v11  ;;  %v930_v5 = vmul.f32 0.044715, %v866_v50  ;;  %v1212_v61 = vmul.f32 0.5, %v1148_v26  ;;  %v740_v50 = vpop.f32.mrf.mxu1 }
 0x161   : > { %v1057_v49 = vmul.f32 0.7978846, %v993_v4  ;;  %v931_v28 = vmul.f32 0.044715, %v867_v29  ;;  %v869_v15 = vmul.f32 %v805_v30, %v3424_v55  ;;  %v1216_v8 = vmul.f32 0.5, %v1152_v0 }
 0x162   : > { %2522 = vtanh.f32 %v1055_v18  ;;  %v1056_v36 = vmul.f32 0.7978846, %v992_v16  ;;  %v994_v41 = vadd.f32 %v930_v5, %v3410_v59  ;;  %v1276_v56 = vmul.f32 %v1212_v61, %v3037_v17 }
 0x163   : > { %2524 = vtanh.f32 %v1057_v49  ;;  %v995_v31 = vadd.f32 %v931_v28, %v3416_v9  ;;  %v933_v23 = vmul.f32 0.044715, %v869_v15  ;;  %v1280_v3 = vmul.f32 %v1216_v8, %v3077_v58  ;;  %v629_v58 = vpop.f32.mrf.mxu0  ;;  %v3934_v15 = vld [vmem:[#allocation4_spill] sm:$0xff] }
 0x164   : > { %2526 = vtanh.f32 %v1056_v36  ;;  %v1058_v26 = vmul.f32 0.7978846, %v994_v41  ;;  %v1150_v4 = vadd.f32 1.0, %v3177_v54  ;;  %v1154_v29 = vadd.f32 1.0, %v3203_v48  ;;  %v3933_v48 = vld [vmem:[#allocation14_spill] sm:$0xff]  ;;  %v3935_v36 = vld [vmem:[#allocation7_spill] sm:$0xff] }
 0x165   : > { %v1059_v30 = vmul.f32 0.7978846, %v995_v31  ;;  %v997_v0 = vadd.f32 %v933_v23, %v3424_v55  ;;  %v1332_v18 = vpack.c.bf16 %v1280_v3, %v1276_v56  ;;  %v3452_v17 = vadd.f32 %v627_v60, %v2894_v34  ;;  %v3936_v56 = vld [vmem:[#allocation20_spill] sm:$0xff]  ;;  %v742_v23 = vpop.f32.mrf.mxu1 }
 0x166   : > { %2528 = vtanh.f32 %v1058_v26  ;;  %v1214_v16 = vmul.f32 0.5, %v1150_v4  ;;  %v1218_v5 = vmul.f32 0.5, %v1154_v29  ;;  %v3455_v61 = vadd.f32 %v740_v50, %v2896_v35  ;;  %v3937_v26 = vld [vmem:[#allocation18_spill] sm:$0xff] }
 0x167   : > { %2530 = vtanh.f32 %v1059_v30  ;;  %v1061_v49 = vmul.f32 0.7978846, %v997_v0  ;;  %1666 = vmatprep.mubr.bf16.mxu0 %v1332_v18  ;;  %v804_v54 = vmul.f32 %v3452_v17, %v3452_v17  ;;  %v1147_v28 = vadd.f32 1.0, %v3933_v48  ;;  %v631_v48 = vpop.f32.mrf.mxu0 }
 0x168   : > { %v1278_v8 = vmul.f32 %v1214_v16, %v3934_v15  ;;  %v1282_v60 = vmul.f32 %v1218_v5, %v3935_v36  ;;  %v806_v41 = vmul.f32 %v3455_v61, %v3455_v61  ;;  %v1151_v31 = vadd.f32 1.0, %v3936_v56  ;;  %v3938_v16 = vld [vmem:[#allocation21_spill] sm:$0xff]  ;;  %v3939_v56 = vld [vmem:[#allocation2_spill] sm:$0xff] }
 0x169   : > { %2532 = vtanh.f32 %v1061_v49  ;;  %v868_v3 = vmul.f32 %v804_v54, %v3452_v17  ;;  %v1211_v50 = vmul.f32 0.5, %v1147_v28  ;;  %v1149_v4 = vadd.f32 1.0, %v3937_v26  ;;  %v3941_v26 = vld [vmem:[#allocation5_spill] sm:$0xff] }
 0x16a   : > { %v3467_v29 = vpop.eup %2518  ;;  %v1334_v30 = vpack.c.bf16 %v1282_v60, %v1278_v8  ;;  %v870_v0 = vmul.f32 %v806_v41, %v3455_v61  ;;  %v1215_v18 = vmul.f32 0.5, %v1151_v31  ;;  %v1153_v5 = vadd.f32 1.0, %v3938_v16  ;;  %v744_v41 = vpop.f32.mrf.mxu1  ;;  %v3943_v16 = vld [vmem:[#allocation3_spill] sm:$0xff] }
 0x16b   : > { %v3471_v15 = vpop.eup %2520  ;;  %v932_v36 = vmul.f32 0.044715, %v868_v3  ;;  %v1275_v55 = vmul.f32 %v1211_v50, %v3939_v56  ;;  %v1213_v49 = vmul.f32 0.5, %v1149_v4  ;;  %v3475_v54 = vadd.f32 %v629_v58, %v2890_v32  ;;  %v3944_v4 = vld [vmem:[#allocation6_spill] sm:$0xff] }
 0x16c   : > { %1763 = vmatprep.mubr.bf16.mxu1 %v1334_v30  ;;  %v934_v28 = vmul.f32 0.044715, %v870_v0  ;;  %v1279_v9 = vmul.f32 %v1215_v18, %v3941_v26  ;;  %v1217_v8 = vmul.f32 0.5, %v1153_v5  ;;  %v3479_v60 = vadd.f32 %v742_v23, %v2892_v33 }
 0x16d   : > { %3940 = vst [vmem:[#allocation14_spill] sm:$0xff] %v3475_v54  ;;  %v996_v31 = vadd.f32 %v932_v36, %v3452_v17  ;;  %v1277_v13 = vmul.f32 %v1213_v49, %v3943_v16  ;;  %v807_v3 = vmul.f32 %v3475_v54, %v3475_v54  ;;  %v3486_v50 = vadd.f32 %v631_v48, %v2894_v34 }
 0x16e   : > { %3942 = vst [vmem:[#allocation4_spill] sm:$0xff] %v3479_v60  ;;  %v998_v32 = vadd.f32 %v934_v28, %v3455_v61  ;;  %v1331_v58 = vpack.c.bf16 %v1279_v9, %v1275_v55  ;;  %v1281_v30 = vmul.f32 %v1217_v8, %v3944_v4  ;;  %v809_v33 = vmul.f32 %v3479_v60, %v3479_v60 }
 0x16f   : > { %v3492_v23 = vpop.eup %2522  ;;  %v1060_v0 = vmul.f32 0.7978846, %v996_v31  ;;  %v871_v18 = vmul.f32 %v807_v3, %v3475_v54  ;;  %v808_v5 = vmul.f32 %v3486_v50, %v3486_v50  ;;  %v3498_v36 = vadd.f32 %v744_v41, %v2896_v35 }
 0x170   : > { %v3500_v34 = vpop.eup %2524  ;;  %v1062_v48 = vmul.f32 0.7978846, %v998_v32  ;;  %1667 = vmatmul.mubr.bf16.gmra.mxu0 %v1331_v58  ;;  %v1333_v9 = vpack.c.bf16 %v1281_v30, %v1277_v13  ;;  %v873_v55 = vmul.f32 %v809_v33, %v3479_v60  ;;  %v1156_v56 = vadd.f32 1.0, %v3243_v21  ;;  %v3945_v33 = vld [vmem:[#allocation10_spill] sm:$0xff] }
 0x171   : > { %v3504_v49 = vpop.eup %2526  ;;  %2534 = vtanh.f32 %v1060_v0  ;;  %v935_v28 = vmul.f32 0.044715, %v871_v18  ;;  %v872_v26 = vmul.f32 %v808_v5, %v3486_v50  ;;  %v810_v8 = vmul.f32 %v3498_v36, %v3498_v36 }
 0x172   : > { %2536 = vtanh.f32 %v1062_v48  ;;  %1764 = vmatmul.mubr.bf16.gmra.mxu1 %v1333_v9  ;;  %v937_v35 = vmul.f32 0.044715, %v873_v55  ;;  %v1160_v41 = vadd.f32 1.0, %v3263_v43  ;;  %v1220_v31 = vmul.f32 0.5, %v1156_v56 }
 0x173   : > { %v3510_v13 = vpop.eup %2528  ;;  %v999_v16 = vadd.f32 %v935_v28, %v3475_v54  ;;  %v936_v21 = vmul.f32 0.044715, %v872_v26  ;;  %v874_v3 = vmul.f32 %v810_v8, %v3498_v36  ;;  %v1158_v32 = vadd.f32 1.0, %v3249_v24  ;;  %v3947_v28 = vld [vmem:[#allocation15_spill] sm:$0xff]  ;;  %v3948_v8 = vld [vmem:[#allocation26_spill] sm:$0xff] }
 0x174   : > { %v3515_v58 = vpop.eup %2530  ;;  %v1001_v4 = vadd.f32 %v937_v35, %v3479_v60  ;;  %v1224_v30 = vmul.f32 0.5, %v1160_v41  ;;  %v1284_v0 = vmul.f32 %v1220_v31, %v3945_v33  ;;  %v1162_v18 = vadd.f32 1.0, %v3267_v19  ;;  %v3949_v31 = vld [vmem:[#allocation11_spill] sm:$0xff] }
 0x175   : > { %v1063_v43 = vmul.f32 0.7978846, %v999_v16  ;;  %v1000_v5 = vadd.f32 %v936_v21, %v3486_v50  ;;  %v938_v48 = vmul.f32 0.044715, %v874_v3  ;;  %v1222_v9 = vmul.f32 0.5, %v1158_v32  ;;  %v3950_v16 = vld [vmem:[#allocation16_spill] sm:$0xff] }
 0x176   : > { %v3521_v55 = vpop.eup %2532  ;;  %v1065_v56 = vmul.f32 0.7978846, %v1001_v4  ;;  %v1288_v26 = vmul.f32 %v1224_v30, %v3947_v28  ;;  %v1226_v24 = vmul.f32 0.5, %v1162_v18  ;;  %v1155_v54 = vadd.f32 1.0, %v3948_v8  ;;  %v3951_v3 = vld [vmem:[#allocation32_spill] sm:$0xff] }
 0x177   : > { %3946 = vst [vmem:[#allocation7_spill] sm:$0xff] %v3521_v55  ;;  %2538 = vtanh.f32 %v1063_v43  ;;  %v1064_v35 = vmul.f32 0.7978846, %v1000_v5  ;;  %v1002_v41 = vadd.f32 %v938_v48, %v3498_v36  ;;  %v1286_v33 = vmul.f32 %v1222_v9, %v3949_v31  ;;  %v3952_v55 = vld [vmem:[#allocation29_spill] sm:$0xff]  ;;  %v3954_v9 = vld [vmem:[#allocation8_spill] sm:$0xff] }
 0x178   : > { %2540 = vtanh.f32 %v1065_v56  ;;  %v1336_v19 = vpack.c.bf16 %v1288_v26, %v1284_v0  ;;  %v1290_v21 = vmul.f32 %v1226_v24, %v3950_v16  ;;  %v1159_v32 = vadd.f32 1.0, %v3951_v3  ;;  %v3953_v43 = vld [vmem:[#allocation33_spill] sm:$0xff]  ;;  %v3955_v24 = vld [vmem:[#allocation12_spill] sm:$0xff] }
 0x179   : > { %2542 = vtanh.f32 %v1064_v35  ;;  %v1066_v60 = vmul.f32 0.7978846, %v1002_v41  ;;  %v1219_v4 = vmul.f32 0.5, %v1155_v54  ;;  %v1157_v30 = vadd.f32 1.0, %v3952_v55  ;;  %v3956_v41 = vld [vmem:[#allocation9_spill] sm:$0xff] }
 0x17a   : > { %1674 = vmatprep.mubr.bf16.mxu0 %v1336_v19  ;;  %v1338_v18 = vpack.c.bf16 %v1290_v21, %v1286_v33  ;;  %v1223_v28 = vmul.f32 0.5, %v1159_v32  ;;  %v1161_v5 = vadd.f32 1.0, %v3953_v43  ;;  %v1164_v48 = vadd.f32 1.0, %v3313_v47  ;;  %v3957_v21 = vld [vmem:[#allocation13_spill] sm:$0xff] }
 0x17b   : > { %2544 = vtanh.f32 %v1066_v60  ;;  %v1283_v56 = vmul.f32 %v1219_v4, %v3954_v9  ;;  %v1221_v0 = vmul.f32 0.5, %v1157_v30  ;;  %v1168_v26 = vadd.f32 1.0, %v3344_v52  ;;  %v3958_v52 = vld [vmem:[#allocation22_spill] sm:$0xff] }
 0x17c   : > { %1771 = vmatprep.mubr.bf16.mxu1 %v1338_v18  ;;  %v1287_v8 = vmul.f32 %v1223_v28, %v3955_v24  ;;  %v1225_v35 = vmul.f32 0.5, %v1161_v5  ;;  %v1228_v54 = vmul.f32 0.5, %v1164_v48  ;;  %v1166_v55 = vadd.f32 1.0, %v3323_v22  ;;  %v3959_v18 = vld [vmem:[#allocation27_spill] sm:$0xff]  ;;  %v3962_v24 = vld [vmem:[#allocation28_spill] sm:$0xff] }
 0x17d   : > { %v1285_v31 = vmul.f32 %v1221_v0, %v3956_v41  ;;  %v1232_v33 = vmul.f32 0.5, %v1168_v26  ;;  %v1170_v19 = vadd.f32 1.0, %v3348_v40  ;;  %v1163_v47 = vadd.f32 1.0, %v3271_v1  ;;  %v3960_v48 = vld [vmem:[#allocation23_spill] sm:$0xff] }
 0x17e   : > { %v3539_v60 = vpop.eup %2534  ;;  %v1335_v16 = vpack.c.bf16 %v1287_v8, %v1283_v56  ;;  %v1289_v3 = vmul.f32 %v1225_v35, %v3957_v21  ;;  %v1292_v32 = vmul.f32 %v1228_v54, %v3958_v52  ;;  %v1230_v4 = vmul.f32 0.5, %v1166_v55  ;;  %v3961_v56 = vld [vmem:[#allocation36_spill] sm:$0xff]  ;;  %v3963_v54 = vld [vmem:[#allocation17_spill] sm:$0xff]  ;;  %v3965_v52 = vld [vmem:[#allocation19_spill] sm:$0xff] }
 0x17f   : > { %v3543_v30 = vpop.eup %2536  ;;  %v1296_v28 = vmul.f32 %v1232_v33, %v3959_v18  ;;  %v1234_v22 = vmul.f32 0.5, %v1170_v19  ;;  %v1167_v43 = vadd.f32 1.0, %v3330_v25  ;;  %v1227_v5 = vmul.f32 0.5, %v1163_v47  ;;  %v3964_v47 = vld [vmem:[#allocation24_spill] sm:$0xff] }
 0x180   : > { %1675 = vmatmul.mubr.bf16.gmra.mxu0 %v1335_v16  ;;  %v1337_v40 = vpack.c.bf16 %v1289_v3, %v1285_v31  ;;  %v1294_v1 = vmul.f32 %v1230_v4, %v3960_v48  ;;  %v1165_v9 = vadd.f32 1.0, %v3288_v12  ;;  %v1169_v0 = vadd.f32 1.0, %v3961_v56  ;;  %v3966_v4 = vld [vmem:[#allocation25_spill] sm:$0xff] }
 0x181   : > { %v1340_v26 = vpack.c.bf16 %v1296_v28, %v1292_v32  ;;  %v1298_v8 = vmul.f32 %v1234_v22, %v3962_v24  ;;  %v1231_v35 = vmul.f32 0.5, %v1167_v43  ;;  %v1291_v55 = vmul.f32 %v1227_v5, %v3963_v54 }
 0x182   : > { %1772 = vmatmul.mubr.bf16.gmra.mxu1 %v1337_v40  ;;  %v1229_v41 = vmul.f32 0.5, %v1165_v9  ;;  %v1233_v33 = vmul.f32 0.5, %v1169_v0  ;;  %v1172_v25 = vadd.f32 1.0, %v3389_v10  ;;  %v1176_v19 = vadd.f32 1.0, %v3418_v2 }
 0x183   : > { %1682 = vmatprep.mubr.bf16.mxu0 %v1340_v26  ;;  %v1342_v31 = vpack.c.bf16 %v1298_v8, %v1294_v1  ;;  %v1295_v16 = vmul.f32 %v1231_v35, %v3964_v47  ;;  %v1174_v12 = vadd.f32 1.0, %v3398_v46  ;;  %v1178_v21 = vadd.f32 1.0, %v3426_v51  ;;  %v3967_v1 = vld [vmem:[#allocation34_spill] sm:$0xff] }
 0x184   : > { %v3557_v3 = vpop.eup %2538  ;;  %v1293_v32 = vmul.f32 %v1229_v41, %v3965_v52  ;;  %v1297_v18 = vmul.f32 %v1233_v33, %v3966_v4  ;;  %v1236_v28 = vmul.f32 0.5, %v1172_v25  ;;  %v1240_v22 = vmul.f32 0.5, %v1176_v19  ;;  %v3968_v25 = vld [vmem:[#allocation30_spill] sm:$0xff] }
 0x185   : > { %v3561_v43 = vpop.eup %2540  ;;  %1779 = vmatprep.mubr.bf16.mxu1 %v1342_v31  ;;  %v1339_v10 = vpack.c.bf16 %v1295_v16, %v1291_v55  ;;  %v1238_v2 = vmul.f32 0.5, %v1174_v12  ;;  %v1242_v5 = vmul.f32 0.5, %v1178_v21  ;;  %v1171_v40 = vadd.f32 1.0, %v3352_v63  ;;  %v3969_v12 = vld [vmem:[#allocation31_spill] sm:$0xff] }
 0x186   : > { %v2543_v48 = vpop.eup %2542  ;;  %v1341_v46 = vpack.c.bf16 %v1297_v18, %v1293_v32  ;;  %v1300_v51 = vmul.f32 %v1236_v28, %v3967_v1  ;;  %v1304_v9 = vmul.f32 %v1240_v22, %v3298_v53  ;;  %v1175_v56 = vadd.f32 1.0, %v3404_v14 }
 0x187   : > { %v1302_v0 = vmul.f32 %v1238_v2, %v3280_v7  ;;  %v1306_v26 = vmul.f32 %v1242_v5, %v3302_v39  ;;  %v1235_v24 = vmul.f32 0.5, %v1171_v40  ;;  %v1173_v8 = vadd.f32 1.0, %v3359_v42 }
 0x188   : > { %v2545_v35 = vpop.eup %2544  ;;  %1683 = vmatmul.mubr.bf16.gmra.mxu0 %v1339_v10  ;;  %v1344_v54 = vpack.c.bf16 %v1304_v9, %v1300_v51  ;;  %v1239_v55 = vmul.f32 0.5, %v1175_v56  ;;  %v1177_v63 = vadd.f32 1.0, %v3412_v6  ;;  %v1180_v41 = vadd.f32 1.0, %v3467_v29 }
 0x189   : > { %v1346_v33 = vpack.c.bf16 %v1306_v26, %v1302_v0  ;;  %v1299_v53 = vmul.f32 %v1235_v24, %v3968_v25  ;;  %v1237_v19 = vmul.f32 0.5, %v1173_v8  ;;  %v1184_v14 = vadd.f32 1.0, %v3504_v49  ;;  %v3971_v24 = vld [vmem:[#allocation35_spill] sm:$0xff] }
 0x18a   : > { %1780 = vmatmul.mubr.bf16.gmra.mxu1 %v1341_v46  ;;  %1690 = vmatprep.mubr.bf16.mxu0 %v1344_v54  ;;  %v1303_v7 = vmul.f32 %v1239_v55, %v3283_v44  ;;  %v1241_v39 = vmul.f32 0.5, %v1177_v63  ;;  %v1244_v42 = vmul.f32 0.5, %v1180_v41  ;;  %v1182_v31 = vadd.f32 1.0, %v3471_v15  ;;  %v3972_v63 = vld [vmem:[#allocation7_spill] sm:$0xff] }
 0x18b   : > { %1787 = vmatprep.mubr.bf16.mxu1 %v1346_v33  ;;  %v1248_v47 = vmul.f32 0.5, %v1184_v14  ;;  %v1186_v6 = vadd.f32 1.0, %v3510_v13  ;;  %v1179_v29 = vadd.f32 1.0, %v3431_v45  ;;  %v1301_v21 = vmul.f32 %v1237_v19, %v3969_v12 }
 0x18c   : > { %v1343_v16 = vpack.c.bf16 %v1303_v7, %v1299_v53  ;;  %v1305_v52 = vmul.f32 %v1241_v39, %v3295_v27  ;;  %v1246_v49 = vmul.f32 0.5, %v1182_v31  ;;  %v1308_v32 = vmul.f32 %v1244_v42, %v3363_v38  ;;  %v3976_v42 = vld [vmem:[#allocation39_spill] sm:$0xff] }
 0x18d   : > { %v1312_v44 = vmul.f32 %v1248_v47, %v3396_v11  ;;  %v1250_v4 = vmul.f32 0.5, %v1186_v6  ;;  %v1183_v18 = vadd.f32 1.0, %v3492_v23  ;;  %v1243_v28 = vmul.f32 0.5, %v1179_v29  ;;  %v3608_v29 = vld [vmem:[%s3858_s4] ss:$0 sm:$0xff] }
 0x18e   : > { %v1345_v15 = vpack.c.bf16 %v1305_v52, %v1301_v21  ;;  %v1181_v22 = vadd.f32 1.0, %v3435_v62  ;;  %v1185_v13 = vadd.f32 1.0, %v3500_v34  ;;  %v1310_v10 = vmul.f32 %v1246_v49, %v3366_v20 }
 0x18f   : > { %v1348_v45 = vpack.c.bf16 %v1312_v44, %v1308_v32  ;;  %v1314_v2 = vmul.f32 %v1250_v4, %v3410_v59  ;;  %v1247_v27 = vmul.f32 0.5, %v1183_v18  ;;  %v1188_v11 = vadd.f32 1.0, %v3539_v60  ;;  %v3970_v59 = vld [vmem:[#allocation37_spill] sm:$0xff] }
 0x190   : > { %1691 = vmatmul.mubr.bf16.gmra.mxu0 %v1343_v16  ;;  %v1245_v5 = vmul.f32 0.5, %v1181_v22  ;;  %v1249_v38 = vmul.f32 0.5, %v1185_v13  ;;  %v1192_v40 = vadd.f32 1.0, %v2543_v48  ;;  %v1190_v62 = vadd.f32 1.0, %v3543_v30 }
 0x191   : > { %1698 = vmatprep.mubr.bf16.mxu0 %v1348_v45  ;;  %v1350_v23 = vpack.c.bf16 %v1314_v2, %v1310_v10  ;;  %v1311_v46 = vmul.f32 %v1247_v27, %v3383_v37  ;;  %v1194_v1 = vadd.f32 1.0, %v2545_v35  ;;  %v1252_v34 = vmul.f32 0.5, %v1188_v11  ;;  %v2578_v45 = vld [vmem:[%s2741_s17] sm:$0xff]  ;;  %v2579_v27 = vld [vmem:[%s2741_s17 + $0x8] sm:$0xff] }
 0x192   : > { %1788 = vmatmul.mubr.bf16.gmra.mxu1 %v1345_v15  ;;  %v1256_v51 = vmul.f32 0.5, %v1192_v40  ;;  %v1307_v20 = vmul.f32 %v1243_v28, %v3318_v57  ;;  %v1313_v9 = vmul.f32 %v1249_v38, %v3970_v59  ;;  %v1254_v56 = vmul.f32 0.5, %v1190_v62 }
 0x193   : > { %1795 = vmatprep.mubr.bf16.mxu1 %v1350_v23  ;;  %v1258_v0 = vmul.f32 0.5, %v1194_v1  ;;  %v1316_v60 = vmul.f32 %v1252_v34, %v3452_v17  ;;  %v1187_v26 = vadd.f32 1.0, %v3515_v58  ;;  %v1191_v37 = vadd.f32 1.0, %v3557_v3  ;;  %v3973_v3 = vld [vmem:[#allocation14_spill] sm:$0xff] }
 0x194   : > { %v1320_v48 = vmul.f32 %v1256_v51, %v3486_v50  ;;  %v1347_v30 = vpack.c.bf16 %v1311_v46, %v1307_v20  ;;  %v1309_v8 = vmul.f32 %v1245_v5, %v3971_v24  ;;  %v1318_v35 = vmul.f32 %v1254_v56, %v3455_v61  ;;  %v3974_v61 = vld [vmem:[#allocation38_spill] sm:$0xff] }
 0x195   : > { %v1322_v54 = vmul.f32 %v1258_v0, %v3498_v36  ;;  %v1255_v55 = vmul.f32 0.5, %v1191_v37  ;;  %v1189_v41 = vadd.f32 1.0, %v3972_v63  ;;  %v1193_v33 = vadd.f32 1.0, %v3561_v43  ;;  %v3975_v36 = vld [vmem:[#allocation4_spill] sm:$0xff] }
 0x196   : > { %v1352_v57 = vpack.c.bf16 %v1320_v48, %v1316_v60  ;;  %v1349_v50 = vpack.c.bf16 %v1313_v9, %v1309_v8  ;;  %v1251_v25 = vmul.f32 0.5, %v1187_v26  ;;  %v2580_v48 = vld [vmem:[%s2741_s17 + $0x10] sm:$0xff] }
 0x197   : > { %v1354_v17 = vpack.c.bf16 %v1322_v54, %v1318_v35  ;;  %v1257_v58 = vmul.f32 0.5, %v1193_v33  ;;  %v1319_v53 = vmul.f32 %v1255_v55, %v3973_v3  ;;  %v1253_v19 = vmul.f32 0.5, %v1189_v41 }
 0x198   : > { %1699 = vmatmul.mubr.bf16.gmra.mxu0 %v1347_v30  ;;  %v1315_v14 = vmul.f32 %v1251_v25, %v3974_v61  ;;  %v2581_v30 = vld [vmem:[%s2741_s17 + $0x18] sm:$0xff]  ;;  %v2582_v61 = vld [vmem:[%s2741_s17 + $0x20] sm:$0xff] }
 0x199   : > { %1706 = vmatprep.mubr.bf16.mxu0 %v1352_v57  ;;  %v1321_v7 = vmul.f32 %v1257_v58, %v3975_v36  ;;  %v1317_v31 = vmul.f32 %v1253_v19, %v3976_v42 }
 0x19a   : > { %1796 = vmatmul.mubr.bf16.gmra.mxu1 %v1349_v50  ;;  %v1351_v39 = vpack.c.bf16 %v1319_v53, %v1315_v14 }
 0x19b   : > { %1803 = vmatprep.mubr.bf16.mxu1 %v1354_v17  ;;  %v1353_v43 = vpack.c.bf16 %v1321_v7, %v1317_v31  ;;  %v2583_v7 = vld [vmem:[%s2741_s17 + $0x28] sm:$0xff] }
 0x1a0   : > { %1707 = vmatmul.mubr.bf16.gmra.mxu0 %v1351_v39 }
 0x1a2   : > { %1804 = vmatmul.mubr.bf16.gmra.mxu1 %v1353_v43 }
 0x205   : > { %v2217_v47 = vpop.f32.mrf.mxu0 }
 0x207   : > { %v2218_v16 = vpop.f32.mrf.mxu0 }
 0x208   : > { %v2281_v6 = vpop.f32.mrf.mxu1  ;;  %v2219_v12 = vadd.f32 %v2218_v16, %v2217_v47 }
 0x209   : > { %v2220_v52 = vpop.f32.mrf.mxu0 }
 0x20a   : > { %v2282_v21 = vpop.f32.mrf.mxu1  ;;  %v1653_v49 = vadd.f32 %v2219_v12, %v3608_v29 }
 0x20b   : > { %v2283_v32 = vadd.f32 %v2282_v21, %v2281_v6  ;;  %v2221_v4 = vpop.f32.mrf.mxu0 }
 0x20c   : > { %v2284_v44 = vpop.f32.mrf.mxu1  ;;  %v2222_v15 = vadd.f32 %v2221_v4, %v2220_v52 }
 0x20d   : > { %v1750_v18 = vadd.f32 %v2283_v32, %v1653_v49 }
 0x20e   : > { %v2285_v28 = vpop.f32.mrf.mxu1  ;;  %v1656_v22 = vadd.f32 %v2222_v15, %v3608_v29 }
 0x20f   : > { %v2286_v13 = vadd.f32 %v2285_v28, %v2284_v44  ;;  %v3613_v10 = vadd.f32 %v2578_v45, %v1750_v18 }
 0x211   : > { %v1753_v2 = vadd.f32 %v2286_v13, %v1656_v22  ;;  %1830 = vadd.xlane.f32.xlu0 %v3613_v10  ;;  %v2584_v22 = vld [vmem:[%s2741_s17 + $0x30] sm:$0xff] }
 0x213   : > { %v3617_v5 = vadd.f32 %v2579_v27, %v1753_v2 }
 0x215   : > { %1832 = vadd.xlane.f32.xlu0 %v3617_v5 }
 0x21b   : > { %v2223_v38 = vpop.f32.mrf.mxu0 }
 0x21c   : > { %v2287_v11 = vpop.f32.mrf.mxu1 }
 0x21d   : > { %v2224_v40 = vpop.f32.mrf.mxu0 }
 0x21e   : > { %v2225_v23 = vadd.f32 %v2224_v40, %v2223_v38  ;;  %v2288_v46 = vpop.f32.mrf.mxu1 }
 0x21f   : > { %v2226_v62 = vpop.f32.mrf.mxu0  ;;  %v2289_v34 = vadd.f32 %v2288_v46, %v2287_v11 }
 0x220   : > { %v1661_v1 = vadd.f32 %v2225_v23, %v3608_v29  ;;  %v2290_v51 = vpop.f32.mrf.mxu1 }
 0x221   : > { %v2227_v20 = vpop.f32.mrf.mxu0 }
 0x222   : > { %v1758_v59 = vadd.f32 %v2289_v34, %v1661_v1  ;;  %v2228_v9 = vadd.f32 %v2227_v20, %v2226_v62  ;;  %v2291_v56 = vpop.f32.mrf.mxu1  ;;  %v2585_v62 = vld [vmem:[%s2741_s17 + $0x38] sm:$0xff] }
 0x223   : > { %v2292_v60 = vadd.f32 %v2291_v56, %v2290_v51 }
 0x224   : > { %v1664_v0 = vadd.f32 %v2228_v9, %v3608_v29  ;;  %v3623_v26 = vadd.f32 %v2580_v48, %v1758_v59  ;;  %v2586_v48 = vld [vmem:[%s2741_s17 + $0x40] sm:$0xff] }
 0x226   : > { %v1761_v37 = vadd.f32 %v2292_v60, %v1664_v0  ;;  %1834 = vadd.xlane.f32.xlu1 %v3623_v26 }
 0x228   : > { %v3627_v24 = vadd.f32 %v2581_v30, %v1761_v37 }
 0x22a   : > { %1836 = vadd.xlane.f32.xlu1 %v3627_v24 }
 0x230   : > { %v2229_v8 = vpop.f32.mrf.mxu0 }
 0x232   : > { %v2293_v35 = vpop.f32.mrf.mxu1  ;;  %v2230_v54 = vpop.f32.mrf.mxu0 }
 0x233   : > { %v2231_v57 = vadd.f32 %v2230_v54, %v2229_v8 }
 0x234   : > { %v2294_v55 = vpop.f32.mrf.mxu1  ;;  %v2232_v63 = vpop.f32.mrf.mxu0 }
 0x235   : > { %v1669_v41 = vadd.f32 %v2231_v57, %v3608_v29  ;;  %v2295_v33 = vadd.f32 %v2294_v55, %v2293_v35 }
 0x236   : > { %v2296_v17 = vpop.f32.mrf.mxu1  ;;  %v2233_v50 = vpop.f32.mrf.mxu0 }
 0x237   : > { %v1766_v25 = vadd.f32 %v2295_v33, %v1669_v41  ;;  %v2234_v58 = vadd.f32 %v2233_v50, %v2232_v63  ;;  %v2587_v33 = vld [vmem:[%s2741_s17 + $0x48] sm:$0xff] }
 0x238   : > { %v2297_v3 = vpop.f32.mrf.mxu1 }
 0x239   : > { %v1672_v53 = vadd.f32 %v2234_v58, %v3608_v29  ;;  %v2298_v19 = vadd.f32 %v2297_v3, %v2296_v17  ;;  %v3633_v14 = vadd.f32 %v2582_v61, %v1766_v25 }
 0x23b   : > { %v1769_v36 = vadd.f32 %v2298_v19, %v1672_v53  ;;  %1838 = vadd.xlane.f32.xlu0 %v3633_v14 }
 0x23d   : > { %v3637_v39 = vadd.f32 %v2583_v7, %v1769_v36  ;;  %v2588_v7 = vld [vmem:[%s2741_s17 + $0x50] sm:$0xff] }
 0x23f   : > { %1840 = vadd.xlane.f32.xlu1 %v3637_v39 }
 0x240   : > { %v2235_v42 = vpop.f32.mrf.mxu0 }
 0x242   : > { %v2299_v31 = vpop.f32.mrf.mxu1  ;;  %v2236_v43 = vpop.f32.mrf.mxu0 }
 0x243   : > { %v2237_v47 = vadd.f32 %v2236_v43, %v2235_v42 }
 0x244   : > { %v2300_v6 = vpop.f32.mrf.mxu1  ;;  %v2238_v16 = vpop.f32.mrf.mxu0 }
 0x245   : > { %v1677_v12 = vadd.f32 %v2237_v47, %v3608_v29  ;;  %v2301_v21 = vadd.f32 %v2300_v6, %v2299_v31 }
 0x246   : > { %v2302_v52 = vpop.f32.mrf.mxu1  ;;  %v2239_v49 = vpop.f32.mrf.mxu0 }
 0x247   : > { %v1774_v32 = vadd.f32 %v2301_v21, %v1677_v12  ;;  %v2240_v44 = vadd.f32 %v2239_v49, %v2238_v16  ;;  %v2589_v49 = vld [vmem:[%s2741_s17 + $0x58] sm:$0xff] }
 0x248   : > { %v2303_v4 = vpop.f32.mrf.mxu1  ;;  %v2241_v18 = vpop.f32.mrf.mxu0 }
 0x249   : > { %v1680_v15 = vadd.f32 %v2240_v44, %v3608_v29  ;;  %v2304_v28 = vadd.f32 %v2303_v4, %v2302_v52  ;;  %v3643_v13 = vadd.f32 %v2584_v22, %v1774_v32 }
 0x24a   : > { %v2305_v45 = vpop.f32.mrf.mxu1  ;;  %v2242_v2 = vpop.f32.mrf.mxu0 }
 0x24b   : > { %v1777_v27 = vadd.f32 %v2304_v28, %v1680_v15  ;;  %v2243_v38 = vadd.f32 %v2242_v2, %v2241_v18  ;;  %1842 = vadd.xlane.f32.xlu0 %v3643_v13 }
 0x24c   : > { %v2306_v11 = vpop.f32.mrf.mxu1  ;;  %v2244_v40 = vpop.f32.mrf.mxu0 }
 0x24d   : > { %v1685_v23 = vadd.f32 %v2243_v38, %v3608_v29  ;;  %v2307_v46 = vadd.f32 %v2306_v11, %v2305_v45  ;;  %v3648_v1 = vadd.f32 %v2585_v62, %v1777_v27  ;;  %v2590_v27 = vld [vmem:[%s2741_s17 + $0x60] sm:$0xff] }
 0x24e   : > { %v2308_v34 = vpop.f32.mrf.mxu1  ;;  %v2245_v51 = vpop.f32.mrf.mxu0 }
 0x24f   : > { %v1782_v20 = vadd.f32 %v2307_v46, %v1685_v23  ;;  %v2246_v59 = vadd.f32 %v2245_v51, %v2244_v40  ;;  %1844 = vadd.xlane.f32.xlu1 %v3648_v1 }
 0x250   : > { %v2309_v9 = vpop.f32.mrf.mxu1  ;;  %v2247_v56 = vpop.f32.mrf.mxu0 }
 0x251   : > { %v1688_v0 = vadd.f32 %v2246_v59, %v3608_v29  ;;  %v2310_v60 = vadd.f32 %v2309_v9, %v2308_v34  ;;  %v3653_v37 = vadd.f32 %v2586_v48, %v1782_v20  ;;  %v2591_v59 = vld [vmem:[%s2741_s17 + $0x68] sm:$0xff] }
 0x252   : > { %v2311_v30 = vpop.f32.mrf.mxu1  ;;  %v2248_v8 = vpop.f32.mrf.mxu0 }
 0x253   : > { %v1785_v35 = vadd.f32 %v2310_v60, %v1688_v0  ;;  %v2249_v54 = vadd.f32 %v2248_v8, %v2247_v56  ;;  %1846 = vadd.xlane.f32.xlu0 %v3653_v37 }
 0x254   : > { %v2312_v57 = vpop.f32.mrf.mxu1  ;;  %v2250_v55 = vpop.f32.mrf.mxu0 }
 0x255   : > { %v1693_v63 = vadd.f32 %v2249_v54, %v3608_v29  ;;  %v2313_v41 = vadd.f32 %v2312_v57, %v2311_v30  ;;  %v3658_v17 = vadd.f32 %v2587_v33, %v1785_v35  ;;  %v2592_v54 = vld [vmem:[%s2741_s17 + $0x70] sm:$0xff] }
 0x256   : > { %v2314_v50 = vpop.f32.mrf.mxu1  ;;  %v2251_v25 = vpop.f32.mrf.mxu0 }
 0x257   : > { %v1790_v58 = vadd.f32 %v2313_v41, %v1693_v63  ;;  %v2252_v3 = vadd.f32 %v2251_v25, %v2250_v55  ;;  %1848 = vadd.xlane.f32.xlu1 %v3658_v17  ;;  %v2593_v63 = vld [vmem:[%s2741_s17 + $0x78] sm:$0xff] }
 0x258   : > { %v2315_v53 = vpop.f32.mrf.mxu1  ;;  %v2253_v19 = vpop.f32.mrf.mxu0 }
 0x259   : > { %v1696_v61 = vadd.f32 %v2252_v3, %v3608_v29  ;;  %v2316_v36 = vadd.f32 %v2315_v53, %v2314_v50  ;;  %v3663_v42 = vadd.f32 %v2588_v7, %v1790_v58 }
 0x25a   : > { %v2317_v31 = vpop.f32.mrf.mxu1  ;;  %v2254_v43 = vpop.f32.mrf.mxu0 }
 0x25b   : > { %v1793_v47 = vadd.f32 %v2316_v36, %v1696_v61  ;;  %v2255_v6 = vadd.f32 %v2254_v43, %v2253_v19  ;;  %1850 = vadd.xlane.f32.xlu0 %v3663_v42 }
 0x25c   : > { %v2318_v16 = vpop.f32.mrf.mxu1  ;;  %v2256_v12 = vpop.f32.mrf.mxu0 }
 0x25d   : > { %v1701_v21 = vadd.f32 %v2255_v6, %v3608_v29  ;;  %v2319_v52 = vadd.f32 %v2318_v16, %v2317_v31  ;;  %v3668_v32 = vadd.f32 %v2589_v49, %v1793_v47 }
 0x25e   : > { %v2320_v44 = vpop.f32.mrf.mxu1  ;;  %v2257_v4 = vpop.f32.mrf.mxu0 }
 0x25f   : > { %v1798_v18 = vadd.f32 %v2319_v52, %v1701_v21  ;;  %v2258_v15 = vadd.f32 %v2257_v4, %v2256_v12  ;;  %1852 = vadd.xlane.f32.xlu1 %v3668_v32 }
 0x260   : > { %v2321_v28 = vpop.f32.mrf.mxu1  ;;  %v2259_v22 = vpop.f32.mrf.mxu0 }
 0x261   : > { %v1704_v45 = vadd.f32 %v2258_v15, %v3608_v29  ;;  %v2322_v2 = vadd.f32 %v2321_v28, %v2320_v44  ;;  %v3673_v38 = vadd.f32 %v2590_v27, %v1798_v18 }
 0x262   : > { %v2323_v11 = vpop.f32.mrf.mxu1  ;;  %v2260_v40 = vpop.f32.mrf.mxu0 }
 0x263   : > { %v1801_v23 = vadd.f32 %v2322_v2, %v1704_v45  ;;  %v2261_v46 = vadd.f32 %v2260_v40, %v2259_v22  ;;  %1854 = vadd.xlane.f32.xlu0 %v3673_v38 }
 0x264   : > { %v2324_v62 = vpop.f32.mrf.mxu1  ;;  %v2262_v34 = vpop.f32.mrf.mxu0 }
 0x265   : > { %v1709_v51 = vadd.f32 %v2261_v46, %v3608_v29  ;;  %v2325_v20 = vadd.f32 %v2324_v62, %v2323_v11  ;;  %v3678_v9 = vadd.f32 %v2591_v59, %v1801_v23 }
 0x266   : > { %v2326_v56 = vpop.f32.mrf.mxu1  ;;  %v2263_v0 = vpop.f32.mrf.mxu0 }
 0x267   : > { %v1806_v60 = vadd.f32 %v2325_v20, %v1709_v51  ;;  %v2264_v48 = vadd.f32 %v2263_v0, %v2262_v34  ;;  %1856 = vadd.xlane.f32.xlu1 %v3678_v9 }
 0x268   : > { %v2327_v30 = vpop.f32.mrf.mxu1 }
 0x269   : > { %v1712_v8 = vadd.f32 %v2264_v48, %v3608_v29  ;;  %v2328_v35 = vadd.f32 %v2327_v30, %v2326_v56  ;;  %v3683_v57 = vadd.f32 %v2592_v54, %v1806_v60 }
 0x26b   : > { %v1809_v55 = vadd.f32 %v2328_v35, %v1712_v8  ;;  %1858 = vadd.xlane.f32.xlu0 %v3683_v57 }
 0x26d   : > { %v3687_v41 = vadd.f32 %v2593_v63, %v1809_v55 }
 0x26f   : > { %1860 = vadd.xlane.f32.xlu1 %v3687_v41 }
 0x29a   : > { %v1831_v33 = vpop.xlane.xlu0 %1830 }
 0x29b   : > { %v1863_v50 = vmul.f32 0.0078125, %v1831_v33 }
 0x29d   : > { %v3691_v25 = vsub.f32 %v3613_v10, %v1863_v50 }
 0x29e   : > { %v1833_v58 = vpop.xlane.xlu0 %1832 }
 0x29f   : > { %v1864_v3 = vmul.f32 0.0078125, %v1833_v58  ;;  %v1895_v29 = vmul.f32 %v3691_v25, %v3691_v25 }
 0x2a1   : > { %v3696_v53 = vsub.f32 %v3617_v5, %v1864_v3  ;;  %1911 = vadd.xlane.f32.xlu0 %v1895_v29 }
 0x2a3   : > { %v1896_v19 = vmul.f32 %v3696_v53, %v3696_v53 }
 0x2a5   : > { %1913 = vadd.xlane.f32.xlu1 %v1896_v19 }
 0x2af   : > { %v1835_v61 = vpop.xlane.xlu1 %1834 }
 0x2b0   : > { %v1865_v36 = vmul.f32 0.0078125, %v1835_v61 }
 0x2b2   : > { %v3701_v7 = vsub.f32 %v3623_v26, %v1865_v36 }
 0x2b3   : > { %v1837_v10 = vpop.xlane.xlu1 %1836 }
 0x2b4   : > { %v1866_v31 = vmul.f32 0.0078125, %v1837_v10  ;;  %v1897_v43 = vmul.f32 %v3701_v7, %v3701_v7 }
 0x2b6   : > { %v3706_v47 = vsub.f32 %v3627_v24, %v1866_v31  ;;  %1915 = vadd.xlane.f32.xlu0 %v1897_v43  ;;  %v3779_v31 = vld [vmem:[%s3860_s6] ss:$0 sm:$0xff] }
 0x2b8   : > { %v1898_v5 = vmul.f32 %v3706_v47, %v3706_v47 }
 0x2ba   : > { %1917 = vadd.xlane.f32.xlu1 %v1898_v5 }
 0x2c4   : > { %v1839_v6 = vpop.xlane.xlu0 %1838 }
 0x2c5   : > { %v1867_v16 = vmul.f32 0.0078125, %v1839_v6 }
 0x2c7   : > { %v3711_v12 = vsub.f32 %v3633_v14, %v1867_v16 }
 0x2c8   : > { %v1841_v26 = vpop.xlane.xlu1 %1840 }
 0x2c9   : > { %v1868_v21 = vmul.f32 0.0078125, %v1841_v26  ;;  %v1899_v52 = vmul.f32 %v3711_v12, %v3711_v12 }
 0x2cb   : > { %v3716_v49 = vsub.f32 %v3637_v39, %v1868_v21  ;;  %1919 = vadd.xlane.f32.xlu0 %v1899_v52 }
 0x2cd   : > { %v1900_v24 = vmul.f32 %v3716_v49, %v3716_v49 }
 0x2cf   : > { %1921 = vadd.xlane.f32.xlu1 %v1900_v24 }
 0x2d4   : > { %v1843_v44 = vpop.xlane.xlu0 %1842 }
 0x2d5   : > { %v1869_v4 = vmul.f32 0.0078125, %v1843_v44 }
 0x2d7   : > { %v3721_v18 = vsub.f32 %v3643_v13, %v1869_v4 }
 0x2d8   : > { %v1845_v14 = vpop.xlane.xlu1 %1844 }
 0x2d9   : > { %v1870_v15 = vmul.f32 0.0078125, %v1845_v14  ;;  %v1901_v28 = vmul.f32 %v3721_v18, %v3721_v18 }
 0x2db   : > { %v3726_v22 = vsub.f32 %v3648_v1, %v1870_v15  ;;  %1923 = vadd.xlane.f32.xlu0 %v1901_v28 }
 0x2dc   : > { %v1847_v39 = vpop.xlane.xlu0 %1846 }
 0x2dd   : > { %v1871_v45 = vmul.f32 0.0078125, %v1847_v39  ;;  %v1902_v2 = vmul.f32 %v3726_v22, %v3726_v22 }
 0x2df   : > { %v3731_v27 = vsub.f32 %v3653_v37, %v1871_v45  ;;  %1925 = vadd.xlane.f32.xlu1 %v1902_v2 }
 0x2e0   : > { %v1849_v13 = vpop.xlane.xlu1 %1848 }
 0x2e1   : > { %v1872_v11 = vmul.f32 0.0078125, %v1849_v13  ;;  %v1903_v40 = vmul.f32 %v3731_v27, %v3731_v27 }
 0x2e3   : > { %v3736_v23 = vsub.f32 %v3658_v17, %v1872_v11  ;;  %1927 = vadd.xlane.f32.xlu0 %v1903_v40 }
 0x2e4   : > { %v1851_v1 = vpop.xlane.xlu0 %1850 }
 0x2e5   : > { %v1873_v46 = vmul.f32 0.0078125, %v1851_v1  ;;  %v1904_v62 = vmul.f32 %v3736_v23, %v3736_v23 }
 0x2e7   : > { %v3741_v34 = vsub.f32 %v3663_v42, %v1873_v46  ;;  %1929 = vadd.xlane.f32.xlu1 %v1904_v62 }
 0x2e8   : > { %v1853_v37 = vpop.xlane.xlu1 %1852 }
 0x2e9   : > { %v1874_v51 = vmul.f32 0.0078125, %v1853_v37  ;;  %v1905_v20 = vmul.f32 %v3741_v34, %v3741_v34 }
 0x2eb   : > { %v3746_v59 = vsub.f32 %v3668_v32, %v1874_v51  ;;  %1931 = vadd.xlane.f32.xlu0 %v1905_v20 }
 0x2ec   : > { %v1855_v17 = vpop.xlane.xlu0 %1854 }
 0x2ed   : > { %v1875_v56 = vmul.f32 0.0078125, %v1855_v17  ;;  %v1906_v0 = vmul.f32 %v3746_v59, %v3746_v59 }
 0x2ef   : > { %v3751_v60 = vsub.f32 %v3673_v38, %v1875_v56  ;;  %1933 = vadd.xlane.f32.xlu1 %v1906_v0 }
 0x2f0   : > { %v1857_v42 = vpop.xlane.xlu1 %1856 }
 0x2f1   : > { %v1876_v48 = vmul.f32 0.0078125, %v1857_v42  ;;  %v1907_v30 = vmul.f32 %v3751_v60, %v3751_v60 }
 0x2f3   : > { %v3756_v8 = vsub.f32 %v3678_v9, %v1876_v48  ;;  %1935 = vadd.xlane.f32.xlu0 %v1907_v30 }
 0x2f4   : > { %v1859_v32 = vpop.xlane.xlu0 %1858 }
 0x2f5   : > { %v1877_v35 = vmul.f32 0.0078125, %v1859_v32  ;;  %v1908_v54 = vmul.f32 %v3756_v8, %v3756_v8 }
 0x2f7   : > { %v3761_v55 = vsub.f32 %v3683_v57, %v1877_v35  ;;  %1937 = vadd.xlane.f32.xlu1 %v1908_v54 }
 0x2f8   : > { %v1861_v38 = vpop.xlane.xlu1 %1860 }
 0x2f9   : > { %v1878_v63 = vmul.f32 0.0078125, %v1861_v38  ;;  %v1909_v33 = vmul.f32 %v3761_v55, %v3761_v55 }
 0x2fb   : > { %v3766_v50 = vsub.f32 %v3687_v41, %v1878_v63  ;;  %1939 = vadd.xlane.f32.xlu0 %v1909_v33  ;;  %v3773_v41 = vld [vmem:[%s3859_s5] ss:$0 sm:$0xff] }
 0x2fd   : > { %v1910_v9 = vmul.f32 %v3766_v50, %v3766_v50 }
 0x2ff   : > { %1941 = vadd.xlane.f32.xlu1 %v1910_v9 }
 0x32a   : > { %v1912_v58 = vpop.xlane.xlu0 %1911 }
 0x32b   : > { %v1943_v3 = vmul.f32 0.0078125, %v1912_v58 }
 0x32d   : > { %v1959_v29 = vadd.f32 1e-12, %v1943_v3 }
 0x32e   : > { %v1914_v57 = vpop.xlane.xlu1 %1913 }
 0x32f   : > { %2546 = vrsqrt.f32 %v1959_v29  ;;  %v1944_v19 = vmul.f32 0.0078125, %v1914_v57 }
 0x331   : > { %v1960_v61 = vadd.f32 1e-12, %v1944_v19 }
 0x333   : > { %2548 = vrsqrt.f32 %v1960_v61 }
 0x33c   : > { %v2547_v36 = vpop.eup %2546 }
 0x33d   : > { %v1991_v10 = vmul.f32 %v2547_v36, %v3691_v25 }
 0x33f   : > { %v2013_v43 = vmul.f32 %v3773_v41, %v1991_v10  ;;  %v1916_v16 = vpop.xlane.xlu0 %1915 }
 0x340   : > { %v2549_v5 = vpop.eup %2548  ;;  %v1945_v26 = vmul.f32 0.0078125, %v1916_v16 }
 0x341   : > { %v2035_v6 = vadd.f32 %v3779_v31, %v2013_v43  ;;  %v1992_v25 = vmul.f32 %v2549_v5, %v3696_v53 }
 0x342   : > { %v1961_v52 = vadd.f32 1e-12, %v1945_v26 }
 0x343   : > { %2051 = vst [vmem:[%s3787_s28] sm:$0xff] %v2035_v6  ;;  %v2014_v21 = vmul.f32 %v3773_v41, %v1992_v25  ;;  %v1918_v44 = vpop.xlane.xlu1 %1917 }
 0x344   : > { %2550 = vrsqrt.f32 %v1961_v52  ;;  %v1946_v4 = vmul.f32 0.0078125, %v1918_v44 }
 0x345   : > { %v2036_v24 = vadd.f32 %v3779_v31, %v2014_v21 }
 0x346   : > { %v1962_v14 = vadd.f32 1e-12, %v1946_v4 }
 0x347   : > { %2052 = vst [vmem:[%s3787_s28 + $0x8] sm:$0xff] %v2036_v24 }
 0x348   : > { %2552 = vrsqrt.f32 %v1962_v14 }
 0x351   : > { %v2551_v15 = vpop.eup %2550 }
 0x352   : > { %v1993_v28 = vmul.f32 %v2551_v15, %v3701_v7 }
 0x354   : > { %v2015_v53 = vmul.f32 %v3773_v41, %v1993_v28  ;;  %v1920_v39 = vpop.xlane.xlu0 %1919 }
 0x355   : > { %v2553_v45 = vpop.eup %2552  ;;  %v1947_v2 = vmul.f32 0.0078125, %v1920_v39 }
 0x356   : > { %v2037_v13 = vadd.f32 %v3779_v31, %v2015_v53  ;;  %v1994_v11 = vmul.f32 %v2553_v45, %v3706_v47 }
 0x357   : > { %v1963_v40 = vadd.f32 1e-12, %v1947_v2 }
 0x358   : > { %2053 = vst [vmem:[%s3787_s28 + $0x10] sm:$0xff] %v2037_v13  ;;  %v2016_v1 = vmul.f32 %v3773_v41, %v1994_v11  ;;  %v1922_v46 = vpop.xlane.xlu1 %1921 }
 0x359   : > { %2554 = vrsqrt.f32 %v1963_v40  ;;  %v1948_v62 = vmul.f32 0.0078125, %v1922_v46 }
 0x35a   : > { %v2038_v37 = vadd.f32 %v3779_v31, %v2016_v1 }
 0x35b   : > { %v1964_v51 = vadd.f32 1e-12, %v1948_v62 }
 0x35c   : > { %2054 = vst [vmem:[%s3787_s28 + $0x18] sm:$0xff] %v2038_v37 }
 0x35d   : > { %2556 = vrsqrt.f32 %v1964_v51 }
 0x364   : > { %v1924_v7 = vpop.xlane.xlu0 %1923 }
 0x365   : > { %v1949_v20 = vmul.f32 0.0078125, %v1924_v7 }
 0x366   : > { %v2555_v17 = vpop.eup %2554 }
 0x367   : > { %v1995_v56 = vmul.f32 %v2555_v17, %v3711_v12  ;;  %v1965_v0 = vadd.f32 1e-12, %v1949_v20 }
 0x368   : > { %v1926_v47 = vpop.xlane.xlu1 %1925 }
 0x369   : > { %v2017_v42 = vmul.f32 %v3773_v41, %v1995_v56  ;;  %2558 = vrsqrt.f32 %v1965_v0  ;;  %v1950_v48 = vmul.f32 0.0078125, %v1926_v47 }
 0x36a   : > { %v2557_v30 = vpop.eup %2556 }
 0x36b   : > { %v2039_v32 = vadd.f32 %v3779_v31, %v2017_v42  ;;  %v1996_v35 = vmul.f32 %v2557_v30, %v3716_v49  ;;  %v1966_v54 = vadd.f32 1e-12, %v1950_v48 }
 0x36c   : > { %v1928_v38 = vpop.xlane.xlu0 %1927 }
 0x36d   : > { %2055 = vst [vmem:[%s3787_s28 + $0x20] sm:$0xff] %v2039_v32  ;;  %v2018_v63 = vmul.f32 %v3773_v41, %v1996_v35  ;;  %2560 = vrsqrt.f32 %v1966_v54  ;;  %v1951_v33 = vmul.f32 0.0078125, %v1928_v38 }
 0x36f   : > { %v2040_v12 = vadd.f32 %v3779_v31, %v2018_v63  ;;  %v1967_v9 = vadd.f32 1e-12, %v1951_v33 }
 0x370   : > { %v1930_v58 = vpop.xlane.xlu1 %1929 }
 0x371   : > { %2056 = vst [vmem:[%s3787_s28 + $0x28] sm:$0xff] %v2040_v12  ;;  %2562 = vrsqrt.f32 %v1967_v9  ;;  %v1952_v3 = vmul.f32 0.0078125, %v1930_v58 }
 0x373   : > { %v1968_v29 = vadd.f32 1e-12, %v1952_v3 }
 0x374   : > { %v1932_v57 = vpop.xlane.xlu0 %1931 }
 0x375   : > { %2564 = vrsqrt.f32 %v1968_v29  ;;  %v1953_v19 = vmul.f32 0.0078125, %v1932_v57 }
 0x376   : > { %v2559_v49 = vpop.eup %2558 }
 0x377   : > { %v1997_v61 = vmul.f32 %v2559_v49, %v3721_v18  ;;  %v1969_v36 = vadd.f32 1e-12, %v1953_v19 }
 0x378   : > { %v1934_v10 = vpop.xlane.xlu1 %1933 }
 0x379   : > { %v2019_v43 = vmul.f32 %v3773_v41, %v1997_v61  ;;  %2566 = vrsqrt.f32 %v1969_v36  ;;  %v1954_v5 = vmul.f32 0.0078125, %v1934_v10 }
 0x37a   : > { %v2561_v6 = vpop.eup %2560 }
 0x37b   : > { %v2041_v25 = vadd.f32 %v3779_v31, %v2019_v43  ;;  %v1998_v16 = vmul.f32 %v2561_v6, %v3726_v22  ;;  %v1970_v26 = vadd.f32 1e-12, %v1954_v5 }
 0x37c   : > { %v1936_v21 = vpop.xlane.xlu0 %1935 }
 0x37d   : > { %2057 = vst [vmem:[%s3787_s28 + $0x30] sm:$0xff] %v2041_v25  ;;  %v2020_v52 = vmul.f32 %v3773_v41, %v1998_v16  ;;  %2568 = vrsqrt.f32 %v1970_v26  ;;  %v1955_v18 = vmul.f32 0.0078125, %v1936_v21 }
 0x37e   : > { %v2563_v24 = vpop.eup %2562 }
 0x37f   : > { %v2042_v44 = vadd.f32 %v3779_v31, %v2020_v52  ;;  %v1999_v4 = vmul.f32 %v2563_v24, %v3731_v27  ;;  %v1971_v14 = vadd.f32 1e-12, %v1955_v18 }
 0x380   : > { %v1938_v15 = vpop.xlane.xlu1 %1937 }
 0x381   : > { %2058 = vst [vmem:[%s3787_s28 + $0x38] sm:$0xff] %v2042_v44  ;;  %v2021_v28 = vmul.f32 %v3773_v41, %v1999_v4  ;;  %2570 = vrsqrt.f32 %v1971_v14  ;;  %v1956_v22 = vmul.f32 0.0078125, %v1938_v15 }
 0x382   : > { %v2565_v53 = vpop.eup %2564 }
 0x383   : > { %v2043_v39 = vadd.f32 %v3779_v31, %v2021_v28  ;;  %v2000_v45 = vmul.f32 %v2565_v53, %v3736_v23  ;;  %v1972_v2 = vadd.f32 1e-12, %v1956_v22 }
 0x384   : > { %v1940_v13 = vpop.xlane.xlu0 %1939 }
 0x385   : > { %2059 = vst [vmem:[%s3787_s28 + $0x40] sm:$0xff] %v2043_v39  ;;  %v2022_v11 = vmul.f32 %v3773_v41, %v2000_v45  ;;  %2572 = vrsqrt.f32 %v1972_v2  ;;  %v1957_v27 = vmul.f32 0.0078125, %v1940_v13 }
 0x386   : > { %v2567_v40 = vpop.eup %2566 }
 0x387   : > { %v2044_v1 = vadd.f32 %v3779_v31, %v2022_v11  ;;  %v2001_v46 = vmul.f32 %v2567_v40, %v3741_v34  ;;  %v1973_v62 = vadd.f32 1e-12, %v1957_v27 }
 0x388   : > { %v1942_v37 = vpop.xlane.xlu1 %1941 }
 0x389   : > { %2060 = vst [vmem:[%s3787_s28 + $0x48] sm:$0xff] %v2044_v1  ;;  %v2023_v51 = vmul.f32 %v3773_v41, %v2001_v46  ;;  %2574 = vrsqrt.f32 %v1973_v62  ;;  %v1958_v23 = vmul.f32 0.0078125, %v1942_v37 }
 0x38a   : > { %v2569_v7 = vpop.eup %2568 }
 0x38b   : > { %v2045_v20 = vadd.f32 %v3779_v31, %v2023_v51  ;;  %v2002_v17 = vmul.f32 %v2569_v7, %v3746_v59  ;;  %v1974_v56 = vadd.f32 1e-12, %v1958_v23 }
 0x38d   : > { %2061 = vst [vmem:[%s3787_s28 + $0x50] sm:$0xff] %v2045_v20  ;;  %v2024_v0 = vmul.f32 %v3773_v41, %v2002_v17  ;;  %2576 = vrsqrt.f32 %v1974_v56 }
 0x38e   : > { %v2571_v34 = vpop.eup %2570 }
 0x38f   : > { %v2046_v47 = vadd.f32 %v3779_v31, %v2024_v0  ;;  %v2003_v42 = vmul.f32 %v2571_v34, %v3751_v60 }
 0x391   : > { %2062 = vst [vmem:[%s3787_s28 + $0x58] sm:$0xff] %v2046_v47  ;;  %v2025_v48 = vmul.f32 %v3773_v41, %v2003_v42 }
 0x392   : > { %v2573_v30 = vpop.eup %2572 }
 0x393   : > { %v2047_v32 = vadd.f32 %v3779_v31, %v2025_v48  ;;  %v2004_v59 = vmul.f32 %v2573_v30, %v3756_v8 }
 0x395   : > { %2063 = vst [vmem:[%s3787_s28 + $0x60] sm:$0xff] %v2047_v32  ;;  %v2026_v35 = vmul.f32 %v3773_v41, %v2004_v59 }
 0x396   : > { %v2575_v54 = vpop.eup %2574 }
 0x397   : > { %v2048_v38 = vadd.f32 %v3779_v31, %v2026_v35  ;;  %v2005_v63 = vmul.f32 %v2575_v54, %v3761_v55 }
 0x399   : > { %2064 = vst [vmem:[%s3787_s28 + $0x68] sm:$0xff] %v2048_v38  ;;  %v2027_v60 = vmul.f32 %v3773_v41, %v2005_v63 }
 0x39a   : > { %v2577_v33 = vpop.eup %2576 }
 0x39b   : > { %v2049_v12 = vadd.f32 %v3779_v31, %v2027_v60  ;;  %v2006_v9 = vmul.f32 %v2577_v33, %v3766_v50 }
 0x39d   : > { %2065 = vst [vmem:[%s3787_s28 + $0x70] sm:$0xff] %v2049_v12  ;;  %v2028_v58 = vmul.f32 %v3773_v41, %v2006_v9 }
 0x39f   : > { %v2050_v8 = vadd.f32 %v3779_v31, %v2028_v58 }
 0x3a1   : > { %2066 = vst [vmem:[%s3787_s28 + $0x78] sm:$0xff] %v2050_v8 }
 0x3a2 PF: > { %s17_s24 = sadd.s32 1, %s2600_s24  }
 0x3a3   : > { %p14_p4 = scmp.ge.s32.totalorder %s17_s24, 4  }
 0x3a5   :  { %16 = sbr.rel (!%p14_p4) target bundleno = 1 (0x1), region = 78 }

</bundles_post_ra>
